<compile_context>
chip_gen: v7x
topology: tpu7x:2x2x1
jax: 0.10.0
libtpu: 0.0.40
codegen_flags: <defaults>
</compile_context>

<pallas_src>
import jax
import jax.numpy as jnp
from jax import lax
from jax.experimental import pallas as pl
from jax.experimental.pallas import tpu as pltpu

UNVOICED_SYMBOL = 0.0
_NEG = -1.0e30  # max-identity sentinel (f32-safe)


def _shift_right(x, d, fill):
    """x shifted right by d along the last axis, filled with `fill` (no wrap)."""
    b, n = x.shape
    pad = jnp.full((b, d), fill, x.dtype)
    return jnp.concatenate([pad, x[:, : n - d]], axis=1)


def _tile_excite(pi, noise, phi_c, tri):
    """Excitation math for one (B, L) tile of sample-rate pitch.

    pi    : (B, L) interpolated pitch, 0 on unvoiced samples.
    noise : (B, L) gaussian noise for the unvoiced region.
    phi_c : (B, 1) phase carried in from the previous tile (0 on the first).
    tri   : (L, L) upper-triangular ones (tri[j, t] = 1 iff j <= t).
    Returns (e, phi_out) with phi_out = phase at the tile's last sample.
    Pure jnp — shared by the Pallas kernel and the plain-JAX reference.
    """
    L = pi.shape[-1]
    voiced = pi > 0.0
    q = jnp.where(voiced, 1.0 / jnp.where(voiced, pi, 1.0), 0.0)

    # Inclusive in-tile cumsum of q as a matmul on the (otherwise idle) MXU.
    # TODO(synk): torch accumulates this cumsum in float64; here it is f32 with
    # HIGHEST-precision matmul plus per-tile phase rebasing to bound drift.
    l = jnp.dot(q, tri, preferred_element_type=jnp.float32,
                precision=lax.Precision.HIGHEST)

    # Running max of the local cumsum over unvoiced samples (phase-reset bias),
    # log-depth scan at tile width only (carry is folded into phi_c).
    m = jnp.where(voiced, _NEG, l)
    d = 1
    while d < L:
        m = jnp.maximum(m, _shift_right(m, d, _NEG))
        d *= 2

    # phase = cumsum - max(carried bias, in-tile unvoiced max), rebased so the
    # cross-tile carry is the bounded phase instead of the raw cumsum.
    phase = jnp.minimum(phi_c + l, l - m)

    # Unipolar pulse positions: ceil(phase) increments by >= 1.
    r = jnp.ceil(phase)
    r_prev = jnp.concatenate([jnp.ceil(phi_c), r[:, : L - 1]], axis=1)
    pulse = (r - r_prev) >= 1.0

    e = jnp.where(voiced, jnp.where(pulse, jnp.sqrt(pi), 0.0), noise)
    return e, phase[:, L - 1 : L]


def _excite_kernel(pi_ref, noise_ref, tri_ref, out_ref, phi_ref):
    """Grid = (batch_blocks [parallel], time_tiles [arbitrary, carries phase])."""

    @pl.when(pl.program_id(1) == 0)
    def _():
        phi_ref[...] = jnp.zeros_like(phi_ref)

    e, phi_new = _tile_excite(pi_ref[...], noise_ref[...], phi_ref[...],
                              tri_ref[...])
    out_ref[...] = e
    phi_ref[...] = phi_new


def _sample_rate_pitch(p, frame_period):
    """Frame-rate glue: transition fix + linear interpolation + voiced mask."""
    P = int(frame_period)
    B, N = p.shape
    base_mask = jnp.clip(p, 0.0, 1.0)
    voiced_f = (base_mask != UNVOICED_SYMBOL).astype(jnp.float32)
    # voiced -> unvoiced frame transition: carry previous frame's pitch over.
    padded = jnp.pad(base_mask, ((0, 0), (1, 0)))
    trans = jnp.diff(padded, axis=-1) == -1.0
    p_fix = jnp.where(trans, jnp.roll(p, 1, axis=-1), p)
    p_nxt = jnp.concatenate([p_fix[:, 1:], p_fix[:, -1:]], axis=-1)
    w = (jnp.arange(P, dtype=jnp.float32) / P)[None, None, :]
    pi = p_fix[:, :, None] * (1.0 - w) + p_nxt[:, :, None] * w
    pi = pi * voiced_f[:, :, None]
    return pi.reshape(B, N * P)


def _build_inputs(p, frame_period, seed, time_tile):
    p = jnp.asarray(p, jnp.float32)
    lead, N = p.shape[:-1], p.shape[-1]
    pi = _sample_rate_pitch(p.reshape(-1, N), frame_period)
    B, T = pi.shape
    T_pad = pl.cdiv(T, time_tile) * time_tile
    pi = jnp.pad(pi, ((0, 0), (0, T_pad - T)))          # padding = unvoiced
    noise = jax.random.normal(jax.random.PRNGKey(seed), (B, T_pad), jnp.float32)
    tri = jnp.triu(jnp.ones((time_tile, time_tile), jnp.float32))
    return pi, noise, tri, lead, T


def excitation_generation(p, frame_period, *, seed=0, time_tile=512):
    """p: (..., N) pitch in samples (0 = unvoiced) -> (..., N*frame_period)."""
    assert time_tile % 128 == 0
    pi, noise, tri, lead, T = _build_inputs(p, frame_period, seed, time_tile)
    B, T_pad = pi.shape
    b_tile = 8 if (B > 8 and B % 8 == 0) else B          # engage 2nd TC on v7x
    grid = (B // b_tile, T_pad // time_tile)

    data_spec = pl.BlockSpec((b_tile, time_tile), lambda b, t: (b, t))
    tri_spec = pl.BlockSpec((time_tile, time_tile), lambda b, t: (0, 0))

    out = pl.pallas_call(
        _excite_kernel,
        out_shape=jax.ShapeDtypeStruct((B, T_pad), jnp.float32),
        grid_spec=pltpu.PrefetchScalarGridSpec(
            num_scalar_prefetch=0,
            grid=grid,
            in_specs=[data_spec, data_spec, tri_spec],
            out_specs=data_spec,
            scratch_shapes=[pltpu.VMEM((b_tile, 1), jnp.float32)],
        ),
        compiler_params=pltpu.CompilerParams(
            dimension_semantics=("parallel", "arbitrary"),
            vmem_limit_bytes=40 * 1024 * 1024,
        ),
    )(pi, noise, tri)
    return out[:, :T].reshape(lead + (T,))


def _reference(p, frame_period, seed, time_tile):
    """Plain-JAX sequential-over-tiles mirror (same math, no Pallas)."""
    pi, noise, tri, lead, T = _build_inputs(p, frame_period, seed, time_tile)
    B, T_pad = pi.shape
    phi = jnp.zeros((B, 1), jnp.float32)
    chunks = []
    for t0 in range(0, T_pad, time_tile):
        e, phi = _tile_excite(pi[:, t0:t0 + time_tile],
                              noise[:, t0:t0 + time_tile], phi, tri)
        chunks.append(e)
    return jnp.concatenate(chunks, axis=1)[:, :T].reshape(lead + (T,))


if __name__ == "__main__":
    # 1) docstring example from the PyTorch spec: excite([2, 3], frame_period=3)
    e0 = jax.block_until_ready(excitation_generation(jnp.array([2.0, 3.0]), 3))
    expected = jnp.array([2.0 ** 0.5, 0.0, (8.0 / 3.0) ** 0.5, 0.0, 0.0, 3.0 ** 0.5])
    assert e0.shape == (6,)
    assert bool(jnp.allclose(e0, expected, atol=1e-3))

    # 2) batched case spanning multiple time tiles (exercises carries + padding)
    B, N, P, SEED = 8, 200, 4, 42            # T = 800 -> padded to 1024 (2 tiles)
    key = jax.random.PRNGKey(0)
    k1, k2 = jax.random.split(key)
    pitch = jax.random.uniform(k1, (B, N), minval=5.3, maxval=12.7)
    vflag = jax.random.bernoulli(k2, 0.7, (B, N))
    p = jnp.where(vflag, pitch, 0.0).astype(jnp.float32)

    e = jax.block_until_ready(excitation_generation(p, P, seed=SEED))
    ref = _reference(p, P, SEED, 512)

    assert e.shape == (B, N * P)
    assert bool(jnp.all(jnp.isfinite(e)))
    # unvoiced samples must carry the gaussian noise through untouched
    pi, noise, _, _, T = _build_inputs(p, P, SEED, 512)
    unvoiced = pi[:, :T] <= 0.0
    assert bool(jnp.all(jnp.where(unvoiced, e, 0.0)
                        == jnp.where(unvoiced, noise[:, :T], 0.0)))
    # voiced/pulse structure must agree with the plain-JAX tile reference
    # (tolerate rare ceil-boundary flips from last-ulp MXU/XLA differences)
    mismatch = float(jnp.mean((jnp.abs(e - ref) > 1e-3).astype(jnp.float32)))
    assert mismatch < 0.01
    print("KERNEL_OK")
</pallas_src>

<mosaic_0001>
module attributes {stable_mosaic.version = 11 : i64} {
  func.func @_excite_kernel(%arg0: i32, %arg1: i32, %arg2: memref<1x512xf32, #tpu.memory_space<vmem>>, %arg3: memref<1x512xf32, #tpu.memory_space<vmem>>, %arg4: memref<512x512xf32, #tpu.memory_space<vmem>>, %arg5: memref<1x512xf32, #tpu.memory_space<vmem>>, %arg6: memref<1x1xf32, #tpu.memory_space<vmem>>) attributes {dimension_semantics = [#tpu.dimension_semantics<parallel>, #tpu.dimension_semantics<arbitrary>], iteration_bounds = array<i64: 1, 1>, scalar_prefetch = 0 : i64, scratch_operands = 1 : i64, tpu.core_type = #tpu.core_type<tc>, window_params = [{transform_indices = @transform_0, window_bounds = array<i64: 1, 512>}, {transform_indices = @transform_1, window_bounds = array<i64: 1, 512>}, {pipeline_mode = #tpu.pipeline_mode<synchronous>, transform_indices = @transform_2, window_bounds = array<i64: 512, 512>}, {transform_indices = @transform_3, window_bounds = array<i64: 1, 512>}]} {
    %c0_i32 = arith.constant 0 : i32
    %0 = arith.cmpi eq, %arg1, %c0_i32 : i32
    %1 = arith.extui %0 : i1 to i32
    %c0_i32_0 = arith.constant 0 : i32
    %2 = arith.cmpi ne, %1, %c0_i32_0 : i32
    scf.if %2 {
      %cst_28 = arith.constant 0.000000e+00 : f32
      %72 = vector.broadcast %cst_28 : f32 to vector<1x1xf32>
      %c0_29 = arith.constant 0 : index
      %c0_30 = arith.constant 0 : index
      %73 = vector.load %arg6[%c0_29, %c0_30] : memref<1x1xf32, #tpu.memory_space<vmem>>, vector<1x1xf32>
      tpu.vector_store %arg6[%c0_29, %c0_30], %72 {strides = array<i32>} : memref<1x1xf32, #tpu.memory_space<vmem>>, vector<1x1xf32>,
    } else {
    }
    %c0 = arith.constant 0 : index
    %c0_1 = arith.constant 0 : index
    %3 = vector.load %arg2[%c0, %c0_1] : memref<1x512xf32, #tpu.memory_space<vmem>>, vector<1x512xf32>
    %c0_2 = arith.constant 0 : index
    %c0_3 = arith.constant 0 : index
    %4 = vector.load %arg3[%c0_2, %c0_3] : memref<1x512xf32, #tpu.memory_space<vmem>>, vector<1x512xf32>
    %c0_4 = arith.constant 0 : index
    %c0_5 = arith.constant 0 : index
    %5 = vector.load %arg6[%c0_4, %c0_5] : memref<1x1xf32, #tpu.memory_space<vmem>>, vector<1x1xf32>
    %c0_6 = arith.constant 0 : index
    %c0_7 = arith.constant 0 : index
    %6 = vector.load %arg4[%c0_6, %c0_7] : memref<512x512xf32, #tpu.memory_space<vmem>>, vector<512x512xf32>
    %cst = arith.constant 0.000000e+00 : f32
    %7 = vector.broadcast %cst : f32 to vector<1x512xf32>
    %8 = arith.cmpf ogt, %3, %7 : vector<1x512xf32>
    %cst_8 = arith.constant 1.000000e+00 : f32
    %9 = vector.broadcast %cst_8 : f32 to vector<1x512xf32>
    %10 = arith.select %8, %3, %9 : vector<1x512xi1>, vector<1x512xf32>
    %cst_9 = arith.constant 1.000000e+00 : f32
    %11 = vector.broadcast %cst_9 : f32 to vector<1x512xf32>
    %12 = arith.divf %11, %10 : vector<1x512xf32>
    %cst_10 = arith.constant 0.000000e+00 : f32
    %13 = vector.broadcast %cst_10 : f32 to vector<1x512xf32>
    %14 = arith.select %8, %12, %13 : vector<1x512xi1>, vector<1x512xf32>
    %cst_11 = arith.constant dense<0.000000e+00> : vector<1x512xf32>
    %15 = tpu.matmul %14, %6, %cst_11 {dimension_numbers = #tpu.dot_dimension_numbers<[1], [0], [0], [1], [0, 0, 1, 1], [], []>, precision = #tpu.contract_precision<fp32>} : vector<1x512xf32>, vector<512x512xf32>, vector<1x512xf32> -> vector<1x512xf32>
    %cst_12 = arith.constant -1.000000e+30 : f32
    %16 = vector.broadcast %cst_12 : f32 to vector<1x512xf32>
    %17 = arith.select %8, %16, %15 : vector<1x512xi1>, vector<1x512xf32>
    %cst_13 = arith.constant -1.000000e+30 : f32
    %18 = vector.broadcast %cst_13 : f32 to vector<1x1xf32>
    %19 = vector.extract_strided_slice %17 {offsets = [0, 0], sizes = [1, 511], strides = [1, 1]} : vector<1x512xf32> to vector<1x511xf32>
    %20 = tpu.concatenate %18, %19 in 1 : vector<1x1xf32>, vector<1x511xf32> -> vector<1x512xf32>
    %21 = arith.maximumf %17, %20 : vector<1x512xf32>
    %cst_14 = arith.constant -1.000000e+30 : f32
    %22 = vector.broadcast %cst_14 : f32 to vector<1x2xf32>
    %23 = vector.extract_strided_slice %21 {offsets = [0, 0], sizes = [1, 510], strides = [1, 1]} : vector<1x512xf32> to vector<1x510xf32>
    %24 = tpu.concatenate %22, %23 in 1 : vector<1x2xf32>, vector<1x510xf32> -> vector<1x512xf32>
    %25 = arith.maximumf %21, %24 : vector<1x512xf32>
    %cst_15 = arith.constant -1.000000e+30 : f32
    %26 = vector.broadcast %cst_15 : f32 to vector<1x4xf32>
    %27 = vector.extract_strided_slice %25 {offsets = [0, 0], sizes = [1, 508], strides = [1, 1]} : vector<1x512xf32> to vector<1x508xf32>
    %28 = tpu.concatenate %26, %27 in 1 : vector<1x4xf32>, vector<1x508xf32> -> vector<1x512xf32>
    %29 = arith.maximumf %25, %28 : vector<1x512xf32>
    %cst_16 = arith.constant -1.000000e+30 : f32
    %30 = vector.broadcast %cst_16 : f32 to vector<1x8xf32>
    %31 = vector.extract_strided_slice %29 {offsets = [0, 0], sizes = [1, 504], strides = [1, 1]} : vector<1x512xf32> to vector<1x504xf32>
    %32 = tpu.concatenate %30, %31 in 1 : vector<1x8xf32>, vector<1x504xf32> -> vector<1x512xf32>
    %33 = arith.maximumf %29, %32 : vector<1x512xf32>
    %cst_17 = arith.constant -1.000000e+30 : f32
    %34 = vector.broadcast %cst_17 : f32 to vector<1x16xf32>
    %35 = vector.extract_strided_slice %33 {offsets = [0, 0], sizes = [1, 496], strides = [1, 1]} : vector<1x512xf32> to vector<1x496xf32>
    %36 = tpu.concatenate %34, %35 in 1 : vector<1x16xf32>, vector<1x496xf32> -> vector<1x512xf32>
    %37 = arith.maximumf %33, %36 : vector<1x512xf32>
    %cst_18 = arith.constant -1.000000e+30 : f32
    %38 = vector.broadcast %cst_18 : f32 to vector<1x32xf32>
    %39 = vector.extract_strided_slice %37 {offsets = [0, 0], sizes = [1, 480], strides = [1, 1]} : vector<1x512xf32> to vector<1x480xf32>
    %40 = tpu.concatenate %38, %39 in 1 : vector<1x32xf32>, vector<1x480xf32> -> vector<1x512xf32>
    %41 = arith.maximumf %37, %40 : vector<1x512xf32>
    %cst_19 = arith.constant -1.000000e+30 : f32
    %42 = vector.broadcast %cst_19 : f32 to vector<1x64xf32>
    %43 = vector.extract_strided_slice %41 {offsets = [0, 0], sizes = [1, 448], strides = [1, 1]} : vector<1x512xf32> to vector<1x448xf32>
    %44 = tpu.concatenate %42, %43 in 1 : vector<1x64xf32>, vector<1x448xf32> -> vector<1x512xf32>
    %45 = arith.maximumf %41, %44 : vector<1x512xf32>
    %cst_20 = arith.constant -1.000000e+30 : f32
    %46 = vector.broadcast %cst_20 : f32 to vector<1x128xf32>
    %47 = vector.extract_strided_slice %45 {offsets = [0, 0], sizes = [1, 384], strides = [1, 1]} : vector<1x512xf32> to vector<1x384xf32>
    %48 = tpu.concatenate %46, %47 in 1 : vector<1x128xf32>, vector<1x384xf32> -> vector<1x512xf32>
    %49 = arith.maximumf %45, %48 : vector<1x512xf32>
    %cst_21 = arith.constant -1.000000e+30 : f32
    %50 = vector.broadcast %cst_21 : f32 to vector<1x256xf32>
    %51 = vector.extract_strided_slice %49 {offsets = [0, 0], sizes = [1, 256], strides = [1, 1]} : vector<1x512xf32> to vector<1x256xf32>
    %52 = tpu.concatenate %50, %51 in 1 : vector<1x256xf32>, vector<1x256xf32> -> vector<1x512xf32>
    %53 = arith.maximumf %49, %52 : vector<1x512xf32>
    %54 = vector.broadcast %5 : vector<1x1xf32> to vector<1x512xf32>
    %55 = arith.addf %54, %15 : vector<1x512xf32>
    %56 = arith.subf %15, %53 : vector<1x512xf32>
    %57 = arith.minimumf %55, %56 : vector<1x512xf32>
    %58 = math.ceil %57 : vector<1x512xf32>
    %59 = math.ceil %5 : vector<1x1xf32>
    %60 = vector.extract_strided_slice %58 {offsets = [0, 0], sizes = [1, 511], strides = [1, 1]} : vector<1x512xf32> to vector<1x511xf32>
    %61 = tpu.concatenate %59, %60 in 1 : vector<1x1xf32>, vector<1x511xf32> -> vector<1x512xf32>
    %62 = arith.subf %58, %61 : vector<1x512xf32>
    %cst_22 = arith.constant 1.000000e+00 : f32
    %63 = vector.broadcast %cst_22 : f32 to vector<1x512xf32>
    %64 = arith.cmpf oge, %62, %63 : vector<1x512xf32>
    %65 = math.sqrt %3 : vector<1x512xf32>
    %cst_23 = arith.constant 0.000000e+00 : f32
    %66 = vector.broadcast %cst_23 : f32 to vector<1x512xf32>
    %67 = arith.select %64, %65, %66 : vector<1x512xi1>, vector<1x512xf32>
    %68 = arith.select %8, %67, %4 : vector<1x512xi1>, vector<1x512xf32>
    %69 = vector.extract_strided_slice %57 {offsets = [0, 511], sizes = [1, 1], strides = [1, 1]} : vector<1x512xf32> to vector<1x1xf32>
    %c0_24 = arith.constant 0 : index
    %c0_25 = arith.constant 0 : index
    %70 = vector.load %arg5[%c0_24, %c0_25] : memref<1x512xf32, #tpu.memory_space<vmem>>, vector<1x512xf32>
    tpu.vector_store %arg5[%c0_24, %c0_25], %68 {strides = array<i32>} : memref<1x512xf32, #tpu.memory_space<vmem>>, vector<1x512xf32>,
    %c0_26 = arith.constant 0 : index
    %c0_27 = arith.constant 0 : index
    %71 = vector.load %arg6[%c0_26, %c0_27] : memref<1x1xf32, #tpu.memory_space<vmem>>, vector<1x1xf32>
    tpu.vector_store %arg6[%c0_26, %c0_27], %69 {strides = array<i32>} : memref<1x1xf32, #tpu.memory_space<vmem>>, vector<1x1xf32>,
    return
  }
  func.func @transform_0(%arg0: i32, %arg1: i32) -> (i32, i32) {
    %c0_i32 = arith.constant 0 : i32
    return %arg0, %arg1 : i32, i32
  }
  func.func @transform_1(%arg0: i32, %arg1: i32) -> (i32, i32) {
    %c0_i32 = arith.constant 0 : i32
    return %arg0, %arg1 : i32, i32
  }
  func.func @transform_2(%arg0: i32, %arg1: i32) -> (i32, i32) {
    %c0_i32 = arith.constant 0 : i32
    %c0_i32_0 = arith.constant 0 : i32
    %c0_i32_1 = arith.constant 0 : i32
    return %c0_i32, %c0_i32_0 : i32, i32
  }
  func.func @transform_3(%arg0: i32, %arg1: i32) -> (i32, i32) {
    %c0_i32 = arith.constant 0 : i32
    return %arg0, %arg1 : i32, i32
  }
}

</mosaic_0001>

<bundles_post_ra>
// kernel: tpu_custom_call.1
= control target key start
LH: loop header
LB: loop body
LE: loop exit
PB: predicated region body
PF: predicated region fallthrough
CT: control target
= control target key end

     0   :  { %8 = vsyncpa [#allocation4], 0  ;;  %s11642_s0 = inlined_call_operand.hbm [shape: f32[1,512], index: 0, kind: input, shape index: {}]   ;;  %s11643_s1 = inlined_call_operand.hbm [shape: f32[1,512], index: 1, kind: input, shape index: {}]   ;;  %s11644_s2 = inlined_call_operand.hbm [shape: f32[512,512], index: 2, kind: input, shape index: {}]   ;;  %s11645_s3 = inlined_call_operand.hbm [shape: f32[1,512], index: 3, kind: output, shape index: {}]  }
   0x1   :  { %9 = vsyncpa [#allocation7], 0 }
   0x2   :  { %10 = vsyncpa [#allocation5], 0  ;;  %s7850_s12 = smov [#allocation6]   ;;  %s7851_s14 = smov [#allocation3]  }
   0x3   :  { %s27_s13 = sshll.u32 %s7850_s12, 4  ;;  %s17_s15 = sshll.u32 %s7851_s14, 4  ;;  %s28_s13 = int_to_ptr.vmem [resolvable:$true] %s27_s13  ;;  %s18_s15 = int_to_ptr.vmem [resolvable:$true] %s17_s15 }
   0x4   :  { %s7756_s18 = scalar_lea.hbm %s11643_s1, 64 }
   0x5   :  { %p7757_p0 = scmp.ne.s32.totalorder %s11643_s1, %s7756_s18  ;;  %p7760_p1 = scmp.lt.u32.totalorder %s7756_s18, %s11643_s1 }
   0x7   :  { %p7762_p2 = pnand %p7760_p1, %p7757_p0 }
   0x9   :  { %7765 = shalt.err (!%p7762_p2)
}
   0xa   :  { %s7766_s23 = scalar_lea.vmem %s28_s13, 64  ;;  %p7771_p4 = scmp.lt.s32.totalorder %s28_s13, %s28_s13 }
   0xb   :  { %p7767_p3 = scmp.ne.s32.totalorder %s28_s13, %s7766_s23  ;;  %p7772_p5 = scmp.lt.s32.totalorder %s7766_s23, %s7766_s23 }
   0xd   :  { %p7773_p6 = por %p7772_p5, %p7771_p4 }
   0xf   :  { %p7774_p7 = pnand %p7773_p6, %p7767_p3 }
  0x11   :  { %7777 = shalt.err (!%p7774_p7)
}
  0x12   :  { %30 = dma.hbm_to_vmem [thread:$0]  %s11643_s1, 64, %s28_s13, [#allocation7]  }
  0x13   :  { %s7778_s28 = scalar_lea.hbm %s11642_s0, 64 }
  0x14   :  { %p7779_p8 = scmp.ne.s32.totalorder %s11642_s0, %s7778_s28  ;;  %p7782_p9 = scmp.lt.u32.totalorder %s7778_s28, %s11642_s0 }
  0x16   :  { %p7784_p10 = pnand %p7782_p9, %p7779_p8 }
  0x18   :  { %7787 = shalt.err (!%p7784_p10)
}
  0x19   :  { %s7788_s6 = scalar_lea.vmem %s18_s15, 64  ;;  %p7793_p12 = scmp.lt.s32.totalorder %s18_s15, %s18_s15 }
  0x1a   :  { %p7789_p11 = scmp.ne.s32.totalorder %s18_s15, %s7788_s6  ;;  %p7794_p13 = scmp.lt.s32.totalorder %s7788_s6, %s7788_s6 }
  0x1c   :  { %p7795_p0 = por %p7794_p13, %p7793_p12 }
  0x1e   :  { %p7796_p1 = pnand %p7795_p0, %p7789_p11 }
  0x20   :  { %7799 = shalt.err (!%p7796_p1)
}
  0x21   :  { %20 = dma.hbm_to_vmem [thread:$0]  %s11642_s0, 64, %s18_s15, [#allocation4]  }
  0x22   :  { %s7852_s8 = smov [#allocation8]   ;;  %s7800_s12 = scalar_lea.hbm %s11644_s2, 32768 }
  0x23   :  { %s36_s9 = sshll.u32 %s7852_s8, 4  ;;  %p7801_p2 = scmp.ne.s32.totalorder %s11644_s2, %s7800_s12  ;;  %s37_s9 = int_to_ptr.vmem [resolvable:$true] %s36_s9 }
  0x24   :  { %p7804_p3 = scmp.lt.u32.totalorder %s7800_s12, %s11644_s2 }
  0x26   :  { %p7806_p4 = pnand %p7804_p3, %p7801_p2 }
  0x28   :  { %7809 = shalt.err (!%p7806_p4)
}
  0x29   :  { %s7810_s18 = scalar_lea.vmem %s37_s9, 32768  ;;  %p7815_p6 = scmp.lt.s32.totalorder %s37_s9, %s37_s9 }
  0x2a   :  { %p7811_p5 = scmp.ne.s32.totalorder %s37_s9, %s7810_s18  ;;  %p7816_p7 = scmp.lt.s32.totalorder %s7810_s18, %s7810_s18 }
  0x2c   :  { %p7817_p8 = por %p7816_p7, %p7815_p6 }
  0x2e   :  { %p7818_p9 = pnand %p7817_p8, %p7811_p5 }
  0x30   :  { %7821 = shalt.err (!%p7818_p9)
}
  0x31   :  { %s7853_s0 = smov 512   ;;  %s7854_s15 = smov 32  }
  0x32   :  { %42 = dma.hbm_to_vmem [thread:$0]  %s11644_s2, 32768, %s37_s9, [#allocation7], %s7853_s0, %s7853_s0, %s7854_s15  }
  0x33   :  { %7844 = dma.done.wait [#allocation4], 64  }
  0x34   :  { %7845 = vsyncadd [#allocation4], 4294967232 }
  0x35   :  { %7846 = dma.done.wait [#allocation7], 32832  }
  0x36   :  { %7847 = vsyncadd [#allocation7], 4294934464  ;;  %v11646_v0 = vlaneseq  ;;  %v62_v2 = vld [vmem:[#allocation8 + $0x8] sm:$0xff]  ;;  %v64_v4 = vld [vmem:[#allocation8 + $0x18] sm:$0xff]  ;;  %s7856_s2 = smov 1   ;;  %vm5534_vm1 = vcmask 7168  }
  0x37   :  { %v66_v3 = vld [vmem:[#allocation8 + $0x28] sm:$0xff]  ;;  %v343_v7 = vand.u32 4294901760, %v62_v2  ;;  %v68_v9 = vld [vmem:[#allocation8 + $0x38] sm:$0xff]  ;;  %v2911_v10 = vand.u32 4294901760, %v64_v4  ;;  %v61_v11 = vld [vmem:[#allocation8] sm:$0xff]  ;;  %s7857_s21 = smov 2  }
  0x38   :  { %v7924_v1 = vshrl.u32 %v11646_v0, 7  ;;  %v347_v8 = vand.u32 4294901760, %v66_v3  ;;  %v65_v12 = vld [vmem:[#allocation8 + $0x20] sm:$0xff]  ;;  %v2915_v13 = vand.u32 4294901760, %v68_v9  ;;  %v345_v14 = vand.u32 4294901760, %v61_v11  ;;  %v63_v16 = vld [vmem:[#allocation8 + $0x10] sm:$0xff] }
  0x39   :  { %v349_v15 = vand.u32 4294901760, %v65_v12  ;;  %v67_v17 = vld [vmem:[#allocation8 + $0x30] sm:$0xff]  ;;  %v70_v18 = vld [vmem:[#allocation8 + $0x48] sm:$0xff]  ;;  %v7934_v20 = vsub.f32 %v62_v2, %v343_v7  ;;  %v7938_v22 = vsub.f32 %v64_v4, %v2911_v10  ;;  %v72_v24 = vld [vmem:[#allocation8 + $0x58] sm:$0xff]  ;;  %v2913_v32 = vand.u32 4294901760, %v63_v16  ;;  %s7858_s22 = smov 4  }
  0x3a   :  { %12533 = vst [vmem:[#allocation13_spill] sm:$0xff] %v7924_v1  ;;  %v7927_v5 = vsub.s32 1, %v7924_v1  ;;  %v7930_v6 = vsub.s32 0, %v7924_v1  ;;  %v7932_v19 = vpack.c.bf16 %v347_v8, %v343_v7  ;;  %v7936_v21 = vsub.f32 %v66_v3, %v347_v8  ;;  %v74_v23 = vld [vmem:[#allocation8 + $0x68] sm:$0xff]  ;;  %v76_v25 = vld [vmem:[#allocation8 + $0x78] sm:$0xff]  ;;  %v69_v30 = vld [vmem:[#allocation8 + $0x40] sm:$0xff] }
  0x3b   :  { %12537 = vst [vmem:[#allocation17_spill] sm:$0xff] %v7934_v20  ;;  %12539 = vst [vmem:[#allocation19_spill] sm:$0xff] %v7938_v22  ;;  %v7940_v26 = vpack.c.bf16 %v2915_v13, %v2911_v10  ;;  %v7942_v27 = vsub.f32 %v68_v9, %v2915_v13  ;;  %v7944_v28 = vpack.c.bf16 %v349_v15, %v345_v14  ;;  %v2917_v33 = vand.u32 4294901760, %v67_v17  ;;  %v73_v35 = vld [vmem:[#allocation8 + $0x60] sm:$0xff]  ;;  %v71_v40 = vld [vmem:[#allocation8 + $0x50] sm:$0xff]  ;;  %s7859_s23 = smov 8  }
  0x3c   :  { %12534 = vst [vmem:[#allocation14_spill] sm:$0xff] %v7927_v5  ;;  %12535 = vst [vmem:[#allocation15_spill] sm:$0xff] %v7930_v6  ;;  %v7946_v29 = vsub.f32 %v61_v11, %v345_v14  ;;  %6155 = vmatprep.subr.bf16.mxu0 %v7932_v19  ;;  %v7949_v31 = vsub.f32 %v65_v12, %v349_v15  ;;  %v351_v34 = vand.u32 4294901760, %v70_v18  ;;  %v355_v36 = vand.u32 4294901760, %v74_v23  ;;  %v75_v41 = vld [vmem:[#allocation8 + $0x70] sm:$0xff]  ;;  %v78_v46 = vld [vmem:[#allocation8 + $0x88] sm:$0xff] }
  0x3d   :  { %12536 = vst [vmem:[#allocation16_spill] sm:$0xff] %v7932_v19  ;;  %12538 = vst [vmem:[#allocation18_spill] sm:$0xff] %v7936_v21  ;;  %6923 = vmatprep.subr.bf16.mxu1 %v7940_v26  ;;  %6157 = vmatpush1.bf16.msra.mxu0 %v7944_v28  ;;  %v2919_v37 = vand.u32 4294901760, %v72_v24  ;;  %v2923_v38 = vand.u32 4294901760, %v76_v25  ;;  %v353_v39 = vand.u32 4294901760, %v69_v30  ;;  %v7953_v42 = vpack.c.bf16 %v2917_v33, %v2913_v32  ;;  %v82_v47 = vld [vmem:[#allocation8 + $0xa8] sm:$0xff] }
  0x3e   :  { %12540 = vst [vmem:[#allocation20_spill] sm:$0xff] %v7940_v26  ;;  %12541 = vst [vmem:[#allocation21_spill] sm:$0xff] %v7942_v27  ;;  %v7955_v43 = vsub.f32 %v63_v16, %v2913_v32  ;;  %v7957_v44 = vsub.f32 %v67_v17, %v2917_v33  ;;  %v7959_v45 = vsub.f32 %v70_v18, %v351_v34  ;;  %v80_v48 = vld [vmem:[#allocation8 + $0x98] sm:$0xff]  ;;  %v357_v55 = vand.u32 4294901760, %v73_v35  ;;  %v77_v62 = vld [vmem:[#allocation8 + $0x80] sm:$0xff]  ;;  %s7860_s24 = smov 16  }
  0x3f   :  { %12542 = vst [vmem:[#allocation22_spill] sm:$0xff] %v7944_v28  ;;  %12543 = vst [vmem:[#allocation23_spill] sm:$0xff] %v7946_v29  ;;  %v7961_v49 = vpack.c.bf16 %v355_v36, %v351_v34  ;;  %v7963_v50 = vsub.f32 %v74_v23, %v355_v36  ;;  %v7965_v51 = vpack.c.bf16 %v2923_v38, %v2919_v37  ;;  %v84_v53 = vld [vmem:[#allocation8 + $0xb8] sm:$0xff]  ;;  %6925 = vmatpush1.bf16.msra.mxu1 %v7953_v42  ;;  %v81_v63 = vld [vmem:[#allocation8 + $0xa0] sm:$0xff]  ;;  %vm5592_vm2 = vcmask 15360   ;;  %s7863_s25 = smov 64  }
  0x40   :  { %12544 = vst [vmem:[#allocation24_spill] sm:$0xff] %v7949_v31  ;;  %12545 = vst [vmem:[#allocation25_spill] sm:$0xff] %v7953_v42  ;;  %v7967_v52 = vsub.f32 %v72_v24, %v2919_v37  ;;  %v7970_v54 = vsub.f32 %v76_v25, %v2923_v38  ;;  %v7972_v56 = vsub.f32 %v69_v30, %v353_v39  ;;  %v2921_v57 = vand.u32 4294901760, %v71_v40  ;;  %v79_v8 = vld [vmem:[#allocation8 + $0x90] sm:$0xff]  ;;  %v86_v10 = vld [vmem:[#allocation8 + $0xc8] sm:$0xff]  ;;  %s7865_s26 = smov [#allocation9]  }
  0x41   :  { %12546 = vst [vmem:[#allocation26_spill] sm:$0xff] %v7955_v43  ;;  %12547 = vst [vmem:[#allocation27_spill] sm:$0xff] %v7957_v44  ;;  %6159 = vmatprep.subr.bf16.mxu0 %v7961_v49  ;;  %6927 = vmatprep.subr.bf16.mxu1 %v7965_v51  ;;  %v2925_v58 = vand.u32 4294901760, %v75_v41  ;;  %v359_v59 = vand.u32 4294901760, %v78_v46  ;;  %v363_v60 = vand.u32 4294901760, %v82_v47  ;;  %v2927_v61 = vand.u32 4294901760, %v80_v48 }
  0x42   :  { %12548 = vst [vmem:[#allocation28_spill] sm:$0xff] %v7959_v45  ;;  %12549 = vst [vmem:[#allocation29_spill] sm:$0xff] %v7961_v49  ;;  %v7976_v2 = vpack.c.bf16 %v357_v55, %v353_v39  ;;  %v7978_v3 = vsub.f32 %v73_v35, %v357_v55  ;;  %v7980_v4 = vsub.f32 %v71_v40, %v2921_v57  ;;  %v2931_v7 = vand.u32 4294901760, %v84_v53  ;;  %v83_v9 = vld [vmem:[#allocation8 + $0xb0] sm:$0xff]  ;;  %v90_v15 = vld [vmem:[#allocation8 + $0xe8] sm:$0xff]  ;;  %s6144_s27 = sshll.u32 %s7865_s26, 4  ;;  %s6145_s27 = int_to_ptr.vmem [resolvable:$true] %s6144_s27 }
  0x43   :  { %12550 = vst [vmem:[#allocation30_spill] sm:$0xff] %v7963_v50  ;;  %12551 = vst [vmem:[#allocation31_spill] sm:$0xff] %v7965_v51  ;;  %v7982_v11 = vpack.c.bf16 %v2925_v58, %v2921_v57  ;;  %v7984_v12 = vsub.f32 %v75_v41, %v2925_v58  ;;  %v7986_v13 = vpack.c.bf16 %v363_v60, %v359_v59  ;;  %v88_v16 = vld [vmem:[#allocation8 + $0xd8] sm:$0xff]  ;;  %v361_v30 = vand.u32 4294901760, %v77_v62  ;;  %v85_v39 = vld [vmem:[#allocation8 + $0xc0] sm:$0xff]  ;;  %s7822_s28 = scalar_lea.vmem %s6145_s27, 64  ;;  %p7827_p11 = scmp.lt.s32.totalorder %s6145_s27, %s6145_s27 }
  0x44   :  { %12552 = vst [vmem:[#allocation32_spill] sm:$0xff] %v7967_v52  ;;  %12553 = vst [vmem:[#allocation33_spill] sm:$0xff] %v7970_v54  ;;  %v7988_v14 = vsub.f32 %v78_v46, %v359_v59  ;;  %v92_v17 = vld [vmem:[#allocation8 + $0xf8] sm:$0xff]  ;;  %6161 = vmatpush1.bf16.msra.mxu0 %v7976_v2  ;;  %v7991_v18 = vsub.f32 %v82_v47, %v363_v60  ;;  %v7993_v23 = vpack.c.bf16 %v2931_v7, %v2927_v61  ;;  %v91_v55 = vld [vmem:[#allocation8 + $0xf0] sm:$0xff]  ;;  %vm5650_vm3 = vcmask 31744   ;;  %p7823_p10 = scmp.ne.s32.totalorder %s6145_s27, %s7822_s28  ;;  %p7828_p12 = scmp.lt.s32.totalorder %s7822_s28, %s7822_s28 }
  0x45   :  { %12554 = vst [vmem:[#allocation34_spill] sm:$0xff] %v7972_v56  ;;  %12555 = vst [vmem:[#allocation35_spill] sm:$0xff] %v7976_v2  ;;  %v7995_v24 = vsub.f32 %v80_v48, %v2927_v61  ;;  %v7997_v25 = vsub.f32 %v84_v53, %v2931_v7  ;;  %6929 = vmatpush1.bf16.msra.mxu1 %v7982_v11  ;;  %6163 = vmatprep.subr.bf16.mxu0 %v7986_v13  ;;  %v365_v32 = vand.u32 4294901760, %v81_v63  ;;  %v89_v48 = vld [vmem:[#allocation8 + $0xe0] sm:$0xff]  ;;  %v87_v53 = vld [vmem:[#allocation8 + $0xd0] sm:$0xff]  ;;  %vm5708_vm4 = vcmask 64512  }
  0x46   :  { %12556 = vst [vmem:[#allocation36_spill] sm:$0xff] %v7978_v3  ;;  %12557 = vst [vmem:[#allocation37_spill] sm:$0xff] %v7980_v4  ;;  %v2929_v33 = vand.u32 4294901760, %v79_v8  ;;  %v2933_v34 = vand.u32 4294901760, %v83_v9  ;;  %6931 = vmatprep.subr.bf16.mxu1 %v7993_v23  ;;  %v367_v35 = vand.u32 4294901760, %v86_v10  ;;  %v371_v36 = vand.u32 4294901760, %v90_v15  ;;  %p7829_p13 = por %p7828_p12, %p7827_p11 }
  0x47   :  { %12558 = vst [vmem:[#allocation38_spill] sm:$0xff] %v7982_v11  ;;  %12559 = vst [vmem:[#allocation39_spill] sm:$0xff] %v7984_v12  ;;  %v2935_v37 = vand.u32 4294901760, %v88_v16  ;;  %v2939_v38 = vand.u32 4294901760, %v92_v17  ;;  %v8002_v40 = vpack.c.bf16 %v365_v32, %v361_v30  ;;  %v8004_v41 = vsub.f32 %v77_v62, %v361_v30  ;;  %v94_v61 = vld [vmem:[#allocation8 + $0x108] sm:$0xff]  ;;  %v96_v0 = vld [vmem:[#allocation8 + $0x118] sm:$0xff] }
  0x48   :  { %12560 = vst [vmem:[#allocation40_spill] sm:$0xff] %v7986_v13  ;;  %12561 = vst [vmem:[#allocation41_spill] sm:$0xff] %v7988_v14  ;;  %v8006_v46 = vsub.f32 %v81_v63, %v365_v32  ;;  %v8008_v47 = vpack.c.bf16 %v2933_v34, %v2929_v33  ;;  %v8010_v57 = vsub.f32 %v79_v8, %v2929_v33  ;;  %v98_v7 = vld [vmem:[#allocation8 + $0x128] sm:$0xff]  ;;  %v369_v8 = vand.u32 4294901760, %v85_v39  ;;  %v104_v49 = vld [vmem:[#allocation8 + $0x158] sm:$0xff]  ;;  %p7830_p0 = pnand %p7829_p13, %p7823_p10 }
  0x49   :  { %12562 = vst [vmem:[#allocation42_spill] sm:$0xff] %v7991_v18  ;;  %12563 = vst [vmem:[#allocation43_spill] sm:$0xff] %v7993_v23  ;;  %v8012_v58 = vsub.f32 %v83_v9, %v2933_v34  ;;  %v8014_v59 = vpack.c.bf16 %v371_v36, %v367_v35  ;;  %v8016_v60 = vsub.f32 %v86_v10, %v367_v35  ;;  %6165 = vmatpush1.bf16.msra.mxu0 %v8002_v40  ;;  %v100_v34 = vld [vmem:[#allocation8 + $0x138] sm:$0xff]  ;;  %v102_v11 = vld [vmem:[#allocation8 + $0x148] sm:$0xff]  ;;  %vm5766_vm5 = vcmask 130048  }
  0x4a   :  { %12564 = vst [vmem:[#allocation44_spill] sm:$0xff] %v7995_v24  ;;  %12565 = vst [vmem:[#allocation45_spill] sm:$0xff] %v7997_v25  ;;  %6933 = vmatpush1.bf16.msra.mxu1 %v8008_v47  ;;  %v8020_v62 = vsub.f32 %v90_v15, %v371_v36  ;;  %v8022_v63 = vpack.c.bf16 %v2939_v38, %v2935_v37  ;;  %v8024_v30 = vsub.f32 %v88_v16, %v2935_v37  ;;  %v95_v16 = vld [vmem:[#allocation8 + $0x110] sm:$0xff]  ;;  %v106_v13 = vld [vmem:[#allocation8 + $0x168] sm:$0xff]  ;;  %vm56_vm6 = vcmask 0  }
  0x4b   :  { %12566 = vst [vmem:[#allocation46_spill] sm:$0xff] %v8002_v40  ;;  %12567 = vst [vmem:[#allocation47_spill] sm:$0xff] %v8004_v41  ;;  %6167 = vmatprep.subr.bf16.mxu0 %v8014_v59  ;;  %v8027_v9 = vsub.f32 %v92_v17, %v2939_v38  ;;  %v373_v10 = vand.u32 4294901760, %v89_v48  ;;  %v2937_v32 = vand.u32 4294901760, %v87_v53  ;;  %v2941_v33 = vand.u32 4294901760, %v91_v55  ;;  %v97_v40 = vld [vmem:[#allocation8 + $0x120] sm:$0xff] }
  0x4c   :  { %12568 = vst [vmem:[#allocation48_spill] sm:$0xff] %v8006_v46  ;;  %12569 = vst [vmem:[#allocation49_spill] sm:$0xff] %v8008_v47  ;;  %6935 = vmatprep.subr.bf16.mxu1 %v8022_v63  ;;  %v8030_v35 = vsub.f32 %v85_v39, %v369_v8  ;;  %v375_v1 = vand.u32 4294901760, %v94_v61  ;;  %v379_v15 = vand.u32 4294901760, %v98_v7  ;;  %v2943_v36 = vand.u32 4294901760, %v96_v0  ;;  %v93_v47 = vld [vmem:[#allocation8 + $0x100] sm:$0xff] }
  0x4d   :  { %12570 = vst [vmem:[#allocation50_spill] sm:$0xff] %v8010_v57  ;;  %12571 = vst [vmem:[#allocation51_spill] sm:$0xff] %v8012_v58  ;;  %v8032_v37 = vpack.c.bf16 %v373_v10, %v369_v8  ;;  %v8034_v23 = vsub.f32 %v89_v48, %v373_v10  ;;  %v8036_v17 = vpack.c.bf16 %v2941_v33, %v2937_v32  ;;  %v2947_v48 = vand.u32 4294901760, %v100_v34  ;;  %v103_v28 = vld [vmem:[#allocation8 + $0x150] sm:$0xff] }
  0x4e   :  { %12572 = vst [vmem:[#allocation52_spill] sm:$0xff] %v8014_v59  ;;  %12573 = vst [vmem:[#allocation53_spill] sm:$0xff] %v8016_v60  ;;  %v8038_v38 = vsub.f32 %v87_v53, %v2937_v32  ;;  %v99_v59 = vld [vmem:[#allocation8 + $0x130] sm:$0xff]  ;;  %v8042_v39 = vpack.c.bf16 %v379_v15, %v375_v1  ;;  %v8044_v2 = vsub.f32 %v94_v61, %v375_v1  ;;  %v377_v53 = vand.u32 4294901760, %v93_v47  ;;  %v108_v1 = vld [vmem:[#allocation8 + $0x178] sm:$0xff] }
  0x4f   :  { %12574 = vst [vmem:[#allocation54_spill] sm:$0xff] %v8020_v62  ;;  %12575 = vst [vmem:[#allocation55_spill] sm:$0xff] %v8022_v63  ;;  %v8040_v63 = vsub.f32 %v91_v55, %v2941_v33  ;;  %v8046_v51 = vsub.f32 %v98_v7, %v379_v15  ;;  %6169 = vmatpush1.bf16.msra.mxu0 %v8032_v37  ;;  %6937 = vmatpush1.bf16.msra.mxu1 %v8036_v17  ;;  %v381_v10 = vand.u32 4294901760, %v97_v40  ;;  %vm5824_vm7 = vcmask 261120  }
  0x50   :  { %12576 = vst [vmem:[#allocation56_spill] sm:$0xff] %v8024_v30  ;;  %12577 = vst [vmem:[#allocation57_spill] sm:$0xff] %v8027_v9  ;;  %v8050_v8 = vsub.f32 %v96_v0, %v2943_v36  ;;  %6171 = vmatprep.subr.bf16.mxu0 %v8042_v39  ;;  %v2945_v32 = vand.u32 4294901760, %v95_v16  ;;  %v2949_v55 = vand.u32 4294901760, %v99_v59  ;;  %v383_v33 = vand.u32 4294901760, %v102_v11  ;;  %v101_v0 = vld [vmem:[#allocation8 + $0x140] sm:$0xff] }
  0x51   :  { %12578 = vst [vmem:[#allocation58_spill] sm:$0xff] %v8030_v35  ;;  %12579 = vst [vmem:[#allocation59_spill] sm:$0xff] %v8032_v37  ;;  %v387_v42 = vand.u32 4294901760, %v106_v13  ;;  %v8053_v61 = vpack.c.bf16 %v2947_v48, %v2943_v36  ;;  %v8055_v7 = vsub.f32 %v100_v34, %v2947_v48  ;;  %v8057_v15 = vpack.c.bf16 %v381_v10, %v377_v53  ;;  %v105_v37 = vld [vmem:[#allocation8 + $0x160] sm:$0xff]  ;;  %v110_v36 = vld [vmem:[#allocation8 + $0x188] sm:$0xff] }
  0x52   :  { %12580 = vst [vmem:[#allocation60_spill] sm:$0xff] %v8034_v23  ;;  %12581 = vst [vmem:[#allocation61_spill] sm:$0xff] %v8036_v17  ;;  %v8059_v17 = vsub.f32 %v93_v47, %v377_v53  ;;  %v8061_v26 = vsub.f32 %v97_v40, %v381_v10  ;;  %v8065_v19 = vsub.f32 %v95_v16, %v2945_v32  ;;  %v2951_v40 = vand.u32 4294901760, %v104_v49 }
  0x53   :  { %12582 = vst [vmem:[#allocation62_spill] sm:$0xff] %v8038_v38  ;;  %12583 = vst [vmem:[#allocation63_spill] sm:$0xff] %v8040_v63  ;;  %6939 = vmatprep.subr.bf16.mxu1 %v8053_v61  ;;  %6173 = vmatpush1.bf16.msra.mxu0 %v8057_v15  ;;  %v8071_v47 = vpack.c.bf16 %v387_v42, %v383_v33  ;;  %v8073_v34 = vsub.f32 %v102_v11, %v383_v33  ;;  %v2955_v16 = vand.u32 4294901760, %v108_v1  ;;  %vm5882_vm8 = vcmask 523264  }
  0x54   :  { %12584 = vst [vmem:[#allocation64_spill] sm:$0xff] %v8042_v39  ;;  %12585 = vst [vmem:[#allocation65_spill] sm:$0xff] %v8044_v2  ;;  %v8063_v39 = vpack.c.bf16 %v2949_v55, %v2945_v32  ;;  %v114_v2 = vld [vmem:[#allocation8 + $0x1a8] sm:$0xff]  ;;  %v8075_v48 = vsub.f32 %v106_v13, %v387_v42  ;;  %v385_v53 = vand.u32 4294901760, %v101_v0  ;;  %v2953_v10 = vand.u32 4294901760, %v103_v28 }
  0x55   :  { %12586 = vst [vmem:[#allocation66_spill] sm:$0xff] %v8046_v51  ;;  %12587 = vst [vmem:[#allocation67_spill] sm:$0xff] %v8050_v8  ;;  %v8067_v8 = vsub.f32 %v99_v59, %v2949_v55  ;;  %v107_v51 = vld [vmem:[#allocation8 + $0x170] sm:$0xff]  ;;  %v389_v59 = vand.u32 4294901760, %v105_v37  ;;  %6175 = vmatprep.subr.bf16.mxu0 %v8071_v47  ;;  %v8079_v32 = vsub.f32 %v104_v49, %v2951_v40 }
  0x56   :  { %12588 = vst [vmem:[#allocation68_spill] sm:$0xff] %v8053_v61  ;;  %12589 = vst [vmem:[#allocation69_spill] sm:$0xff] %v8055_v7  ;;  %6941 = vmatpush1.bf16.msra.mxu1 %v8063_v39  ;;  %v2957_v55 = vand.u32 4294901760, %v107_v51  ;;  %v391_v61 = vand.u32 4294901760, %v110_v36  ;;  %v8081_v11 = vpack.c.bf16 %v2955_v16, %v2951_v40  ;;  %v8083_v42 = vsub.f32 %v108_v1, %v2955_v16  ;;  %v118_v40 = vld [vmem:[#allocation8 + $0x1c8] sm:$0xff] }
  0x57   :  { %12590 = vst [vmem:[#allocation70_spill] sm:$0xff] %v8057_v15  ;;  %12591 = vst [vmem:[#allocation71_spill] sm:$0xff] %v8059_v17  ;;  %v395_v15 = vand.u32 4294901760, %v114_v2  ;;  %v8085_v13 = vpack.c.bf16 %v389_v59, %v385_v53  ;;  %v8087_v33 = vsub.f32 %v101_v0, %v385_v53  ;;  %v115_v17 = vld [vmem:[#allocation8 + $0x1b0] sm:$0xff]  ;;  %v122_v7 = vld [vmem:[#allocation8 + $0x1e8] sm:$0xff] }
  0x58   :  { %12592 = vst [vmem:[#allocation72_spill] sm:$0xff] %v8061_v26  ;;  %12593 = vst [vmem:[#allocation73_spill] sm:$0xff] %v8063_v39  ;;  %v109_v39 = vld [vmem:[#allocation8 + $0x180] sm:$0xff]  ;;  %v8089_v26 = vsub.f32 %v105_v37, %v389_v59  ;;  %v8091_v49 = vpack.c.bf16 %v2957_v55, %v2953_v10  ;;  %6943 = vmatprep.subr.bf16.mxu1 %v8081_v11  ;;  %v8101_v0 = vsub.f32 %v110_v36, %v391_v61 }
  0x59   :  { %12594 = vst [vmem:[#allocation74_spill] sm:$0xff] %v8065_v19  ;;  %12595 = vst [vmem:[#allocation75_spill] sm:$0xff] %v8067_v8  ;;  %v112_v8 = vld [vmem:[#allocation8 + $0x198] sm:$0xff]  ;;  %6177 = vmatpush1.bf16.msra.mxu0 %v8085_v13  ;;  %v8099_v1 = vpack.c.bf16 %v395_v15, %v391_v61  ;;  %v8103_v16 = vsub.f32 %v114_v2, %v395_v15  ;;  %v393_v53 = vand.u32 4294901760, %v109_v39 }
  0x5a   :  { %12596 = vst [vmem:[#allocation76_spill] sm:$0xff] %v8071_v47  ;;  %12597 = vst [vmem:[#allocation77_spill] sm:$0xff] %v8073_v34  ;;  %v116_v19 = vld [vmem:[#allocation8 + $0x1b8] sm:$0xff]  ;;  %v111_v34 = vld [vmem:[#allocation8 + $0x190] sm:$0xff]  ;;  %v8093_v47 = vsub.f32 %v103_v28, %v2953_v10  ;;  %v2959_v37 = vand.u32 4294901760, %v112_v8  ;;  %6945 = vmatpush1.bf16.msra.mxu1 %v8091_v49 }
  0x5b   :  { %12598 = vst [vmem:[#allocation78_spill] sm:$0xff] %v8075_v48  ;;  %12599 = vst [vmem:[#allocation79_spill] sm:$0xff] %v8079_v32  ;;  %v113_v48 = vld [vmem:[#allocation8 + $0x1a0] sm:$0xff]  ;;  %v8095_v32 = vsub.f32 %v107_v51, %v2957_v55  ;;  %v2963_v28 = vand.u32 4294901760, %v116_v19  ;;  %v2961_v59 = vand.u32 4294901760, %v111_v34  ;;  %6179 = vmatprep.subr.bf16.mxu0 %v8099_v1  ;;  %v2965_v55 = vand.u32 4294901760, %v115_v17 }
  0x5c   :  { %12600 = vst [vmem:[#allocation80_spill] sm:$0xff] %v8081_v11  ;;  %12601 = vst [vmem:[#allocation81_spill] sm:$0xff] %v8083_v42  ;;  %v397_v51 = vand.u32 4294901760, %v113_v48  ;;  %v8107_v10 = vsub.f32 %v112_v8, %v2959_v37  ;;  %v399_v11 = vand.u32 4294901760, %v118_v40  ;;  %v8115_v36 = vsub.f32 %v109_v39, %v393_v53  ;;  %v130_v42 = vld [vmem:[#allocation8 + $0x228] sm:$0xff] }
  0x5d   :  { %12602 = vst [vmem:[#allocation82_spill] sm:$0xff] %v8085_v13  ;;  %12603 = vst [vmem:[#allocation83_spill] sm:$0xff] %v8087_v33  ;;  %v403_v13 = vand.u32 4294901760, %v122_v7  ;;  %v8109_v61 = vpack.c.bf16 %v2963_v28, %v2959_v37  ;;  %v8111_v2 = vsub.f32 %v116_v19, %v2963_v28  ;;  %v8119_v8 = vpack.c.bf16 %v2965_v55, %v2961_v59  ;;  %v123_v33 = vld [vmem:[#allocation8 + $0x1f0] sm:$0xff]  ;;  %v126_v37 = vld [vmem:[#allocation8 + $0x208] sm:$0xff] }
  0x5e   :  { %12604 = vst [vmem:[#allocation84_spill] sm:$0xff] %v8089_v26  ;;  %12605 = vst [vmem:[#allocation85_spill] sm:$0xff] %v8091_v49  ;;  %v8113_v15 = vpack.c.bf16 %v397_v51, %v393_v53  ;;  %v117_v49 = vld [vmem:[#allocation8 + $0x1c0] sm:$0xff]  ;;  %v8117_v26 = vsub.f32 %v113_v48, %v397_v51  ;;  %v8129_v39 = vsub.f32 %v118_v40, %v399_v11 }
  0x5f   :  { %12606 = vst [vmem:[#allocation86_spill] sm:$0xff] %v8093_v47  ;;  %12607 = vst [vmem:[#allocation87_spill] sm:$0xff] %v8095_v32  ;;  %v120_v32 = vld [vmem:[#allocation8 + $0x1d8] sm:$0xff]  ;;  %6947 = vmatprep.subr.bf16.mxu1 %v8109_v61  ;;  %v8127_v19 = vpack.c.bf16 %v403_v13, %v399_v11  ;;  %v8131_v28 = vsub.f32 %v122_v7, %v403_v13  ;;  %v401_v53 = vand.u32 4294901760, %v117_v49 }
  0x60   :  { %12608 = vst [vmem:[#allocation88_spill] sm:$0xff] %v8099_v1  ;;  %12609 = vst [vmem:[#allocation89_spill] sm:$0xff] %v8101_v0  ;;  %v124_v47 = vld [vmem:[#allocation8 + $0x1f8] sm:$0xff]  ;;  %v119_v0 = vld [vmem:[#allocation8 + $0x1d0] sm:$0xff]  ;;  %v8121_v1 = vsub.f32 %v111_v34, %v2961_v59  ;;  %6181 = vmatpush1.bf16.msra.mxu0 %v8113_v15  ;;  %v2967_v48 = vand.u32 4294901760, %v120_v32  ;;  %6949 = vmatpush1.bf16.msra.mxu1 %v8119_v8 }
  0x61   :  { %12610 = vst [vmem:[#allocation90_spill] sm:$0xff] %v8103_v16  ;;  %12611 = vst [vmem:[#allocation91_spill] sm:$0xff] %v8107_v10  ;;  %v121_v16 = vld [vmem:[#allocation8 + $0x1e0] sm:$0xff]  ;;  %v8123_v10 = vsub.f32 %v115_v17, %v2965_v55  ;;  %v2971_v34 = vand.u32 4294901760, %v124_v47  ;;  %v2969_v51 = vand.u32 4294901760, %v119_v0  ;;  %6183 = vmatprep.subr.bf16.mxu0 %v8127_v19  ;;  %v2973_v55 = vand.u32 4294901760, %v123_v33 }
  0x62   :  { %12612 = vst [vmem:[#allocation92_spill] sm:$0xff] %v8109_v61  ;;  %12613 = vst [vmem:[#allocation93_spill] sm:$0xff] %v8111_v2  ;;  %v405_v17 = vand.u32 4294901760, %v121_v16  ;;  %v8135_v59 = vsub.f32 %v120_v32, %v2967_v48  ;;  %v407_v61 = vand.u32 4294901760, %v126_v37  ;;  %v8143_v40 = vsub.f32 %v117_v49, %v401_v53  ;;  %v138_v2 = vld [vmem:[#allocation8 + $0x268] sm:$0xff] }
  0x63   :  { %12614 = vst [vmem:[#allocation94_spill] sm:$0xff] %v8113_v15  ;;  %12615 = vst [vmem:[#allocation95_spill] sm:$0xff] %v8115_v36  ;;  %v411_v15 = vand.u32 4294901760, %v130_v42  ;;  %v8137_v11 = vpack.c.bf16 %v2971_v34, %v2967_v48  ;;  %v8139_v7 = vsub.f32 %v124_v47, %v2971_v34  ;;  %v8147_v32 = vpack.c.bf16 %v2973_v55, %v2969_v51  ;;  %v131_v36 = vld [vmem:[#allocation8 + $0x230] sm:$0xff]  ;;  %v134_v48 = vld [vmem:[#allocation8 + $0x248] sm:$0xff] }
  0x64   :  { %12616 = vst [vmem:[#allocation96_spill] sm:$0xff] %v8117_v26  ;;  %12617 = vst [vmem:[#allocation97_spill] sm:$0xff] %v8119_v8  ;;  %v8141_v13 = vpack.c.bf16 %v405_v17, %v401_v53  ;;  %v125_v8 = vld [vmem:[#allocation8 + $0x200] sm:$0xff]  ;;  %v8145_v26 = vsub.f32 %v121_v16, %v405_v17  ;;  %v8157_v49 = vsub.f32 %v126_v37, %v407_v61 }
  0x65   :  { %12618 = vst [vmem:[#allocation98_spill] sm:$0xff] %v8121_v1  ;;  %12619 = vst [vmem:[#allocation99_spill] sm:$0xff] %v8123_v10  ;;  %v128_v10 = vld [vmem:[#allocation8 + $0x218] sm:$0xff]  ;;  %6951 = vmatprep.subr.bf16.mxu1 %v8137_v11  ;;  %v8155_v47 = vpack.c.bf16 %v411_v15, %v407_v61  ;;  %v8159_v34 = vsub.f32 %v130_v42, %v411_v15  ;;  %v409_v53 = vand.u32 4294901760, %v125_v8 }
  0x66   :  { %12620 = vst [vmem:[#allocation100_spill] sm:$0xff] %v8127_v19  ;;  %12621 = vst [vmem:[#allocation101_spill] sm:$0xff] %v8129_v39  ;;  %v132_v1 = vld [vmem:[#allocation8 + $0x238] sm:$0xff]  ;;  %v127_v39 = vld [vmem:[#allocation8 + $0x210] sm:$0xff]  ;;  %v8149_v19 = vsub.f32 %v119_v0, %v2969_v51  ;;  %6185 = vmatpush1.bf16.msra.mxu0 %v8141_v13  ;;  %v2975_v16 = vand.u32 4294901760, %v128_v10  ;;  %6953 = vmatpush1.bf16.msra.mxu1 %v8147_v32 }
  0x67   :  { %12622 = vst [vmem:[#allocation102_spill] sm:$0xff] %v8131_v28  ;;  %12623 = vst [vmem:[#allocation103_spill] sm:$0xff] %v8135_v59  ;;  %v129_v28 = vld [vmem:[#allocation8 + $0x220] sm:$0xff]  ;;  %v8151_v59 = vsub.f32 %v123_v33, %v2973_v55  ;;  %v2979_v0 = vand.u32 4294901760, %v132_v1  ;;  %v2977_v17 = vand.u32 4294901760, %v127_v39  ;;  %6187 = vmatprep.subr.bf16.mxu0 %v8155_v47  ;;  %v2981_v55 = vand.u32 4294901760, %v131_v36 }
  0x68   :  { %12624 = vst [vmem:[#allocation104_spill] sm:$0xff] %v8137_v11  ;;  %12625 = vst [vmem:[#allocation105_spill] sm:$0xff] %v8139_v7  ;;  %v413_v33 = vand.u32 4294901760, %v129_v28  ;;  %v8163_v51 = vsub.f32 %v128_v10, %v2975_v16  ;;  %v415_v11 = vand.u32 4294901760, %v134_v48  ;;  %v8171_v37 = vsub.f32 %v125_v8, %v409_v53  ;;  %v146_v7 = vld [vmem:[#allocation8 + $0x2a8] sm:$0xff] }
  0x69   :  { %12626 = vst [vmem:[#allocation106_spill] sm:$0xff] %v8141_v13  ;;  %12627 = vst [vmem:[#allocation107_spill] sm:$0xff] %v8143_v40  ;;  %v419_v13 = vand.u32 4294901760, %v138_v2  ;;  %v8165_v61 = vpack.c.bf16 %v2979_v0, %v2975_v16  ;;  %v8167_v42 = vsub.f32 %v132_v1, %v2979_v0  ;;  %v8175_v10 = vpack.c.bf16 %v2981_v55, %v2977_v17  ;;  %v139_v40 = vld [vmem:[#allocation8 + $0x270] sm:$0xff]  ;;  %v142_v16 = vld [vmem:[#allocation8 + $0x288] sm:$0xff] }
  0x6a   :  { %12628 = vst [vmem:[#allocation108_spill] sm:$0xff] %v8145_v26  ;;  %12629 = vst [vmem:[#allocation109_spill] sm:$0xff] %v8147_v32  ;;  %v8169_v15 = vpack.c.bf16 %v413_v33, %v409_v53  ;;  %v133_v32 = vld [vmem:[#allocation8 + $0x240] sm:$0xff]  ;;  %v8173_v26 = vsub.f32 %v129_v28, %v413_v33  ;;  %v8185_v8 = vsub.f32 %v134_v48, %v415_v11 }
  0x6b   :  { %12630 = vst [vmem:[#allocation110_spill] sm:$0xff] %v8149_v19  ;;  %12631 = vst [vmem:[#allocation111_spill] sm:$0xff] %v8151_v59  ;;  %v136_v59 = vld [vmem:[#allocation8 + $0x258] sm:$0xff]  ;;  %6955 = vmatprep.subr.bf16.mxu1 %v8165_v61  ;;  %v8183_v1 = vpack.c.bf16 %v419_v13, %v415_v11  ;;  %v8187_v0 = vsub.f32 %v138_v2, %v419_v13  ;;  %v417_v53 = vand.u32 4294901760, %v133_v32 }
  0x6c   :  { %12632 = vst [vmem:[#allocation112_spill] sm:$0xff] %v8155_v47  ;;  %12633 = vst [vmem:[#allocation113_spill] sm:$0xff] %v8157_v49  ;;  %v140_v19 = vld [vmem:[#allocation8 + $0x278] sm:$0xff]  ;;  %v135_v49 = vld [vmem:[#allocation8 + $0x250] sm:$0xff]  ;;  %v8177_v47 = vsub.f32 %v127_v39, %v2977_v17  ;;  %6189 = vmatpush1.bf16.msra.mxu0 %v8169_v15  ;;  %v2983_v28 = vand.u32 4294901760, %v136_v59  ;;  %6957 = vmatpush1.bf16.msra.mxu1 %v8175_v10 }
  0x6d   :  { %12634 = vst [vmem:[#allocation114_spill] sm:$0xff] %v8159_v34  ;;  %12635 = vst [vmem:[#allocation115_spill] sm:$0xff] %v8163_v51  ;;  %v137_v34 = vld [vmem:[#allocation8 + $0x260] sm:$0xff]  ;;  %v8179_v51 = vsub.f32 %v131_v36, %v2981_v55  ;;  %v2987_v39 = vand.u32 4294901760, %v140_v19  ;;  %v2985_v33 = vand.u32 4294901760, %v135_v49  ;;  %6191 = vmatprep.subr.bf16.mxu0 %v8183_v1  ;;  %v2989_v55 = vand.u32 4294901760, %v139_v40 }
  0x6e   :  { %12636 = vst [vmem:[#allocation116_spill] sm:$0xff] %v8165_v61  ;;  %12637 = vst [vmem:[#allocation117_spill] sm:$0xff] %v8167_v42  ;;  %v421_v36 = vand.u32 4294901760, %v137_v34  ;;  %v8191_v17 = vsub.f32 %v136_v59, %v2983_v28  ;;  %v423_v61 = vand.u32 4294901760, %v142_v16  ;;  %v8199_v48 = vsub.f32 %v133_v32, %v417_v53  ;;  %v154_v42 = vld [vmem:[#allocation8 + $0x2e8] sm:$0xff] }
  0x6f   :  { %12638 = vst [vmem:[#allocation118_spill] sm:$0xff] %v8169_v15  ;;  %12639 = vst [vmem:[#allocation119_spill] sm:$0xff] %v8171_v37  ;;  %v427_v15 = vand.u32 4294901760, %v146_v7  ;;  %v8193_v11 = vpack.c.bf16 %v2987_v39, %v2983_v28  ;;  %v8195_v2 = vsub.f32 %v140_v19, %v2987_v39  ;;  %v8203_v59 = vpack.c.bf16 %v2989_v55, %v2985_v33  ;;  %v147_v37 = vld [vmem:[#allocation8 + $0x2b0] sm:$0xff]  ;;  %v150_v28 = vld [vmem:[#allocation8 + $0x2c8] sm:$0xff] }
  0x70   :  { %12640 = vst [vmem:[#allocation120_spill] sm:$0xff] %v8173_v26  ;;  %12641 = vst [vmem:[#allocation121_spill] sm:$0xff] %v8175_v10  ;;  %v8197_v13 = vpack.c.bf16 %v421_v36, %v417_v53  ;;  %v141_v10 = vld [vmem:[#allocation8 + $0x280] sm:$0xff]  ;;  %v8201_v26 = vsub.f32 %v137_v34, %v421_v36  ;;  %v8213_v32 = vsub.f32 %v142_v16, %v423_v61 }
  0x71   :  { %12642 = vst [vmem:[#allocation122_spill] sm:$0xff] %v8177_v47  ;;  %12643 = vst [vmem:[#allocation123_spill] sm:$0xff] %v8179_v51  ;;  %v144_v51 = vld [vmem:[#allocation8 + $0x298] sm:$0xff]  ;;  %6959 = vmatprep.subr.bf16.mxu1 %v8193_v11  ;;  %v8211_v19 = vpack.c.bf16 %v427_v15, %v423_v61  ;;  %v8215_v39 = vsub.f32 %v146_v7, %v427_v15  ;;  %v425_v53 = vand.u32 4294901760, %v141_v10 }
  0x72   :  { %12644 = vst [vmem:[#allocation124_spill] sm:$0xff] %v8183_v1  ;;  %12645 = vst [vmem:[#allocation125_spill] sm:$0xff] %v8185_v8  ;;  %v148_v47 = vld [vmem:[#allocation8 + $0x2b8] sm:$0xff]  ;;  %v143_v8 = vld [vmem:[#allocation8 + $0x290] sm:$0xff]  ;;  %v8205_v1 = vsub.f32 %v135_v49, %v2985_v33  ;;  %6193 = vmatpush1.bf16.msra.mxu0 %v8197_v13  ;;  %v2991_v34 = vand.u32 4294901760, %v144_v51  ;;  %6961 = vmatpush1.bf16.msra.mxu1 %v8203_v59 }
  0x73   :  { %12646 = vst [vmem:[#allocation126_spill] sm:$0xff] %v8187_v0  ;;  %12647 = vst [vmem:[#allocation127_spill] sm:$0xff] %v8191_v17  ;;  %v145_v0 = vld [vmem:[#allocation8 + $0x2a0] sm:$0xff]  ;;  %v8207_v17 = vsub.f32 %v139_v40, %v2989_v55  ;;  %v2995_v49 = vand.u32 4294901760, %v148_v47  ;;  %v2993_v36 = vand.u32 4294901760, %v143_v8  ;;  %6195 = vmatprep.subr.bf16.mxu0 %v8211_v19  ;;  %v2997_v55 = vand.u32 4294901760, %v147_v37 }
  0x74   :  { %12648 = vst [vmem:[#allocation128_spill] sm:$0xff] %v8193_v11  ;;  %12649 = vst [vmem:[#allocation129_spill] sm:$0xff] %v8195_v2  ;;  %v429_v40 = vand.u32 4294901760, %v145_v0  ;;  %v8219_v33 = vsub.f32 %v144_v51, %v2991_v34  ;;  %v431_v11 = vand.u32 4294901760, %v150_v28  ;;  %v8227_v16 = vsub.f32 %v141_v10, %v425_v53  ;;  %v162_v2 = vld [vmem:[#allocation8 + $0x328] sm:$0xff] }
  0x75   :  { %12650 = vst [vmem:[#allocation130_spill] sm:$0xff] %v8197_v13  ;;  %12651 = vst [vmem:[#allocation131_spill] sm:$0xff] %v8199_v48  ;;  %v435_v13 = vand.u32 4294901760, %v154_v42  ;;  %v8221_v61 = vpack.c.bf16 %v2995_v49, %v2991_v34  ;;  %v8223_v7 = vsub.f32 %v148_v47, %v2995_v49  ;;  %v8231_v51 = vpack.c.bf16 %v2997_v55, %v2993_v36  ;;  %v155_v48 = vld [vmem:[#allocation8 + $0x2f0] sm:$0xff]  ;;  %v158_v34 = vld [vmem:[#allocation8 + $0x308] sm:$0xff] }
  0x76   :  { %12652 = vst [vmem:[#allocation132_spill] sm:$0xff] %v8201_v26  ;;  %12653 = vst [vmem:[#allocation133_spill] sm:$0xff] %v8203_v59  ;;  %v8225_v15 = vpack.c.bf16 %v429_v40, %v425_v53  ;;  %v149_v59 = vld [vmem:[#allocation8 + $0x2c0] sm:$0xff]  ;;  %v8229_v26 = vsub.f32 %v145_v0, %v429_v40  ;;  %v8241_v10 = vsub.f32 %v150_v28, %v431_v11 }
  0x77   :  { %12654 = vst [vmem:[#allocation134_spill] sm:$0xff] %v8205_v1  ;;  %12655 = vst [vmem:[#allocation135_spill] sm:$0xff] %v8207_v17  ;;  %v152_v17 = vld [vmem:[#allocation8 + $0x2d8] sm:$0xff]  ;;  %6963 = vmatprep.subr.bf16.mxu1 %v8221_v61  ;;  %v8239_v47 = vpack.c.bf16 %v435_v13, %v431_v11  ;;  %v8243_v49 = vsub.f32 %v154_v42, %v435_v13  ;;  %v433_v53 = vand.u32 4294901760, %v149_v59 }
  0x78   :  { %12656 = vst [vmem:[#allocation136_spill] sm:$0xff] %v8211_v19  ;;  %12657 = vst [vmem:[#allocation137_spill] sm:$0xff] %v8213_v32  ;;  %v156_v1 = vld [vmem:[#allocation8 + $0x2f8] sm:$0xff]  ;;  %v151_v32 = vld [vmem:[#allocation8 + $0x2d0] sm:$0xff]  ;;  %v8233_v19 = vsub.f32 %v143_v8, %v2993_v36  ;;  %6197 = vmatpush1.bf16.msra.mxu0 %v8225_v15  ;;  %v2999_v0 = vand.u32 4294901760, %v152_v17  ;;  %6965 = vmatpush1.bf16.msra.mxu1 %v8231_v51 }
  0x79   :  { %12658 = vst [vmem:[#allocation138_spill] sm:$0xff] %v8215_v39  ;;  %12659 = vst [vmem:[#allocation139_spill] sm:$0xff] %v8219_v33  ;;  %v153_v39 = vld [vmem:[#allocation8 + $0x2e0] sm:$0xff]  ;;  %v8235_v33 = vsub.f32 %v147_v37, %v2997_v55  ;;  %v3003_v8 = vand.u32 4294901760, %v156_v1  ;;  %v3001_v40 = vand.u32 4294901760, %v151_v32  ;;  %6199 = vmatprep.subr.bf16.mxu0 %v8239_v47  ;;  %v3005_v55 = vand.u32 4294901760, %v155_v48 }
  0x7a   :  { %12660 = vst [vmem:[#allocation140_spill] sm:$0xff] %v8221_v61  ;;  %12661 = vst [vmem:[#allocation141_spill] sm:$0xff] %v8223_v7  ;;  %v437_v37 = vand.u32 4294901760, %v153_v39  ;;  %v8247_v36 = vsub.f32 %v152_v17, %v2999_v0  ;;  %v439_v61 = vand.u32 4294901760, %v158_v34  ;;  %v8255_v28 = vsub.f32 %v149_v59, %v433_v53  ;;  %v170_v7 = vld [vmem:[#allocation8 + $0x368] sm:$0xff] }
  0x7b   :  { %12662 = vst [vmem:[#allocation142_spill] sm:$0xff] %v8225_v15  ;;  %12663 = vst [vmem:[#allocation143_spill] sm:$0xff] %v8227_v16  ;;  %v443_v15 = vand.u32 4294901760, %v162_v2  ;;  %v8249_v11 = vpack.c.bf16 %v3003_v8, %v2999_v0  ;;  %v8251_v42 = vsub.f32 %v156_v1, %v3003_v8  ;;  %v8259_v17 = vpack.c.bf16 %v3005_v55, %v3001_v40  ;;  %v163_v16 = vld [vmem:[#allocation8 + $0x330] sm:$0xff]  ;;  %v166_v0 = vld [vmem:[#allocation8 + $0x348] sm:$0xff] }
  0x7c   :  { %12664 = vst [vmem:[#allocation144_spill] sm:$0xff] %v8229_v26  ;;  %12665 = vst [vmem:[#allocation145_spill] sm:$0xff] %v8231_v51  ;;  %v8253_v13 = vpack.c.bf16 %v437_v37, %v433_v53  ;;  %v157_v51 = vld [vmem:[#allocation8 + $0x300] sm:$0xff]  ;;  %v8257_v26 = vsub.f32 %v153_v39, %v437_v37  ;;  %v8269_v59 = vsub.f32 %v158_v34, %v439_v61 }
  0x7d   :  { %12666 = vst [vmem:[#allocation146_spill] sm:$0xff] %v8233_v19  ;;  %12667 = vst [vmem:[#allocation147_spill] sm:$0xff] %v8235_v33  ;;  %v160_v33 = vld [vmem:[#allocation8 + $0x318] sm:$0xff]  ;;  %6967 = vmatprep.subr.bf16.mxu1 %v8249_v11  ;;  %v8267_v1 = vpack.c.bf16 %v443_v15, %v439_v61  ;;  %v8271_v8 = vsub.f32 %v162_v2, %v443_v15  ;;  %v441_v53 = vand.u32 4294901760, %v157_v51 }
  0x7e   :  { %12668 = vst [vmem:[#allocation148_spill] sm:$0xff] %v8239_v47  ;;  %12669 = vst [vmem:[#allocation149_spill] sm:$0xff] %v8241_v10  ;;  %v164_v19 = vld [vmem:[#allocation8 + $0x338] sm:$0xff]  ;;  %v159_v10 = vld [vmem:[#allocation8 + $0x310] sm:$0xff]  ;;  %v8261_v47 = vsub.f32 %v151_v32, %v3001_v40  ;;  %6201 = vmatpush1.bf16.msra.mxu0 %v8253_v13  ;;  %v3007_v39 = vand.u32 4294901760, %v160_v33  ;;  %6969 = vmatpush1.bf16.msra.mxu1 %v8259_v17 }
  0x7f   :  { %12670 = vst [vmem:[#allocation150_spill] sm:$0xff] %v8243_v49  ;;  %12671 = vst [vmem:[#allocation151_spill] sm:$0xff] %v8247_v36  ;;  %v161_v49 = vld [vmem:[#allocation8 + $0x320] sm:$0xff]  ;;  %v8263_v36 = vsub.f32 %v155_v48, %v3005_v55  ;;  %v3011_v32 = vand.u32 4294901760, %v164_v19  ;;  %v3009_v37 = vand.u32 4294901760, %v159_v10  ;;  %6203 = vmatprep.subr.bf16.mxu0 %v8267_v1  ;;  %v3013_v55 = vand.u32 4294901760, %v163_v16 }
  0x80   :  { %12672 = vst [vmem:[#allocation152_spill] sm:$0xff] %v8249_v11  ;;  %12673 = vst [vmem:[#allocation153_spill] sm:$0xff] %v8251_v42  ;;  %v445_v48 = vand.u32 4294901760, %v161_v49  ;;  %v8275_v40 = vsub.f32 %v160_v33, %v3007_v39  ;;  %v447_v11 = vand.u32 4294901760, %v166_v0  ;;  %v8283_v34 = vsub.f32 %v157_v51, %v441_v53  ;;  %v178_v42 = vld [vmem:[#allocation8 + $0x3a8] sm:$0xff] }
  0x81   :  { %12674 = vst [vmem:[#allocation154_spill] sm:$0xff] %v8253_v13  ;;  %12675 = vst [vmem:[#allocation155_spill] sm:$0xff] %v8255_v28  ;;  %v451_v13 = vand.u32 4294901760, %v170_v7  ;;  %v8277_v61 = vpack.c.bf16 %v3011_v32, %v3007_v39  ;;  %v8279_v2 = vsub.f32 %v164_v19, %v3011_v32  ;;  %v8287_v33 = vpack.c.bf16 %v3013_v55, %v3009_v37  ;;  %v171_v28 = vld [vmem:[#allocation8 + $0x370] sm:$0xff]  ;;  %v174_v39 = vld [vmem:[#allocation8 + $0x388] sm:$0xff] }
  0x82   :  { %12676 = vst [vmem:[#allocation156_spill] sm:$0xff] %v8257_v26  ;;  %12677 = vst [vmem:[#allocation157_spill] sm:$0xff] %v8259_v17  ;;  %v8281_v15 = vpack.c.bf16 %v445_v48, %v441_v53  ;;  %v165_v17 = vld [vmem:[#allocation8 + $0x340] sm:$0xff]  ;;  %v8285_v26 = vsub.f32 %v161_v49, %v445_v48  ;;  %v8297_v51 = vsub.f32 %v166_v0, %v447_v11 }
  0x83   :  { %12678 = vst [vmem:[#allocation158_spill] sm:$0xff] %v8261_v47  ;;  %12679 = vst [vmem:[#allocation159_spill] sm:$0xff] %v8263_v36  ;;  %v168_v36 = vld [vmem:[#allocation8 + $0x358] sm:$0xff]  ;;  %6971 = vmatprep.subr.bf16.mxu1 %v8277_v61  ;;  %v8295_v19 = vpack.c.bf16 %v451_v13, %v447_v11  ;;  %v8299_v32 = vsub.f32 %v170_v7, %v451_v13  ;;  %v449_v53 = vand.u32 4294901760, %v165_v17 }
  0x84   :  { %12680 = vst [vmem:[#allocation160_spill] sm:$0xff] %v8267_v1  ;;  %12681 = vst [vmem:[#allocation161_spill] sm:$0xff] %v8269_v59  ;;  %v172_v47 = vld [vmem:[#allocation8 + $0x378] sm:$0xff]  ;;  %v167_v59 = vld [vmem:[#allocation8 + $0x350] sm:$0xff]  ;;  %v8289_v1 = vsub.f32 %v159_v10, %v3009_v37  ;;  %6205 = vmatpush1.bf16.msra.mxu0 %v8281_v15  ;;  %v3015_v49 = vand.u32 4294901760, %v168_v36  ;;  %6973 = vmatpush1.bf16.msra.mxu1 %v8287_v33 }
  0x85   :  { %12682 = vst [vmem:[#allocation162_spill] sm:$0xff] %v8271_v8  ;;  %12683 = vst [vmem:[#allocation163_spill] sm:$0xff] %v8275_v40  ;;  %v169_v8 = vld [vmem:[#allocation8 + $0x360] sm:$0xff]  ;;  %v8291_v40 = vsub.f32 %v163_v16, %v3013_v55  ;;  %v3019_v10 = vand.u32 4294901760, %v172_v47  ;;  %v3017_v48 = vand.u32 4294901760, %v167_v59  ;;  %6207 = vmatprep.subr.bf16.mxu0 %v8295_v19  ;;  %v3021_v55 = vand.u32 4294901760, %v171_v28 }
  0x86   :  { %12684 = vst [vmem:[#allocation164_spill] sm:$0xff] %v8277_v61  ;;  %12685 = vst [vmem:[#allocation165_spill] sm:$0xff] %v8279_v2  ;;  %v453_v16 = vand.u32 4294901760, %v169_v8  ;;  %v8303_v37 = vsub.f32 %v168_v36, %v3015_v49  ;;  %v455_v61 = vand.u32 4294901760, %v174_v39  ;;  %v8311_v0 = vsub.f32 %v165_v17, %v449_v53  ;;  %v186_v2 = vld [vmem:[#allocation8 + $0x3e8] sm:$0xff] }
  0x87   :  { %12686 = vst [vmem:[#allocation166_spill] sm:$0xff] %v8281_v15  ;;  %12687 = vst [vmem:[#allocation167_spill] sm:$0xff] %v8283_v34  ;;  %v459_v15 = vand.u32 4294901760, %v178_v42  ;;  %v8305_v11 = vpack.c.bf16 %v3019_v10, %v3015_v49  ;;  %v8307_v7 = vsub.f32 %v172_v47, %v3019_v10  ;;  %v8315_v36 = vpack.c.bf16 %v3021_v55, %v3017_v48  ;;  %v179_v34 = vld [vmem:[#allocation8 + $0x3b0] sm:$0xff]  ;;  %v182_v49 = vld [vmem:[#allocation8 + $0x3c8] sm:$0xff] }
  0x88   :  { %12688 = vst [vmem:[#allocation168_spill] sm:$0xff] %v8285_v26  ;;  %12689 = vst [vmem:[#allocation169_spill] sm:$0xff] %v8287_v33  ;;  %v8309_v13 = vpack.c.bf16 %v453_v16, %v449_v53  ;;  %v173_v33 = vld [vmem:[#allocation8 + $0x380] sm:$0xff]  ;;  %v8313_v26 = vsub.f32 %v169_v8, %v453_v16  ;;  %v8325_v17 = vsub.f32 %v174_v39, %v455_v61 }
  0x89   :  { %12690 = vst [vmem:[#allocation170_spill] sm:$0xff] %v8289_v1  ;;  %12691 = vst [vmem:[#allocation171_spill] sm:$0xff] %v8291_v40  ;;  %v176_v40 = vld [vmem:[#allocation8 + $0x398] sm:$0xff]  ;;  %6975 = vmatprep.subr.bf16.mxu1 %v8305_v11  ;;  %v8323_v47 = vpack.c.bf16 %v459_v15, %v455_v61  ;;  %v8327_v10 = vsub.f32 %v178_v42, %v459_v15  ;;  %v457_v53 = vand.u32 4294901760, %v173_v33 }
  0x8a   :  { %12692 = vst [vmem:[#allocation172_spill] sm:$0xff] %v8295_v19  ;;  %12693 = vst [vmem:[#allocation173_spill] sm:$0xff] %v8297_v51  ;;  %v180_v1 = vld [vmem:[#allocation8 + $0x3b8] sm:$0xff]  ;;  %v175_v51 = vld [vmem:[#allocation8 + $0x390] sm:$0xff]  ;;  %v8317_v19 = vsub.f32 %v167_v59, %v3017_v48  ;;  %6209 = vmatpush1.bf16.msra.mxu0 %v8309_v13  ;;  %v3023_v8 = vand.u32 4294901760, %v176_v40  ;;  %6977 = vmatpush1.bf16.msra.mxu1 %v8315_v36 }
  0x8b   :  { %12694 = vst [vmem:[#allocation174_spill] sm:$0xff] %v8299_v32  ;;  %12695 = vst [vmem:[#allocation175_spill] sm:$0xff] %v8303_v37  ;;  %v177_v32 = vld [vmem:[#allocation8 + $0x3a0] sm:$0xff]  ;;  %v8319_v37 = vsub.f32 %v171_v28, %v3021_v55  ;;  %v3027_v59 = vand.u32 4294901760, %v180_v1  ;;  %v3025_v16 = vand.u32 4294901760, %v175_v51  ;;  %6211 = vmatprep.subr.bf16.mxu0 %v8323_v47  ;;  %v3029_v55 = vand.u32 4294901760, %v179_v34 }
  0x8c   :  { %12696 = vst [vmem:[#allocation176_spill] sm:$0xff] %v8305_v11  ;;  %12697 = vst [vmem:[#allocation177_spill] sm:$0xff] %v8307_v7  ;;  %v461_v28 = vand.u32 4294901760, %v177_v32  ;;  %v8331_v48 = vsub.f32 %v176_v40, %v3023_v8  ;;  %v463_v11 = vand.u32 4294901760, %v182_v49  ;;  %v8339_v39 = vsub.f32 %v173_v33, %v457_v53 }
  0x8d   :  { %12698 = vst [vmem:[#allocation178_spill] sm:$0xff] %v8309_v13  ;;  %12699 = vst [vmem:[#allocation179_spill] sm:$0xff] %v8311_v0  ;;  %v467_v13 = vand.u32 4294901760, %v186_v2  ;;  %v8333_v61 = vpack.c.bf16 %v3027_v59, %v3023_v8  ;;  %v8335_v42 = vsub.f32 %v180_v1, %v3027_v59  ;;  %v8343_v40 = vpack.c.bf16 %v3029_v55, %v3025_v16  ;;  %v187_v0 = vld [vmem:[#allocation8 + $0x3f0] sm:$0xff]  ;;  %v8349_v8 = vld [vmem:[#allocation3] sm:$0xf] }
  0x8e   :  { %12700 = vst [vmem:[#allocation180_spill] sm:$0xff] %v8313_v26  ;;  %12701 = vst [vmem:[#allocation181_spill] sm:$0xff] %v8315_v36  ;;  %v8337_v15 = vpack.c.bf16 %v461_v28, %v457_v53  ;;  %v181_v36 = vld [vmem:[#allocation8 + $0x3c0] sm:$0xff]  ;;  %v8341_v26 = vsub.f32 %v177_v32, %v461_v28  ;;  %v8355_v33 = vsub.f32 %v182_v49, %v463_v11  ;;  %vm317_vm0 = vcmp.gt.f32.partialorder %v8349_v8, 0.0 }
  0x8f   :  { %12702 = vst [vmem:[#allocation182_spill] sm:$0xff] %v8317_v19  ;;  %12703 = vst [vmem:[#allocation183_spill] sm:$0xff] %v8319_v37  ;;  %v184_v37 = vld [vmem:[#allocation8 + $0x3d8] sm:$0xff]  ;;  %6979 = vmatprep.subr.bf16.mxu1 %v8333_v61  ;;  %v8353_v1 = vpack.c.bf16 %v467_v13, %v463_v11  ;;  %v8357_v59 = vsub.f32 %v186_v2, %v467_v13  ;;  %v465_v53 = vand.u32 4294901760, %v181_v36 }
  0x90   :  { %12704 = vst [vmem:[#allocation184_spill] sm:$0xff] %v8323_v47  ;;  %12705 = vst [vmem:[#allocation185_spill] sm:$0xff] %v8325_v17  ;;  %v188_v19 = vld [vmem:[#allocation8 + $0x3f8] sm:$0xff]  ;;  %v183_v17 = vld [vmem:[#allocation8 + $0x3d0] sm:$0xff]  ;;  %v8345_v47 = vsub.f32 %v175_v51, %v3025_v16  ;;  %6213 = vmatpush1.bf16.msra.mxu0 %v8337_v15  ;;  %v3031_v32 = vand.u32 4294901760, %v184_v37  ;;  %6981 = vmatpush1.bf16.msra.mxu1 %v8343_v40 }
  0x91   :  { %12706 = vst [vmem:[#allocation186_spill] sm:$0xff] %v8327_v10  ;;  %12707 = vst [vmem:[#allocation187_spill] sm:$0xff] %v8331_v48  ;;  %v185_v10 = vld [vmem:[#allocation8 + $0x3e0] sm:$0xff]  ;;  %v8347_v48 = vsub.f32 %v179_v34, %v3029_v55  ;;  %v3035_v51 = vand.u32 4294901760, %v188_v19  ;;  %v3033_v28 = vand.u32 4294901760, %v183_v17  ;;  %6215 = vmatprep.subr.bf16.mxu0 %v8353_v1  ;;  %v3037_v55 = vand.u32 4294901760, %v187_v0 }
  0x92   :  { %12708 = vst [vmem:[#allocation188_spill] sm:$0xff] %v8333_v61  ;;  %12709 = vst [vmem:[#allocation189_spill] sm:$0xff] %v8335_v42  ;;  %v469_v34 = vand.u32 4294901760, %v185_v10  ;;  %v8361_v16 = vsub.f32 %v184_v37, %v3031_v32  ;;  %v8371_v49 = vsub.f32 %v181_v36, %v465_v53 }
  0x93   :  { %12710 = vst [vmem:[#allocation190_spill] sm:$0xff] %v8337_v15  ;;  %12711 = vst [vmem:[#allocation191_spill] sm:$0xff] %v8339_v39  ;;  %v11853_v15 = vand.u32 4294901760, %v7934_v20  ;;  %v8365_v11 = vpack.c.bf16 %v3035_v51, %v3031_v32  ;;  %v8367_v2 = vsub.f32 %v188_v19, %v3035_v51  ;;  %v8375_v61 = vpack.c.bf16 %v3037_v55, %v3033_v28 }
  0x94   :  { %12712 = vst [vmem:[#allocation192_spill] sm:$0xff] %v8341_v26  ;;  %12713 = vst [vmem:[#allocation193_spill] sm:$0xff] %v8343_v40  ;;  %v8369_v13 = vpack.c.bf16 %v469_v34, %v465_v53  ;;  %v8373_v40 = vsub.f32 %v185_v10, %v469_v34  ;;  %v8379_v37 = vsub.f32 %v187_v0, %v3037_v55  ;;  %v318_v19 = vsel %vm317_vm0, %v8349_v8, 1.0 }
  0x95   :  { %12714 = vst [vmem:[#allocation194_spill] sm:$0xff] %v8345_v47  ;;  %12715 = vst [vmem:[#allocation195_spill] sm:$0xff] %v8347_v48  ;;  %6983 = vmatprep.subr.bf16.mxu1 %v8365_v11  ;;  %v491_v36 = vsub.f32 %v7934_v20, %v11853_v15  ;;  %v11854_v10 = vand.u32 4294901760, %v7936_v21  ;;  %v11859_v32 = vand.u32 4294901760, %v7938_v22  ;;  %7751 = vrcp.f32 %v318_v19 }
  0x96   :  { %12716 = vst [vmem:[#allocation196_spill] sm:$0xff] %v8349_v8  ;;  %12717 = vst [vmem:[#allocation197_spill] sm:$0xff] %v8353_v1  ;;  %v8377_v1 = vsub.f32 %v183_v17, %v3033_v28  ;;  %6217 = vmatpush1.bf16.msra.mxu0 %v8369_v13  ;;  %6985 = vmatpush1.bf16.msra.mxu1 %v8375_v61  ;;  %v11864_v0 = vand.u32 4294901760, %v7942_v27  ;;  %v11867_v17 = vand.u32 4294901760, %v7946_v29  ;;  %v11872_v51 = vand.u32 4294901760, %v7949_v31 }
  0x97   :  { %12718 = vst [vmem:[#allocation198_spill] sm:$0xff] %v8355_v33  ;;  %12719 = vst [vmem:[#allocation199_spill] sm:$0xff] %v8357_v59  ;;  %v492_v53 = vand.u32 4294901760, %v491_v36  ;;  %v503_v34 = vsub.f32 %v7936_v21, %v11854_v10  ;;  %v3059_v28 = vsub.f32 %v7938_v22, %v11859_v32  ;;  %v11875_v55 = vand.u32 4294901760, %v7955_v43 }
  0x98   :  { %12720 = vst [vmem:[#allocation200_spill] sm:$0xff] %v8361_v16  ;;  %12721 = vst [vmem:[#allocation201_spill] sm:$0xff] %v8365_v11  ;;  %v3071_v19 = vsub.f32 %v7942_v27, %v11864_v0  ;;  %v497_v15 = vsub.f32 %v7946_v29, %v11867_v17  ;;  %v509_v36 = vsub.f32 %v7949_v31, %v11872_v51  ;;  %v11878_v10 = vand.u32 4294901760, %v7957_v44 }
  0x99   :  { %12722 = vst [vmem:[#allocation202_spill] sm:$0xff] %v8367_v2  ;;  %12723 = vst [vmem:[#allocation203_spill] sm:$0xff] %v8369_v13  ;;  %v3060_v13 = vand.u32 4294901760, %v3059_v28  ;;  %v3065_v32 = vsub.f32 %v7955_v43, %v11875_v55  ;;  %v11882_v11 = vand.u32 4294901760, %v7959_v45  ;;  %v11880_v28 = vand.u32 4294901760, %v7963_v50 }
  0x9a   :  { %12724 = vst [vmem:[#allocation204_spill] sm:$0xff] %v8371_v49  ;;  %12725 = vst [vmem:[#allocation205_spill] sm:$0xff] %v8373_v40  ;;  %v3072_v22 = vand.u32 4294901760, %v3071_v19  ;;  %v498_v0 = vand.u32 4294901760, %v497_v15  ;;  %v510_v27 = vand.u32 4294901760, %v509_v36  ;;  %v3077_v17 = vsub.f32 %v7957_v44, %v11878_v10 }
  0x9b   :  { %12726 = vst [vmem:[#allocation206_spill] sm:$0xff] %v8375_v61  ;;  %12727 = vst [vmem:[#allocation207_spill] sm:$0xff] %v8377_v1  ;;  %v504_v61 = vand.u32 4294901760, %v503_v34  ;;  %v3066_v21 = vand.u32 4294901760, %v3065_v32  ;;  %v515_v34 = vsub.f32 %v7959_v45, %v11882_v11  ;;  %v11876_v19 = vand.u32 4294901760, %v7967_v52 }
  0x9c   :  { %12728 = vst [vmem:[#allocation208_spill] sm:$0xff] %v8379_v37  ;;  %v6986_v51 = vpack.c.bf16 %v3072_v22, %v3060_v13  ;;  %v8423_v31 = vpack.c.bf16 %v510_v27, %v498_v0  ;;  %v3078_v55 = vand.u32 4294901760, %v3077_v17  ;;  %v527_v36 = vsub.f32 %v7963_v50, %v11880_v28 }
  0x9d   :  { %v6218_v29 = vpack.c.bf16 %v504_v61, %v492_v53  ;;  %v516_v15 = vand.u32 4294901760, %v515_v34  ;;  %v11877_v61 = vand.u32 4294901760, %v7970_v54  ;;  %v11879_v32 = vand.u32 4294901760, %v7972_v56 }
  0x9e   :  { %6987 = vmatprep.subr.bf16.mxu1 %v6986_v51  ;;  %v8431_v53 = vpack.c.bf16 %v3078_v55, %v3066_v21  ;;  %v3083_v22 = vsub.f32 %v7967_v52, %v11876_v19  ;;  %v11881_v27 = vand.u32 4294901760, %v7978_v3  ;;  %v528_v13 = vand.u32 4294901760, %v527_v36 }
  0x9f   :  { %6219 = vmatprep.subr.bf16.mxu0 %v6218_v29  ;;  %v11885_v29 = vand.u32 4294901760, %v7980_v4  ;;  %v3095_v0 = vsub.f32 %v7970_v54, %v11877_v61  ;;  %v521_v17 = vsub.f32 %v7972_v56, %v11879_v32  ;;  %v7752_v51 = vpop.eup %7751  ;;  %v11907_v8 = vand.u32 4294901760, %v8006_v46 }
  0xa0   :  { %v3084_v55 = vand.u32 4294901760, %v3083_v22  ;;  %v533_v34 = vsub.f32 %v7978_v3, %v11881_v27  ;;  %v8454_v61 = vsel %vm317_vm0, %v7752_v51, 0.0  ;;  %v8456_v10 = vpack.c.bf16 %v528_v13, %v516_v15 }
  0xa1   :  { %v3089_v36 = vsub.f32 %v7980_v4, %v11885_v29  ;;  %12729 = vst [vmem:[#allocation209_spill] sm:$0xff] %v8454_v61  ;;  %v3096_v32 = vand.u32 4294901760, %v3095_v0  ;;  %v522_v28 = vand.u32 4294901760, %v521_v17  ;;  %v330_v22 = vrot.slane %v8454_v61, %v7927_v5 }
  0xa2   :  { %v326_v27 = vrot.slane %v8454_v61, %v7930_v6  ;;  %v534_v11 = vand.u32 4294901760, %v533_v34  ;;  %v12730_v29 = vand.u32 4294901760, %v7984_v12  ;;  %v12731_v51 = vand.u32 4294901760, %v7988_v14 }
  0xa3   :  { %v3090_v21 = vand.u32 4294901760, %v3089_v36  ;;  %v6990_v3 = vpack.c.bf16 %v3096_v32, %v3084_v55  ;;  %v11890_v13 = vand.u32 4294901760, %v7991_v18  ;;  %v8469_v0 = vand.u32 4294901760, %v330_v22 }
  0xa4   :  { %v3101_v19 = vsub.f32 %v7984_v12, %v12730_v29  ;;  %v539_v15 = vsub.f32 %v7988_v14, %v12731_v51  ;;  %v8471_v17 = vand.u32 4294901760, %v326_v27  ;;  %v8473_v5 = vpack.c.bf16 %v534_v11, %v522_v28 }
  0xa5   :  { %12732 = vst [vmem:[#allocation210_spill] sm:$0xff] %v8469_v0  ;;  %v11895_v34 = vand.u32 4294901760, %v7995_v24  ;;  %v551_v29 = vsub.f32 %v7991_v18, %v11890_v13  ;;  %v11898_v55 = vand.u32 4294901760, %v7997_v25  ;;  %v8481_v51 = vsub.f32 %v330_v22, %v8469_v0 }
  0xa6   :  { %12733 = vst [vmem:[#allocation211_spill] sm:$0xff] %v8471_v17  ;;  %v3102_v36 = vand.u32 4294901760, %v3101_v19  ;;  %v540_v32 = vand.u32 4294901760, %v539_v15  ;;  %v8484_v6 = vsub.f32 %v326_v27, %v8471_v17  ;;  %v11908_v28 = vand.u32 4294901760, %v8004_v41 }
  0xa7   :  { %12734 = vst [vmem:[#allocation212_spill] sm:$0xff] %v8481_v51  ;;  %v3107_v11 = vsub.f32 %v7995_v24, %v11895_v34  ;;  %v552_v15 = vand.u32 4294901760, %v551_v29  ;;  %v3119_v13 = vsub.f32 %v7997_v25, %v11898_v55  ;;  %v8495_v22 = vand.u32 4294901760, %v8481_v51 }
  0xa8   :  { %12735 = vst [vmem:[#allocation213_spill] sm:$0xff] %v8484_v6  ;;  %v6992_v19 = vpack.c.bf16 %v3102_v36, %v3090_v21  ;;  %v8498_v27 = vand.u32 4294901760, %v8484_v6  ;;  %v545_v34 = vsub.f32 %v8004_v41, %v11908_v28  ;;  %v557_v36 = vsub.f32 %v8006_v46, %v11907_v8 }
  0xa9   :  { %12736 = vst [vmem:[#allocation214_spill] sm:$0xff] %v8495_v22  ;;  %v3108_v61 = vand.u32 4294901760, %v3107_v11  ;;  %v6226_v24 = vpack.c.bf16 %v552_v15, %v540_v32  ;;  %v3120_v21 = vand.u32 4294901760, %v3119_v13  ;;  %v11914_v29 = vand.u32 4294901760, %v8010_v57 }
  0xaa   :  { %12737 = vst [vmem:[#allocation215_spill] sm:$0xff] %v8498_v27  ;;  %v474_v55 = vsub.f32 %v8481_v51, %v8495_v22  ;;  %v480_v25 = vsub.f32 %v8484_v6, %v8498_v27  ;;  %v546_v18 = vand.u32 4294901760, %v545_v34  ;;  %v11913_v11 = vand.u32 4294901760, %v8012_v58  ;;  %v12742_v6 = vld [vmem:[#allocation71_spill] sm:$0xff] }
  0xab   :  { %v6994_v14 = vpack.c.bf16 %v3120_v21, %v3108_v61  ;;  %v558_v12 = vand.u32 4294901760, %v557_v36  ;;  %v3113_v13 = vsub.f32 %v8010_v57, %v11914_v29  ;;  %v11918_v32 = vand.u32 4294901760, %v8016_v60 }
  0xac   :  { %v475_v15 = vand.u32 4294901760, %v474_v55  ;;  %v481_v8 = vand.u32 4294901760, %v480_v25  ;;  %v3125_v28 = vsub.f32 %v8012_v58, %v11913_v11  ;;  %v11915_v22 = vand.u32 4294901760, %v8020_v62 }
  0xad   :  { %v6228_v27 = vpack.c.bf16 %v558_v12, %v546_v18  ;;  %v3114_v34 = vand.u32 4294901760, %v3113_v13  ;;  %v563_v61 = vsub.f32 %v8016_v60, %v11918_v32  ;;  %v11917_v21 = vand.u32 4294901760, %v8024_v30 }
  0xae   :  { %476 = vmatprep.mubr.f32.mxu0 %v475_v15  ;;  %3044 = vmatprep.mubr.f32.mxu1 %v475_v15  ;;  %v3126_v36 = vand.u32 4294901760, %v3125_v28  ;;  %v575_v25 = vsub.f32 %v8020_v62, %v11915_v22  ;;  %v11916_v55 = vand.u32 4294901760, %v8027_v9  ;;  %v11920_v11 = vand.u32 4294901760, %v8030_v35 }
  0xaf   :  { %482 = vmatmul.mubr.f32.vlgmr.msra.gmra.mrb[0].mxu0 %v481_v8  ;;  %3050 = vmatmul.mubr.f32.vlgmr.msra.gmra.mrb[0].mxu1 %v481_v8  ;;  %v564_v12 = vand.u32 4294901760, %v563_v61  ;;  %v3131_v18 = vsub.f32 %v8024_v30, %v11917_v21  ;;  %v11919_v13 = vand.u32 4294901760, %v8034_v23  ;;  %v11921_v15 = vand.u32 4294901760, %v8038_v38  ;;  %v12738_v21 = vld [vmem:[#allocation65_spill] sm:$0xff] }
  0xb0   :  { %6221 = vmatpush1.bf16.msra.mxu0 %v8423_v31  ;;  %6989 = vmatpush1.bf16.msra.mxu1 %v8431_v53  ;;  %v6996_v28 = vpack.c.bf16 %v3126_v36, %v3114_v34  ;;  %v576_v29 = vand.u32 4294901760, %v575_v25  ;;  %v3143_v22 = vsub.f32 %v8027_v9, %v11916_v55  ;;  %v569_v8 = vsub.f32 %v8030_v35, %v11920_v11 }
  0xb1   :  { %6223 = vmatprep.subr.bf16.mxu0 %v8456_v10  ;;  %6991 = vmatprep.subr.bf16.mxu1 %v6990_v3  ;;  %v3132_v61 = vand.u32 4294901760, %v3131_v18  ;;  %v581_v31 = vsub.f32 %v8034_v23, %v11919_v13  ;;  %v3137_v53 = vsub.f32 %v8038_v38, %v11921_v15  ;;  %v11924_v34 = vand.u32 4294901760, %v8040_v63  ;;  %v12739_v13 = vld [vmem:[#allocation66_spill] sm:$0xff]  ;;  %v12741_v15 = vld [vmem:[#allocation69_spill] sm:$0xff] }
  0xb2   :  { %v6230_v36 = vpack.c.bf16 %v576_v29, %v564_v12  ;;  %v3144_v25 = vand.u32 4294901760, %v3143_v22  ;;  %v570_v55 = vand.u32 4294901760, %v569_v8  ;;  %v11927_v32 = vand.u32 4294901760, %v12738_v21  ;;  %873 = vmatprep.mubr.f32.mxu0 %v8469_v0  ;;  %3441 = vmatprep.mubr.f32.mxu1 %v8469_v0  ;;  %v12740_v12 = vld [vmem:[#allocation67_spill] sm:$0xff] }
  0xb3   :  { %v582_v3 = vand.u32 4294901760, %v581_v31  ;;  %v3138_v10 = vand.u32 4294901760, %v3137_v53  ;;  %v3149_v18 = vsub.f32 %v8040_v63, %v11924_v34  ;;  %v11928_v11 = vand.u32 4294901760, %v12739_v13 }
  0xb4   :  { %6225 = vmatpush1.bf16.msra.mxu0 %v8473_v5  ;;  %6993 = vmatpush1.bf16.msra.mxu1 %v6992_v19  ;;  %v6998_v29 = vpack.c.bf16 %v3144_v25, %v3132_v61  ;;  %v587_v22 = vsub.f32 %v12738_v21, %v11927_v32  ;;  %v11931_v8 = vand.u32 4294901760, %v12740_v12  ;;  %v11933_v0 = vand.u32 4294901760, %v12741_v15  ;;  %v12743_v32 = vld [vmem:[#allocation72_spill] sm:$0xff] }
  0xb5   :  { %6227 = vmatprep.subr.bf16.mxu0 %v6226_v24  ;;  %6995 = vmatprep.subr.bf16.mxu1 %v6994_v14  ;;  %v6232_v31 = vpack.c.bf16 %v582_v3, %v570_v55  ;;  %v3150_v53 = vand.u32 4294901760, %v3149_v18  ;;  %v599_v34 = vsub.f32 %v12739_v13, %v11928_v11  ;;  %v11934_v5 = vand.u32 4294901760, %v12742_v6  ;;  %v12744_v18 = vld [vmem:[#allocation74_spill] sm:$0xff] }
  0xb6   :  { %v588_v19 = vand.u32 4294901760, %v587_v22  ;;  %v3155_v61 = vsub.f32 %v12740_v12, %v11931_v8  ;;  %v3167_v25 = vsub.f32 %v12741_v15, %v11933_v0  ;;  %v11936_v24 = vand.u32 4294901760, %v12743_v32  ;;  %v12745_v12 = vld [vmem:[#allocation75_spill] sm:$0xff] }
  0xb7   :  { %v7000_v14 = vpack.c.bf16 %v3150_v53, %v3138_v10  ;;  %v600_v55 = vand.u32 4294901760, %v599_v34  ;;  %v593_v3 = vsub.f32 %v12742_v6, %v11934_v5  ;;  %v11938_v11 = vand.u32 4294901760, %v12744_v18  ;;  %v12746_v5 = vld [vmem:[#allocation77_spill] sm:$0xff] }
  0xb8   :  { %6229 = vmatpush1.bf16.msra.mxu0 %v6228_v27  ;;  %6997 = vmatpush1.bf16.msra.mxu1 %v6996_v28  ;;  %v3156_v22 = vand.u32 4294901760, %v3155_v61  ;;  %v3168_v51 = vand.u32 4294901760, %v3167_v25  ;;  %v605_v8 = vsub.f32 %v12743_v32, %v11936_v24  ;;  %v11939_v0 = vand.u32 4294901760, %v12745_v12  ;;  %v12747_v25 = vld [vmem:[#allocation78_spill] sm:$0xff] }
  0xb9   :  { %6231 = vmatprep.subr.bf16.mxu0 %v6230_v36  ;;  %6999 = vmatprep.subr.bf16.mxu1 %v6998_v29  ;;  %v6234_v10 = vpack.c.bf16 %v600_v55, %v588_v19  ;;  %v594_v34 = vand.u32 4294901760, %v593_v3  ;;  %v3161_v53 = vsub.f32 %v12744_v18, %v11938_v11  ;;  %v11940_v6 = vand.u32 4294901760, %v12746_v5  ;;  %v12748_v29 = vld [vmem:[#allocation79_spill] sm:$0xff]  ;;  %v12749_v55 = vld [vmem:[#allocation81_spill] sm:$0xff] }
  0xba   :  { %v7002_v27 = vpack.c.bf16 %v3168_v51, %v3156_v22  ;;  %v606_v28 = vand.u32 4294901760, %v605_v8  ;;  %v3173_v61 = vsub.f32 %v12745_v12, %v11939_v0  ;;  %v11941_v24 = vand.u32 4294901760, %v12747_v25  ;;  %v12750_v22 = vld [vmem:[#allocation83_spill] sm:$0xff]  ;;  %v12752_v12 = vld [vmem:[#allocation86_spill] sm:$0xff] }
  0xbb   :  { %v3162_v32 = vand.u32 4294901760, %v3161_v53  ;;  %v611_v36 = vsub.f32 %v12746_v5, %v11940_v6  ;;  %v11943_v19 = vand.u32 4294901760, %v12748_v29  ;;  %v11946_v3 = vand.u32 4294901760, %v12749_v55 }
  0xbc   :  { %6233 = vmatpush1.bf16.msra.mxu0 %v6232_v31  ;;  %7001 = vmatpush1.bf16.msra.mxu1 %v7000_v14  ;;  %v6236_v11 = vpack.c.bf16 %v606_v28, %v594_v34  ;;  %v3174_v51 = vand.u32 4294901760, %v3173_v61  ;;  %v623_v8 = vsub.f32 %v12747_v25, %v11941_v24  ;;  %v11948_v0 = vand.u32 4294901760, %v12750_v22  ;;  %v12751_v14 = vld [vmem:[#allocation84_spill] sm:$0xff] }
  0xbd   :  { %6235 = vmatprep.subr.bf16.mxu0 %v6234_v10  ;;  %7003 = vmatprep.subr.bf16.mxu1 %v7002_v27  ;;  %v612_v53 = vand.u32 4294901760, %v611_v36  ;;  %v3179_v6 = vsub.f32 %v12748_v29, %v11943_v19  ;;  %v3191_v31 = vsub.f32 %v12749_v55, %v11946_v3  ;;  %v11950_v34 = vand.u32 4294901760, %v12751_v14  ;;  %v12753_v29 = vld [vmem:[#allocation87_spill] sm:$0xff] }
  0xbe   :  { %v7004_v28 = vpack.c.bf16 %v3174_v51, %v3162_v32  ;;  %v624_v61 = vand.u32 4294901760, %v623_v8  ;;  %v617_v24 = vsub.f32 %v12750_v22, %v11948_v0  ;;  %v11952_v10 = vand.u32 4294901760, %v12752_v12  ;;  %v12754_v51 = vld [vmem:[#allocation89_spill] sm:$0xff] }
  0xbf   :  { %v3180_v27 = vand.u32 4294901760, %v3179_v6  ;;  %v3192_v36 = vand.u32 4294901760, %v3191_v31  ;;  %v629_v19 = vsub.f32 %v12751_v14, %v11950_v34  ;;  %v11953_v18 = vand.u32 4294901760, %v12753_v29  ;;  %v12755_v31 = vld [vmem:[#allocation90_spill] sm:$0xff] }
  0xc0   :  { %6237 = vmatpush1.bf16.msra.mxu0 %v6236_v11  ;;  %7005 = vmatpush1.bf16.msra.mxu1 %v7004_v28  ;;  %v6238_v3 = vpack.c.bf16 %v624_v61, %v612_v53  ;;  %v618_v55 = vand.u32 4294901760, %v617_v24  ;;  %v3185_v32 = vsub.f32 %v12752_v12, %v11952_v10  ;;  %v11955_v8 = vand.u32 4294901760, %v12754_v51  ;;  %v12756_v24 = vld [vmem:[#allocation91_spill] sm:$0xff]  ;;  %v12757_v28 = vld [vmem:[#allocation93_spill] sm:$0xff] }
  0xc1   :  { %v7006_v0 = vpack.c.bf16 %v3192_v36, %v3180_v27  ;;  %v630_v22 = vand.u32 4294901760, %v629_v19  ;;  %v3197_v6 = vsub.f32 %v12753_v29, %v11953_v18  ;;  %v11957_v34 = vand.u32 4294901760, %v12755_v31  ;;  %v12758_v36 = vld [vmem:[#allocation95_spill] sm:$0xff] }
  0xc2   :  { %6239 = vmatprep.subr.bf16.mxu0 %v6238_v3  ;;  %v3186_v14 = vand.u32 4294901760, %v3185_v32  ;;  %v635_v11 = vsub.f32 %v12754_v51, %v11955_v8  ;;  %v11959_v53 = vand.u32 4294901760, %v12756_v24  ;;  %v11962_v61 = vand.u32 4294901760, %v12757_v28  ;;  %v12759_v8 = vld [vmem:[#allocation96_spill] sm:$0xff] }
  0xc3   :  { %7007 = vmatprep.subr.bf16.mxu1 %v7006_v0  ;;  %v6240_v10 = vpack.c.bf16 %v630_v22, %v618_v55  ;;  %v3198_v27 = vand.u32 4294901760, %v3197_v6  ;;  %v647_v19 = vsub.f32 %v12755_v31, %v11957_v34  ;;  %v11964_v18 = vand.u32 4294901760, %v12758_v36  ;;  %v12760_v6 = vld [vmem:[#allocation98_spill] sm:$0xff] }
  0xc4   :  { %v636_v29 = vand.u32 4294901760, %v635_v11  ;;  %v3203_v3 = vsub.f32 %v12756_v24, %v11959_v53  ;;  %v3215_v32 = vsub.f32 %v12757_v28, %v11962_v61  ;;  %v11966_v12 = vand.u32 4294901760, %v12759_v8  ;;  %v12761_v24 = vld [vmem:[#allocation99_spill] sm:$0xff] }
  0xc5   :  { %6241 = vmatpush1.bf16.msra.mxu0 %v6240_v10  ;;  %v7008_v0 = vpack.c.bf16 %v3198_v27, %v3186_v14  ;;  %v648_v55 = vand.u32 4294901760, %v647_v19  ;;  %v641_v22 = vsub.f32 %v12758_v36, %v11964_v18  ;;  %v11967_v34 = vand.u32 4294901760, %v12760_v6  ;;  %v12762_v10 = vld [vmem:[#allocation101_spill] sm:$0xff] }
  0xc6   :  { %v3204_v11 = vand.u32 4294901760, %v3203_v3  ;;  %v3216_v31 = vand.u32 4294901760, %v3215_v32  ;;  %v653_v53 = vsub.f32 %v12759_v8, %v11966_v12  ;;  %v11969_v51 = vand.u32 4294901760, %v12761_v24  ;;  %v12763_v32 = vld [vmem:[#allocation102_spill] sm:$0xff] }
  0xc7   :  { %7009 = vmatpush1.bf16.msra.mxu1 %v7008_v0  ;;  %v6242_v61 = vpack.c.bf16 %v648_v55, %v636_v29  ;;  %v642_v28 = vand.u32 4294901760, %v641_v22  ;;  %v3209_v14 = vsub.f32 %v12760_v6, %v11967_v34  ;;  %v11971_v27 = vand.u32 4294901760, %v12762_v10  ;;  %v12764_v0 = vld [vmem:[#allocation103_spill] sm:$0xff]  ;;  %v12765_v22 = vld [vmem:[#allocation105_spill] sm:$0xff] }
  0xc8   :  { %v7010_v19 = vpack.c.bf16 %v3216_v31, %v3204_v11  ;;  %v654_v18 = vand.u32 4294901760, %v653_v53  ;;  %v3221_v3 = vsub.f32 %v12761_v24, %v11969_v51  ;;  %v11973_v36 = vand.u32 4294901760, %v12763_v32  ;;  %v12766_v11 = vld [vmem:[#allocation107_spill] sm:$0xff] }
  0xc9   :  { %6243 = vmatprep.subr.bf16.mxu0 %v6242_v61  ;;  %v3210_v12 = vand.u32 4294901760, %v3209_v14  ;;  %v659_v29 = vsub.f32 %v12762_v10, %v11971_v27  ;;  %v11975_v55 = vand.u32 4294901760, %v12764_v0  ;;  %v11978_v34 = vand.u32 4294901760, %v12765_v22  ;;  %v12767_v27 = vld [vmem:[#allocation108_spill] sm:$0xff] }
  0xca   :  { %7011 = vmatprep.subr.bf16.mxu1 %v7010_v19  ;;  %v6244_v6 = vpack.c.bf16 %v654_v18, %v642_v28  ;;  %v3222_v31 = vand.u32 4294901760, %v3221_v3  ;;  %v671_v53 = vsub.f32 %v12763_v32, %v11973_v36  ;;  %v11980_v51 = vand.u32 4294901760, %v12766_v11  ;;  %v12768_v3 = vld [vmem:[#allocation110_spill] sm:$0xff] }
  0xcb   :  { %v660_v24 = vand.u32 4294901760, %v659_v29  ;;  %v3227_v61 = vsub.f32 %v12764_v0, %v11975_v55  ;;  %v3239_v14 = vsub.f32 %v12765_v22, %v11978_v34  ;;  %v11982_v10 = vand.u32 4294901760, %v12767_v27  ;;  %v12769_v0 = vld [vmem:[#allocation111_spill] sm:$0xff] }
  0xcc   :  { %6245 = vmatpush1.bf16.msra.mxu0 %v6244_v6  ;;  %v7012_v18 = vpack.c.bf16 %v3222_v31, %v3210_v12  ;;  %v672_v28 = vand.u32 4294901760, %v671_v53  ;;  %v665_v19 = vsub.f32 %v12766_v11, %v11980_v51  ;;  %v11983_v36 = vand.u32 4294901760, %v12768_v3  ;;  %v12770_v6 = vld [vmem:[#allocation113_spill] sm:$0xff] }
  0xcd   :  { %v3228_v29 = vand.u32 4294901760, %v3227_v61  ;;  %v3240_v32 = vand.u32 4294901760, %v3239_v14  ;;  %v677_v55 = vsub.f32 %v12767_v27, %v11982_v10  ;;  %v11985_v8 = vand.u32 4294901760, %v12769_v0  ;;  %v12771_v14 = vld [vmem:[#allocation114_spill] sm:$0xff] }
  0xce   :  { %7013 = vmatpush1.bf16.msra.mxu1 %v7012_v18  ;;  %v6246_v34 = vpack.c.bf16 %v672_v28, %v660_v24  ;;  %v666_v22 = vand.u32 4294901760, %v665_v19  ;;  %v3233_v12 = vsub.f32 %v12768_v3, %v11983_v36  ;;  %v11987_v31 = vand.u32 4294901760, %v12770_v6  ;;  %v12772_v18 = vld [vmem:[#allocation115_spill] sm:$0xff]  ;;  %v12773_v19 = vld [vmem:[#allocation117_spill] sm:$0xff] }
  0xcf   :  { %v7014_v53 = vpack.c.bf16 %v3240_v32, %v3228_v29  ;;  %v678_v51 = vand.u32 4294901760, %v677_v55  ;;  %v3245_v61 = vsub.f32 %v12769_v0, %v11985_v8  ;;  %v11989_v11 = vand.u32 4294901760, %v12771_v14  ;;  %v12774_v29 = vld [vmem:[#allocation119_spill] sm:$0xff] }
  0xd0   :  { %6247 = vmatprep.subr.bf16.mxu0 %v6246_v34  ;;  %v3234_v10 = vand.u32 4294901760, %v3233_v12  ;;  %v683_v24 = vsub.f32 %v12770_v6, %v11987_v31  ;;  %v11991_v28 = vand.u32 4294901760, %v12772_v18  ;;  %v11994_v36 = vand.u32 4294901760, %v12773_v19  ;;  %v12775_v31 = vld [vmem:[#allocation120_spill] sm:$0xff] }
  0xd1   :  { %7015 = vmatprep.subr.bf16.mxu1 %v7014_v53  ;;  %v6248_v3 = vpack.c.bf16 %v678_v51, %v666_v22  ;;  %v3246_v32 = vand.u32 4294901760, %v3245_v61  ;;  %v695_v55 = vsub.f32 %v12771_v14, %v11989_v11  ;;  %v11996_v8 = vand.u32 4294901760, %v12774_v29  ;;  %v12776_v61 = vld [vmem:[#allocation122_spill] sm:$0xff] }
  0xd2   :  { %v684_v0 = vand.u32 4294901760, %v683_v24  ;;  %v3251_v34 = vsub.f32 %v12772_v18, %v11991_v28  ;;  %v3263_v12 = vsub.f32 %v12773_v19, %v11994_v36  ;;  %v11998_v6 = vand.u32 4294901760, %v12775_v31  ;;  %v12777_v18 = vld [vmem:[#allocation123_spill] sm:$0xff] }
  0xd3   :  { %6249 = vmatpush1.bf16.msra.mxu0 %v6248_v3  ;;  %v7016_v51 = vpack.c.bf16 %v3246_v32, %v3234_v10  ;;  %v696_v22 = vand.u32 4294901760, %v695_v55  ;;  %v689_v53 = vsub.f32 %v12774_v29, %v11996_v8  ;;  %v11999_v11 = vand.u32 4294901760, %v12776_v61  ;;  %v12778_v3 = vld [vmem:[#allocation125_spill] sm:$0xff] }
  0xd4   :  { %v3252_v24 = vand.u32 4294901760, %v3251_v34  ;;  %v3264_v14 = vand.u32 4294901760, %v3263_v12  ;;  %v701_v28 = vsub.f32 %v12775_v31, %v11998_v6  ;;  %v12001_v27 = vand.u32 4294901760, %v12777_v18  ;;  %v12779_v12 = vld [vmem:[#allocation126_spill] sm:$0xff] }
  0xd5   :  { %7017 = vmatpush1.bf16.msra.mxu1 %v7016_v51  ;;  %v6250_v36 = vpack.c.bf16 %v696_v22, %v684_v0  ;;  %v690_v19 = vand.u32 4294901760, %v689_v53  ;;  %v3257_v10 = vsub.f32 %v12776_v61, %v11999_v11  ;;  %v12003_v32 = vand.u32 4294901760, %v12778_v3  ;;  %v12780_v51 = vld [vmem:[#allocation127_spill] sm:$0xff]  ;;  %v12781_v53 = vld [vmem:[#allocation129_spill] sm:$0xff] }
  0xd6   :  { %v7018_v55 = vpack.c.bf16 %v3264_v14, %v3252_v24  ;;  %v702_v8 = vand.u32 4294901760, %v701_v28  ;;  %v3269_v34 = vsub.f32 %v12777_v18, %v12001_v27  ;;  %v12006_v25 = vand.u32 4294901760, %v12779_v12  ;;  %v12782_v24 = vld [vmem:[#allocation131_spill] sm:$0xff] }
  0xd7   :  { %6251 = vmatprep.subr.bf16.mxu0 %v6250_v36  ;;  %v3258_v6 = vand.u32 4294901760, %v3257_v10  ;;  %v707_v0 = vsub.f32 %v12778_v3, %v12003_v32  ;;  %v12009_v22 = vand.u32 4294901760, %v12780_v51  ;;  %v12012_v11 = vand.u32 4294901760, %v12781_v53  ;;  %v12783_v32 = vld [vmem:[#allocation132_spill] sm:$0xff] }
  0xd8   :  { %7019 = vmatprep.subr.bf16.mxu1 %v7018_v55  ;;  %v6252_v5 = vpack.c.bf16 %v702_v8, %v690_v19  ;;  %v3270_v14 = vand.u32 4294901760, %v3269_v34  ;;  %v719_v28 = vsub.f32 %v12779_v12, %v12006_v25  ;;  %v12014_v27 = vand.u32 4294901760, %v12782_v24  ;;  %v12784_v34 = vld [vmem:[#allocation134_spill] sm:$0xff] }
  0xd9   :  { %v708_v15 = vand.u32 4294901760, %v707_v0  ;;  %v3275_v36 = vsub.f32 %v12780_v51, %v12009_v22  ;;  %v3287_v10 = vsub.f32 %v12781_v53, %v12012_v11  ;;  %v12016_v63 = vand.u32 4294901760, %v12783_v32  ;;  %v12785_v51 = vld [vmem:[#allocation135_spill] sm:$0xff] }
  0xda   :  { %6253 = vmatpush1.bf16.msra.mxu0 %v6252_v5  ;;  %v7020_v8 = vpack.c.bf16 %v3270_v14, %v3258_v6  ;;  %v720_v19 = vand.u32 4294901760, %v719_v28  ;;  %v713_v55 = vsub.f32 %v12782_v24, %v12014_v27  ;;  %v12017_v25 = vand.u32 4294901760, %v12784_v34  ;;  %v12786_v6 = vld [vmem:[#allocation137_spill] sm:$0xff] }
  0xdb   :  { %v3276_v0 = vand.u32 4294901760, %v3275_v36  ;;  %v3288_v38 = vand.u32 4294901760, %v3287_v10  ;;  %v725_v22 = vsub.f32 %v12783_v32, %v12016_v63  ;;  %v12019_v12 = vand.u32 4294901760, %v12785_v51  ;;  %v12787_v10 = vld [vmem:[#allocation138_spill] sm:$0xff] }
  0xdc   :  { %7021 = vmatpush1.bf16.msra.mxu1 %v7020_v8  ;;  %v6254_v11 = vpack.c.bf16 %v720_v19, %v708_v15  ;;  %v714_v53 = vand.u32 4294901760, %v713_v55  ;;  %v3281_v5 = vsub.f32 %v12784_v34, %v12017_v25  ;;  %v12021_v14 = vand.u32 4294901760, %v12786_v6  ;;  %v12788_v8 = vld [vmem:[#allocation139_spill] sm:$0xff]  ;;  %v12789_v55 = vld [vmem:[#allocation141_spill] sm:$0xff] }
  0xdd   :  { %v7022_v28 = vpack.c.bf16 %v3288_v38, %v3276_v0  ;;  %v726_v27 = vand.u32 4294901760, %v725_v22  ;;  %v3293_v36 = vsub.f32 %v12785_v51, %v12019_v12  ;;  %v12023_v24 = vand.u32 4294901760, %v12787_v10  ;;  %v12790_v0 = vld [vmem:[#allocation143_spill] sm:$0xff] }
  0xde   :  { %6255 = vmatprep.subr.bf16.mxu0 %v6254_v11  ;;  %v3282_v63 = vand.u32 4294901760, %v3281_v5  ;;  %v731_v15 = vsub.f32 %v12786_v6, %v12021_v14  ;;  %v12025_v19 = vand.u32 4294901760, %v12788_v8  ;;  %v12028_v25 = vand.u32 4294901760, %v12789_v55  ;;  %v12791_v14 = vld [vmem:[#allocation144_spill] sm:$0xff] }
  0xdf   :  { %7023 = vmatprep.subr.bf16.mxu1 %v7022_v28  ;;  %v6256_v34 = vpack.c.bf16 %v726_v27, %v714_v53  ;;  %v3294_v38 = vand.u32 4294901760, %v3293_v36  ;;  %v743_v22 = vsub.f32 %v12787_v10, %v12023_v24  ;;  %v12030_v12 = vand.u32 4294901760, %v12790_v0  ;;  %v12792_v36 = vld [vmem:[#allocation146_spill] sm:$0xff] }
  0xe0   :  { %v732_v51 = vand.u32 4294901760, %v731_v15  ;;  %v3299_v11 = vsub.f32 %v12788_v8, %v12025_v19  ;;  %v3311_v5 = vsub.f32 %v12789_v55, %v12028_v25  ;;  %v12032_v6 = vand.u32 4294901760, %v12791_v14  ;;  %v12793_v8 = vld [vmem:[#allocation147_spill] sm:$0xff] }
  0xe1   :  { %6257 = vmatpush1.bf16.msra.mxu0 %v6256_v34  ;;  %v7024_v27 = vpack.c.bf16 %v3294_v38, %v3282_v63  ;;  %v744_v53 = vand.u32 4294901760, %v743_v22  ;;  %v737_v28 = vsub.f32 %v12790_v0, %v12030_v12  ;;  %v12033_v24 = vand.u32 4294901760, %v12792_v36  ;;  %v12794_v34 = vld [vmem:[#allocation149_spill] sm:$0xff] }
  0xe2   :  { %v3300_v15 = vand.u32 4294901760, %v3299_v11  ;;  %v3312_v10 = vand.u32 4294901760, %v3311_v5  ;;  %v749_v19 = vsub.f32 %v12791_v14, %v12032_v6  ;;  %v12035_v32 = vand.u32 4294901760, %v12793_v8  ;;  %v12795_v5 = vld [vmem:[#allocation150_spill] sm:$0xff] }
  0xe3   :  { %7025 = vmatpush1.bf16.msra.mxu1 %v7024_v27  ;;  %v6258_v25 = vpack.c.bf16 %v744_v53, %v732_v51  ;;  %v738_v55 = vand.u32 4294901760, %v737_v28  ;;  %v3305_v63 = vsub.f32 %v12792_v36, %v12033_v24  ;;  %v12037_v38 = vand.u32 4294901760, %v12794_v34  ;;  %v12796_v27 = vld [vmem:[#allocation151_spill] sm:$0xff]  ;;  %v12797_v28 = vld [vmem:[#allocation153_spill] sm:$0xff] }
  0xe4   :  { %v7026_v22 = vpack.c.bf16 %v3312_v10, %v3300_v15  ;;  %v750_v12 = vand.u32 4294901760, %v749_v19  ;;  %v3317_v11 = vsub.f32 %v12793_v8, %v12035_v32  ;;  %v12039_v0 = vand.u32 4294901760, %v12795_v5  ;;  %v12798_v15 = vld [vmem:[#allocation155_spill] sm:$0xff] }
  0xe5   :  { %6259 = vmatprep.subr.bf16.mxu0 %v6258_v25  ;;  %v3306_v6 = vand.u32 4294901760, %v3305_v63  ;;  %v755_v51 = vsub.f32 %v12794_v34, %v12037_v38  ;;  %v12041_v53 = vand.u32 4294901760, %v12796_v27  ;;  %v12044_v24 = vand.u32 4294901760, %v12797_v28  ;;  %v12799_v38 = vld [vmem:[#allocation156_spill] sm:$0xff] }
  0xe6   :  { %7027 = vmatprep.subr.bf16.mxu1 %v7026_v22  ;;  %v6260_v36 = vpack.c.bf16 %v750_v12, %v738_v55  ;;  %v3318_v10 = vand.u32 4294901760, %v3317_v11  ;;  %v767_v19 = vsub.f32 %v12795_v5, %v12039_v0  ;;  %v12046_v32 = vand.u32 4294901760, %v12798_v15  ;;  %v12800_v11 = vld [vmem:[#allocation158_spill] sm:$0xff] }
  0xe7   :  { %v756_v8 = vand.u32 4294901760, %v755_v51  ;;  %v3323_v25 = vsub.f32 %v12796_v27, %v12041_v53  ;;  %v3335_v63 = vsub.f32 %v12797_v28, %v12044_v24  ;;  %v12048_v34 = vand.u32 4294901760, %v12799_v38  ;;  %v12801_v27 = vld [vmem:[#allocation159_spill] sm:$0xff] }
  0xe8   :  { %6261 = vmatpush1.bf16.msra.mxu0 %v6260_v36  ;;  %v7028_v12 = vpack.c.bf16 %v3318_v10, %v3306_v6  ;;  %v768_v55 = vand.u32 4294901760, %v767_v19  ;;  %v761_v22 = vsub.f32 %v12798_v15, %v12046_v32  ;;  %v12049_v0 = vand.u32 4294901760, %v12800_v11  ;;  %v12802_v36 = vld [vmem:[#allocation161_spill] sm:$0xff] }
  0xe9   :  { %v3324_v51 = vand.u32 4294901760, %v3323_v25  ;;  %v3336_v5 = vand.u32 4294901760, %v3335_v63  ;;  %v773_v53 = vsub.f32 %v12799_v38, %v12048_v34  ;;  %v12051_v14 = vand.u32 4294901760, %v12801_v27  ;;  %v12803_v63 = vld [vmem:[#allocation162_spill] sm:$0xff] }
  0xea   :  { %7029 = vmatpush1.bf16.msra.mxu1 %v7028_v12  ;;  %v6262_v24 = vpack.c.bf16 %v768_v55, %v756_v8  ;;  %v762_v28 = vand.u32 4294901760, %v761_v22  ;;  %v3329_v6 = vsub.f32 %v12800_v11, %v12049_v0  ;;  %v12053_v10 = vand.u32 4294901760, %v12802_v36  ;;  %v12804_v12 = vld [vmem:[#allocation163_spill] sm:$0xff]  ;;  %v12805_v22 = vld [vmem:[#allocation165_spill] sm:$0xff] }
  0xeb   :  { %v7030_v19 = vpack.c.bf16 %v3336_v5, %v3324_v51  ;;  %v774_v32 = vand.u32 4294901760, %v773_v53  ;;  %v3341_v25 = vsub.f32 %v12801_v27, %v12051_v14  ;;  %v12055_v15 = vand.u32 4294901760, %v12803_v63  ;;  %v12806_v51 = vld [vmem:[#allocation167_spill] sm:$0xff] }
  0xec   :  { %6263 = vmatprep.subr.bf16.mxu0 %v6262_v24  ;;  %v3330_v34 = vand.u32 4294901760, %v3329_v6  ;;  %v779_v8 = vsub.f32 %v12802_v36, %v12053_v10  ;;  %v12057_v55 = vand.u32 4294901760, %v12804_v12  ;;  %v12060_v0 = vand.u32 4294901760, %v12805_v22  ;;  %v12807_v10 = vld [vmem:[#allocation168_spill] sm:$0xff] }
  0xed   :  { %7031 = vmatprep.subr.bf16.mxu1 %v7030_v19  ;;  %v6264_v11 = vpack.c.bf16 %v774_v32, %v762_v28  ;;  %v3342_v5 = vand.u32 4294901760, %v3341_v25  ;;  %v791_v53 = vsub.f32 %v12803_v63, %v12055_v15  ;;  %v12062_v14 = vand.u32 4294901760, %v12806_v51  ;;  %v12808_v25 = vld [vmem:[#allocation170_spill] sm:$0xff] }
  0xee   :  { %v780_v27 = vand.u32 4294901760, %v779_v8  ;;  %v3347_v24 = vsub.f32 %v12804_v12, %v12057_v55  ;;  %v3359_v6 = vsub.f32 %v12805_v22, %v12060_v0  ;;  %v12064_v36 = vand.u32 4294901760, %v12807_v10  ;;  %v12809_v12 = vld [vmem:[#allocation171_spill] sm:$0xff] }
  0xef   :  { %6265 = vmatpush1.bf16.msra.mxu0 %v6264_v11  ;;  %v7032_v32 = vpack.c.bf16 %v3342_v5, %v3330_v34  ;;  %v792_v28 = vand.u32 4294901760, %v791_v53  ;;  %v785_v19 = vsub.f32 %v12806_v51, %v12062_v14  ;;  %v12065_v15 = vand.u32 4294901760, %v12808_v25  ;;  %v12810_v11 = vld [vmem:[#allocation173_spill] sm:$0xff] }
  0xf0   :  { %v3348_v8 = vand.u32 4294901760, %v3347_v24  ;;  %v3360_v63 = vand.u32 4294901760, %v3359_v6  ;;  %v797_v55 = vsub.f32 %v12807_v10, %v12064_v36  ;;  %v12066_v38 = vand.u32 4294901760, %v12809_v12  ;;  %v12811_v6 = vld [vmem:[#allocation174_spill] sm:$0xff] }
  0xf1   :  { %7033 = vmatpush1.bf16.msra.mxu1 %v7032_v32  ;;  %v6266_v0 = vpack.c.bf16 %v792_v28, %v780_v27  ;;  %v786_v22 = vand.u32 4294901760, %v785_v19  ;;  %v3353_v34 = vsub.f32 %v12808_v25, %v12065_v15  ;;  %v12068_v5 = vand.u32 4294901760, %v12810_v11  ;;  %v12812_v32 = vld [vmem:[#allocation175_spill] sm:$0xff] }
  0xf2   :  { %v7034_v53 = vpack.c.bf16 %v3360_v63, %v3348_v8  ;;  %v798_v14 = vand.u32 4294901760, %v797_v55  ;;  %v3365_v24 = vsub.f32 %v12809_v12, %v12066_v38  ;;  %v12070_v51 = vand.u32 4294901760, %v12811_v6  ;;  %v12813_v8 = vld [vmem:[#allocation179_spill] sm:$0xff] }
  0xf3   :  { %6267 = vmatprep.subr.bf16.mxu0 %v6266_v0  ;;  %v3354_v36 = vand.u32 4294901760, %v3353_v34  ;;  %v803_v27 = vsub.f32 %v12810_v11, %v12068_v5  ;;  %v12072_v28 = vand.u32 4294901760, %v12812_v32  ;;  %v12075_v19 = vand.u32 4294901760, %v8307_v7  ;;  %v12814_v5 = vld [vmem:[#allocation180_spill] sm:$0xff] }
  0xf4   :  { %7035 = vmatprep.subr.bf16.mxu1 %v7034_v53  ;;  %v6268_v15 = vpack.c.bf16 %v798_v14, %v786_v22  ;;  %v3366_v63 = vand.u32 4294901760, %v3365_v24  ;;  %v815_v55 = vsub.f32 %v12811_v6, %v12070_v51  ;;  %v12078_v38 = vand.u32 4294901760, %v12813_v8  ;;  %v12815_v24 = vld [vmem:[#allocation182_spill] sm:$0xff] }
  0xf5   :  { %v804_v12 = vand.u32 4294901760, %v803_v27  ;;  %v3371_v0 = vsub.f32 %v12812_v32, %v12072_v28  ;;  %v3383_v34 = vsub.f32 %v8307_v7, %v12075_v19  ;;  %v12080_v11 = vand.u32 4294901760, %v12814_v5  ;;  %v12816_v32 = vld [vmem:[#allocation183_spill] sm:$0xff] }
  0xf6   :  { %6269 = vmatpush1.bf16.msra.mxu0 %v6268_v15  ;;  %v7036_v14 = vpack.c.bf16 %v3366_v63, %v3354_v36  ;;  %v816_v22 = vand.u32 4294901760, %v815_v55  ;;  %v809_v53 = vsub.f32 %v12813_v8, %v12078_v38  ;;  %v12081_v51 = vand.u32 4294901760, %v12815_v24  ;;  %v12817_v36 = vld [vmem:[#allocation185_spill] sm:$0xff] }
  0xf7   :  { %v3372_v27 = vand.u32 4294901760, %v3371_v0  ;;  %v3384_v6 = vand.u32 4294901760, %v3383_v34  ;;  %v821_v28 = vsub.f32 %v12814_v5, %v12080_v11  ;;  %v12082_v25 = vand.u32 4294901760, %v12816_v32  ;;  %v12818_v34 = vld [vmem:[#allocation186_spill] sm:$0xff] }
  0xf8   :  { %7037 = vmatpush1.bf16.msra.mxu1 %v7036_v14  ;;  %v6270_v19 = vpack.c.bf16 %v816_v22, %v804_v12  ;;  %v810_v7 = vand.u32 4294901760, %v809_v53  ;;  %v3377_v15 = vsub.f32 %v12815_v24, %v12081_v51  ;;  %v12083_v63 = vand.u32 4294901760, %v12817_v36  ;;  %v12819_v14 = vld [vmem:[#allocation187_spill] sm:$0xff] }
  0xf9   :  { %v7038_v55 = vpack.c.bf16 %v3384_v6, %v3372_v27  ;;  %v822_v38 = vand.u32 4294901760, %v821_v28  ;;  %v3389_v0 = vsub.f32 %v12816_v32, %v12082_v25  ;;  %v12084_v8 = vand.u32 4294901760, %v12818_v34 }
  0xfa   :  { %6271 = vmatprep.subr.bf16.mxu0 %v6270_v19  ;;  %v3378_v11 = vand.u32 4294901760, %v3377_v15  ;;  %v827_v12 = vsub.f32 %v12817_v36, %v12083_v63  ;;  %v12085_v22 = vand.u32 4294901760, %v12819_v14  ;;  %v12087_v53 = vand.u32 4294901760, %v8335_v42 }
  0xfb   :  { %7039 = vmatprep.subr.bf16.mxu1 %v7038_v55  ;;  %v6272_v51 = vpack.c.bf16 %v822_v38, %v810_v7  ;;  %v3390_v6 = vand.u32 4294901760, %v3389_v0  ;;  %v839_v28 = vsub.f32 %v12818_v34, %v12084_v8  ;;  %v12097_v27 = vand.u32 4294901760, %v8339_v39 }
  0xfc   :  { %v828_v25 = vand.u32 4294901760, %v827_v12  ;;  %v3395_v19 = vsub.f32 %v12819_v14, %v12085_v22  ;;  %v3407_v15 = vsub.f32 %v8335_v42, %v12087_v53  ;;  %v12090_v63 = vand.u32 4294901760, %v8341_v26 }
  0xfd   :  { %6273 = vmatpush1.bf16.msra.mxu0 %v6272_v51  ;;  %v7040_v7 = vpack.c.bf16 %v3390_v6, %v3378_v11  ;;  %v840_v38 = vand.u32 4294901760, %v839_v28  ;;  %v833_v55 = vsub.f32 %v8339_v39, %v12097_v27  ;;  %v12095_v0 = vand.u32 4294901760, %v8345_v47  ;;  %v12871_v39 = vld [vmem:[#allocation212_spill] sm:$0xff] }
  0xfe   :  { %v3396_v12 = vand.u32 4294901760, %v3395_v19  ;;  %v3408_v8 = vand.u32 4294901760, %v3407_v15  ;;  %v845_v22 = vsub.f32 %v8341_v26, %v12090_v63  ;;  %v12091_v14 = vand.u32 4294901760, %v8347_v48 }
  0xff   :  { %7041 = vmatpush1.bf16.msra.mxu1 %v7040_v7  ;;  %v6274_v53 = vpack.c.bf16 %v840_v38, %v828_v25  ;;  %v834_v42 = vand.u32 4294901760, %v833_v55  ;;  %v3401_v51 = vsub.f32 %v8345_v47, %v12095_v0  ;;  %v12092_v11 = vand.u32 4294901760, %v8355_v33 }
 0x100   :  { %v7042_v6 = vpack.c.bf16 %v3408_v8, %v3396_v12  ;;  %v846_v28 = vand.u32 4294901760, %v845_v22  ;;  %v3413_v19 = vsub.f32 %v8347_v48, %v12091_v14  ;;  %v12093_v15 = vand.u32 4294901760, %v8357_v59 }
 0x101   :  { %6275 = vmatprep.subr.bf16.mxu0 %v6274_v53  ;;  %v3402_v63 = vand.u32 4294901760, %v3401_v51  ;;  %v851_v25 = vsub.f32 %v8355_v33, %v12092_v11  ;;  %v12094_v7 = vand.u32 4294901760, %v8361_v16  ;;  %v12096_v38 = vand.u32 4294901760, %v8367_v2 }
 0x102   :  { %7043 = vmatprep.subr.bf16.mxu1 %v7042_v6  ;;  %v6276_v55 = vpack.c.bf16 %v846_v28, %v834_v42  ;;  %v3414_v8 = vand.u32 4294901760, %v3413_v19  ;;  %v863_v22 = vsub.f32 %v8357_v59, %v12093_v15  ;;  %v12099_v12 = vand.u32 4294901760, %v8371_v49 }
 0x103   :  { %v852_v14 = vand.u32 4294901760, %v851_v25  ;;  %v3419_v53 = vsub.f32 %v8361_v16, %v12094_v7  ;;  %v3431_v51 = vsub.f32 %v8367_v2, %v12096_v38  ;;  %v12098_v11 = vand.u32 4294901760, %v8373_v40 }
 0x104   :  { %6277 = vmatpush1.bf16.msra.mxu0 %v6276_v55  ;;  %v7044_v42 = vpack.c.bf16 %v3414_v8, %v3402_v63  ;;  %v864_v6 = vand.u32 4294901760, %v863_v22  ;;  %v857_v28 = vsub.f32 %v8371_v49, %v12099_v12  ;;  %v12102_v19 = vand.u32 4294901760, %v8377_v1  ;;  %v12877_v49 = vld [vmem:[#allocation78_spill] sm:$0xff] }
 0x105   :  { %v3420_v25 = vand.u32 4294901760, %v3419_v53  ;;  %v3432_v15 = vand.u32 4294901760, %v3431_v51  ;;  %v869_v7 = vsub.f32 %v8373_v40, %v12098_v11  ;;  %v12103_v0 = vand.u32 4294901760, %v8379_v37  ;;  %v12820_v51 = vld [vmem:[#allocation18_spill] sm:$0xff] }
 0x106   :  { %7045 = vmatpush1.bf16.msra.mxu1 %v7044_v42  ;;  %v6278_v38 = vpack.c.bf16 %v864_v6, %v852_v14  ;;  %v858_v27 = vand.u32 4294901760, %v857_v28  ;;  %v3425_v63 = vsub.f32 %v8377_v1, %v12102_v19  ;;  %v6282_v11 = vpack.c.bf16 %v12820_v51, %v7934_v20  ;;  %v12821_v14 = vld [vmem:[#allocation19_spill] sm:$0xff]  ;;  %v12822_v6 = vld [vmem:[#allocation21_spill] sm:$0xff] }
 0x107   :  { %v7046_v55 = vpack.c.bf16 %v3432_v15, %v3420_v25  ;;  %v870_v8 = vand.u32 4294901760, %v869_v7  ;;  %v3437_v22 = vsub.f32 %v8379_v37, %v12103_v0  ;;  %v7050_v28 = vpack.c.bf16 %v12822_v6, %v12821_v14  ;;  %v12823_v19 = vld [vmem:[#allocation23_spill] sm:$0xff]  ;;  %v12824_v15 = vld [vmem:[#allocation24_spill] sm:$0xff]  ;;  %v12855_v14 = vld [vmem:[#allocation162_spill] sm:$0xff] }
 0x108   :  { %6279 = vmatprep.subr.bf16.mxu0 %v6278_v38  ;;  %v3426_v53 = vand.u32 4294901760, %v3425_v63  ;;  %v6284_v7 = vpack.c.bf16 %v12824_v15, %v12823_v19  ;;  %v6286_v25 = vpack.c.bf16 %v7963_v50, %v7959_v45  ;;  %v7052_v38 = vpack.c.bf16 %v7957_v44, %v7955_v43  ;;  %v12847_v44 = vld [vmem:[#allocation150_spill] sm:$0xff]  ;;  %v12849_v50 = vld [vmem:[#allocation153_spill] sm:$0xff]  ;;  %v12853_v19 = vld [vmem:[#allocation159_spill] sm:$0xff] }
 0x109   :  { %7047 = vmatprep.subr.bf16.mxu1 %v7046_v55  ;;  %v6280_v12 = vpack.c.bf16 %v870_v8, %v858_v27  ;;  %v3438_v42 = vand.u32 4294901760, %v3437_v22  ;;  %v7054_v27 = vpack.c.bf16 %v7970_v54, %v7967_v52  ;;  %v12826_v55 = vld [vmem:[#allocation39_spill] sm:$0xff]  ;;  %v12827_v8 = vld [vmem:[#allocation41_spill] sm:$0xff]  ;;  %v12828_v22 = vld [vmem:[#allocation42_spill] sm:$0xff]  ;;  %v7060_v54 = vpack.c.bf16 %v8012_v58, %v8010_v57 }
 0x10a   :  { %v12831_v58 = vld [vmem:[#allocation126_spill] sm:$0xff]  ;;  %v12856_v51 = vld [vmem:[#allocation163_spill] sm:$0xff]  ;;  %v12857_v20 = vld [vmem:[#allocation165_spill] sm:$0xff] }
 0x10b   :  { %6281 = vmatpush1.bf16.msra.mxu0 %v6280_v12  ;;  %v7048_v40 = vpack.c.bf16 %v3438_v42, %v3426_v53  ;;  %v12825_v12 = vld [vmem:[#allocation36_spill] sm:$0xff]  ;;  %v6290_v53 = vpack.c.bf16 %v12828_v22, %v12827_v8  ;;  %v12830_v42 = vld [vmem:[#allocation45_spill] sm:$0xff]  ;;  %v12862_v43 = vld [vmem:[#allocation174_spill] sm:$0xff] }
 0x10c   :  { %6283 = vmatprep.subr.bf16.mxu0 %v6282_v11  ;;  %v6288_v63 = vpack.c.bf16 %v12825_v12, %v7972_v56  ;;  %v7056_v11 = vpack.c.bf16 %v12826_v55, %v7980_v4  ;;  %v7062_v55 = vpack.c.bf16 %v8027_v9, %v8024_v30  ;;  %v6296_v4 = vpack.c.bf16 %v8034_v23, %v8030_v35  ;;  %v12835_v30 = vld [vmem:[#allocation132_spill] sm:$0xff]  ;;  %v12836_v23 = vld [vmem:[#allocation134_spill] sm:$0xff]  ;;  %v12837_v35 = vld [vmem:[#allocation135_spill] sm:$0xff] }
 0x10d   :  { %7049 = vmatpush1.bf16.msra.mxu1 %v7048_v40  ;;  %v12829_v40 = vld [vmem:[#allocation44_spill] sm:$0xff]  ;;  %v12841_v22 = vld [vmem:[#allocation141_spill] sm:$0xff]  ;;  %v12860_v56 = vld [vmem:[#allocation171_spill] sm:$0xff] }
 0x10e   :  { %7051 = vmatprep.subr.bf16.mxu1 %v7050_v28  ;;  %875 = vmatmul.mubr.f32.vlgmr.msra.gmra.mrb[0].mxu0 %v8471_v17  ;;  %v7058_v0 = vpack.c.bf16 %v12830_v42, %v12829_v40  ;;  %v6292_v28 = vpack.c.bf16 %v8006_v46, %v8004_v41  ;;  %v6298_v42 = vpack.c.bf16 %v12739_v13, %v12738_v21  ;;  %v12838_v13 = vld [vmem:[#allocation137_spill] sm:$0xff]  ;;  %v12839_v21 = vld [vmem:[#allocation138_spill] sm:$0xff]  ;;  %v12840_v40 = vld [vmem:[#allocation139_spill] sm:$0xff] }
 0x10f   :  { %6285 = vmatpush1.bf16.msra.mxu0 %v6284_v7  ;;  %v6294_v7 = vpack.c.bf16 %v8020_v62, %v8016_v60  ;;  %v12832_v62 = vld [vmem:[#allocation127_spill] sm:$0xff]  ;;  %v12833_v60 = vld [vmem:[#allocation129_spill] sm:$0xff]  ;;  %v12843_v8 = vld [vmem:[#allocation144_spill] sm:$0xff]  ;;  %1075 = vmatprep.mubr.f32.mxu0 %v12871_v39 }
 0x110   :  { %3443 = vmatmul.mubr.f32.vlgmr.msra.gmra.mrb[0].mxu1 %v8471_v17  ;;  %6287 = vmatprep.subr.bf16.mxu0 %v6286_v25  ;;  %v12854_v25 = vld [vmem:[#allocation161_spill] sm:$0xff]  ;;  %v12859_v46 = vld [vmem:[#allocation170_spill] sm:$0xff]  ;;  %v12870_v52 = vld [vmem:[#allocation63_spill] sm:$0xff] }
 0x111   :  { %7053 = vmatpush1.bf16.msra.mxu1 %v7052_v38  ;;  %v12834_v38 = vld [vmem:[#allocation131_spill] sm:$0xff]  ;;  %v12861_v41 = vld [vmem:[#allocation173_spill] sm:$0xff]  ;;  %v12869_v9 = vld [vmem:[#allocation62_spill] sm:$0xff]  ;;  %3643 = vmatprep.mubr.f32.mxu1 %v12871_v39 }
 0x112   :  { %7055 = vmatprep.subr.bf16.mxu1 %v7054_v27  ;;  %v12842_v27 = vld [vmem:[#allocation143_spill] sm:$0xff]  ;;  %v12864_v45 = vld [vmem:[#allocation177_spill] sm:$0xff]  ;;  %v12875_v17 = vld [vmem:[#allocation72_spill] sm:$0xff] }
 0x113   :  { %6289 = vmatpush1.bf16.msra.mxu0 %v6288_v63  ;;  %v12863_v63 = vld [vmem:[#allocation175_spill] sm:$0xff]  ;;  %v12873_v15 = vld [vmem:[#allocation69_spill] sm:$0xff] }
 0x114   :  { %6291 = vmatprep.subr.bf16.mxu0 %v6290_v53  ;;  %v12867_v53 = vld [vmem:[#allocation189_spill] sm:$0xff]  ;;  %v12874_v12 = vld [vmem:[#allocation71_spill] sm:$0xff] }
 0x115   :  { %7057 = vmatpush1.bf16.msra.mxu1 %v7056_v11  ;;  %v12865_v11 = vld [vmem:[#allocation179_spill] sm:$0xff]  ;;  %v6300_v16 = vpack.c.bf16 %v12875_v17, %v12874_v12  ;;  %v12876_v6 = vld [vmem:[#allocation77_spill] sm:$0xff] }
 0x116   :  { %7059 = vmatprep.subr.bf16.mxu1 %v7058_v0  ;;  %v7064_v0 = vpack.c.bf16 %v12870_v52, %v12869_v9  ;;  %v6302_v57 = vpack.c.bf16 %v12877_v49, %v12876_v6  ;;  %v12879_v1 = vld [vmem:[#allocation75_spill] sm:$0xff]  ;;  %v12889_v6 = vld [vmem:[#allocation93_spill] sm:$0xff] }
 0x117   :  { %6293 = vmatpush1.bf16.msra.mxu0 %v6292_v28  ;;  %v12880_v9 = vld [vmem:[#allocation79_spill] sm:$0xff]  ;;  %v12885_v28 = vld [vmem:[#allocation90_spill] sm:$0xff] }
 0x118   :  { %6295 = vmatprep.subr.bf16.mxu0 %v6294_v7  ;;  %v12872_v7 = vld [vmem:[#allocation67_spill] sm:$0xff] }
 0x119   :  { %7061 = vmatpush1.bf16.msra.mxu1 %v7060_v54  ;;  %v7066_v47 = vpack.c.bf16 %v12873_v15, %v12872_v7  ;;  %v12878_v54 = vld [vmem:[#allocation74_spill] sm:$0xff]  ;;  %v12882_v15 = vld [vmem:[#allocation83_spill] sm:$0xff]  ;;  %v12883_v7 = vld [vmem:[#allocation84_spill] sm:$0xff] }
 0x11a   :  { %7063 = vmatprep.subr.bf16.mxu1 %v7062_v55  ;;  %v7068_v52 = vpack.c.bf16 %v12879_v1, %v12878_v54  ;;  %v12881_v55 = vld [vmem:[#allocation81_spill] sm:$0xff]  ;;  %v6304_v39 = vpack.c.bf16 %v12883_v7, %v12882_v15  ;;  %v12887_v12 = vld [vmem:[#allocation87_spill] sm:$0xff]  ;;  %v12891_v54 = vld [vmem:[#allocation96_spill] sm:$0xff] }
 0x11b   :  { %6297 = vmatpush1.bf16.msra.mxu0 %v6296_v4  ;;  %v7070_v37 = vpack.c.bf16 %v12881_v55, %v12880_v9  ;;  %v12884_v4 = vld [vmem:[#allocation89_spill] sm:$0xff]  ;;  %v12893_v9 = vld [vmem:[#allocation102_spill] sm:$0xff]  ;;  %v12895_v15 = vld [vmem:[#allocation99_spill] sm:$0xff] }
 0x11c   :  { %6299 = vmatprep.subr.bf16.mxu0 %v6298_v42  ;;  %v6306_v17 = vpack.c.bf16 %v12885_v28, %v12884_v4  ;;  %v12886_v42 = vld [vmem:[#allocation86_spill] sm:$0xff]  ;;  %v12897_v4 = vld [vmem:[#allocation105_spill] sm:$0xff] }
 0x11d   :  { %7065 = vmatpush1.bf16.msra.mxu1 %v7064_v0  ;;  %v7072_v49 = vpack.c.bf16 %v12887_v12, %v12886_v42  ;;  %v12888_v0 = vld [vmem:[#allocation91_spill] sm:$0xff]  ;;  %v12899_v42 = vld [vmem:[#allocation108_spill] sm:$0xff] }
 0x11e   :  { %7067 = vmatprep.subr.bf16.mxu1 %v7066_v47  ;;  %v7074_v1 = vpack.c.bf16 %v12889_v6, %v12888_v0  ;;  %v12890_v47 = vld [vmem:[#allocation95_spill] sm:$0xff]  ;;  %v12901_v0 = vld [vmem:[#allocation114_spill] sm:$0xff] }
 0x11f   :  { %6301 = vmatpush1.bf16.msra.mxu0 %v6300_v16  ;;  %v6308_v55 = vpack.c.bf16 %v12891_v54, %v12890_v47  ;;  %v12892_v16 = vld [vmem:[#allocation101_spill] sm:$0xff]  ;;  %v12903_v47 = vld [vmem:[#allocation111_spill] sm:$0xff] }
 0x120   :  { %6303 = vmatprep.subr.bf16.mxu0 %v6302_v57  ;;  %v6310_v7 = vpack.c.bf16 %v12893_v9, %v12892_v16  ;;  %v12894_v57 = vld [vmem:[#allocation98_spill] sm:$0xff]  ;;  %v12905_v16 = vld [vmem:[#allocation117_spill] sm:$0xff] }
 0x121   :  { %7069 = vmatpush1.bf16.msra.mxu1 %v7068_v52  ;;  %v7076_v28 = vpack.c.bf16 %v12895_v15, %v12894_v57  ;;  %v12896_v52 = vld [vmem:[#allocation103_spill] sm:$0xff] }
 0x122   :  { %7071 = vmatprep.subr.bf16.mxu1 %v7070_v37  ;;  %v7078_v12 = vpack.c.bf16 %v12897_v4, %v12896_v52  ;;  %v12898_v37 = vld [vmem:[#allocation107_spill] sm:$0xff] }
 0x123   :  { %6305 = vmatpush1.bf16.msra.mxu0 %v6304_v39  ;;  %v6312_v6 = vpack.c.bf16 %v12899_v42, %v12898_v37  ;;  %v12900_v39 = vld [vmem:[#allocation113_spill] sm:$0xff] }
 0x124   :  { %6307 = vmatprep.subr.bf16.mxu0 %v6306_v17  ;;  %v6314_v54 = vpack.c.bf16 %v12901_v0, %v12900_v39  ;;  %v12902_v17 = vld [vmem:[#allocation110_spill] sm:$0xff] }
 0x125   :  { %7073 = vmatpush1.bf16.msra.mxu1 %v7072_v49  ;;  %v7080_v9 = vpack.c.bf16 %v12903_v47, %v12902_v17  ;;  %v12904_v49 = vld [vmem:[#allocation115_spill] sm:$0xff] }
 0x126   :  { %7075 = vmatprep.subr.bf16.mxu1 %v7074_v1  ;;  %v7082_v15 = vpack.c.bf16 %v12905_v16, %v12904_v49  ;;  %v12906_v1 = vpack.c.bf16 %v12775_v31, %v12774_v29 }
 0x127   :  { %6309 = vmatpush1.bf16.msra.mxu0 %v6308_v55  ;;  %v12914_v55 = vpack.c.bf16 %v12843_v8, %v12842_v27 }
 0x128   :  { %6311 = vmatprep.subr.bf16.mxu0 %v6310_v7  ;;  %v12907_v7 = vpack.c.bf16 %v12831_v58, %v12778_v3 }
 0x129   :  { %7077 = vmatpush1.bf16.msra.mxu1 %v7076_v28  ;;  %v12908_v28 = vpack.c.bf16 %v12777_v18, %v12776_v61 }
 0x12a   :  { %7079 = vmatprep.subr.bf16.mxu1 %v7078_v12  ;;  %v12909_v12 = vpack.c.bf16 %v12833_v60, %v12832_v62 }
 0x12b   :  { %6313 = vmatpush1.bf16.msra.mxu0 %v6312_v6  ;;  %v12911_v6 = vpack.c.bf16 %v12839_v21, %v12838_v13 }
 0x12c   :  { %6315 = vmatprep.subr.bf16.mxu0 %v6314_v54  ;;  %v12913_v54 = vpack.c.bf16 %v12841_v22, %v12840_v40 }
 0x12d   :  { %7081 = vmatpush1.bf16.msra.mxu1 %v7080_v9  ;;  %v12910_v9 = vpack.c.bf16 %v12835_v30, %v12834_v38 }
 0x12e   :  { %7083 = vmatprep.subr.bf16.mxu1 %v7082_v15  ;;  %v12912_v15 = vpack.c.bf16 %v12837_v35, %v12836_v23  ;;  %v12923_v23 = vld [vmem:[#allocation155_spill] sm:$0xff] }
 0x12f   :  { %6317 = vmatpush1.bf16.msra.mxu0 %v12906_v1  ;;  %v12915_v1 = vld [vmem:[#allocation149_spill] sm:$0xff] }
 0x130   :  { %6319 = vmatprep.subr.bf16.mxu0 %v12907_v7  ;;  %v12916_v7 = vpack.c.bf16 %v12847_v44, %v12915_v1 }
 0x131   :  { %7085 = vmatpush1.bf16.msra.mxu1 %v12908_v28  ;;  %v12917_v28 = vld [vmem:[#allocation147_spill] sm:$0xff] }
 0x132   :  { %7087 = vmatprep.subr.bf16.mxu1 %v12909_v12  ;;  %v12918_v12 = vld [vmem:[#allocation146_spill] sm:$0xff] }
 0x133   :  { %6321 = vmatpush1.bf16.msra.mxu0 %v12910_v9  ;;  %v12919_v9 = vpack.c.bf16 %v12917_v28, %v12918_v12 }
 0x134   :  { %6323 = vmatprep.subr.bf16.mxu0 %v12911_v6  ;;  %v12920_v6 = vld [vmem:[#allocation151_spill] sm:$0xff] }
 0x135   :  { %7089 = vmatpush1.bf16.msra.mxu1 %v12912_v15  ;;  %v12921_v35 = vpack.c.bf16 %v12849_v50, %v12920_v6  ;;  %v12922_v15 = vld [vmem:[#allocation156_spill] sm:$0xff] }
 0x136   :  { %7091 = vmatprep.subr.bf16.mxu1 %v12913_v54  ;;  %v12924_v22 = vpack.c.bf16 %v12922_v15, %v12923_v23  ;;  %v12925_v54 = vpack.c.bf16 %v12855_v14, %v12854_v25 }
 0x137   :  { %6325 = vmatpush1.bf16.msra.mxu0 %v12914_v55  ;;  %v12926_v55 = vld [vmem:[#allocation158_spill] sm:$0xff] }
 0x138   :  { %6327 = vmatprep.subr.bf16.mxu0 %v12916_v7  ;;  %v12927_v44 = vpack.c.bf16 %v12853_v19, %v12926_v55  ;;  %v12928_v7 = vpack.c.bf16 %v12857_v20, %v12856_v51 }
 0x139   :  { %7093 = vmatpush1.bf16.msra.mxu1 %v12919_v9  ;;  %v12929_v9 = vld [vmem:[#allocation167_spill] sm:$0xff] }
 0x13a   :  { %7095 = vmatprep.subr.bf16.mxu1 %v12921_v35  ;;  %v12930_v50 = vpack.c.bf16 %v12807_v10, %v12929_v9  ;;  %v12931_v35 = vpack.c.bf16 %v12862_v43, %v12861_v41 }
 0x13b   :  { %6329 = vmatpush1.bf16.msra.mxu0 %v12924_v22  ;;  %v12932_v22 = vpack.c.bf16 %v12860_v56, %v12859_v46 }
 0x13c   :  { %6331 = vmatprep.subr.bf16.mxu0 %v12925_v54  ;;  %v12933_v54 = vpack.c.bf16 %v12864_v45, %v12863_v63  ;;  %v13062_v63 = vld [vmem:[#allocation48_spill] sm:$0xff] }
 0x13d   :  { %7097 = vmatpush1.bf16.msra.mxu1 %v12927_v44  ;;  %v12934_v44 = vpack.c.bf16 %v12814_v5, %v12865_v11  ;;  %v13033_v5 = vld [vmem:[#allocation206_spill] sm:$0xff]  ;;  %v13036_v11 = vld [vmem:[#allocation27_spill] sm:$0xff] }
 0x13e   :  { %7099 = vmatprep.subr.bf16.mxu1 %v12928_v7  ;;  %v12935_v7 = vpack.c.bf16 %v12818_v34, %v12817_v36 }
 0x13f   :  { %6333 = vmatpush1.bf16.msra.mxu0 %v12930_v50  ;;  %v12936_v50 = vpack.c.bf16 %v12816_v32, %v12815_v24  ;;  %v12947_v32 = vld [vmem:[#allocation204_spill] sm:$0xff] }
 0x140   :  { %6335 = vmatprep.subr.bf16.mxu0 %v12931_v35  ;;  %v12937_v35 = vld [vmem:[#allocation187_spill] sm:$0xff] }
 0x141   :  { %7101 = vmatpush1.bf16.msra.mxu1 %v12932_v22  ;;  %v12938_v43 = vpack.c.bf16 %v12867_v53, %v12937_v35  ;;  %v12939_v22 = vld [vmem:[#allocation191_spill] sm:$0xff]  ;;  %v13027_v35 = vld [vmem:[#allocation24_spill] sm:$0xff] }
 0x142   :  { %7103 = vmatprep.subr.bf16.mxu1 %v12933_v54  ;;  %v12940_v45 = vpack.c.bf16 %v8341_v26, %v12939_v22  ;;  %v12941_v54 = vpack.c.bf16 %v8357_v59, %v8355_v33  ;;  %v12950_v26 = vld [vmem:[#allocation208_spill] sm:$0xff]  ;;  %v12955_v33 = vld [vmem:[#allocation22_spill] sm:$0xff] }
 0x143   :  { %6337 = vmatpush1.bf16.msra.mxu0 %v12934_v44  ;;  %v12942_v44 = vld [vmem:[#allocation194_spill] sm:$0xff]  ;;  %v12953_v59 = vld [vmem:[#allocation20_spill] sm:$0xff] }
 0x144   :  { %6339 = vmatprep.subr.bf16.mxu0 %v12935_v7  ;;  %v12943_v34 = vpack.c.bf16 %v8347_v48, %v12942_v44  ;;  %v12944_v7 = vld [vmem:[#allocation200_spill] sm:$0xff]  ;;  %v13024_v44 = vld [vmem:[#allocation203_spill] sm:$0xff] }
 0x145   :  { %7105 = vmatpush1.bf16.msra.mxu1 %v12936_v50  ;;  %v12945_v36 = vpack.c.bf16 %v8367_v2, %v12944_v7  ;;  %v12946_v50 = vld [vmem:[#allocation205_spill] sm:$0xff] }
 0x146   :  { %7107 = vmatprep.subr.bf16.mxu1 %v12938_v43  ;;  %v12948_v53 = vpack.c.bf16 %v12946_v50, %v12947_v32  ;;  %v12949_v43 = vld [vmem:[#allocation16_spill] sm:$0xff]  ;;  %v12958_v50 = vld [vmem:[#allocation25_spill] sm:$0xff]  ;;  %v13016_v32 = vld [vmem:[#allocation18_spill] sm:$0xff] }
 0x147   :  { %6341 = vmatpush1.bf16.msra.mxu0 %v12940_v45  ;;  %v12951_v45 = vld [vmem:[#allocation207_spill] sm:$0xff] }
 0x148   :  { %6343 = vmatprep.subr.bf16.mxu0 %v12941_v54  ;;  %v12952_v22 = vpack.c.bf16 %v12950_v26, %v12951_v45  ;;  %v12954_v54 = vld [vmem:[#allocation213_spill] sm:$0xff]  ;;  %v12963_v26 = vld [vmem:[#allocation43_spill] sm:$0xff]  ;;  %v12965_v45 = vld [vmem:[#allocation52_spill] sm:$0xff] }
 0x149   :  { %7109 = vmatpush1.bf16.msra.mxu1 %v12943_v34  ;;  %v12956_v34 = vld [vmem:[#allocation214_spill] sm:$0xff] }
 0x14a   :  { %7111 = vmatprep.subr.bf16.mxu1 %v12945_v36  ;;  %v12957_v36 = vld [vmem:[#allocation29_spill] sm:$0xff] }
 0x14b   :  { %6345 = vmatpush1.bf16.msra.mxu0 %v12948_v53  ;;  %v12959_v53 = vld [vmem:[#allocation31_spill] sm:$0xff] }
 0x14c   :  { %6347 = vmatprep.subr.bf16.mxu0 %v12949_v43  ;;  %v12960_v43 = vld [vmem:[#allocation35_spill] sm:$0xff] }
 0x14d   :  { %7113 = vmatpush1.bf16.msra.mxu1 %v12952_v22  ;;  %v12961_v22 = vld [vmem:[#allocation40_spill] sm:$0xff] }
 0x14e   :  { %7115 = vmatprep.subr.bf16.mxu1 %v12953_v59  ;;  %1078 = vmatmul.mubr.f32.vlgmr.msra.gmra.mrb[0].mxu0 %v12954_v54  ;;  %v12962_v59 = vld [vmem:[#allocation38_spill] sm:$0xff] }
 0x14f   :  { %6349 = vmatpush1.bf16.msra.mxu0 %v12955_v33  ;;  %1215 = vmatprep.mubr.f32.mxu0 %v12956_v34  ;;  %v12964_v33 = vld [vmem:[#allocation46_spill] sm:$0xff] }
 0x150   :  { %3646 = vmatmul.mubr.f32.vlgmr.msra.gmra.mrb[0].mxu1 %v12954_v54  ;;  %6351 = vmatprep.subr.bf16.mxu0 %v12957_v36  ;;  %v12966_v54 = vld [vmem:[#allocation49_spill] sm:$0xff]  ;;  %v12967_v36 = vld [vmem:[#allocation55_spill] sm:$0xff] }
 0x151   :  { %7117 = vmatpush1.bf16.msra.mxu1 %v12958_v50  ;;  %3783 = vmatprep.mubr.f32.mxu1 %v12956_v34  ;;  %v12968_v50 = vld [vmem:[#allocation59_spill] sm:$0xff]  ;;  %v12969_v34 = vld [vmem:[#allocation64_spill] sm:$0xff] }
 0x152   :  { %7119 = vmatprep.subr.bf16.mxu1 %v12959_v53  ;;  %v12970_v53 = vld [vmem:[#allocation61_spill] sm:$0xff] }
 0x153   :  { %6353 = vmatpush1.bf16.msra.mxu0 %v12960_v43  ;;  %v12971_v43 = vld [vmem:[#allocation68_spill] sm:$0xff] }
 0x154   :  { %6355 = vmatprep.subr.bf16.mxu0 %v12961_v22  ;;  %v12972_v22 = vld [vmem:[#allocation70_spill] sm:$0xff] }
 0x155   :  { %7121 = vmatpush1.bf16.msra.mxu1 %v12962_v59  ;;  %v12973_v59 = vld [vmem:[#allocation76_spill] sm:$0xff] }
 0x156   :  { %7123 = vmatprep.subr.bf16.mxu1 %v12963_v26  ;;  %v12974_v26 = vld [vmem:[#allocation73_spill] sm:$0xff] }
 0x157   :  { %6357 = vmatpush1.bf16.msra.mxu0 %v12964_v33  ;;  %v12975_v33 = vld [vmem:[#allocation80_spill] sm:$0xff] }
 0x158   :  { %6359 = vmatprep.subr.bf16.mxu0 %v12965_v45  ;;  %v12976_v45 = vld [vmem:[#allocation82_spill] sm:$0xff] }
 0x159   :  { %7125 = vmatpush1.bf16.msra.mxu1 %v12966_v54  ;;  %v12977_v54 = vld [vmem:[#allocation88_spill] sm:$0xff] }
 0x15a   :  { %7127 = vmatprep.subr.bf16.mxu1 %v12967_v36  ;;  %v12978_v36 = vld [vmem:[#allocation85_spill] sm:$0xff] }
 0x15b   :  { %6361 = vmatpush1.bf16.msra.mxu0 %v12968_v50  ;;  %v12979_v50 = vld [vmem:[#allocation92_spill] sm:$0xff] }
 0x15c   :  { %6363 = vmatprep.subr.bf16.mxu0 %v12969_v34  ;;  %v12980_v34 = vld [vmem:[#allocation94_spill] sm:$0xff] }
 0x15d   :  { %7129 = vmatpush1.bf16.msra.mxu1 %v12970_v53  ;;  %v12981_v53 = vld [vmem:[#allocation100_spill] sm:$0xff] }
 0x15e   :  { %7131 = vmatprep.subr.bf16.mxu1 %v12971_v43  ;;  %v12982_v43 = vld [vmem:[#allocation97_spill] sm:$0xff] }
 0x15f   :  { %6365 = vmatpush1.bf16.msra.mxu0 %v12972_v22  ;;  %v12983_v22 = vld [vmem:[#allocation104_spill] sm:$0xff] }
 0x160   :  { %6367 = vmatprep.subr.bf16.mxu0 %v12973_v59  ;;  %v12984_v59 = vld [vmem:[#allocation106_spill] sm:$0xff] }
 0x161   :  { %7133 = vmatpush1.bf16.msra.mxu1 %v12974_v26  ;;  %v12985_v26 = vld [vmem:[#allocation112_spill] sm:$0xff] }
 0x162   :  { %7135 = vmatprep.subr.bf16.mxu1 %v12975_v33  ;;  %v12986_v33 = vld [vmem:[#allocation109_spill] sm:$0xff] }
 0x163   :  { %6369 = vmatpush1.bf16.msra.mxu0 %v12976_v45  ;;  %v12987_v45 = vld [vmem:[#allocation116_spill] sm:$0xff] }
 0x164   :  { %6371 = vmatprep.subr.bf16.mxu0 %v12977_v54  ;;  %v12988_v54 = vld [vmem:[#allocation118_spill] sm:$0xff] }
 0x165   :  { %7137 = vmatpush1.bf16.msra.mxu1 %v12978_v36  ;;  %v12989_v36 = vld [vmem:[#allocation124_spill] sm:$0xff] }
 0x166   :  { %7139 = vmatprep.subr.bf16.mxu1 %v12979_v50  ;;  %v12990_v50 = vld [vmem:[#allocation121_spill] sm:$0xff] }
 0x167   :  { %6373 = vmatpush1.bf16.msra.mxu0 %v12980_v34  ;;  %v12991_v34 = vld [vmem:[#allocation128_spill] sm:$0xff] }
 0x168   :  { %6375 = vmatprep.subr.bf16.mxu0 %v12981_v53  ;;  %v12992_v53 = vld [vmem:[#allocation130_spill] sm:$0xff] }
 0x169   :  { %7141 = vmatpush1.bf16.msra.mxu1 %v12982_v43  ;;  %v12993_v43 = vld [vmem:[#allocation136_spill] sm:$0xff] }
 0x16a   :  { %7143 = vmatprep.subr.bf16.mxu1 %v12983_v22  ;;  %v12994_v22 = vld [vmem:[#allocation133_spill] sm:$0xff] }
 0x16b   :  { %6377 = vmatpush1.bf16.msra.mxu0 %v12984_v59  ;;  %v12995_v59 = vld [vmem:[#allocation140_spill] sm:$0xff] }
 0x16c   :  { %6379 = vmatprep.subr.bf16.mxu0 %v12985_v26  ;;  %v12996_v26 = vld [vmem:[#allocation142_spill] sm:$0xff] }
 0x16d   :  { %7145 = vmatpush1.bf16.msra.mxu1 %v12986_v33  ;;  %v12997_v33 = vld [vmem:[#allocation148_spill] sm:$0xff] }
 0x16e   :  { %7147 = vmatprep.subr.bf16.mxu1 %v12987_v45  ;;  %v12998_v45 = vld [vmem:[#allocation145_spill] sm:$0xff] }
 0x16f   :  { %6381 = vmatpush1.bf16.msra.mxu0 %v12988_v54  ;;  %v12999_v54 = vld [vmem:[#allocation152_spill] sm:$0xff] }
 0x170   :  { %6383 = vmatprep.subr.bf16.mxu0 %v12989_v36  ;;  %v13000_v36 = vld [vmem:[#allocation154_spill] sm:$0xff] }
 0x171   :  { %7149 = vmatpush1.bf16.msra.mxu1 %v12990_v50  ;;  %v13001_v50 = vld [vmem:[#allocation160_spill] sm:$0xff] }
 0x172   :  { %7151 = vmatprep.subr.bf16.mxu1 %v12991_v34  ;;  %v13002_v34 = vld [vmem:[#allocation157_spill] sm:$0xff] }
 0x173   :  { %6385 = vmatpush1.bf16.msra.mxu0 %v12992_v53  ;;  %v13003_v53 = vld [vmem:[#allocation164_spill] sm:$0xff] }
 0x174   :  { %6387 = vmatprep.subr.bf16.mxu0 %v12993_v43  ;;  %v13004_v43 = vld [vmem:[#allocation166_spill] sm:$0xff] }
 0x175   :  { %7153 = vmatpush1.bf16.msra.mxu1 %v12994_v22  ;;  %v13005_v22 = vld [vmem:[#allocation172_spill] sm:$0xff] }
 0x176   :  { %7155 = vmatprep.subr.bf16.mxu1 %v12995_v59  ;;  %v13006_v59 = vld [vmem:[#allocation169_spill] sm:$0xff] }
 0x177   :  { %6389 = vmatpush1.bf16.msra.mxu0 %v12996_v26  ;;  %v13007_v26 = vld [vmem:[#allocation176_spill] sm:$0xff] }
 0x178   :  { %6391 = vmatprep.subr.bf16.mxu0 %v12997_v33  ;;  %v13008_v33 = vld [vmem:[#allocation178_spill] sm:$0xff] }
 0x179   :  { %7157 = vmatpush1.bf16.msra.mxu1 %v12998_v45  ;;  %v13009_v45 = vld [vmem:[#allocation184_spill] sm:$0xff] }
 0x17a   :  { %7159 = vmatprep.subr.bf16.mxu1 %v12999_v54  ;;  %v13010_v54 = vld [vmem:[#allocation181_spill] sm:$0xff] }
 0x17b   :  { %6393 = vmatpush1.bf16.msra.mxu0 %v13000_v36  ;;  %v13011_v36 = vld [vmem:[#allocation188_spill] sm:$0xff] }
 0x17c   :  { %6395 = vmatprep.subr.bf16.mxu0 %v13001_v50  ;;  %v13012_v50 = vld [vmem:[#allocation190_spill] sm:$0xff] }
 0x17d   :  { %7161 = vmatpush1.bf16.msra.mxu1 %v13002_v34  ;;  %v13013_v34 = vld [vmem:[#allocation197_spill] sm:$0xff] }
 0x17e   :  { %7163 = vmatprep.subr.bf16.mxu1 %v13003_v53  ;;  %v13014_v53 = vld [vmem:[#allocation17_spill] sm:$0xff] }
 0x17f   :  { %6397 = vmatpush1.bf16.msra.mxu0 %v13004_v43  ;;  %v13015_v43 = vand.u32 4294901760, %v13014_v53  ;;  %v13029_v53 = vld [vmem:[#allocation28_spill] sm:$0xff] }
 0x180   :  { %6399 = vmatprep.subr.bf16.mxu0 %v13005_v22  ;;  %v13017_v22 = vand.u32 4294901760, %v13016_v32  ;;  %v13030_v32 = vand.u32 4294901760, %v13029_v53 }
 0x181   :  { %7165 = vmatpush1.bf16.msra.mxu1 %v13006_v59  ;;  %v13018_v59 = vld [vmem:[#allocation193_spill] sm:$0xff] }
 0x182   :  { %7167 = vmatprep.subr.bf16.mxu1 %v13007_v26  ;;  %v6410_v2 = vpack.c.bf16 %v13017_v22, %v13015_v43  ;;  %v13019_v26 = vld [vmem:[#allocation201_spill] sm:$0xff]  ;;  %v13031_v43 = vld [vmem:[#allocation30_spill] sm:$0xff] }
 0x183   :  { %6401 = vmatpush1.bf16.msra.mxu0 %v13008_v33  ;;  %v13020_v33 = vld [vmem:[#allocation19_spill] sm:$0xff]  ;;  %v13032_v22 = vand.u32 4294901760, %v13031_v43  ;;  %v13045_v43 = vld [vmem:[#allocation36_spill] sm:$0xff] }
 0x184   :  { %6403 = vmatprep.subr.bf16.mxu0 %v13009_v45  ;;  %v13021_v7 = vand.u32 4294901760, %v13020_v33  ;;  %v13022_v45 = vld [vmem:[#allocation21_spill] sm:$0xff] }
 0x185   :  { %7169 = vmatpush1.bf16.msra.mxu1 %v13010_v54  ;;  %v13023_v48 = vand.u32 4294901760, %v13022_v45  ;;  %v13037_v45 = vand.u32 4294901760, %v13036_v11 }
 0x186   :  { %7171 = vmatprep.subr.bf16.mxu1 %v13011_v36  ;;  %v13025_v36 = vld [vmem:[#allocation23_spill] sm:$0xff] }
 0x187   :  { %6405 = vmatpush1.bf16.msra.mxu0 %v13012_v50  ;;  %v7178_v54 = vpack.c.bf16 %v13023_v48, %v13021_v7  ;;  %v13026_v50 = vand.u32 4294901760, %v13025_v36  ;;  %v13038_v7 = vld [vmem:[#allocation215_spill] sm:$0xff]  ;;  %v13039_v36 = vld [vmem:[#allocation32_spill] sm:$0xff] }
 0x188   :  { %6407 = vmatprep.subr.bf16.mxu0 %v13013_v34  ;;  %v13028_v34 = vand.u32 4294901760, %v13027_v35  ;;  %v13041_v35 = vld [vmem:[#allocation33_spill] sm:$0xff] }
 0x189   :  { %7173 = vmatpush1.bf16.msra.mxu1 %v13018_v59  ;;  %v6414_v59 = vpack.c.bf16 %v13032_v22, %v13030_v32  ;;  %v13046_v32 = vand.u32 4294901760, %v13045_v43  ;;  %v13058_v43 = vld [vmem:[#allocation45_spill] sm:$0xff] }
 0x18a   :  { %7175 = vmatprep.subr.bf16.mxu1 %v13019_v26  ;;  %v6412_v24 = vpack.c.bf16 %v13028_v34, %v13026_v50  ;;  %v13034_v26 = vld [vmem:[#allocation26_spill] sm:$0xff]  ;;  %v13042_v50 = vand.u32 4294901760, %v13041_v35 }
 0x18b   :  { %6409 = vmatpush1.bf16.msra.mxu0 %v13024_v44  ;;  %v13035_v33 = vand.u32 4294901760, %v13034_v26  ;;  %v13040_v44 = vand.u32 4294901760, %v13039_v36  ;;  %v13043_v34 = vld [vmem:[#allocation34_spill] sm:$0xff]  ;;  %v13048_v26 = vld [vmem:[#allocation41_spill] sm:$0xff] }
 0x18c   :  { %6411 = vmatprep.subr.bf16.mxu0 %v6410_v2  ;;  %v13044_v53 = vand.u32 4294901760, %v13043_v34  ;;  %v13049_v11 = vand.u32 4294901760, %v13048_v26  ;;  %v13052_v36 = vld [vmem:[#allocation37_spill] sm:$0xff]  ;;  %v13056_v34 = vld [vmem:[#allocation44_spill] sm:$0xff] }
 0x18d   :  { %7177 = vmatpush1.bf16.msra.mxu1 %v13033_v5  ;;  %v7180_v48 = vpack.c.bf16 %v13037_v45, %v13035_v33  ;;  %v7182_v2 = vpack.c.bf16 %v13042_v50, %v13040_v44  ;;  %v13047_v5 = vld [vmem:[#allocation210_spill] sm:$0xff]  ;;  %v13053_v35 = vand.u32 4294901760, %v13052_v36  ;;  %v13054_v44 = vld [vmem:[#allocation39_spill] sm:$0xff] }
 0x18e   :  { %7179 = vmatprep.subr.bf16.mxu1 %v7178_v54  ;;  %1219 = vmatmul.mubr.f32.vlgmr.msra.gmra.mrb[0].mxu0 %v13038_v7  ;;  %v6416_v22 = vpack.c.bf16 %v13046_v32, %v13044_v53  ;;  %v13050_v54 = vld [vmem:[#allocation42_spill] sm:$0xff]  ;;  %v13057_v53 = vand.u32 4294901760, %v13056_v34  ;;  %v13059_v32 = vand.u32 4294901760, %v13058_v43  ;;  %v13074_v43 = vld [vmem:[#allocation57_spill] sm:$0xff] }
 0x18f   :  { %6413 = vmatpush1.bf16.msra.mxu0 %v6412_v24  ;;  %1482 = vmatprep.mubr.f32.mxu0 %v13047_v5  ;;  %v13051_v33 = vand.u32 4294901760, %v13050_v54  ;;  %v13055_v24 = vand.u32 4294901760, %v13054_v44  ;;  %v13063_v54 = vand.u32 4294901760, %v13062_v63  ;;  %v13066_v36 = vld [vmem:[#allocation54_spill] sm:$0xff] }
 0x190   :  { %3787 = vmatmul.mubr.f32.vlgmr.msra.gmra.mrb[0].mxu1 %v13038_v7  ;;  %6415 = vmatprep.subr.bf16.mxu0 %v6414_v59  ;;  %v7186_v7 = vpack.c.bf16 %v13059_v32, %v13057_v53  ;;  %v13060_v59 = vld [vmem:[#allocation47_spill] sm:$0xff]  ;;  %v13067_v44 = vand.u32 4294901760, %v13066_v36  ;;  %v13072_v53 = vld [vmem:[#allocation56_spill] sm:$0xff]  ;;  %v13075_v32 = vand.u32 4294901760, %v13074_v43  ;;  %v13076_v63 = vld [vmem:[#allocation58_spill] sm:$0xff] }
 0x191   :  { %v6418_v45 = vpack.c.bf16 %v13051_v33, %v13049_v11  ;;  %7181 = vmatpush1.bf16.msra.mxu1 %v7180_v48  ;;  %v7184_v50 = vpack.c.bf16 %v13055_v24, %v13053_v35  ;;  %4050 = vmatprep.mubr.f32.mxu1 %v13047_v5  ;;  %v13061_v26 = vand.u32 4294901760, %v13060_v59  ;;  %v13064_v48 = vld [vmem:[#allocation53_spill] sm:$0xff]  ;;  %v13068_v24 = vld [vmem:[#allocation50_spill] sm:$0xff]  ;;  %v13070_v5 = vld [vmem:[#allocation51_spill] sm:$0xff] }
 0x192   :  { %7183 = vmatprep.subr.bf16.mxu1 %v7182_v2  ;;  %v13065_v33 = vand.u32 4294901760, %v13064_v48  ;;  %v13069_v2 = vand.u32 4294901760, %v13068_v24  ;;  %v13071_v34 = vand.u32 4294901760, %v13070_v5  ;;  %v13082_v36 = vld [vmem:[#allocation66_spill] sm:$0xff]  ;;  %v13090_v43 = vld [vmem:[#allocation69_spill] sm:$0xff] }
 0x193   :  { %6417 = vmatpush1.bf16.msra.mxu0 %v6416_v22  ;;  %v6420_v11 = vpack.c.bf16 %v13063_v54, %v13061_v26  ;;  %v13073_v22 = vand.u32 4294901760, %v13072_v53  ;;  %v13078_v26 = vld [vmem:[#allocation60_spill] sm:$0xff]  ;;  %v13084_v5 = vld [vmem:[#allocation62_spill] sm:$0xff] }
 0x194   :  { %6419 = vmatprep.subr.bf16.mxu0 %v6418_v45  ;;  %v6422_v35 = vpack.c.bf16 %v13067_v44, %v13065_v33  ;;  %v7188_v41 = vpack.c.bf16 %v13071_v34, %v13069_v2  ;;  %v13077_v45 = vand.u32 4294901760, %v13076_v63  ;;  %v13079_v54 = vand.u32 4294901760, %v13078_v26  ;;  %v13080_v33 = vld [vmem:[#allocation65_spill] sm:$0xff]  ;;  %v13086_v2 = vld [vmem:[#allocation63_spill] sm:$0xff]  ;;  %v13094_v26 = vld [vmem:[#allocation72_spill] sm:$0xff] }
 0x195   :  { %7185 = vmatpush1.bf16.msra.mxu1 %v7184_v50  ;;  %v7190_v59 = vpack.c.bf16 %v13075_v32, %v13073_v22  ;;  %v13081_v50 = vand.u32 4294901760, %v13080_v33  ;;  %v13083_v44 = vand.u32 4294901760, %v13082_v36  ;;  %v13087_v34 = vand.u32 4294901760, %v13086_v2  ;;  %v13088_v22 = vld [vmem:[#allocation67_spill] sm:$0xff]  ;;  %v13098_v36 = vld [vmem:[#allocation78_spill] sm:$0xff] }
 0x196   :  { %7187 = vmatprep.subr.bf16.mxu1 %v7186_v7  ;;  %v6424_v48 = vpack.c.bf16 %v13079_v54, %v13077_v45  ;;  %v13085_v7 = vand.u32 4294901760, %v13084_v5  ;;  %v13091_v32 = vand.u32 4294901760, %v13090_v43  ;;  %v13092_v45 = vld [vmem:[#allocation71_spill] sm:$0xff]  ;;  %v13095_v54 = vand.u32 4294901760, %v13094_v26  ;;  %v13106_v43 = vld [vmem:[#allocation81_spill] sm:$0xff]  ;;  %v13110_v26 = vld [vmem:[#allocation84_spill] sm:$0xff] }
 0x197   :  { %6421 = vmatpush1.bf16.msra.mxu0 %v6420_v11  ;;  %v6426_v24 = vpack.c.bf16 %v13083_v44, %v13081_v50  ;;  %v13089_v11 = vand.u32 4294901760, %v13088_v22  ;;  %v13096_v50 = vld [vmem:[#allocation77_spill] sm:$0xff]  ;;  %v13099_v44 = vand.u32 4294901760, %v13098_v36  ;;  %v13102_v2 = vld [vmem:[#allocation75_spill] sm:$0xff]  ;;  %v13114_v36 = vld [vmem:[#allocation90_spill] sm:$0xff] }
 0x198   :  { %6423 = vmatprep.subr.bf16.mxu0 %v6422_v35  ;;  %v7192_v53 = vpack.c.bf16 %v13087_v34, %v13085_v7  ;;  %v13093_v35 = vand.u32 4294901760, %v13092_v45  ;;  %v13100_v7 = vld [vmem:[#allocation74_spill] sm:$0xff]  ;;  %v13103_v34 = vand.u32 4294901760, %v13102_v2  ;;  %v13118_v2 = vld [vmem:[#allocation87_spill] sm:$0xff] }
 0x199   :  { %7189 = vmatpush1.bf16.msra.mxu1 %v7188_v41  ;;  %v7194_v63 = vpack.c.bf16 %v13091_v32, %v13089_v11  ;;  %v13097_v41 = vand.u32 4294901760, %v13096_v50  ;;  %v13104_v11 = vld [vmem:[#allocation79_spill] sm:$0xff]  ;;  %v13107_v32 = vand.u32 4294901760, %v13106_v43  ;;  %v13122_v43 = vld [vmem:[#allocation93_spill] sm:$0xff] }
 0x19a   :  { %7191 = vmatprep.subr.bf16.mxu1 %v7190_v59  ;;  %v6428_v33 = vpack.c.bf16 %v13095_v54, %v13093_v35  ;;  %v13101_v59 = vand.u32 4294901760, %v13100_v7  ;;  %v13108_v35 = vld [vmem:[#allocation83_spill] sm:$0xff]  ;;  %v13111_v54 = vand.u32 4294901760, %v13110_v26  ;;  %v13126_v26 = vld [vmem:[#allocation96_spill] sm:$0xff] }
 0x19b   :  { %6425 = vmatpush1.bf16.msra.mxu0 %v6424_v48  ;;  %v6430_v5 = vpack.c.bf16 %v13099_v44, %v13097_v41  ;;  %v13105_v48 = vand.u32 4294901760, %v13104_v11  ;;  %v13112_v41 = vld [vmem:[#allocation89_spill] sm:$0xff]  ;;  %v13115_v44 = vand.u32 4294901760, %v13114_v36  ;;  %v13130_v36 = vld [vmem:[#allocation102_spill] sm:$0xff] }
 0x19c   :  { %6427 = vmatprep.subr.bf16.mxu0 %v6426_v24  ;;  %v7196_v22 = vpack.c.bf16 %v13103_v34, %v13101_v59  ;;  %v13109_v24 = vand.u32 4294901760, %v13108_v35  ;;  %v13116_v59 = vld [vmem:[#allocation86_spill] sm:$0xff]  ;;  %v13119_v34 = vand.u32 4294901760, %v13118_v2 }
 0x19d   :  { %7193 = vmatpush1.bf16.msra.mxu1 %v7192_v53  ;;  %v7198_v45 = vpack.c.bf16 %v13107_v32, %v13105_v48  ;;  %v13113_v53 = vand.u32 4294901760, %v13112_v41  ;;  %v13120_v48 = vld [vmem:[#allocation91_spill] sm:$0xff]  ;;  %v13123_v32 = vand.u32 4294901760, %v13122_v43  ;;  %v13138_v43 = vand.u32 4294901760, %v12899_v42 }
 0x19e   :  { %7195 = vmatprep.subr.bf16.mxu1 %v7194_v63  ;;  %v6432_v50 = vpack.c.bf16 %v13111_v54, %v13109_v24  ;;  %v13117_v63 = vand.u32 4294901760, %v13116_v59  ;;  %v13124_v24 = vld [vmem:[#allocation95_spill] sm:$0xff]  ;;  %v13127_v54 = vand.u32 4294901760, %v13126_v26  ;;  %v13145_v42 = vand.u32 4294901760, %v12774_v29 }
 0x19f   :  { %6429 = vmatpush1.bf16.msra.mxu0 %v6428_v33  ;;  %v6434_v7 = vpack.c.bf16 %v13115_v44, %v13113_v53  ;;  %v13121_v33 = vand.u32 4294901760, %v13120_v48  ;;  %v13128_v53 = vld [vmem:[#allocation101_spill] sm:$0xff]  ;;  %v13131_v44 = vand.u32 4294901760, %v13130_v36  ;;  %v13136_v48 = vand.u32 4294901760, %v12897_v4 }
 0x1a0   :  { %6431 = vmatprep.subr.bf16.mxu0 %v6430_v5  ;;  %v7200_v11 = vpack.c.bf16 %v13119_v34, %v13117_v63  ;;  %v13125_v5 = vand.u32 4294901760, %v13124_v24  ;;  %v13133_v63 = vld [vmem:[#allocation99_spill] sm:$0xff]  ;;  %v13143_v4 = vand.u32 4294901760, %v12904_v49  ;;  %v13150_v49 = vand.u32 4294901760, %v12777_v18  ;;  %v13157_v18 = vld [vmem:[#allocation134_spill] sm:$0xff] }
 0x1a1   :  { %7197 = vmatpush1.bf16.msra.mxu1 %v7196_v22  ;;  %v7202_v35 = vpack.c.bf16 %v13123_v32, %v13121_v33  ;;  %v13129_v22 = vand.u32 4294901760, %v13128_v53  ;;  %v13134_v2 = vand.u32 4294901760, %v13133_v63  ;;  %v13152_v29 = vand.u32 4294901760, %v12833_v60 }
 0x1a2   :  { %7199 = vmatprep.subr.bf16.mxu1 %v7198_v45  ;;  %v6436_v41 = vpack.c.bf16 %v13127_v54, %v13125_v5  ;;  %v13132_v45 = vand.u32 4294901760, %v12894_v57  ;;  %v13140_v57 = vand.u32 4294901760, %v12901_v0  ;;  %v13147_v0 = vand.u32 4294901760, %v12778_v3 }
 0x1a3   :  { %6433 = vmatpush1.bf16.msra.mxu0 %v6432_v50  ;;  %v6438_v59 = vpack.c.bf16 %v13131_v44, %v13129_v22  ;;  %v13135_v50 = vand.u32 4294901760, %v12896_v52  ;;  %v13142_v52 = vand.u32 4294901760, %v12903_v47  ;;  %v13149_v47 = vand.u32 4294901760, %v12776_v61 }
 0x1a4   :  { %6435 = vmatprep.subr.bf16.mxu0 %v6434_v7  ;;  %v7204_v34 = vpack.c.bf16 %v13134_v2, %v13132_v45  ;;  %v13137_v7 = vand.u32 4294901760, %v12898_v37  ;;  %v13144_v37 = vand.u32 4294901760, %v12905_v16  ;;  %v13151_v16 = vand.u32 4294901760, %v12832_v62  ;;  %v13159_v45 = vld [vmem:[#allocation135_spill] sm:$0xff]  ;;  %v13162_v2 = vld [vmem:[#allocation141_spill] sm:$0xff] }
 0x1a5   :  { %7201 = vmatpush1.bf16.msra.mxu1 %v7200_v11  ;;  %v7206_v33 = vpack.c.bf16 %v13136_v48, %v13135_v50  ;;  %v13139_v11 = vand.u32 4294901760, %v12900_v39  ;;  %v13146_v39 = vand.u32 4294901760, %v12775_v31  ;;  %v7212_v53 = vpack.c.bf16 %v13150_v49, %v13149_v47  ;;  %v13188_v49 = vld [vmem:[#allocation174_spill] sm:$0xff] }
 0x1a6   :  { %7203 = vmatprep.subr.bf16.mxu1 %v7202_v35  ;;  %v6440_v32 = vpack.c.bf16 %v13138_v43, %v13137_v7  ;;  %v13141_v35 = vand.u32 4294901760, %v12902_v17  ;;  %v7210_v26 = vpack.c.bf16 %v13144_v37, %v13143_v4  ;;  %v13148_v17 = vand.u32 4294901760, %v12831_v58  ;;  %v13169_v43 = vld [vmem:[#allocation150_spill] sm:$0xff] }
 0x1a7   :  { %6437 = vmatpush1.bf16.msra.mxu0 %v6436_v41  ;;  %v6442_v24 = vpack.c.bf16 %v13140_v57, %v13139_v11  ;;  %v6444_v54 = vpack.c.bf16 %v13146_v39, %v13145_v42  ;;  %v7214_v22 = vpack.c.bf16 %v13152_v29, %v13151_v16  ;;  %v13153_v31 = vand.u32 4294901760, %v12834_v38  ;;  %v190_v11 = vld [vmem:[#allocation8 + $0x408] sm:$0xff]  ;;  %v192_v39 = vld [vmem:[#allocation8 + $0x418] sm:$0xff]  ;;  %v193_v29 = vld [vmem:[#allocation8 + $0x420] sm:$0xff] }
 0x1a8   :  { %6439 = vmatprep.subr.bf16.mxu0 %v6438_v59  ;;  %v7208_v5 = vpack.c.bf16 %v13142_v52, %v13141_v35  ;;  %v6446_v41 = vpack.c.bf16 %v13148_v17, %v13147_v0  ;;  %v13154_v3 = vand.u32 4294901760, %v12835_v30  ;;  %v13155_v58 = vand.u32 4294901760, %v12838_v13  ;;  %v194_v57 = vld [vmem:[#allocation8 + $0x428] sm:$0xff] }
 0x1a9   :  { %7205 = vmatpush1.bf16.msra.mxu1 %v7204_v34  ;;  %v13156_v61 = vand.u32 4294901760, %v12839_v21  ;;  %v13158_v59 = vand.u32 4294901760, %v13157_v18  ;;  %v13160_v62 = vand.u32 4294901760, %v13159_v45  ;;  %v13161_v60 = vand.u32 4294901760, %v12840_v40  ;;  %v13198_v18 = vld [vmem:[#allocation182_spill] sm:$0xff]  ;;  %v13200_v45 = vld [vmem:[#allocation183_spill] sm:$0xff] }
 0x1aa   :  { %7207 = vmatprep.subr.bf16.mxu1 %v7206_v33  ;;  %v6448_v36 = vpack.c.bf16 %v13154_v3, %v13153_v31  ;;  %v13163_v38 = vand.u32 4294901760, %v13162_v2  ;;  %v13164_v30 = vand.u32 4294901760, %v12842_v27  ;;  %v13165_v13 = vand.u32 4294901760, %v12843_v8  ;;  %v13172_v27 = vld [vmem:[#allocation153_spill] sm:$0xff]  ;;  %v13194_v3 = vld [vmem:[#allocation179_spill] sm:$0xff] }
 0x1ab   :  { %6441 = vmatpush1.bf16.msra.mxu0 %v6440_v32  ;;  %v6450_v44 = vpack.c.bf16 %v13156_v61, %v13155_v58  ;;  %v7216_v63 = vpack.c.bf16 %v13160_v62, %v13158_v59  ;;  %v13166_v21 = vand.u32 4294901760, %v12918_v12  ;;  %v13167_v48 = vand.u32 4294901760, %v12917_v28 }
 0x1ac   :  { %6443 = vmatprep.subr.bf16.mxu0 %v6442_v24  ;;  %v7218_v34 = vpack.c.bf16 %v13163_v38, %v13161_v60  ;;  %v6452_v50 = vpack.c.bf16 %v13165_v13, %v13164_v30  ;;  %v13168_v7 = vand.u32 4294901760, %v12915_v1  ;;  %v13170_v32 = vand.u32 4294901760, %v13169_v43  ;;  %v13202_v60 = vld [vmem:[#allocation185_spill] sm:$0xff]  ;;  %v13204_v38 = vld [vmem:[#allocation186_spill] sm:$0xff] }
 0x1ad   :  { %7209 = vmatpush1.bf16.msra.mxu1 %v7208_v5  ;;  %v7220_v33 = vpack.c.bf16 %v13167_v48, %v13166_v21  ;;  %v13171_v24 = vand.u32 4294901760, %v12920_v6  ;;  %v13173_v35 = vand.u32 4294901760, %v13172_v27  ;;  %v13174_v52 = vand.u32 4294901760, %v12923_v23  ;;  %v196_v6 = vld [vmem:[#allocation8 + $0x438] sm:$0xff]  ;;  %v191_v21 = vld [vmem:[#allocation8 + $0x410] sm:$0xff] }
 0x1ae   :  { %7211 = vmatprep.subr.bf16.mxu1 %v7210_v26  ;;  %v6454_v40 = vpack.c.bf16 %v13170_v32, %v13168_v7  ;;  %v13175_v12 = vand.u32 4294901760, %v12922_v15  ;;  %v13176_v28 = vand.u32 4294901760, %v12926_v55  ;;  %v13177_v1 = vand.u32 4294901760, %v12853_v19  ;;  %v195_v48 = vld [vmem:[#allocation8 + $0x430] sm:$0xff]  ;;  %v13208_v32 = vld [vmem:[#allocation189_spill] sm:$0xff] }
 0x1af   :  { %6445 = vmatpush1.bf16.msra.mxu0 %v6444_v54  ;;  %v7222_v8 = vpack.c.bf16 %v13173_v35, %v13171_v24  ;;  %v13178_v37 = vand.u32 4294901760, %v12854_v25  ;;  %v13179_v26 = vand.u32 4294901760, %v12855_v14  ;;  %v13180_v54 = vand.u32 4294901760, %v12856_v51  ;;  %v13186_v14 = vld [vmem:[#allocation173_spill] sm:$0xff]  ;;  %v13206_v7 = vld [vmem:[#allocation187_spill] sm:$0xff] }
 0x1b0   :  { %6447 = vmatprep.subr.bf16.mxu0 %v6446_v41  ;;  %v6456_v5 = vpack.c.bf16 %v13175_v12, %v13174_v52  ;;  %v7224_v4 = vpack.c.bf16 %v13177_v1, %v13176_v28  ;;  %v13181_v23 = vand.u32 4294901760, %v12857_v20  ;;  %v13182_v15 = vand.u32 4294901760, %v12929_v9  ;;  %v189_v51 = vld [vmem:[#allocation8 + $0x400] sm:$0xff]  ;;  %v13190_v20 = vld [vmem:[#allocation175_spill] sm:$0xff] }
 0x1b1   :  { %7213 = vmatpush1.bf16.msra.mxu1 %v7212_v53  ;;  %v6458_v42 = vpack.c.bf16 %v13179_v26, %v13178_v37  ;;  %v13183_v55 = vand.u32 4294901760, %v12807_v10  ;;  %v13184_v19 = vand.u32 4294901760, %v12859_v46  ;;  %v13185_v25 = vand.u32 4294901760, %v12860_v56  ;;  %v13192_v9 = vld [vmem:[#allocation177_spill] sm:$0xff]  ;;  %v13210_v27 = vld [vmem:[#allocation191_spill] sm:$0xff]  ;;  %v13212_v52 = vld [vmem:[#allocation192_spill] sm:$0xff] }
 0x1b2   :  { %7215 = vmatprep.subr.bf16.mxu1 %v7214_v22  ;;  %v7226_v0 = vpack.c.bf16 %v13181_v23, %v13180_v54  ;;  %v13187_v47 = vand.u32 4294901760, %v13186_v14  ;;  %v13189_v53 = vand.u32 4294901760, %v13188_v49  ;;  %v13191_v22 = vand.u32 4294901760, %v13190_v20  ;;  %v13214_v26 = vld [vmem:[#allocation194_spill] sm:$0xff]  ;;  %v13216_v23 = vld [vmem:[#allocation195_spill] sm:$0xff]  ;;  %v13222_v49 = vld [vmem:[#allocation200_spill] sm:$0xff] }
 0x1b3   :  { %6449 = vmatpush1.bf16.msra.mxu0 %v6448_v36  ;;  %v6460_v17 = vpack.c.bf16 %v13183_v55, %v13182_v15  ;;  %v9442_v41 = vpack.c.bf16 %v13185_v25, %v13184_v19  ;;  %v13193_v31 = vand.u32 4294901760, %v13192_v9  ;;  %v13195_v46 = vand.u32 4294901760, %v13194_v3  ;;  %v13196_v36 = vld [vmem:[#allocation180_spill] sm:$0xff]  ;;  %v13218_v55 = vld [vmem:[#allocation198_spill] sm:$0xff]  ;;  %v13220_v25 = vld [vmem:[#allocation199_spill] sm:$0xff] }
 0x1b4   :  { %6451 = vmatprep.subr.bf16.mxu0 %v6450_v44  ;;  %v6462_v16 = vpack.c.bf16 %v13189_v53, %v13187_v47  ;;  %v13197_v56 = vand.u32 4294901760, %v13196_v36  ;;  %v1627_v61 = vand.u32 4294901760, %v190_v11  ;;  %v1631_v44 = vand.u32 4294901760, %v194_v57  ;;  %v13224_v20 = vld [vmem:[#allocation202_spill] sm:$0xff]  ;;  %v13228_v3 = vld [vmem:[#allocation205_spill] sm:$0xff] }
 0x1b5   :  { %7217 = vmatpush1.bf16.msra.mxu1 %v7216_v63  ;;  %v9452_v10 = vpack.c.bf16 %v13193_v31, %v13191_v22  ;;  %v13199_v59 = vand.u32 4294901760, %v13198_v18  ;;  %v13201_v62 = vand.u32 4294901760, %v13200_v45  ;;  %v13203_v2 = vand.u32 4294901760, %v13202_v60  ;;  %v13226_v31 = vld [vmem:[#allocation204_spill] sm:$0xff]  ;;  %v202_v18 = vld [vmem:[#allocation8 + $0x468] sm:$0xff] }
 0x1b6   :  { %7219 = vmatprep.subr.bf16.mxu1 %v7218_v34  ;;  %v9458_v58 = vpack.c.bf16 %v13197_v56, %v13195_v46  ;;  %v13205_v34 = vand.u32 4294901760, %v13204_v38  ;;  %v4195_v13 = vand.u32 4294901760, %v192_v39  ;;  %v13207_v43 = vand.u32 4294901760, %v13206_v7  ;;  %v198_v56 = vld [vmem:[#allocation8 + $0x448] sm:$0xff] }
 0x1b7   :  { %6453 = vmatpush1.bf16.msra.mxu0 %v6452_v50  ;;  %v9464_v63 = vpack.c.bf16 %v13201_v62, %v13199_v59  ;;  %v4199_v50 = vand.u32 4294901760, %v196_v6  ;;  %v13211_v35 = vand.u32 4294901760, %v13210_v27  ;;  %v13213_v12 = vand.u32 4294901760, %v13212_v52  ;;  %v13230_v59 = vld [vmem:[#allocation207_spill] sm:$0xff]  ;;  %v13232_v62 = vld [vmem:[#allocation208_spill] sm:$0xff] }
 0x1b8   :  { %6455 = vmatprep.subr.bf16.mxu0 %v6454_v40  ;;  %v9470_v30 = vpack.c.bf16 %v13205_v34, %v13203_v2  ;;  %v13209_v40 = vand.u32 4294901760, %v13208_v32  ;;  %v1629_v1 = vand.u32 4294901760, %v189_v51  ;;  %v1633_v37 = vand.u32 4294901760, %v193_v29  ;;  %v204_v32 = vld [vmem:[#allocation8 + $0x478] sm:$0xff]  ;;  %v197_v52 = vld [vmem:[#allocation8 + $0x440] sm:$0xff] }
 0x1b9   :  { %7221 = vmatpush1.bf16.msra.mxu1 %v7220_v33  ;;  %v9482_v28 = vpack.c.bf16 %v13213_v12, %v13211_v35  ;;  %v13215_v54 = vand.u32 4294901760, %v13214_v26  ;;  %v13217_v15 = vand.u32 4294901760, %v13216_v23  ;;  %v13219_v19 = vand.u32 4294901760, %v13218_v55  ;;  %v199_v55 = vld [vmem:[#allocation8 + $0x450] sm:$0xff] }
 0x1ba   :  { %v9476_v24 = vpack.c.bf16 %v13209_v40, %v13207_v43  ;;  %7223 = vmatprep.subr.bf16.mxu1 %v7222_v8  ;;  %v13221_v14 = vand.u32 4294901760, %v13220_v25  ;;  %v13223_v53 = vand.u32 4294901760, %v13222_v49  ;;  %v13225_v22 = vand.u32 4294901760, %v13224_v20  ;;  %v200_v43 = vld [vmem:[#allocation8 + $0x458] sm:$0xff]  ;;  %v209_v49 = vld [vmem:[#allocation8 + $0x4a0] sm:$0xff] }
 0x1bb   :  { %v9488_v33 = vpack.c.bf16 %v13217_v15, %v13215_v54  ;;  %v13227_v8 = vand.u32 4294901760, %v13226_v31  ;;  %v13229_v46 = vand.u32 4294901760, %v13228_v3  ;;  %6457 = vmatpush1.bf16.msra.mxu0 %v6456_v5  ;;  %v13231_v45 = vand.u32 4294901760, %v13230_v59  ;;  %v201_v15 = vld [vmem:[#allocation8 + $0x460] sm:$0xff]  ;;  %v208_v25 = vld [vmem:[#allocation8 + $0x498] sm:$0xff]  ;;  %v211_v3 = vld [vmem:[#allocation8 + $0x4b0] sm:$0xff] }
 0x1bc   :  { %v9494_v47 = vpack.c.bf16 %v13221_v14, %v13219_v19  ;;  %v9500_v9 = vpack.c.bf16 %v13225_v22, %v13223_v53  ;;  %v13233_v60 = vand.u32 4294901760, %v13232_v62  ;;  %v9514_v38 = vpack.c.bf16 %v1631_v44, %v1627_v61  ;;  %6459 = vmatprep.subr.bf16.mxu0 %v6458_v42  ;;  %v203_v19 = vld [vmem:[#allocation8 + $0x470] sm:$0xff]  ;;  %v212_v14 = vld [vmem:[#allocation8 + $0x4b8] sm:$0xff] }
 0x1bd   :  { %v9506_v36 = vpack.c.bf16 %v13229_v46, %v13227_v8  ;;  %v4197_v34 = vand.u32 4294901760, %v191_v21  ;;  %v4201_v7 = vand.u32 4294901760, %v195_v48  ;;  %v9516_v40 = vsub.f32 %v190_v11, %v1627_v61  ;;  %7225 = vmatpush1.bf16.msra.mxu1 %v7224_v4  ;;  %v207_v8 = vld [vmem:[#allocation8 + $0x490] sm:$0xff] }
 0x1be   :  { %v9512_v2 = vpack.c.bf16 %v13233_v60, %v13231_v45  ;;  %13234 = vst [vmem:[#allocation119_spill] sm:$0xff] %v9514_v38  ;;  %v9518_v27 = vsub.f32 %v194_v57, %v1631_v44  ;;  %v9520_v35 = vpack.c.bf16 %v4199_v50, %v4195_v13  ;;  %v9522_v5 = vsub.f32 %v192_v39, %v4195_v13  ;;  %v206_v39 = vld [vmem:[#allocation8 + $0x488] sm:$0xff] }
 0x1bf   :  { %13235 = vst [vmem:[#allocation120_spill] sm:$0xff] %v9516_v40  ;;  %v9524_v12 = vsub.f32 %v196_v6, %v4199_v50  ;;  %v9526_v26 = vpack.c.bf16 %v1633_v37, %v1629_v1  ;;  %v1635_v54 = vand.u32 4294901760, %v198_v56  ;;  %v1639_v23 = vand.u32 4294901760, %v202_v18  ;;  %7227 = vmatprep.subr.bf16.mxu1 %v7226_v0  ;;  %v210_v44 = vld [vmem:[#allocation8 + $0x4a8] sm:$0xff]  ;;  %6461 = vmatpush1.bf16.msra.mxu0 %v6460_v17 }
 0x1c0   :  { %13236 = vst [vmem:[#allocation122_spill] sm:$0xff] %v9518_v27  ;;  %13237 = vst [vmem:[#allocation123_spill] sm:$0xff] %v9520_v35  ;;  %v9528_v11 = vsub.f32 %v189_v51, %v1629_v1  ;;  %v9530_v57 = vsub.f32 %v193_v29, %v1633_v37  ;;  %v4203_v42 = vand.u32 4294901760, %v200_v43  ;;  %v4207_v61 = vand.u32 4294901760, %v204_v32  ;;  %6463 = vmatprep.subr.bf16.mxu0 %v6462_v16  ;;  %v205_v37 = vld [vmem:[#allocation8 + $0x480] sm:$0xff]  ;;  %v214_v60 = vld [vmem:[#allocation8 + $0x4c8] sm:$0xff] }
 0x1c1   :  { %13238 = vst [vmem:[#allocation125_spill] sm:$0xff] %v9522_v5  ;;  %13239 = vst [vmem:[#allocation168_spill] sm:$0xff] %v9524_v12  ;;  %v9532_v4 = vpack.c.bf16 %v4201_v7, %v4197_v34  ;;  %v9534_v6 = vsub.f32 %v191_v21, %v4197_v34  ;;  %v9536_v13 = vsub.f32 %v195_v48, %v4201_v7  ;;  %v1637_v0 = vand.u32 4294901760, %v197_v52  ;;  %v218_v34 = vld [vmem:[#allocation8 + $0x4e8] sm:$0xff] }
 0x1c2   :  { %13240 = vst [vmem:[#allocation126_spill] sm:$0xff] %v9526_v26  ;;  %13241 = vst [vmem:[#allocation127_spill] sm:$0xff] %v9528_v11  ;;  %v9538_v50 = vsub.f32 %v198_v56, %v1635_v54  ;;  %v1641_v51 = vand.u32 4294901760, %v201_v15  ;;  %v4205_v29 = vand.u32 4294901760, %v199_v55  ;;  %v4209_v1 = vand.u32 4294901760, %v203_v19  ;;  %7229 = vmatpush1.bf16.msra.mxu1 %v9442_v41 }
 0x1c3   :  { %13242 = vst [vmem:[#allocation129_spill] sm:$0xff] %v9530_v57  ;;  %13243 = vst [vmem:[#allocation131_spill] sm:$0xff] %v9532_v4  ;;  %v9541_v17 = vpack.c.bf16 %v1639_v23, %v1635_v54  ;;  %v9543_v53 = vsub.f32 %v202_v18, %v1639_v23  ;;  %v1643_v21 = vand.u32 4294901760, %v206_v39  ;;  %v1647_v48 = vand.u32 4294901760, %v210_v44  ;;  %7231 = vmatprep.subr.bf16.mxu1 %v9452_v10 }
 0x1c4   :  { %13244 = vst [vmem:[#allocation132_spill] sm:$0xff] %v9534_v6  ;;  %13245 = vst [vmem:[#allocation137_spill] sm:$0xff] %v9536_v13  ;;  %v9546_v20 = vpack.c.bf16 %v4207_v61, %v4203_v42  ;;  %v9548_v22 = vsub.f32 %v200_v43, %v4203_v42  ;;  %v4211_v16 = vand.u32 4294901760, %v208_v25  ;;  %v4215_v31 = vand.u32 4294901760, %v212_v14  ;;  %6465 = vmatpush1.bf16.msra.mxu0 %v9458_v58  ;;  %v213_v42 = vld [vmem:[#allocation8 + $0x4c0] sm:$0xff] }
 0x1c5   :  { %13246 = vst [vmem:[#allocation138_spill] sm:$0xff] %v9538_v50  ;;  %13247 = vst [vmem:[#allocation139_spill] sm:$0xff] %v9541_v17  ;;  %v9551_v46 = vsub.f32 %v204_v32, %v4207_v61  ;;  %v9553_v41 = vsub.f32 %v197_v52, %v1637_v0  ;;  %v1645_v56 = vand.u32 4294901760, %v205_v37  ;;  %v1649_v18 = vand.u32 4294901760, %v209_v49  ;;  %6467 = vmatprep.subr.bf16.mxu0 %v9470_v30  ;;  %v216_v52 = vld [vmem:[#allocation8 + $0x4d8] sm:$0xff] }
 0x1c6   :  { %13248 = vst [vmem:[#allocation143_spill] sm:$0xff] %v9543_v53  ;;  %13249 = vst [vmem:[#allocation144_spill] sm:$0xff] %v9546_v20  ;;  %v9556_v59 = vpack.c.bf16 %v1641_v51, %v1637_v0  ;;  %v9558_v10 = vsub.f32 %v201_v15, %v1641_v51  ;;  %v9560_v45 = vpack.c.bf16 %v4209_v1, %v4205_v29  ;;  %7233 = vmatpush1.bf16.msra.mxu1 %v9464_v63  ;;  %v220_v30 = vld [vmem:[#allocation8 + $0x4f8] sm:$0xff]  ;;  %v217_v63 = vld [vmem:[#allocation8 + $0x4e0] sm:$0xff] }
 0x1c7   :  { %13250 = vst [vmem:[#allocation159_spill] sm:$0xff] %v9548_v22  ;;  %13251 = vst [vmem:[#allocation161_spill] sm:$0xff] %v9551_v46  ;;  %v9562_v62 = vsub.f32 %v199_v55, %v4205_v29  ;;  %v9565_v58 = vsub.f32 %v203_v19, %v4209_v1  ;;  %v9567_v7 = vpack.c.bf16 %v1647_v48, %v1643_v21  ;;  %v4213_v43 = vand.u32 4294901760, %v207_v8  ;;  %v215_v29 = vld [vmem:[#allocation8 + $0x4d0] sm:$0xff] }
 0x1c8   :  { %13252 = vst [vmem:[#allocation162_spill] sm:$0xff] %v9553_v41  ;;  %13253 = vst [vmem:[#allocation163_spill] sm:$0xff] %v9556_v59  ;;  %v4217_v32 = vand.u32 4294901760, %v211_v3  ;;  %7235 = vmatprep.subr.bf16.mxu1 %v9476_v24  ;;  %v9570_v54 = vsub.f32 %v206_v39, %v1643_v21  ;;  %v9572_v23 = vsub.f32 %v210_v44, %v1647_v48  ;;  %6469 = vmatpush1.bf16.msra.mxu0 %v9482_v28  ;;  %v219_v24 = vld [vmem:[#allocation8 + $0x4f0] sm:$0xff]  ;;  %v222_v21 = vld [vmem:[#allocation8 + $0x508] sm:$0xff] }
 0x1c9   :  { %13254 = vst [vmem:[#allocation165_spill] sm:$0xff] %v9558_v10  ;;  %13255 = vst [vmem:[#allocation170_spill] sm:$0xff] %v9560_v45  ;;  %v9574_v15 = vpack.c.bf16 %v4215_v31, %v4211_v16  ;;  %v9576_v55 = vsub.f32 %v208_v25, %v4211_v16  ;;  %v9579_v19 = vsub.f32 %v212_v14, %v4215_v31  ;;  %v1651_v0 = vand.u32 4294901760, %v214_v60  ;;  %v226_v48 = vld [vmem:[#allocation8 + $0x528] sm:$0xff] }
 0x1ca   :  { %13256 = vst [vmem:[#allocation171_spill] sm:$0xff] %v9562_v62  ;;  %13257 = vst [vmem:[#allocation212_spill] sm:$0xff] %v9565_v58  ;;  %v9581_v61 = vpack.c.bf16 %v1649_v18, %v1645_v56  ;;  %v1655_v51 = vand.u32 4294901760, %v218_v34  ;;  %6471 = vmatprep.subr.bf16.mxu0 %v9494_v47  ;;  %v9584_v39 = vsub.f32 %v205_v37, %v1645_v56  ;;  %v4219_v25 = vand.u32 4294901760, %v216_v52  ;;  %v224_v56 = vld [vmem:[#allocation8 + $0x518] sm:$0xff] }
 0x1cb   :  { %13258 = vst [vmem:[#allocation98_spill] sm:$0xff] %v9567_v7  ;;  %13259 = vst [vmem:[#allocation103_spill] sm:$0xff] %v9570_v54  ;;  %v9586_v44 = vsub.f32 %v209_v49, %v1649_v18  ;;  %v4223_v1 = vand.u32 4294901760, %v220_v30  ;;  %7237 = vmatpush1.bf16.msra.mxu1 %v9488_v33  ;;  %v9589_v28 = vpack.c.bf16 %v4217_v32, %v4213_v43  ;;  %v1653_v16 = vand.u32 4294901760, %v213_v42  ;;  %v228_v18 = vld [vmem:[#allocation8 + $0x538] sm:$0xff]  ;;  %v246_v54 = vld [vmem:[#allocation8 + $0x5c8] sm:$0xff] }
 0x1cc   :  { %13260 = vst [vmem:[#allocation105_spill] sm:$0xff] %v9572_v23  ;;  %13261 = vst [vmem:[#allocation107_spill] sm:$0xff] %v9574_v15  ;;  %v9591_v14 = vsub.f32 %v207_v8, %v4213_v43  ;;  %v1657_v31 = vand.u32 4294901760, %v217_v63  ;;  %7239 = vmatprep.subr.bf16.mxu1 %v9500_v9  ;;  %v9596_v47 = vsub.f32 %v214_v60, %v1651_v0  ;;  %v4221_v37 = vand.u32 4294901760, %v215_v29  ;;  %v13297_v23 = vld [vmem:[#allocation35_spill] sm:$0xff]  ;;  %v13434_v15 = vld [vmem:[#allocation154_spill] sm:$0xff] }
 0x1cd   :  { %13262 = vst [vmem:[#allocation108_spill] sm:$0xff] %v9576_v55  ;;  %13263 = vst [vmem:[#allocation113_spill] sm:$0xff] %v9579_v19  ;;  %v4225_v49 = vand.u32 4294901760, %v219_v24  ;;  %6473 = vmatpush1.bf16.msra.mxu0 %v9506_v36  ;;  %v9601_v33 = vsub.f32 %v218_v34, %v1655_v51  ;;  %v1659_v8 = vand.u32 4294901760, %v222_v21  ;;  %v1663_v43 = vand.u32 4294901760, %v226_v48  ;;  %v235_v19 = vld [vmem:[#allocation8 + $0x570] sm:$0xff] }
 0x1ce   :  { %13264 = vst [vmem:[#allocation114_spill] sm:$0xff] %v9581_v61  ;;  %13265 = vst [vmem:[#allocation110_spill] sm:$0xff] %v9584_v39  ;;  %v9594_v61 = vsub.f32 %v211_v3, %v4217_v32  ;;  %v225_v39 = vld [vmem:[#allocation8 + $0x520] sm:$0xff]  ;;  %v9604_v9 = vpack.c.bf16 %v4223_v1, %v4219_v25  ;;  %v9606_v3 = vsub.f32 %v216_v52, %v4219_v25  ;;  %v13281_v52 = vld [vmem:[#allocation211_spill] sm:$0xff] }
 0x1cf   :  { %13266 = vst [vmem:[#allocation111_spill] sm:$0xff] %v9586_v44  ;;  %13267 = vst [vmem:[#allocation115_spill] sm:$0xff] %v9589_v28  ;;  %v9599_v44 = vpack.c.bf16 %v1655_v51, %v1651_v0  ;;  %v13273_v28 = vld [vmem:[#allocation16_spill] sm:$0xff]  ;;  %v9608_v60 = vsub.f32 %v220_v30, %v4223_v1  ;;  %v9610_v32 = vsub.f32 %v213_v42, %v1653_v16  ;;  %7241 = vmatpush1.bf16.msra.mxu1 %v9512_v2  ;;  %v13284_v2 = vld [vmem:[#allocation22_spill] sm:$0xff] }
 0x1d0   :  { %13268 = vst [vmem:[#allocation117_spill] sm:$0xff] %v9591_v14  ;;  %13269 = vst [vmem:[#allocation149_spill] sm:$0xff] %v9594_v61  ;;  %v221_v14 = vld [vmem:[#allocation8 + $0x500] sm:$0xff]  ;;  %6475 = vmatprep.subr.bf16.mxu0 %v13273_v28  ;;  %v9613_v36 = vpack.c.bf16 %v1657_v31, %v1653_v16  ;;  %v9615_v34 = vsub.f32 %v217_v63, %v1657_v31  ;;  %v4227_v0 = vand.u32 4294901760, %v224_v56  ;;  %v4231_v51 = vand.u32 4294901760, %v228_v18  ;;  %v230_v61 = vld [vmem:[#allocation8 + $0x548] sm:$0xff] }
 0x1d1   :  { %13270 = vst [vmem:[#allocation147_spill] sm:$0xff] %v9596_v47  ;;  %13271 = vst [vmem:[#allocation146_spill] sm:$0xff] %v9599_v44  ;;  %v223_v47 = vld [vmem:[#allocation8 + $0x510] sm:$0xff]  ;;  %v234_v28 = vld [vmem:[#allocation8 + $0x568] sm:$0xff]  ;;  %1484 = vmatmul.mubr.f32.vlgmr.msra.gmra.mrb[0].mxu0 %v13281_v52  ;;  %v9619_v30 = vpack.c.bf16 %v4225_v49, %v4221_v37  ;;  %v9621_v42 = vsub.f32 %v215_v29, %v4221_v37  ;;  %v1661_v25 = vand.u32 4294901760, %v221_v14  ;;  %v1665_v1 = vand.u32 4294901760, %v225_v39 }
 0x1d2   :  { %13272 = vst [vmem:[#allocation151_spill] sm:$0xff] %v9601_v33  ;;  %13274 = vst [vmem:[#allocation156_spill] sm:$0xff] %v9604_v9  ;;  %v227_v33 = vld [vmem:[#allocation8 + $0x530] sm:$0xff]  ;;  %v13280_v44 = vld [vmem:[#allocation20_spill] sm:$0xff]  ;;  %6477 = vmatpush1.bf16.msra.mxu0 %v13284_v2  ;;  %v9625_v63 = vsub.f32 %v219_v24, %v4225_v49  ;;  %v9627_v31 = vpack.c.bf16 %v1663_v43, %v1659_v8  ;;  %4052 = vmatmul.mubr.f32.vlgmr.msra.gmra.mrb[0].mxu1 %v13281_v52  ;;  %v4229_v29 = vand.u32 4294901760, %v223_v47 }
 0x1d3   :  { %13275 = vst [vmem:[#allocation155_spill] sm:$0xff] %v9606_v3  ;;  %13276 = vst [vmem:[#allocation158_spill] sm:$0xff] %v9608_v60  ;;  %7243 = vmatprep.subr.bf16.mxu1 %v13280_v44  ;;  %v13285_v16 = vld [vmem:[#allocation210_spill] sm:$0xff]  ;;  %v236_v44 = vld [vmem:[#allocation8 + $0x578] sm:$0xff]  ;;  %v4233_v37 = vand.u32 4294901760, %v227_v33  ;;  %v1671_v3 = vand.u32 4294901760, %v234_v28  ;;  %v9635_v24 = vsub.f32 %v226_v48, %v1663_v43  ;;  %v9639_v49 = vsub.f32 %v224_v56, %v4227_v0 }
 0x1d4   :  { %13277 = vst [vmem:[#allocation167_spill] sm:$0xff] %v9610_v32  ;;  %13278 = vst [vmem:[#allocation213_spill] sm:$0xff] %v9613_v36  ;;  %1619 = vmatprep.mubr.f32.mxu0 %v13285_v16  ;;  %v232_v32 = vld [vmem:[#allocation8 + $0x558] sm:$0xff]  ;;  %v13289_v60 = vld [vmem:[#allocation29_spill] sm:$0xff]  ;;  %4187 = vmatprep.mubr.f32.mxu1 %v13285_v16  ;;  %v4239_v9 = vand.u32 4294901760, %v236_v44  ;;  %v9647_v48 = vsub.f32 %v221_v14, %v1661_v25  ;;  %v9649_v43 = vsub.f32 %v225_v39, %v1665_v1 }
 0x1d5   :  { %13279 = vst [vmem:[#allocation214_spill] sm:$0xff] %v9615_v34  ;;  %13282 = vst [vmem:[#allocation17_spill] sm:$0xff] %v9619_v30  ;;  %v9629_v34 = vsub.f32 %v222_v21, %v1659_v8  ;;  %6479 = vmatprep.subr.bf16.mxu0 %v13289_v60  ;;  %v229_v30 = vld [vmem:[#allocation8 + $0x540] sm:$0xff]  ;;  %v9637_v21 = vpack.c.bf16 %v4231_v51, %v4227_v0  ;;  %v231_v8 = vld [vmem:[#allocation8 + $0x550] sm:$0xff]  ;;  %v9642_v60 = vsub.f32 %v228_v18, %v4231_v51 }
 0x1d6   :  { %13283 = vst [vmem:[#allocation18_spill] sm:$0xff] %v9621_v42  ;;  %13286 = vst [vmem:[#allocation19_spill] sm:$0xff] %v9625_v63  ;;  %v1667_v42 = vand.u32 4294901760, %v230_v61  ;;  %v233_v2 = vld [vmem:[#allocation8 + $0x560] sm:$0xff]  ;;  %v9644_v63 = vpack.c.bf16 %v1665_v1, %v1661_v25  ;;  %v238_v55 = vld [vmem:[#allocation8 + $0x588] sm:$0xff]  ;;  %6481 = vmatpush1.bf16.msra.mxu0 %v13297_v23  ;;  %v1669_v56 = vand.u32 4294901760, %v229_v30  ;;  %v9654_v18 = vsub.f32 %v223_v47, %v4229_v29 }
 0x1d7   :  { %13287 = vst [vmem:[#allocation21_spill] sm:$0xff] %v9627_v31  ;;  %13288 = vst [vmem:[#allocation23_spill] sm:$0xff] %v9629_v34  ;;  %v13290_v36 = vld [vmem:[#allocation25_spill] sm:$0xff]  ;;  %v13294_v34 = vld [vmem:[#allocation31_spill] sm:$0xff]  ;;  %v4235_v31 = vand.u32 4294901760, %v232_v32  ;;  %v1673_v0 = vand.u32 4294901760, %v233_v2  ;;  %v9656_v51 = vsub.f32 %v227_v33, %v4233_v37  ;;  %v9664_v47 = vsub.f32 %v234_v28, %v1671_v3 }
 0x1d8   :  { %7245 = vmatpush1.bf16.msra.mxu1 %v13290_v36  ;;  %13291 = vst [vmem:[#allocation24_spill] sm:$0xff] %v9635_v24  ;;  %13292 = vst [vmem:[#allocation28_spill] sm:$0xff] %v9637_v21  ;;  %v242_v36 = vld [vmem:[#allocation8 + $0x5a8] sm:$0xff]  ;;  %v13300_v16 = vld [vmem:[#allocation40_spill] sm:$0xff]  ;;  %v4237_v23 = vand.u32 4294901760, %v231_v8  ;;  %v4241_v14 = vand.u32 4294901760, %v235_v19 }
 0x1d9   :  { %13293 = vst [vmem:[#allocation30_spill] sm:$0xff] %v9639_v49  ;;  %7247 = vmatprep.subr.bf16.mxu1 %v13294_v34  ;;  %13295 = vst [vmem:[#allocation26_spill] sm:$0xff] %v9642_v60  ;;  %6483 = vmatprep.subr.bf16.mxu0 %v13300_v16  ;;  %v9652_v34 = vpack.c.bf16 %v4233_v37, %v4229_v29  ;;  %v9658_v60 = vpack.c.bf16 %v1671_v3, %v1667_v42  ;;  %v240_v49 = vld [vmem:[#allocation8 + $0x598] sm:$0xff]  ;;  %v1675_v39 = vand.u32 4294901760, %v238_v55  ;;  %v237_v1 = vld [vmem:[#allocation8 + $0x580] sm:$0xff] }
 0x1da   :  { %13296 = vst [vmem:[#allocation27_spill] sm:$0xff] %v9644_v63  ;;  %13298 = vst [vmem:[#allocation215_spill] sm:$0xff] %v9647_v48  ;;  %v244_v24 = vld [vmem:[#allocation8 + $0x5b8] sm:$0xff]  ;;  %v13305_v63 = vld [vmem:[#allocation38_spill] sm:$0xff]  ;;  %v1679_v25 = vand.u32 4294901760, %v242_v36  ;;  %v9662_v16 = vsub.f32 %v230_v61, %v1667_v42  ;;  %v9666_v33 = vpack.c.bf16 %v4239_v9, %v4235_v31  ;;  %v9668_v29 = vsub.f32 %v232_v32, %v4235_v31 }
 0x1db   :  { %13299 = vst [vmem:[#allocation32_spill] sm:$0xff] %v9649_v43  ;;  %13301 = vst [vmem:[#allocation33_spill] sm:$0xff] %v9652_v34  ;;  %v241_v43 = vld [vmem:[#allocation8 + $0x5a0] sm:$0xff]  ;;  %v13306_v48 = vld [vmem:[#allocation43_spill] sm:$0xff]  ;;  %v4243_v34 = vand.u32 4294901760, %v240_v49  ;;  %v9676_v3 = vsub.f32 %v229_v30, %v1669_v56  ;;  %v9678_v28 = vsub.f32 %v233_v2, %v1673_v0  ;;  %v1677_v32 = vand.u32 4294901760, %v237_v1 }
 0x1dc   :  { %13302 = vst [vmem:[#allocation34_spill] sm:$0xff] %v9654_v18  ;;  %13303 = vst [vmem:[#allocation36_spill] sm:$0xff] %v9656_v51  ;;  %7249 = vmatpush1.bf16.msra.mxu1 %v13305_v63  ;;  %v239_v37 = vld [vmem:[#allocation8 + $0x590] sm:$0xff]  ;;  %v9671_v63 = vsub.f32 %v236_v44, %v4239_v9  ;;  %v9673_v18 = vpack.c.bf16 %v1673_v0, %v1669_v56  ;;  %v13314_v61 = vld [vmem:[#allocation52_spill] sm:$0xff]  ;;  %v1681_v42 = vand.u32 4294901760, %v241_v43  ;;  %v1683_v2 = vand.u32 4294901760, %v246_v54 }
 0x1dd   :  { %13304 = vst [vmem:[#allocation41_spill] sm:$0xff] %v9658_v60  ;;  %7251 = vmatprep.subr.bf16.mxu1 %v13306_v48  ;;  %13307 = vst [vmem:[#allocation42_spill] sm:$0xff] %v9662_v16  ;;  %v13311_v51 = vld [vmem:[#allocation46_spill] sm:$0xff]  ;;  %v4247_v60 = vand.u32 4294901760, %v244_v24  ;;  %v13317_v31 = vld [vmem:[#allocation49_spill] sm:$0xff]  ;;  %v9683_v9 = vsub.f32 %v231_v8, %v4237_v23  ;;  %v9685_v44 = vsub.f32 %v235_v19, %v4241_v14  ;;  %v4245_v30 = vand.u32 4294901760, %v239_v37 }
 0x1de   :  { %13308 = vst [vmem:[#allocation37_spill] sm:$0xff] %v9664_v47  ;;  %13309 = vst [vmem:[#allocation39_spill] sm:$0xff] %v9666_v33  ;;  %6485 = vmatpush1.bf16.msra.mxu0 %v13311_v51  ;;  %v243_v21 = vld [vmem:[#allocation8 + $0x5b0] sm:$0xff]  ;;  %v250_v48 = vld [vmem:[#allocation8 + $0x5e8] sm:$0xff]  ;;  %v9681_v51 = vpack.c.bf16 %v4241_v14, %v4237_v23  ;;  %v9693_v8 = vsub.f32 %v242_v36, %v1679_v25  ;;  %v9697_v23 = vsub.f32 %v240_v49, %v4243_v34 }
 0x1df   :  { %13310 = vst [vmem:[#allocation44_spill] sm:$0xff] %v9668_v29  ;;  %13312 = vst [vmem:[#allocation45_spill] sm:$0xff] %v9671_v63  ;;  %6487 = vmatprep.subr.bf16.mxu0 %v13314_v61  ;;  %v9687_v63 = vpack.c.bf16 %v1679_v25, %v1675_v39  ;;  %v248_v29 = vld [vmem:[#allocation8 + $0x5d8] sm:$0xff]  ;;  %v4249_v56 = vand.u32 4294901760, %v243_v21  ;;  %v1687_v0 = vand.u32 4294901760, %v250_v48  ;;  %v245_v61 = vld [vmem:[#allocation8 + $0x5c0] sm:$0xff]  ;;  %v9695_v19 = vpack.c.bf16 %v4247_v60, %v4243_v34 }
 0x1e0   :  { %13313 = vst [vmem:[#allocation47_spill] sm:$0xff] %v9673_v18  ;;  %13315 = vst [vmem:[#allocation48_spill] sm:$0xff] %v9676_v3  ;;  %7253 = vmatpush1.bf16.msra.mxu1 %v13317_v31  ;;  %v252_v47 = vld [vmem:[#allocation8 + $0x5f8] sm:$0xff]  ;;  %v9691_v31 = vsub.f32 %v238_v55, %v1675_v39  ;;  %v247_v14 = vld [vmem:[#allocation8 + $0x5d0] sm:$0xff]  ;;  %v9705_v36 = vsub.f32 %v237_v1, %v1677_v32  ;;  %v9707_v39 = vsub.f32 %v241_v43, %v1681_v42 }
 0x1e1   :  { %13316 = vst [vmem:[#allocation53_spill] sm:$0xff] %v9678_v28  ;;  %13318 = vst [vmem:[#allocation54_spill] sm:$0xff] %v9681_v51  ;;  %v13322_v16 = vld [vmem:[#allocation55_spill] sm:$0xff]  ;;  %v249_v28 = vld [vmem:[#allocation8 + $0x5e0] sm:$0xff]  ;;  %v4251_v51 = vand.u32 4294901760, %v248_v29  ;;  %v1685_v49 = vand.u32 4294901760, %v245_v61 }
 0x1e2   :  { %13319 = vst [vmem:[#allocation50_spill] sm:$0xff] %v9683_v9  ;;  %13320 = vst [vmem:[#allocation51_spill] sm:$0xff] %v9685_v44  ;;  %7255 = vmatprep.subr.bf16.mxu1 %v13322_v16  ;;  %v13323_v3 = vld [vmem:[#allocation59_spill] sm:$0xff]  ;;  %v13328_v44 = vld [vmem:[#allocation64_spill] sm:$0xff]  ;;  %v9700_v16 = vsub.f32 %v244_v24, %v4247_v60  ;;  %v9702_v9 = vpack.c.bf16 %v1681_v42, %v1677_v32  ;;  %v1689_v34 = vand.u32 4294901760, %v249_v28  ;;  %v4253_v1 = vand.u32 4294901760, %v247_v14 }
 0x1e3   :  { %13321 = vst [vmem:[#allocation56_spill] sm:$0xff] %v9687_v63  ;;  %6489 = vmatpush1.bf16.msra.mxu0 %v13323_v3  ;;  %13324 = vst [vmem:[#allocation57_spill] sm:$0xff] %v9691_v31  ;;  %v4255_v63 = vand.u32 4294901760, %v252_v47  ;;  %v251_v18 = vld [vmem:[#allocation8 + $0x5f0] sm:$0xff]  ;;  %v254_v33 = vld [vmem:[#allocation8 + $0x608] sm:$0xff]  ;;  %v9712_v24 = vsub.f32 %v239_v37, %v4245_v30  ;;  %v9714_v60 = vsub.f32 %v243_v21, %v4249_v56 }
 0x1e4   :  { %13325 = vst [vmem:[#allocation58_spill] sm:$0xff] %v9693_v8  ;;  %13326 = vst [vmem:[#allocation60_spill] sm:$0xff] %v9695_v19  ;;  %6491 = vmatprep.subr.bf16.mxu0 %v13328_v44  ;;  %v258_v3 = vld [vmem:[#allocation8 + $0x628] sm:$0xff]  ;;  %v13334_v25 = vld [vmem:[#allocation68_spill] sm:$0xff]  ;;  %v9710_v44 = vpack.c.bf16 %v4249_v56, %v4245_v30  ;;  %v4257_v32 = vand.u32 4294901760, %v251_v18  ;;  %v1691_v43 = vand.u32 4294901760, %v254_v33  ;;  %v9722_v37 = vsub.f32 %v250_v48, %v1687_v0 }
 0x1e5   :  { %13327 = vst [vmem:[#allocation65_spill] sm:$0xff] %v9697_v23  ;;  %13329 = vst [vmem:[#allocation66_spill] sm:$0xff] %v9700_v16  ;;  %v13331_v55 = vld [vmem:[#allocation61_spill] sm:$0xff]  ;;  %v9716_v16 = vpack.c.bf16 %v1687_v0, %v1683_v2  ;;  %v256_v23 = vld [vmem:[#allocation8 + $0x618] sm:$0xff]  ;;  %v1695_v42 = vand.u32 4294901760, %v258_v3  ;;  %v9724_v21 = vpack.c.bf16 %v4255_v63, %v4251_v51  ;;  %v9726_v30 = vsub.f32 %v248_v29, %v4251_v51 }
 0x1e6   :  { %13330 = vst [vmem:[#allocation62_spill] sm:$0xff] %v9702_v9  ;;  %7257 = vmatpush1.bf16.msra.mxu1 %v13331_v55  ;;  %13332 = vst [vmem:[#allocation63_spill] sm:$0xff] %v9705_v36  ;;  %v260_v8 = vld [vmem:[#allocation8 + $0x638] sm:$0xff]  ;;  %v13339_v31 = vld [vmem:[#allocation70_spill] sm:$0xff]  ;;  %v9734_v48 = vsub.f32 %v245_v61, %v1685_v49 }
 0x1e7   :  { %13333 = vst [vmem:[#allocation67_spill] sm:$0xff] %v9707_v39  ;;  %7259 = vmatprep.subr.bf16.mxu1 %v13334_v25  ;;  %13335 = vst [vmem:[#allocation69_spill] sm:$0xff] %v9710_v44  ;;  %6493 = vmatpush1.bf16.msra.mxu0 %v13339_v31  ;;  %v253_v55 = vld [vmem:[#allocation8 + $0x600] sm:$0xff]  ;;  %v9720_v25 = vsub.f32 %v246_v54, %v1683_v2  ;;  %v255_v56 = vld [vmem:[#allocation8 + $0x610] sm:$0xff]  ;;  %v9729_v31 = vsub.f32 %v252_v47, %v4255_v63  ;;  %v4259_v44 = vand.u32 4294901760, %v256_v23 }
 0x1e8   :  { %13336 = vst [vmem:[#allocation71_spill] sm:$0xff] %v9712_v24  ;;  %13337 = vst [vmem:[#allocation72_spill] sm:$0xff] %v9714_v60  ;;  %v257_v39 = vld [vmem:[#allocation8 + $0x620] sm:$0xff]  ;;  %v9731_v24 = vpack.c.bf16 %v1689_v34, %v1685_v49  ;;  %v259_v9 = vld [vmem:[#allocation8 + $0x630] sm:$0xff]  ;;  %v9736_v2 = vsub.f32 %v249_v28, %v1689_v34  ;;  %v1693_v29 = vand.u32 4294901760, %v253_v55  ;;  %v9741_v47 = vsub.f32 %v247_v14, %v4253_v1 }
 0x1e9   :  { %13338 = vst [vmem:[#allocation77_spill] sm:$0xff] %v9716_v16  ;;  %v13340_v36 = vld [vmem:[#allocation76_spill] sm:$0xff]  ;;  %13341 = vst [vmem:[#allocation78_spill] sm:$0xff] %v9720_v25  ;;  %v13345_v60 = vld [vmem:[#allocation73_spill] sm:$0xff]  ;;  %v4263_v16 = vand.u32 4294901760, %v260_v8  ;;  %v1697_v51 = vand.u32 4294901760, %v257_v39  ;;  %v9743_v63 = vsub.f32 %v251_v18, %v4257_v32  ;;  %v9751_v14 = vsub.f32 %v258_v3, %v1695_v42 }
 0x1ea   :  { %6495 = vmatprep.subr.bf16.mxu0 %v13340_v36  ;;  %13342 = vst [vmem:[#allocation74_spill] sm:$0xff] %v9722_v37  ;;  %13343 = vst [vmem:[#allocation75_spill] sm:$0xff] %v9724_v21  ;;  %7261 = vmatpush1.bf16.msra.mxu1 %v13345_v60  ;;  %v262_v19 = vld [vmem:[#allocation8 + $0x648] sm:$0xff]  ;;  %v13348_v54 = vld [vmem:[#allocation80_spill] sm:$0xff]  ;;  %v9739_v60 = vpack.c.bf16 %v4257_v32, %v4253_v1  ;;  %v4261_v61 = vand.u32 4294901760, %v255_v56  ;;  %v4265_v49 = vand.u32 4294901760, %v259_v9 }
 0x1eb   :  { %13344 = vst [vmem:[#allocation79_spill] sm:$0xff] %v9726_v30  ;;  %13346 = vst [vmem:[#allocation81_spill] sm:$0xff] %v9729_v31  ;;  %v266_v36 = vld [vmem:[#allocation8 + $0x668] sm:$0xff]  ;;  %7263 = vmatprep.subr.bf16.mxu1 %v13348_v54  ;;  %v9745_v31 = vpack.c.bf16 %v1695_v42, %v1691_v43  ;;  %v264_v30 = vld [vmem:[#allocation8 + $0x658] sm:$0xff]  ;;  %v1699_v28 = vand.u32 4294901760, %v262_v19  ;;  %v9753_v18 = vpack.c.bf16 %v4263_v16, %v4259_v44 }
 0x1ec   :  { %13347 = vst [vmem:[#allocation83_spill] sm:$0xff] %v9731_v24  ;;  %13349 = vst [vmem:[#allocation84_spill] sm:$0xff] %v9734_v48  ;;  %v13351_v0 = vld [vmem:[#allocation82_spill] sm:$0xff]  ;;  %v268_v37 = vld [vmem:[#allocation8 + $0x678] sm:$0xff]  ;;  %v1703_v34 = vand.u32 4294901760, %v266_v36  ;;  %v9755_v1 = vsub.f32 %v256_v23, %v4259_v44  ;;  %v9765_v3 = vsub.f32 %v257_v39, %v1697_v51 }
 0x1ed   :  { %13350 = vst [vmem:[#allocation89_spill] sm:$0xff] %v9736_v2  ;;  %6497 = vmatpush1.bf16.msra.mxu0 %v13351_v0  ;;  %13352 = vst [vmem:[#allocation90_spill] sm:$0xff] %v9739_v60  ;;  %v13356_v25 = vld [vmem:[#allocation88_spill] sm:$0xff]  ;;  %v13357_v48 = vld [vmem:[#allocation85_spill] sm:$0xff]  ;;  %v9749_v0 = vsub.f32 %v254_v33, %v1691_v43  ;;  %v4271_v60 = vand.u32 4294901760, %v268_v37  ;;  %v9763_v33 = vsub.f32 %v253_v55, %v1693_v29 }
 0x1ee   :  { %13353 = vst [vmem:[#allocation86_spill] sm:$0xff] %v9741_v47  ;;  %13354 = vst [vmem:[#allocation87_spill] sm:$0xff] %v9743_v63  ;;  %6499 = vmatprep.subr.bf16.mxu0 %v13356_v25  ;;  %v261_v54 = vld [vmem:[#allocation8 + $0x640] sm:$0xff]  ;;  %7265 = vmatpush1.bf16.msra.mxu1 %v13357_v48  ;;  %v9758_v63 = vsub.f32 %v260_v8, %v4263_v16  ;;  %v9760_v25 = vpack.c.bf16 %v1697_v51, %v1693_v29  ;;  %v4267_v47 = vand.u32 4294901760, %v264_v30  ;;  %v267_v24 = vld [vmem:[#allocation8 + $0x670] sm:$0xff] }
 0x1ef   :  { %13355 = vst [vmem:[#allocation91_spill] sm:$0xff] %v9745_v31  ;;  %v265_v2 = vld [vmem:[#allocation8 + $0x660] sm:$0xff]  ;;  %13358 = vst [vmem:[#allocation93_spill] sm:$0xff] %v9749_v0  ;;  %v263_v31 = vld [vmem:[#allocation8 + $0x650] sm:$0xff]  ;;  %v1701_v43 = vand.u32 4294901760, %v261_v54  ;;  %v9768_v8 = vpack.c.bf16 %v4265_v49, %v4261_v61  ;;  %v9770_v16 = vsub.f32 %v255_v56, %v4261_v61  ;;  %v9777_v39 = vsub.f32 %v262_v19, %v1699_v28 }
 0x1f0   :  { %13359 = vst [vmem:[#allocation95_spill] sm:$0xff] %v9751_v14  ;;  %13360 = vst [vmem:[#allocation96_spill] sm:$0xff] %v9753_v18  ;;  %v13362_v32 = vld [vmem:[#allocation92_spill] sm:$0xff]  ;;  %v13365_v21 = vld [vmem:[#allocation94_spill] sm:$0xff]  ;;  %v1705_v42 = vand.u32 4294901760, %v265_v2  ;;  %v9779_v29 = vsub.f32 %v266_v36, %v1703_v34  ;;  %v4269_v51 = vand.u32 4294901760, %v263_v31  ;;  %v9782_v56 = vpack.c.bf16 %v4271_v60, %v4267_v47 }
 0x1f1   :  { %13361 = vst [vmem:[#allocation101_spill] sm:$0xff] %v9755_v1  ;;  %7267 = vmatprep.subr.bf16.mxu1 %v13362_v32  ;;  %13363 = vst [vmem:[#allocation102_spill] sm:$0xff] %v9758_v63  ;;  %6501 = vmatpush1.bf16.msra.mxu0 %v13365_v21  ;;  %v270_v23 = vld [vmem:[#allocation8 + $0x688] sm:$0xff]  ;;  %v13368_v48 = vld [vmem:[#allocation100_spill] sm:$0xff]  ;;  %v9772_v32 = vsub.f32 %v259_v9, %v4265_v49  ;;  %v9774_v63 = vpack.c.bf16 %v1703_v34, %v1699_v28 }
 0x1f2   :  { %13364 = vst [vmem:[#allocation99_spill] sm:$0xff] %v9760_v25  ;;  %13366 = vst [vmem:[#allocation134_spill] sm:$0xff] %v9763_v33  ;;  %v274_v44 = vld [vmem:[#allocation8 + $0x6a8] sm:$0xff]  ;;  %6503 = vmatprep.subr.bf16.mxu0 %v13368_v48  ;;  %v272_v1 = vld [vmem:[#allocation8 + $0x698] sm:$0xff]  ;;  %v9784_v9 = vsub.f32 %v264_v30, %v4267_v47  ;;  %v1707_v61 = vand.u32 4294901760, %v270_v23  ;;  %v9787_v19 = vsub.f32 %v268_v37, %v4271_v60 }
 0x1f3   :  { %13367 = vst [vmem:[#allocation135_spill] sm:$0xff] %v9765_v3  ;;  %13369 = vst [vmem:[#allocation141_spill] sm:$0xff] %v9768_v8  ;;  %v276_v21 = vld [vmem:[#allocation8 + $0x6b8] sm:$0xff]  ;;  %v13373_v55 = vld [vmem:[#allocation97_spill] sm:$0xff]  ;;  %v4273_v3 = vand.u32 4294901760, %v267_v24  ;;  %v1711_v49 = vand.u32 4294901760, %v274_v44  ;;  %v9789_v36 = vpack.c.bf16 %v1705_v42, %v1701_v43  ;;  %v9799_v37 = vsub.f32 %v263_v31, %v4269_v51 }
 0x1f4   :  { %13370 = vst [vmem:[#allocation150_spill] sm:$0xff] %v9770_v16  ;;  %13371 = vst [vmem:[#allocation153_spill] sm:$0xff] %v9772_v32  ;;  %7269 = vmatpush1.bf16.msra.mxu1 %v13373_v55  ;;  %v269_v33 = vld [vmem:[#allocation8 + $0x680] sm:$0xff]  ;;  %v271_v32 = vld [vmem:[#allocation8 + $0x690] sm:$0xff]  ;;  %v4275_v28 = vand.u32 4294901760, %v272_v1  ;;  %v4279_v34 = vand.u32 4294901760, %v276_v21 }
 0x1f5   :  { %13372 = vst [vmem:[#allocation173_spill] sm:$0xff] %v9774_v63  ;;  %13374 = vst [vmem:[#allocation174_spill] sm:$0xff] %v9777_v39  ;;  %v273_v48 = vld [vmem:[#allocation8 + $0x6a0] sm:$0xff]  ;;  %v275_v16 = vld [vmem:[#allocation8 + $0x6b0] sm:$0xff]  ;;  %v1709_v30 = vand.u32 4294901760, %v269_v33  ;;  %v9797_v8 = vpack.c.bf16 %v4273_v3, %v4269_v51  ;;  %v4277_v60 = vand.u32 4294901760, %v271_v32 }
 0x1f6   :  { %13375 = vst [vmem:[#allocation175_spill] sm:$0xff] %v9779_v29  ;;  %v13376_v14 = vld [vmem:[#allocation104_spill] sm:$0xff]  ;;  %13377 = vst [vmem:[#allocation177_spill] sm:$0xff] %v9782_v56  ;;  %v13379_v0 = vld [vmem:[#allocation106_spill] sm:$0xff]  ;;  %v9792_v29 = vsub.f32 %v261_v54, %v1701_v43  ;;  %v1713_v47 = vand.u32 4294901760, %v273_v48  ;;  %v9802_v54 = vsub.f32 %v267_v24, %v4273_v3  ;;  %v9806_v43 = vsub.f32 %v270_v23, %v1707_v61 }
 0x1f7   :  { %7271 = vmatprep.subr.bf16.mxu1 %v13376_v14  ;;  %13378 = vst [vmem:[#allocation179_spill] sm:$0xff] %v9784_v9  ;;  %6505 = vmatpush1.bf16.msra.mxu0 %v13379_v0  ;;  %13380 = vst [vmem:[#allocation180_spill] sm:$0xff] %v9787_v19  ;;  %v13382_v55 = vld [vmem:[#allocation112_spill] sm:$0xff]  ;;  %v9794_v14 = vsub.f32 %v265_v2, %v1705_v42  ;;  %v278_v9 = vld [vmem:[#allocation8 + $0x6c8] sm:$0xff]  ;;  %v4281_v0 = vand.u32 4294901760, %v275_v16  ;;  %v9804_v2 = vpack.c.bf16 %v1711_v49, %v1707_v61 }
 0x1f8   :  { %13381 = vst [vmem:[#allocation182_spill] sm:$0xff] %v9789_v36  ;;  %6507 = vmatprep.subr.bf16.mxu0 %v13382_v55  ;;  %13383 = vst [vmem:[#allocation183_spill] sm:$0xff] %v9792_v29  ;;  %v282_v39 = vld [vmem:[#allocation8 + $0x6e8] sm:$0xff]  ;;  %v280_v19 = vld [vmem:[#allocation8 + $0x6d8] sm:$0xff]  ;;  %v9808_v42 = vsub.f32 %v274_v44, %v1711_v49  ;;  %v9813_v31 = vsub.f32 %v272_v1, %v4275_v28  ;;  %v1715_v51 = vand.u32 4294901760, %v278_v9 }
 0x1f9   :  { %13384 = vst [vmem:[#allocation185_spill] sm:$0xff] %v9794_v14  ;;  %v13385_v56 = vld [vmem:[#allocation109_spill] sm:$0xff]  ;;  %13386 = vst [vmem:[#allocation186_spill] sm:$0xff] %v9797_v8  ;;  %v284_v36 = vld [vmem:[#allocation8 + $0x6f8] sm:$0xff]  ;;  %v9811_v14 = vpack.c.bf16 %v4279_v34, %v4275_v28  ;;  %v9816_v3 = vsub.f32 %v276_v21, %v4279_v34  ;;  %v9818_v23 = vpack.c.bf16 %v1713_v47, %v1709_v30  ;;  %v4283_v44 = vand.u32 4294901760, %v280_v19 }
 0x1fa   :  { %7273 = vmatpush1.bf16.msra.mxu1 %v13385_v56  ;;  %13387 = vst [vmem:[#allocation187_spill] sm:$0xff] %v9799_v37  ;;  %v13388_v63 = vld [vmem:[#allocation116_spill] sm:$0xff]  ;;  %13389 = vst [vmem:[#allocation189_spill] sm:$0xff] %v9802_v54  ;;  %v13393_v56 = vld [vmem:[#allocation118_spill] sm:$0xff]  ;;  %v1719_v37 = vand.u32 4294901760, %v282_v39  ;;  %v4287_v61 = vand.u32 4294901760, %v284_v36  ;;  %v9825_v1 = vpack.c.bf16 %v4281_v0, %v4277_v60  ;;  %v9827_v28 = vsub.f32 %v271_v32, %v4277_v60 }
 0x1fb   :  { %7275 = vmatprep.subr.bf16.mxu1 %v13388_v63  ;;  %13390 = vst [vmem:[#allocation191_spill] sm:$0xff] %v9804_v2  ;;  %13391 = vst [vmem:[#allocation192_spill] sm:$0xff] %v9806_v43  ;;  %v277_v55 = vld [vmem:[#allocation8 + $0x6c0] sm:$0xff]  ;;  %6509 = vmatpush1.bf16.msra.mxu0 %v13393_v56  ;;  %v279_v8 = vld [vmem:[#allocation8 + $0x6d0] sm:$0xff]  ;;  %v9821_v56 = vsub.f32 %v269_v33, %v1709_v30  ;;  %v9831_v33 = vsub.f32 %v275_v16, %v4281_v0 }
 0x1fc   :  { %13392 = vst [vmem:[#allocation194_spill] sm:$0xff] %v9808_v42  ;;  %13394 = vst [vmem:[#allocation195_spill] sm:$0xff] %v9811_v14  ;;  %v281_v29 = vld [vmem:[#allocation8 + $0x6e0] sm:$0xff]  ;;  %v283_v63 = vld [vmem:[#allocation8 + $0x6f0] sm:$0xff]  ;;  %v9823_v42 = vsub.f32 %v273_v48, %v1713_v47  ;;  %v1717_v21 = vand.u32 4294901760, %v277_v55  ;;  %v9833_v48 = vpack.c.bf16 %v1719_v37, %v1715_v51  ;;  %v9835_v30 = vsub.f32 %v278_v9, %v1715_v51 }
 0x1fd   :  { %13395 = vst [vmem:[#allocation198_spill] sm:$0xff] %v9813_v31  ;;  %v13396_v24 = vld [vmem:[#allocation124_spill] sm:$0xff]  ;;  %13397 = vst [vmem:[#allocation199_spill] sm:$0xff] %v9816_v3  ;;  %v13399_v49 = vld [vmem:[#allocation121_spill] sm:$0xff]  ;;  %v1721_v34 = vand.u32 4294901760, %v281_v29  ;;  %v4289_v3 = vand.u32 4294901760, %v283_v63  ;;  %v9846_v16 = vsub.f32 %v280_v19, %v4283_v44  ;;  %v9848_v0 = vsub.f32 %v284_v36, %v4287_v61 }
 0x1fe   :  { %6511 = vmatprep.subr.bf16.mxu0 %v13396_v24  ;;  %13398 = vst [vmem:[#allocation200_spill] sm:$0xff] %v9818_v23  ;;  %7277 = vmatpush1.bf16.msra.mxu1 %v13399_v49  ;;  %13400 = vst [vmem:[#allocation202_spill] sm:$0xff] %v9821_v56  ;;  %v286_v31 = vld [vmem:[#allocation8 + $0x708] sm:$0xff]  ;;  %v13404_v54 = vld [vmem:[#allocation128_spill] sm:$0xff]  ;;  %v4285_v24 = vand.u32 4294901760, %v279_v8  ;;  %v9843_v49 = vpack.c.bf16 %v4287_v61, %v4283_v44 }
 0x1ff   :  { %13401 = vst [vmem:[#allocation204_spill] sm:$0xff] %v9823_v42  ;;  %13402 = vst [vmem:[#allocation205_spill] sm:$0xff] %v9825_v1  ;;  %v290_v43 = vld [vmem:[#allocation8 + $0x728] sm:$0xff]  ;;  %7279 = vmatprep.subr.bf16.mxu1 %v13404_v54  ;;  %v288_v23 = vld [vmem:[#allocation8 + $0x718] sm:$0xff]  ;;  %v9841_v54 = vsub.f32 %v282_v39, %v1719_v37  ;;  %v9851_v39 = vpack.c.bf16 %v1721_v34, %v1717_v21  ;;  %v9853_v37 = vsub.f32 %v277_v55, %v1717_v21 }
 0x200   :  { %13403 = vst [vmem:[#allocation207_spill] sm:$0xff] %v9827_v28  ;;  %v292_v14 = vld [vmem:[#allocation8 + $0x738] sm:$0xff]  ;;  %v13405_v2 = vld [vmem:[#allocation130_spill] sm:$0xff]  ;;  %13406 = vst [vmem:[#allocation208_spill] sm:$0xff] %v9831_v33  ;;  %v1723_v28 = vand.u32 4294901760, %v286_v31  ;;  %v1727_v42 = vand.u32 4294901760, %v290_v43  ;;  %v9860_v19 = vsub.f32 %v279_v8, %v4285_v24  ;;  %v9865_v55 = vsub.f32 %v283_v63, %v4289_v3 }
 0x201   :  { %6513 = vmatpush1.bf16.msra.mxu0 %v13405_v2  ;;  %13407 = vst [vmem:[#allocation16_spill] sm:$0xff] %v9833_v48  ;;  %13408 = vst [vmem:[#allocation20_spill] sm:$0xff] %v9835_v30  ;;  %v13409_v32 = vld [vmem:[#allocation13_spill] sm:$0xff]  ;;  %v13411_v60 = vld [vmem:[#allocation136_spill] sm:$0xff]  ;;  %v4291_v9 = vand.u32 4294901760, %v288_v23  ;;  %v4295_v51 = vand.u32 4294901760, %v292_v14 }
 0x202   :  { %v9838_v47 = vsub.s32 3, %v13409_v32  ;;  %6515 = vmatprep.subr.bf16.mxu0 %v13411_v60  ;;  %13412 = vst [vmem:[#allocation22_spill] sm:$0xff] %v9841_v54  ;;  %13413 = vst [vmem:[#allocation210_spill] sm:$0xff] %v9843_v49  ;;  %v285_v56 = vld [vmem:[#allocation8 + $0x700] sm:$0xff]  ;;  %v287_v30 = vld [vmem:[#allocation8 + $0x710] sm:$0xff]  ;;  %v9855_v60 = vsub.f32 %v281_v29, %v1721_v34  ;;  %v9857_v54 = vpack.c.bf16 %v4289_v3, %v4285_v24 }
 0x203   :  { %v289_v1 = vld [vmem:[#allocation8 + $0x720] sm:$0xff]  ;;  %13415 = vst [vmem:[#allocation29_spill] sm:$0xff] %v9846_v16  ;;  %13416 = vst [vmem:[#allocation25_spill] sm:$0xff] %v9848_v0  ;;  %v291_v33 = vld [vmem:[#allocation8 + $0x730] sm:$0xff]  ;;  %v1725_v36 = vand.u32 4294901760, %v285_v56  ;;  %v9867_v29 = vpack.c.bf16 %v1727_v42, %v1723_v28  ;;  %v4293_v21 = vand.u32 4294901760, %v287_v30  ;;  %v9870_v8 = vsub.f32 %v286_v31, %v1723_v28 }
 0x204   :  { %13410 = vst [vmem:[#allocation211_spill] sm:$0xff] %v9838_v47  ;;  %v13414_v2 = vld [vmem:[#allocation133_spill] sm:$0xff]  ;;  %v13417_v48 = vld [vmem:[#allocation140_spill] sm:$0xff]  ;;  %13418 = vst [vmem:[#allocation31_spill] sm:$0xff] %v9851_v39  ;;  %v1729_v44 = vand.u32 4294901760, %v289_v1  ;;  %v4297_v34 = vand.u32 4294901760, %v291_v33  ;;  %v9872_v24 = vsub.f32 %v290_v43, %v1727_v42  ;;  %v9880_v31 = vsub.f32 %v292_v14, %v4295_v51 }
 0x205   :  { %7281 = vmatpush1.bf16.msra.mxu1 %v13414_v2  ;;  %13419 = vst [vmem:[#allocation35_spill] sm:$0xff] %v9853_v37  ;;  %13420 = vst [vmem:[#allocation40_spill] sm:$0xff] %v9855_v60  ;;  %v294_v49 = vld [vmem:[#allocation8 + $0x748] sm:$0xff]  ;;  %v296_v0 = vld [vmem:[#allocation8 + $0x758] sm:$0xff]  ;;  %v9884_v42 = vsub.f32 %v285_v56, %v1725_v36 }
 0x206   :  { %7283 = vmatprep.subr.bf16.mxu1 %v13417_v48  ;;  %13421 = vst [vmem:[#allocation38_spill] sm:$0xff] %v9857_v54  ;;  %v13422_v2 = vld [vmem:[#allocation142_spill] sm:$0xff]  ;;  %13423 = vst [vmem:[#allocation43_spill] sm:$0xff] %v9860_v19  ;;  %v300_v16 = vld [vmem:[#allocation8 + $0x778] sm:$0xff]  ;;  %v9876_v19 = vsub.f32 %v288_v23, %v4291_v9  ;;  %v1731_v63 = vand.u32 4294901760, %v294_v49  ;;  %v9882_v43 = vpack.c.bf16 %v1729_v44, %v1725_v36 }
 0x207   :  { %6517 = vmatpush1.bf16.msra.mxu0 %v13422_v2  ;;  %v298_v61 = vld [vmem:[#allocation8 + $0x768] sm:$0xff]  ;;  %v13425_v39 = vld [vmem:[#allocation148_spill] sm:$0xff]  ;;  %13426 = vst [vmem:[#allocation46_spill] sm:$0xff] %v9865_v55  ;;  %13427 = vst [vmem:[#allocation52_spill] sm:$0xff] %v9867_v29  ;;  %v9874_v2 = vpack.c.bf16 %v4295_v51, %v4291_v9  ;;  %v4303_v55 = vand.u32 4294901760, %v300_v16  ;;  %v9889_v9 = vsub.f32 %v289_v1, %v1729_v44 }
 0x208   :  { %v13424_v48 = vld [vmem:[#allocation209_spill] sm:$0xff]  ;;  %6519 = vmatprep.subr.bf16.mxu0 %v13425_v39  ;;  %13429 = vst [vmem:[#allocation49_spill] sm:$0xff] %v9870_v8  ;;  %13430 = vst [vmem:[#allocation55_spill] sm:$0xff] %v9872_v24  ;;  %v13433_v54 = vld [vmem:[#allocation152_spill] sm:$0xff]  ;;  %v1735_v3 = vand.u32 4294901760, %v298_v61  ;;  %v4299_v39 = vand.u32 4294901760, %v296_v0  ;;  %v9894_v8 = vsub.f32 %v287_v30, %v4293_v21  ;;  %v9901_v1 = vsub.f32 %v294_v49, %v1731_v63 }
 0x209   :  { %v338_v25 = vrot.slane %v13424_v48, %v9838_v47  ;;  %v13428_v60 = vld [vmem:[#allocation145_spill] sm:$0xff]  ;;  %13431 = vst [vmem:[#allocation59_spill] sm:$0xff] %v9874_v2  ;;  %13432 = vst [vmem:[#allocation64_spill] sm:$0xff] %v9876_v19  ;;  %v295_v29 = vld [vmem:[#allocation8 + $0x750] sm:$0xff] }
 0x20a   :  { %7285 = vmatpush1.bf16.msra.mxu1 %v13428_v60  ;;  %v293_v37 = vld [vmem:[#allocation8 + $0x740] sm:$0xff]  ;;  %v299_v18 = vld [vmem:[#allocation8 + $0x770] sm:$0xff]  ;;  %13435 = vst [vmem:[#allocation61_spill] sm:$0xff] %v9880_v31  ;;  %13436 = vst [vmem:[#allocation68_spill] sm:$0xff] %v9882_v43  ;;  %v4301_v14 = vand.u32 4294901760, %v295_v29  ;;  %v9899_v31 = vpack.c.bf16 %v1735_v3, %v1731_v63  ;;  %v9903_v44 = vsub.f32 %v298_v61, %v1735_v3 }
 0x20b   :  { %v297_v47 = vld [vmem:[#allocation8 + $0x760] sm:$0xff]  ;;  %7287 = vmatprep.subr.bf16.mxu1 %v13433_v54  ;;  %6521 = vmatpush1.bf16.msra.mxu0 %v13434_v15  ;;  %13437 = vst [vmem:[#allocation70_spill] sm:$0xff] %v9884_v42  ;;  %v9886_v23 = vand.u32 4294901760, %v338_v25  ;;  %13440 = vst [vmem:[#allocation73_spill] sm:$0xff] %v9889_v9  ;;  %v9891_v54 = vpack.c.bf16 %v4297_v34, %v4293_v21  ;;  %v1733_v60 = vand.u32 4294901760, %v293_v37  ;;  %v4305_v51 = vand.u32 4294901760, %v299_v18 }
 0x20c   :  { %v13439_v28 = vld [vmem:[#allocation160_spill] sm:$0xff]  ;;  %v1737_v19 = vand.u32 4294901760, %v297_v47  ;;  %v13442_v24 = vld [vmem:[#allocation157_spill] sm:$0xff]  ;;  %13443 = vst [vmem:[#allocation82_spill] sm:$0xff] %v9894_v8  ;;  %v9896_v15 = vsub.f32 %v291_v33, %v4297_v34  ;;  %13446 = vst [vmem:[#allocation85_spill] sm:$0xff] %v9899_v31  ;;  %v9908_v33 = vsub.f32 %v296_v0, %v4299_v39  ;;  %v9910_v21 = vsub.f32 %v300_v16, %v4303_v55 }
 0x20d   :  { %13438 = vst [vmem:[#allocation76_spill] sm:$0xff] %v9886_v23  ;;  %6523 = vmatprep.subr.bf16.mxu0 %v13439_v28  ;;  %13441 = vst [vmem:[#allocation80_spill] sm:$0xff] %v9891_v54  ;;  %v302_v56 = vld [vmem:[#allocation8 + $0x788] sm:$0xff]  ;;  %v13445_v42 = vld [vmem:[#allocation164_spill] sm:$0xff]  ;;  %v9905_v28 = vpack.c.bf16 %v4303_v55, %v4299_v39  ;;  %v9912_v34 = vsub.f32 %v293_v37, %v1733_v60  ;;  %v9915_v8 = vsub.f32 %v338_v25, %v9886_v23 }
 0x20e   :  { %7289 = vmatpush1.bf16.msra.mxu1 %v13442_v24  ;;  %13444 = vst [vmem:[#allocation88_spill] sm:$0xff] %v9896_v15  ;;  %v306_v36 = vld [vmem:[#allocation8 + $0x7a8] sm:$0xff]  ;;  %13447 = vst [vmem:[#allocation92_spill] sm:$0xff] %v9901_v1  ;;  %v304_v9 = vld [vmem:[#allocation8 + $0x798] sm:$0xff]  ;;  %v9918_v61 = vpack.c.bf16 %v1737_v19, %v1733_v60  ;;  %v9920_v63 = vsub.f32 %v297_v47, %v1737_v19  ;;  %v1739_v3 = vand.u32 4294901760, %v302_v56 }
 0x20f   :  { %7291 = vmatprep.subr.bf16.mxu1 %v13445_v42  ;;  %13448 = vst [vmem:[#allocation94_spill] sm:$0xff] %v9903_v44  ;;  %13449 = vst [vmem:[#allocation100_spill] sm:$0xff] %v9905_v28  ;;  %v308_v24 = vld [vmem:[#allocation8 + $0x7b8] sm:$0xff]  ;;  %v13450_v30 = vld [vmem:[#allocation166_spill] sm:$0xff]  ;;  %v1743_v44 = vand.u32 4294901760, %v306_v36  ;;  %v9923_v16 = vpack.c.bf16 %v4305_v51, %v4301_v14  ;;  %v9925_v37 = vsub.f32 %v295_v29, %v4301_v14  ;;  %v4307_v55 = vand.u32 4294901760, %v304_v9 }
 0x210   :  { %6525 = vmatpush1.bf16.msra.mxu0 %v13450_v30  ;;  %13451 = vst [vmem:[#allocation97_spill] sm:$0xff] %v9908_v33  ;;  %13452 = vst [vmem:[#allocation104_spill] sm:$0xff] %v9910_v21  ;;  %v301_v15 = vld [vmem:[#allocation8 + $0x780] sm:$0xff]  ;;  %v303_v30 = vld [vmem:[#allocation8 + $0x790] sm:$0xff]  ;;  %v9928_v60 = vsub.f32 %v299_v18, %v4305_v51  ;;  %v9930_v47 = vsub.f32 %v302_v56, %v1739_v3  ;;  %v9934_v29 = vand.u32 4294901760, %v9915_v8  ;;  %v9937_v14 = vsub.s32 2, %v13409_v32 }
 0x211   :  { %13453 = vst [vmem:[#allocation106_spill] sm:$0xff] %v9912_v34  ;;  %v305_v42 = vld [vmem:[#allocation8 + $0x7a0] sm:$0xff]  ;;  %13454 = vst [vmem:[#allocation112_spill] sm:$0xff] %v9915_v8  ;;  %v307_v0 = vld [vmem:[#allocation8 + $0x7b0] sm:$0xff]  ;;  %v4311_v34 = vand.u32 4294901760, %v308_v24  ;;  %v1741_v19 = vand.u32 4294901760, %v301_v15  ;;  %v9942_v18 = vsub.f32 %v306_v36, %v1743_v44 }
 0x212   :  { %v13455_v49 = vld [vmem:[#allocation172_spill] sm:$0xff]  ;;  %13456 = vst [vmem:[#allocation109_spill] sm:$0xff] %v9918_v61  ;;  %13457 = vst [vmem:[#allocation116_spill] sm:$0xff] %v9920_v63  ;;  %v13458_v39 = vld [vmem:[#allocation169_spill] sm:$0xff]  ;;  %v4309_v1 = vand.u32 4294901760, %v303_v30 }
 0x213   :  { %6527 = vmatprep.subr.bf16.mxu0 %v13455_v49  ;;  %7293 = vmatpush1.bf16.msra.mxu1 %v13458_v39  ;;  %13459 = vst [vmem:[#allocation118_spill] sm:$0xff] %v9923_v16  ;;  %13460 = vst [vmem:[#allocation124_spill] sm:$0xff] %v9925_v37  ;;  %v310_v25 = vld [vmem:[#allocation8 + $0x7c8] sm:$0xff]  ;;  %v13461_v33 = vld [vmem:[#allocation176_spill] sm:$0xff]  ;;  %v1745_v49 = vand.u32 4294901760, %v305_v42  ;;  %v4313_v39 = vand.u32 4294901760, %v307_v0  ;;  %v9947_v16 = vsub.f32 %v304_v9, %v4307_v55 }
 0x214   :  { %v314_v21 = vld [vmem:[#allocation8 + $0x7e8] sm:$0xff]  ;;  %7295 = vmatprep.subr.bf16.mxu1 %v13461_v33  ;;  %13462 = vst [vmem:[#allocation121_spill] sm:$0xff] %v9928_v60  ;;  %13463 = vst [vmem:[#allocation128_spill] sm:$0xff] %v9930_v47  ;;  %v312_v23 = vld [vmem:[#allocation8 + $0x7d8] sm:$0xff]  ;;  %v9940_v33 = vpack.c.bf16 %v1743_v44, %v1739_v3  ;;  %v1747_v51 = vand.u32 4294901760, %v310_v25  ;;  %v9949_v61 = vsub.f32 %v308_v24, %v4311_v34 }
 0x215   :  { %v13464_v63 = vld [vmem:[#allocation178_spill] sm:$0xff]  ;;  %13465 = vst [vmem:[#allocation130_spill] sm:$0xff] %v9934_v29  ;;  %13466 = vst [vmem:[#allocation136_spill] sm:$0xff] %v9937_v14  ;;  %v13467_v37 = vld [vmem:[#allocation184_spill] sm:$0xff]  ;;  %v1751_v56 = vand.u32 4294901760, %v314_v21  ;;  %v9951_v28 = vsub.f32 %v301_v15, %v1741_v19  ;;  %v9954_v3 = vpack.c.bf16 %v1745_v49, %v1741_v19  ;;  %v9956_v36 = vsub.f32 %v305_v42, %v1745_v49 }
 0x216   :  { %6529 = vmatpush1.bf16.msra.mxu0 %v13464_v63  ;;  %13468 = vst [vmem:[#allocation133_spill] sm:$0xff] %v9940_v33  ;;  %13469 = vst [vmem:[#allocation140_spill] sm:$0xff] %v9942_v18  ;;  %v316_v47 = vld [vmem:[#allocation8 + $0x7f8] sm:$0xff]  ;;  %v13470_v60 = vld [vmem:[#allocation181_spill] sm:$0xff]  ;;  %v9945_v63 = vpack.c.bf16 %v4311_v34, %v4307_v55  ;;  %v9958_v44 = vsub.f32 %v303_v30, %v4309_v1  ;;  %v4315_v18 = vand.u32 4294901760, %v312_v23 }
 0x217   :  { %6531 = vmatprep.subr.bf16.mxu0 %v13467_v37  ;;  %7297 = vmatpush1.bf16.msra.mxu1 %v13470_v60  ;;  %13472 = vst [vmem:[#allocation209_spill] sm:$0xff] %v9947_v16  ;;  %13473 = vst [vmem:[#allocation148_spill] sm:$0xff] %v9949_v61  ;;  %v309_v32 = vld [vmem:[#allocation8 + $0x7c0] sm:$0xff]  ;;  %v311_v60 = vld [vmem:[#allocation8 + $0x7d0] sm:$0xff]  ;;  %v9961_v9 = vpack.c.bf16 %v4313_v39, %v4309_v1  ;;  %v4319_v24 = vand.u32 4294901760, %v316_v47  ;;  %v1758_v15 = vsub.f32 %v9915_v8, %v9934_v29 }
 0x218   :  { %13471 = vst [vmem:[#allocation142_spill] sm:$0xff] %v9945_v63  ;;  %13474 = vst [vmem:[#allocation145_spill] sm:$0xff] %v9951_v28  ;;  %v313_v54 = vld [vmem:[#allocation8 + $0x7e0] sm:$0xff]  ;;  %v315_v33 = vld [vmem:[#allocation8 + $0x7f0] sm:$0xff]  ;;  %v334_v34 = vrot.slane %v13424_v48, %v9937_v14  ;;  %v9968_v42 = vsub.f32 %v307_v0, %v4313_v39  ;;  %v9970_v30 = vpack.c.bf16 %v1751_v56, %v1747_v51  ;;  %v1749_v19 = vand.u32 4294901760, %v309_v32 }
 0x219   :  { %v13475_v37 = vld [vmem:[#allocation188_spill] sm:$0xff]  ;;  %13476 = vst [vmem:[#allocation152_spill] sm:$0xff] %v9954_v3  ;;  %13477 = vst [vmem:[#allocation154_spill] sm:$0xff] %v9956_v36  ;;  %v13479_v63 = vld [vmem:[#allocation190_spill] sm:$0xff]  ;;  %v1753_v49 = vand.u32 4294901760, %v313_v54  ;;  %v4317_v1 = vand.u32 4294901760, %v311_v60  ;;  %v9977_v8 = vsub.f32 %v314_v21, %v1751_v56  ;;  %v9983_v14 = vpack.c.bf16 %v4319_v24, %v4315_v18 }
 0x21a   :  { %7299 = vmatprep.subr.bf16.mxu1 %v13475_v37  ;;  %13478 = vst [vmem:[#allocation160_spill] sm:$0xff] %v9958_v44  ;;  %6533 = vmatpush1.bf16.msra.mxu0 %v13479_v63  ;;  %13480 = vst [vmem:[#allocation157_spill] sm:$0xff] %v9961_v9  ;;  %v13481_v55 = vld [vmem:[#allocation197_spill] sm:$0xff]  ;;  %v9973_v63 = vsub.f32 %v310_v25, %v1747_v51  ;;  %v4321_v44 = vand.u32 4294901760, %v315_v33  ;;  %v12318_v36 = vand.u32 4294901760, %v9516_v40  ;;  %v1759_v25 = vand.u32 4294901760, %v1758_v15 }
 0x21b   :  { %6535 = vmatprep.subr.bf16.mxu0 %v13481_v55  ;;  %13482 = vst [vmem:[#allocation164_spill] sm:$0xff] %v9968_v42  ;;  %13483 = vst [vmem:[#allocation166_spill] sm:$0xff] %v9970_v30  ;;  %v13484_v37 = vld [vmem:[#allocation193_spill] sm:$0xff]  ;;  %v13488_v55 = vld [vmem:[#allocation203_spill] sm:$0xff]  ;;  %v9985_v51 = vand.u32 4294901760, %v334_v34  ;;  %v9991_v21 = vsub.f32 %v316_v47, %v4319_v24  ;;  %v9993_v56 = vpack.c.bf16 %v1753_v49, %v1749_v19  ;;  %v12319_v24 = vand.u32 4294901760, %v9530_v57 }
 0x21c   :  { %7301 = vmatpush1.bf16.msra.mxu1 %v13484_v37  ;;  %13485 = vst [vmem:[#allocation172_spill] sm:$0xff] %v9973_v63  ;;  %v13486_v29 = vld [vmem:[#allocation201_spill] sm:$0xff]  ;;  %13487 = vst [vmem:[#allocation169_spill] sm:$0xff] %v9977_v8  ;;  %v9995_v0 = vsub.f32 %v309_v32, %v1749_v19  ;;  %v13495_v39 = vld [vmem:[#allocation206_spill] sm:$0xff]  ;;  %v10000_v48 = vpack.c.bf16 %v4321_v44, %v4317_v1  ;;  %v10002_v15 = vsub.f32 %v311_v60, %v4317_v1 }
 0x21d   :  { %7303 = vmatprep.subr.bf16.mxu1 %v13486_v29  ;;  %13489 = vst [vmem:[#allocation176_spill] sm:$0xff] %v9983_v14  ;;  %13490 = vst [vmem:[#allocation178_spill] sm:$0xff] %v9985_v51  ;;  %v9989_v29 = vsub.f32 %v312_v23, %v4315_v18  ;;  %v10007_v37 = vsub.f32 %v9516_v40, %v12318_v36  ;;  %v13499_v32 = vand.u32 4294901760, %v9518_v27  ;;  %v13501_v18 = vand.u32 4294901760, %v9524_v12  ;;  %v13631_v8 = vld [vmem:[#allocation16_spill] sm:$0xff] }
 0x21e   :  { %6537 = vmatpush1.bf16.msra.mxu0 %v13488_v55  ;;  %13492 = vst [vmem:[#allocation181_spill] sm:$0xff] %v9991_v21  ;;  %13493 = vst [vmem:[#allocation188_spill] sm:$0xff] %v9993_v56  ;;  %v9998_v55 = vsub.f32 %v313_v54, %v1753_v49  ;;  %v13500_v54 = vand.u32 4294901760, %v9522_v5  ;;  %v10029_v19 = vsub.f32 %v334_v34, %v9985_v51  ;;  %v13503_v49 = vand.u32 4294901760, %v9528_v11  ;;  %v13632_v63 = vld [vmem:[#allocation72_spill] sm:$0xff] }
 0x21f   :  { %6539 = vmatprep.subr.bf16.mxu0 %v9514_v38  ;;  %13491 = vst [vmem:[#allocation184_spill] sm:$0xff] %v9989_v29  ;;  %13494 = vst [vmem:[#allocation190_spill] sm:$0xff] %v9995_v0  ;;  %v10014_v23 = vsub.f32 %v9518_v27, %v13499_v32  ;;  %v10024_v60 = vsub.f32 %v9524_v12, %v13501_v18  ;;  %v13509_v32 = vand.u32 4294901760, %v9543_v53  ;;  %v13516_v38 = vld [vmem:[#allocation105_spill] sm:$0xff]  ;;  %v13522_v51 = vand.u32 4294901760, %v9562_v62  ;;  %v13553_v12 = vld [vmem:[#allocation26_spill] sm:$0xff] }
 0x220   :  { %7305 = vmatpush1.bf16.msra.mxu1 %v13495_v39  ;;  %13496 = vst [vmem:[#allocation197_spill] sm:$0xff] %v9998_v55  ;;  %13497 = vst [vmem:[#allocation193_spill] sm:$0xff] %v10000_v48  ;;  %v10019_v47 = vsub.f32 %v9522_v5, %v13500_v54  ;;  %v10034_v1 = vsub.f32 %v9528_v11, %v13503_v49  ;;  %v10045_v49 = vsub.f32 %v315_v33, %v4321_v44  ;;  %v13552_v11 = vld [vmem:[#allocation30_spill] sm:$0xff]  ;;  %v13554_v5 = vld [vmem:[#allocation47_spill] sm:$0xff] }
 0x221   :  { %13498 = vst [vmem:[#allocation201_spill] sm:$0xff] %v10002_v15  ;;  %7307 = vmatprep.subr.bf16.mxu1 %v9520_v35  ;;  %1621 = vmatmul.mubr.f32.vlgmr.msra.gmra.mrb[0].mxu0 %v13281_v52  ;;  %13502 = vst [vmem:[#allocation203_spill] sm:$0xff] %v10029_v19  ;;  %v1776_v39 = vand.u32 4294901760, %v10007_v37  ;;  %v1788_v54 = vand.u32 4294901760, %v10014_v23  ;;  %v4356_v34 = vand.u32 4294901760, %v10024_v60  ;;  %v1793_v33 = vsub.f32 %v9530_v57, %v12319_v24  ;;  %v13551_v57 = vld [vmem:[#allocation24_spill] sm:$0xff] }
 0x222   :  { %6541 = vmatpush1.bf16.msra.mxu0 %v9526_v26  ;;  %1760 = vmatprep.mubr.f32.mxu0 %v1759_v25  ;;  %13504 = vst [vmem:[#allocation206_spill] sm:$0xff] %v10045_v49  ;;  %v4344_v18 = vand.u32 4294901760, %v10019_v47  ;;  %v10059_v44 = vand.u32 4294901760, %v10029_v19  ;;  %v13506_v37 = vand.u32 4294901760, %v9534_v6  ;;  %v13507_v23 = vand.u32 4294901760, %v9536_v13  ;;  %v13514_v26 = vld [vmem:[#allocation107_spill] sm:$0xff] }
 0x223   :  { %4189 = vmatmul.mubr.f32.vlgmr.msra.gmra.mrb[0].mxu1 %v13281_v52  ;;  %6543 = vmatprep.subr.bf16.mxu0 %v9541_v17  ;;  %v13508_v60 = vand.u32 4294901760, %v9538_v50  ;;  %v1811_v36 = vsub.f32 %v9543_v53, %v13509_v32  ;;  %v13521_v53 = vld [vmem:[#allocation115_spill] sm:$0xff]  ;;  %v13562_v27 = vld [vmem:[#allocation54_spill] sm:$0xff]  ;;  %v13574_v49 = vld [vmem:[#allocation32_spill] sm:$0xff] }
 0x224   :  { %7309 = vmatpush1.bf16.msra.mxu1 %v9532_v4  ;;  %4328 = vmatprep.mubr.f32.mxu1 %v1759_v25  ;;  %13505 = vst [vmem:[#allocation216_spill] sm:$0xff] %v10059_v44  ;;  %v1782_v25 = vand.u32 4294901760, %v10034_v1  ;;  %v4349_v52 = vsub.f32 %v9534_v6, %v13506_v37  ;;  %v4361_v47 = vsub.f32 %v9536_v13, %v13507_v23  ;;  %v13510_v1 = vand.u32 4294901760, %v9548_v22  ;;  %v13519_v13 = vld [vmem:[#allocation114_spill] sm:$0xff]  ;;  %v13576_v0 = vld [vmem:[#allocation69_spill] sm:$0xff]  ;;  %v13578_v29 = vld [vmem:[#allocation83_spill] sm:$0xff] }
 0x225   :  { %7311 = vmatprep.subr.bf16.mxu1 %v9546_v20  ;;  %v1799_v24 = vsub.f32 %v9538_v50, %v13508_v60  ;;  %v13511_v37 = vand.u32 4294901760, %v9551_v46  ;;  %v13512_v23 = vand.u32 4294901760, %v9553_v41  ;;  %v13513_v60 = vand.u32 4294901760, %v9558_v10  ;;  %v13549_v50 = vld [vmem:[#allocation39_spill] sm:$0xff] }
 0x226   :  { %6545 = vmatpush1.bf16.msra.mxu0 %v9556_v59  ;;  %v4367_v59 = vsub.f32 %v9548_v22, %v13510_v1  ;;  %v13515_v1 = vld [vmem:[#allocation103_spill] sm:$0xff]  ;;  %v13518_v22 = vld [vmem:[#allocation113_spill] sm:$0xff]  ;;  %v4362_v32 = vand.u32 4294901760, %v4361_v47 }
 0x227   :  { %6547 = vmatprep.subr.bf16.mxu0 %v9567_v7  ;;  %v4379_v20 = vsub.f32 %v9551_v46, %v13511_v37  ;;  %v1805_v7 = vsub.f32 %v9553_v41, %v13512_v23  ;;  %v1817_v4 = vsub.f32 %v9558_v10, %v13513_v60  ;;  %v13517_v46 = vld [vmem:[#allocation108_spill] sm:$0xff]  ;;  %v1764_v23 = vsub.f32 %v10029_v19, %v10059_v44  ;;  %v13520_v41 = vld [vmem:[#allocation146_spill] sm:$0xff]  ;;  %v13529_v47 = vld [vmem:[#allocation213_spill] sm:$0xff] }
 0x228   :  { %7313 = vmatpush1.bf16.msra.mxu1 %v9560_v45  ;;  %v1794_v60 = vand.u32 4294901760, %v1793_v33  ;;  %v4350_v10 = vand.u32 4294901760, %v4349_v52  ;;  %v1800_v17 = vand.u32 4294901760, %v1799_v24  ;;  %v4368_v6 = vand.u32 4294901760, %v4367_v59  ;;  %v13524_v33 = vld [vmem:[#allocation156_spill] sm:$0xff] }
 0x229   :  { %7315 = vmatprep.subr.bf16.mxu1 %v13514_v26  ;;  %v1812_v26 = vand.u32 4294901760, %v1811_v36  ;;  %v4380_v35 = vand.u32 4294901760, %v4379_v20  ;;  %v1806_v37 = vand.u32 4294901760, %v1805_v7  ;;  %v1818_v45 = vand.u32 4294901760, %v1817_v4  ;;  %v13534_v19 = vld [vmem:[#allocation28_spill] sm:$0xff] }
 0x22a   :  { %6549 = vmatpush1.bf16.msra.mxu0 %v13519_v13  ;;  %v10103_v13 = vsub.f32 %v9562_v62, %v13522_v51  ;;  %v13523_v44 = vand.u32 4294901760, %v9565_v58  ;;  %v13525_v36 = vand.u32 4294901760, %v13515_v1  ;;  %v13526_v59 = vand.u32 4294901760, %v13516_v38 }
 0x22b   :  { %6551 = vmatprep.subr.bf16.mxu0 %v13520_v41  ;;  %v13527_v7 = vand.u32 4294901760, %v13517_v46  ;;  %v13528_v24 = vand.u32 4294901760, %v13518_v22  ;;  %v10139_v62 = vand.u32 4294901760, %v1764_v23  ;;  %v13539_v23 = vld [vmem:[#allocation41_spill] sm:$0xff] }
 0x22c   :  { %7317 = vmatpush1.bf16.msra.mxu1 %v13521_v53  ;;  %v10108_v52 = vsub.f32 %v9565_v58, %v13523_v44  ;;  %v10114_v20 = vsub.f32 %v13515_v1, %v13525_v36  ;;  %v10119_v4 = vsub.f32 %v13516_v38, %v13526_v59  ;;  %v10134_v36 = vpack.c.bf16 %v4356_v34, %v4344_v18  ;;  %v13530_v53 = vld [vmem:[#allocation110_spill] sm:$0xff]  ;;  %v13531_v59 = vld [vmem:[#allocation111_spill] sm:$0xff]  ;;  %v13532_v58 = vld [vmem:[#allocation21_spill] sm:$0xff] }
 0x22d   :  { %7319 = vmatprep.subr.bf16.mxu1 %v13524_v33  ;;  %v10124_v51 = vsub.f32 %v13517_v46, %v13527_v7  ;;  %v10129_v44 = vsub.f32 %v13518_v22, %v13528_v24  ;;  %v10132_v33 = vpack.c.bf16 %v1788_v54, %v1776_v39  ;;  %v12364_v41 = vand.u32 4294901760, %v13530_v53  ;;  %v13533_v22 = vld [vmem:[#allocation17_spill] sm:$0xff]  ;;  %v13541_v34 = vld [vmem:[#allocation151_spill] sm:$0xff]  ;;  %v13547_v38 = vld [vmem:[#allocation18_spill] sm:$0xff] }
 0x22e   :  { %6553 = vmatpush1.bf16.msra.mxu0 %v13529_v47  ;;  %v10141_v7 = vpack.c.bf16 %v1794_v60, %v1782_v25  ;;  %v10143_v46 = vpack.c.bf16 %v4362_v32, %v4350_v10  ;;  %v10145_v24 = vpack.c.bf16 %v1812_v26, %v1800_v17  ;;  %v10148_v39 = vpack.c.bf16 %v4380_v35, %v4368_v6  ;;  %v13535_v17 = vld [vmem:[#allocation27_spill] sm:$0xff]  ;;  %v13537_v32 = vld [vmem:[#allocation117_spill] sm:$0xff] }
 0x22f   :  { %6555 = vmatprep.subr.bf16.mxu0 %v13532_v58  ;;  %v10150_v54 = vpack.c.bf16 %v1818_v45, %v1806_v37  ;;  %v10163_v35 = vsub.f32 %v13530_v53, %v12364_v41  ;;  %v13536_v6 = vand.u32 4294901760, %v13531_v59  ;;  %v13538_v60 = vld [vmem:[#allocation149_spill] sm:$0xff]  ;;  %v13540_v10 = vld [vmem:[#allocation147_spill] sm:$0xff]  ;;  %v13555_v37 = vand.u32 4294901760, %v13537_v32 }
 0x230   :  { %7321 = vmatpush1.bf16.msra.mxu1 %v13533_v22  ;;  %v13543_v22 = vld [vmem:[#allocation158_spill] sm:$0xff]  ;;  %v13544_v58 = vld [vmem:[#allocation33_spill] sm:$0xff]  ;;  %v13545_v47 = vld [vmem:[#allocation167_spill] sm:$0xff]  ;;  %v13559_v18 = vand.u32 4294901760, %v13541_v34 }
 0x231   :  { %7323 = vmatprep.subr.bf16.mxu1 %v13534_v19  ;;  %v10168_v45 = vsub.f32 %v13531_v59, %v13536_v6  ;;  %v13546_v6 = vld [vmem:[#allocation214_spill] sm:$0xff]  ;;  %v13548_v1 = vld [vmem:[#allocation19_spill] sm:$0xff]  ;;  %v1830_v53 = vand.u32 4294901760, %v10163_v35  ;;  %v4397_v25 = vsub.f32 %v13537_v32, %v13555_v37  ;;  %v13558_v19 = vand.u32 4294901760, %v13540_v10 }
 0x232   :  { %6557 = vmatpush1.bf16.msra.mxu0 %v13535_v17  ;;  %v13542_v17 = vld [vmem:[#allocation155_spill] sm:$0xff]  ;;  %v1859_v35 = vsub.f32 %v13541_v34, %v13559_v18  ;;  %v13561_v37 = vand.u32 4294901760, %v13543_v22  ;;  %v13565_v18 = vand.u32 4294901760, %v13547_v38 }
 0x233   :  { %6559 = vmatprep.subr.bf16.mxu0 %v13539_v23  ;;  %v13550_v23 = vld [vmem:[#allocation23_spill] sm:$0xff]  ;;  %v1842_v59 = vand.u32 4294901760, %v10168_v45  ;;  %v1847_v41 = vsub.f32 %v13540_v10, %v13558_v19  ;;  %v13560_v45 = vand.u32 4294901760, %v13542_v17  ;;  %v13564_v19 = vand.u32 4294901760, %v13546_v6  ;;  %v13567_v10 = vld [vmem:[#allocation60_spill] sm:$0xff] }
 0x234   :  { %7325 = vmatpush1.bf16.msra.mxu1 %v13544_v58  ;;  %v13557_v58 = vld [vmem:[#allocation56_spill] sm:$0xff]  ;;  %v4427_v32 = vsub.f32 %v13543_v22, %v13561_v37  ;;  %v4421_v34 = vsub.f32 %v13547_v38, %v13565_v18  ;;  %v13568_v37 = vand.u32 4294901760, %v13550_v23  ;;  %v13571_v18 = vand.u32 4294901760, %v13553_v12  ;;  %v13572_v22 = vld [vmem:[#allocation62_spill] sm:$0xff] }
 0x235   :  { %7327 = vmatprep.subr.bf16.mxu1 %v13549_v50  ;;  %v13556_v50 = vand.u32 4294901760, %v13538_v60  ;;  %v1848_v15 = vand.u32 4294901760, %v1847_v41  ;;  %v13580_v41 = vand.u32 4294901760, %v10108_v52  ;;  %v13586_v52 = vand.u32 4294901760, %v10119_v4 }
 0x236   :  { %6561 = vmatpush1.bf16.msra.mxu0 %v13554_v5  ;;  %v4415_v5 = vsub.f32 %v13542_v17, %v13560_v45  ;;  %v13566_v45 = vand.u32 4294901760, %v13548_v1  ;;  %v4451_v38 = vsub.f32 %v13553_v12, %v13571_v18  ;;  %v4428_v55 = vand.u32 4294901760, %v4427_v32  ;;  %v13577_v12 = vld [vmem:[#allocation75_spill] sm:$0xff] }
 0x237   :  { %v4409_v26 = vsub.f32 %v13538_v60, %v13556_v50  ;;  %6563 = vmatprep.subr.bf16.mxu0 %v13557_v58  ;;  %v13563_v50 = vand.u32 4294901760, %v13545_v47  ;;  %v1865_v60 = vsub.f32 %v13546_v6, %v13564_v19  ;;  %v13570_v19 = vand.u32 4294901760, %v13552_v11 }
 0x238   :  { %7329 = vmatpush1.bf16.msra.mxu1 %v13562_v27  ;;  %v4433_v17 = vsub.f32 %v13548_v1, %v13566_v45  ;;  %v1871_v27 = vsub.f32 %v13550_v23, %v13568_v37  ;;  %v4398_v45 = vand.u32 4294901760, %v4397_v25  ;;  %v13573_v1 = vld [vmem:[#allocation215_spill] sm:$0xff]  ;;  %v13575_v23 = vld [vmem:[#allocation77_spill] sm:$0xff]  ;;  %v4422_v21 = vand.u32 4294901760, %v4421_v34 }
 0x239   :  { %v1853_v58 = vsub.f32 %v13545_v47, %v13563_v50  ;;  %7331 = vmatprep.subr.bf16.mxu1 %v13567_v10  ;;  %v13569_v50 = vand.u32 4294901760, %v13551_v57  ;;  %v4439_v6 = vsub.f32 %v13552_v11, %v13570_v19  ;;  %v4410_v10 = vand.u32 4294901760, %v4409_v26 }
 0x23a   :  { %6565 = vmatpush1.bf16.msra.mxu0 %v13572_v22  ;;  %v1866_v11 = vand.u32 4294901760, %v1865_v60  ;;  %v4434_v18 = vand.u32 4294901760, %v4433_v17  ;;  %v1872_v25 = vand.u32 4294901760, %v1871_v27  ;;  %v4452_v40 = vand.u32 4294901760, %v4451_v38  ;;  %v13584_v17 = vld [vmem:[#allocation91_spill] sm:$0xff] }
 0x23b   :  { %v1883_v47 = vsub.f32 %v13551_v57, %v13569_v50  ;;  %6567 = vmatprep.subr.bf16.mxu0 %v13575_v23  ;;  %v1860_v50 = vand.u32 4294901760, %v1859_v35  ;;  %v4416_v57 = vand.u32 4294901760, %v4415_v5  ;;  %v1854_v19 = vand.u32 4294901760, %v1853_v58  ;;  %v13608_v23 = vld [vmem:[#allocation65_spill] sm:$0xff] }
 0x23c   :  { %7333 = vmatpush1.bf16.msra.mxu1 %v13576_v0  ;;  %v4440_v22 = vand.u32 4294901760, %v4439_v6  ;;  %v13579_v37 = vand.u32 4294901760, %v10103_v13  ;;  %v13581_v32 = vand.u32 4294901760, %v13573_v1  ;;  %v13582_v34 = vand.u32 4294901760, %v13574_v49 }
 0x23d   :  { %7335 = vmatprep.subr.bf16.mxu1 %v13577_v12  ;;  %v1884_v26 = vand.u32 4294901760, %v1883_v47  ;;  %v13583_v47 = vld [vmem:[#allocation34_spill] sm:$0xff]  ;;  %v13585_v13 = vand.u32 4294901760, %v10114_v20  ;;  %v13587_v6 = vand.u32 4294901760, %v10124_v51  ;;  %v13588_v35 = vand.u32 4294901760, %v10129_v44 }
 0x23e   :  { %6569 = vmatpush1.bf16.msra.mxu0 %v13578_v29  ;;  %v10246_v5 = vpack.c.bf16 %v13580_v41, %v13579_v37  ;;  %v10251_v58 = vsub.f32 %v13573_v1, %v13581_v32  ;;  %v10256_v27 = vsub.f32 %v13574_v49, %v13582_v34  ;;  %v13589_v41 = vld [vmem:[#allocation36_spill] sm:$0xff]  ;;  %v13590_v34 = vld [vmem:[#allocation42_spill] sm:$0xff]  ;;  %v10275_v38 = vpack.c.bf16 %v1842_v59, %v1830_v53  ;;  %v13614_v49 = vld [vmem:[#allocation191_spill] sm:$0xff] }
 0x23f   :  { %6571 = vmatprep.subr.bf16.mxu0 %v13584_v17  ;;  %v10264_v60 = vpack.c.bf16 %v13586_v52, %v13585_v13  ;;  %v10270_v37 = vpack.c.bf16 %v13588_v35, %v13587_v6  ;;  %v12403_v32 = vand.u32 4294901760, %v13589_v41  ;;  %v12404_v29 = vand.u32 4294901760, %v13590_v34  ;;  %v13591_v12 = vld [vmem:[#allocation90_spill] sm:$0xff]  ;;  %v13592_v13 = vld [vmem:[#allocation96_spill] sm:$0xff]  ;;  %v13594_v35 = vld [vmem:[#allocation99_spill] sm:$0xff] }
 0x240   :  { %7337 = vmatpush1.bf16.msra.mxu1 %v13591_v12  ;;  %v10277_v17 = vpack.c.bf16 %v4410_v10, %v4398_v45  ;;  %v10279_v20 = vpack.c.bf16 %v1860_v50, %v1848_v15  ;;  %v10281_v4 = vpack.c.bf16 %v4428_v55, %v4416_v57  ;;  %v10284_v51 = vpack.c.bf16 %v1866_v11, %v1854_v19  ;;  %v13596_v55 = vld [vmem:[#allocation37_spill] sm:$0xff]  ;;  %v13603_v53 = vld [vmem:[#allocation50_spill] sm:$0xff] }
 0x241   :  { %7339 = vmatprep.subr.bf16.mxu1 %v13592_v13  ;;  %v10286_v44 = vpack.c.bf16 %v4434_v18, %v4422_v21  ;;  %v10288_v52 = vpack.c.bf16 %v1884_v26, %v1872_v25  ;;  %v10290_v6 = vpack.c.bf16 %v4452_v40, %v4440_v22  ;;  %v13595_v15 = vand.u32 4294901760, %v13583_v47  ;;  %v13597_v10 = vld [vmem:[#allocation173_spill] sm:$0xff]  ;;  %v13598_v21 = vld [vmem:[#allocation44_spill] sm:$0xff]  ;;  %v13617_v1 = vld [vmem:[#allocation186_spill] sm:$0xff] }
 0x242   :  { %6573 = vmatpush1.bf16.msra.mxu0 %v13594_v35  ;;  %v10305_v40 = vsub.f32 %v13589_v41, %v12403_v32  ;;  %v10310_v22 = vsub.f32 %v13590_v34, %v12404_v29  ;;  %v13599_v50 = vld [vmem:[#allocation45_spill] sm:$0xff]  ;;  %v13601_v25 = vld [vmem:[#allocation48_spill] sm:$0xff]  ;;  %v13607_v29 = vld [vmem:[#allocation58_spill] sm:$0xff]  ;;  %v13611_v59 = vand.u32 4294901760, %v13596_v55  ;;  %v13615_v19 = vand.u32 4294901760, %v13598_v21 }
 0x243   :  { %13593 = vst [vmem:[#allocation217_spill] sm:$0xff] %v10290_v6  ;;  %v10298_v57 = vsub.f32 %v13583_v47, %v13595_v15  ;;  %6575 = vmatprep.subr.bf16.mxu0 %v13597_v10  ;;  %v13600_v18 = vld [vmem:[#allocation141_spill] sm:$0xff]  ;;  %v13604_v10 = vld [vmem:[#allocation51_spill] sm:$0xff]  ;;  %v13609_v41 = vld [vmem:[#allocation66_spill] sm:$0xff] }
 0x244   :  { %7341 = vmatpush1.bf16.msra.mxu1 %v13600_v18  ;;  %v13602_v15 = vld [vmem:[#allocation53_spill] sm:$0xff]  ;;  %v13610_v47 = vld [vmem:[#allocation182_spill] sm:$0xff]  ;;  %v1907_v11 = vsub.f32 %v13596_v55, %v13611_v59  ;;  %v13612_v18 = vld [vmem:[#allocation63_spill] sm:$0xff]  ;;  %v4458_v0 = vand.u32 4294901760, %v10305_v40  ;;  %v1896_v45 = vand.u32 4294901760, %v10310_v22  ;;  %v4463_v12 = vsub.f32 %v13598_v21, %v13615_v19 }
 0x245   :  { %v13605_v35 = vld [vmem:[#allocation177_spill] sm:$0xff]  ;;  %v4446_v26 = vand.u32 4294901760, %v10298_v57  ;;  %v13613_v34 = vld [vmem:[#allocation67_spill] sm:$0xff]  ;;  %v13616_v57 = vand.u32 4294901760, %v13599_v50  ;;  %v13618_v59 = vand.u32 4294901760, %v13601_v25  ;;  %v13619_v32 = vand.u32 4294901760, %v13602_v15 }
 0x246   :  { %7343 = vmatprep.subr.bf16.mxu1 %v13605_v35  ;;  %v13606_v13 = vld [vmem:[#allocation57_spill] sm:$0xff]  ;;  %6577 = vmatpush1.bf16.msra.mxu0 %v13610_v47  ;;  %v13620_v22 = vand.u32 4294901760, %v13603_v53  ;;  %v13621_v19 = vand.u32 4294901760, %v13604_v10  ;;  %v13622_v55 = vld [vmem:[#allocation195_spill] sm:$0xff] }
 0x247   :  { %6579 = vmatprep.subr.bf16.mxu0 %v13614_v49  ;;  %v4475_v47 = vsub.f32 %v13599_v50, %v13616_v57  ;;  %v1901_v35 = vsub.f32 %v13601_v25, %v13618_v59  ;;  %v1913_v40 = vsub.f32 %v13602_v15, %v13619_v32  ;;  %v13623_v57 = vand.u32 4294901760, %v13606_v13  ;;  %v13627_v50 = vld [vmem:[#allocation200_spill] sm:$0xff]  ;;  %v13636_v6 = vld [vmem:[#allocation31_spill] sm:$0xff] }
 0x248   :  { %7345 = vmatpush1.bf16.msra.mxu1 %v13617_v1  ;;  %v4469_v49 = vsub.f32 %v13603_v53, %v13620_v22  ;;  %v4481_v21 = vsub.f32 %v13604_v10, %v13621_v19  ;;  %v13624_v59 = vand.u32 4294901760, %v13607_v29  ;;  %v13625_v32 = vand.u32 4294901760, %v13608_v23 }
 0x249   :  { %7347 = vmatprep.subr.bf16.mxu1 %v13622_v55  ;;  %v1919_v1 = vsub.f32 %v13606_v13, %v13623_v57  ;;  %v13626_v22 = vand.u32 4294901760, %v13609_v41  ;;  %v1908_v19 = vand.u32 4294901760, %v1907_v11  ;;  %v13628_v55 = vand.u32 4294901760, %v13612_v18 }
 0x24a   :  { %v1931_v25 = vsub.f32 %v13607_v29, %v13624_v59  ;;  %v4487_v15 = vsub.f32 %v13608_v23, %v13625_v32  ;;  %6581 = vmatpush1.bf16.msra.mxu0 %v13627_v50  ;;  %v13629_v57 = vand.u32 4294901760, %v13613_v34  ;;  %v13630_v59 = vld [vmem:[#allocation71_spill] sm:$0xff]  ;;  %v4464_v32 = vand.u32 4294901760, %v4463_v12  ;;  %v13634_v50 = vld [vmem:[#allocation205_spill] sm:$0xff] }
 0x24b   :  { %v4499_v53 = vsub.f32 %v13609_v41, %v13626_v22  ;;  %v1925_v10 = vsub.f32 %v13612_v18, %v13628_v55  ;;  %6583 = vmatprep.subr.bf16.mxu0 %v13631_v8  ;;  %v4476_v23 = vand.u32 4294901760, %v4475_v47  ;;  %v13633_v22 = vld [vmem:[#allocation78_spill] sm:$0xff]  ;;  %v1902_v11 = vand.u32 4294901760, %v1901_v35  ;;  %v13639_v35 = vld [vmem:[#allocation52_spill] sm:$0xff] }
 0x24c   :  { %v1937_v13 = vsub.f32 %v13613_v34, %v13629_v57  ;;  %7349 = vmatpush1.bf16.msra.mxu1 %v13634_v50  ;;  %v1914_v28 = vand.u32 4294901760, %v1913_v40  ;;  %v4470_v61 = vand.u32 4294901760, %v4469_v49  ;;  %v4482_v55 = vand.u32 4294901760, %v4481_v21  ;;  %v13635_v18 = vld [vmem:[#allocation210_spill] sm:$0xff] }
 0x24d   :  { %7351 = vmatprep.subr.bf16.mxu1 %v13635_v18  ;;  %v1920_v16 = vand.u32 4294901760, %v1919_v1  ;;  %v1932_v57 = vand.u32 4294901760, %v1931_v25  ;;  %v4488_v34 = vand.u32 4294901760, %v4487_v15  ;;  %v4500_v29 = vand.u32 4294901760, %v4499_v53  ;;  %v13638_v8 = vld [vmem:[#allocation74_spill] sm:$0xff]  ;;  %v13642_v25 = vld [vmem:[#allocation79_spill] sm:$0xff] }
 0x24e   :  { %6585 = vmatpush1.bf16.msra.mxu0 %v13636_v6  ;;  %v1926_v12 = vand.u32 4294901760, %v1925_v10  ;;  %v1938_v47 = vand.u32 4294901760, %v1937_v13  ;;  %v13637_v42 = vand.u32 4294901760, %v13630_v59  ;;  %v13640_v49 = vand.u32 4294901760, %v13632_v63  ;;  %v13643_v10 = vld [vmem:[#allocation81_spill] sm:$0xff]  ;;  %v13644_v40 = vld [vmem:[#allocation38_spill] sm:$0xff] }
 0x24f   :  { %6587 = vmatprep.subr.bf16.mxu0 %v13639_v35  ;;  %v13641_v1 = vand.u32 4294901760, %v13633_v22  ;;  %v13646_v50 = vand.u32 4294901760, %v10256_v27  ;;  %v10400_v35 = vpack.c.bf16 %v4458_v0, %v4446_v26  ;;  %v10402_v18 = vpack.c.bf16 %v1908_v19, %v1896_v45  ;;  %v13648_v45 = vld [vmem:[#allocation84_spill] sm:$0xff] }
 0x250   :  { %v4493_v41 = vsub.f32 %v13630_v59, %v13637_v42  ;;  %v4505_v21 = vsub.f32 %v13632_v63, %v13640_v49  ;;  %7353 = vmatpush1.bf16.msra.mxu1 %v13644_v40  ;;  %v13645_v42 = vand.u32 4294901760, %v10251_v58  ;;  %v10404_v49 = vpack.c.bf16 %v4476_v23, %v4464_v32  ;;  %v13651_v19 = vld [vmem:[#allocation80_spill] sm:$0xff] }
 0x251   :  { %v1943_v53 = vsub.f32 %v13633_v22, %v13641_v1  ;;  %7355 = vmatprep.subr.bf16.mxu1 %v9874_v2  ;;  %v10407_v1 = vpack.c.bf16 %v1914_v28, %v1902_v11  ;;  %v10409_v15 = vpack.c.bf16 %v4482_v55, %v4470_v61  ;;  %v10411_v13 = vpack.c.bf16 %v1932_v57, %v1920_v16  ;;  %v13653_v11 = vld [vmem:[#allocation86_spill] sm:$0xff]  ;;  %v13654_v57 = vld [vmem:[#allocation87_spill] sm:$0xff] }
 0x252   :  { %v10398_v6 = vpack.c.bf16 %v13646_v50, %v13645_v42  ;;  %v10413_v40 = vpack.c.bf16 %v4500_v29, %v4488_v34  ;;  %6589 = vmatpush1.bf16.msra.mxu0 %v9882_v43  ;;  %v10416_v58 = vpack.c.bf16 %v1938_v47, %v1926_v12  ;;  %v4494_v0 = vand.u32 4294901760, %v4493_v41  ;;  %v13652_v41 = vld [vmem:[#allocation89_spill] sm:$0xff]  ;;  %v13660_v2 = vld [vmem:[#allocation134_spill] sm:$0xff]  ;;  %v13663_v12 = vld [vmem:[#allocation135_spill] sm:$0xff] }
 0x253   :  { %v13647_v27 = vand.u32 4294901760, %v13638_v8  ;;  %6591 = vmatprep.subr.bf16.mxu0 %v9899_v31  ;;  %v4506_v28 = vand.u32 4294901760, %v4505_v21  ;;  %v1944_v61 = vand.u32 4294901760, %v1943_v53  ;;  %v13649_v16 = vand.u32 4294901760, %v13642_v25  ;;  %v13655_v47 = vld [vmem:[#allocation93_spill] sm:$0xff]  ;;  %v13656_v21 = vld [vmem:[#allocation100_spill] sm:$0xff] }
 0x254   :  { %v13650_v34 = vand.u32 4294901760, %v13643_v10  ;;  %7357 = vmatpush1.bf16.msra.mxu1 %v13651_v19  ;;  %v13657_v53 = vld [vmem:[#allocation95_spill] sm:$0xff]  ;;  %v13658_v50 = vld [vmem:[#allocation101_spill] sm:$0xff]  ;;  %v13659_v31 = vld [vmem:[#allocation102_spill] sm:$0xff]  ;;  %v13662_v32 = vand.u32 4294901760, %v13648_v45  ;;  %v13671_v63 = vand.u32 4294901760, %v13654_v57 }
 0x255   :  { %v1955_v23 = vsub.f32 %v13638_v8, %v13647_v27  ;;  %v4511_v29 = vsub.f32 %v13642_v25, %v13649_v16  ;;  %7359 = vmatprep.subr.bf16.mxu1 %v13656_v21  ;;  %v13664_v42 = vld [vmem:[#allocation150_spill] sm:$0xff]  ;;  %v13665_v21 = vld [vmem:[#allocation133_spill] sm:$0xff]  ;;  %v10446_v27 = vpack.c.bf16 %v4506_v28, %v4494_v0  ;;  %v13672_v0 = vand.u32 4294901760, %v13655_v47 }
 0x256   :  { %v4523_v26 = vsub.f32 %v13643_v10, %v13650_v34  ;;  %v13661_v10 = vld [vmem:[#allocation109_spill] sm:$0xff]  ;;  %v1949_v55 = vsub.f32 %v13648_v45, %v13662_v32  ;;  %v13668_v34 = vld [vmem:[#allocation118_spill] sm:$0xff]  ;;  %v13670_v32 = vand.u32 4294901760, %v13653_v11 }
 0x257   :  { %6593 = vmatpush1.bf16.msra.mxu0 %v13661_v10  ;;  %v1956_v19 = vand.u32 4294901760, %v1955_v23  ;;  %13666 = vst [vmem:[#allocation218_spill] sm:$0xff] %v10446_v27  ;;  %v4512_v16 = vand.u32 4294901760, %v4511_v29  ;;  %v13667_v43 = vld [vmem:[#allocation153_spill] sm:$0xff]  ;;  %v13669_v23 = vand.u32 4294901760, %v13652_v41  ;;  %v1967_v28 = vsub.f32 %v13655_v47, %v13672_v0  ;;  %v13673_v29 = vld [vmem:[#allocation142_spill] sm:$0xff] }
 0x258   :  { %6595 = vmatprep.subr.bf16.mxu0 %v13665_v21  ;;  %v4524_v59 = vand.u32 4294901760, %v4523_v26  ;;  %7361 = vmatpush1.bf16.msra.mxu1 %v13668_v34  ;;  %v4517_v25 = vsub.f32 %v13653_v11, %v13670_v32  ;;  %v4529_v21 = vsub.f32 %v13654_v57, %v13671_v63  ;;  %v13674_v26 = vand.u32 4294901760, %v13657_v53  ;;  %v13723_v27 = vld [vmem:[#allocation35_spill] sm:$0xff] }
 0x259   :  { %v1961_v10 = vsub.f32 %v13652_v41, %v13669_v23  ;;  %7363 = vmatprep.subr.bf16.mxu1 %v13673_v29  ;;  %v13675_v23 = vand.u32 4294901760, %v13658_v50  ;;  %v13676_v32 = vand.u32 4294901760, %v13659_v31  ;;  %v13677_v63 = vand.u32 4294901760, %v13660_v2 }
 0x25a   :  { %v1979_v8 = vsub.f32 %v13657_v53, %v13674_v26  ;;  %v10476_v0 = vpack.c.bf16 %v1956_v19, %v1944_v61  ;;  %v13679_v29 = vand.u32 4294901760, %v13663_v12  ;;  %v13680_v53 = vand.u32 4294901760, %v13664_v42  ;;  %v13684_v19 = vld [vmem:[#allocation175_spill] sm:$0xff] }
 0x25b   :  { %v4535_v34 = vsub.f32 %v13658_v50, %v13675_v23  ;;  %v4547_v11 = vsub.f32 %v13659_v31, %v13676_v32  ;;  %v1973_v57 = vsub.f32 %v13660_v2, %v13677_v63  ;;  %6597 = vmatpush1.bf16.msra.mxu0 %v9954_v3  ;;  %v13681_v50 = vld [vmem:[#allocation174_spill] sm:$0xff]  ;;  %v10486_v32 = vpack.c.bf16 %v4524_v59, %v4512_v16  ;;  %v13751_v2 = vld [vmem:[#allocation164_spill] sm:$0xff] }
 0x25c   :  { %13678 = vst [vmem:[#allocation219_spill] sm:$0xff] %v10476_v0  ;;  %v1985_v26 = vsub.f32 %v13663_v12, %v13679_v29  ;;  %v4541_v23 = vsub.f32 %v13664_v42, %v13680_v53  ;;  %6599 = vmatprep.subr.bf16.mxu0 %v9970_v30  ;;  %v1950_v31 = vand.u32 4294901760, %v1949_v55  ;;  %v13683_v63 = vand.u32 4294901760, %v13667_v43  ;;  %7365 = vmatpush1.bf16.msra.mxu1 %v9961_v9  ;;  %v13686_v9 = vld [vmem:[#allocation179_spill] sm:$0xff]  ;;  %v13726_v0 = vld [vmem:[#allocation46_spill] sm:$0xff]  ;;  %v13752_v12 = vld [vmem:[#allocation172_spill] sm:$0xff] }
 0x25d   :  { %13682 = vst [vmem:[#allocation220_spill] sm:$0xff] %v10486_v32  ;;  %v1962_v29 = vand.u32 4294901760, %v1961_v10  ;;  %v4518_v41 = vand.u32 4294901760, %v4517_v25  ;;  %v4530_v45 = vand.u32 4294901760, %v4529_v21  ;;  %v1968_v22 = vand.u32 4294901760, %v1967_v28  ;;  %7367 = vmatprep.subr.bf16.mxu1 %v9983_v14  ;;  %v13693_v14 = vld [vmem:[#allocation189_spill] sm:$0xff] }
 0x25e   :  { %v4553_v61 = vsub.f32 %v13667_v43, %v13683_v63  ;;  %v1980_v53 = vand.u32 4294901760, %v1979_v8  ;;  %v4536_v47 = vand.u32 4294901760, %v4535_v34  ;;  %v4548_v30 = vand.u32 4294901760, %v4547_v11  ;;  %v13688_v11 = vld [vmem:[#allocation180_spill] sm:$0xff]  ;;  %v13689_v34 = vld [vmem:[#allocation183_spill] sm:$0xff]  ;;  %v13697_v32 = vld [vmem:[#allocation194_spill] sm:$0xff] }
 0x25f   :  { %v1974_v59 = vand.u32 4294901760, %v1973_v57  ;;  %6601 = vmatpush1.bf16.msra.mxu0 %v9993_v56  ;;  %v1986_v55 = vand.u32 4294901760, %v1985_v26  ;;  %v4542_v16 = vand.u32 4294901760, %v4541_v23  ;;  %v13685_v63 = vand.u32 4294901760, %v13681_v50  ;;  %v13691_v23 = vld [vmem:[#allocation185_spill] sm:$0xff]  ;;  %v13692_v56 = vld [vmem:[#allocation187_spill] sm:$0xff] }
 0x260   :  { %6603 = vmatprep.subr.bf16.mxu0 %v10132_v33  ;;  %v4554_v25 = vand.u32 4294901760, %v4553_v61  ;;  %v13687_v21 = vand.u32 4294901760, %v13684_v19  ;;  %7369 = vmatpush1.bf16.msra.mxu1 %v10000_v48  ;;  %v10510_v26 = vpack.c.bf16 %v1962_v29, %v1950_v31  ;;  %v10517_v61 = vpack.c.bf16 %v4530_v45, %v4518_v41  ;;  %v13696_v57 = vld [vmem:[#allocation192_spill] sm:$0xff]  ;;  %v13756_v43 = vld [vmem:[#allocation190_spill] sm:$0xff] }
 0x261   :  { %v10498_v3 = vsub.f32 %v13681_v50, %v13685_v63  ;;  %v12461_v63 = vand.u32 4294901760, %v13691_v23  ;;  %7371 = vmatprep.subr.bf16.mxu1 %v10134_v36  ;;  %v12463_v28 = vand.u32 4294901760, %v13696_v57  ;;  %v12464_v48 = vand.u32 4294901760, %v13697_v32  ;;  %v13701_v45 = vld [vmem:[#allocation76_spill] sm:$0xff] }
 0x262   :  { %v10505_v8 = vsub.f32 %v13684_v19, %v13687_v21  ;;  %13690 = vst [vmem:[#allocation221_spill] sm:$0xff] %v10510_v26  ;;  %1766 = vmatmul.mubr.f32.vlgmr.msra.gmra.mrb[0].mxu0 %v10139_v62  ;;  %13694 = vst [vmem:[#allocation222_spill] sm:$0xff] %v10517_v61  ;;  %v10519_v21 = vpack.c.bf16 %v1980_v53, %v1968_v22  ;;  %v10524_v31 = vpack.c.bf16 %v4548_v30, %v4536_v47  ;;  %v13710_v30 = vld [vmem:[#allocation204_spill] sm:$0xff]  ;;  %v13714_v61 = vld [vmem:[#allocation22_spill] sm:$0xff] }
 0x263   :  { %6605 = vmatpush1.bf16.msra.mxu0 %v10141_v7  ;;  %v10526_v29 = vpack.c.bf16 %v1986_v55, %v1974_v59  ;;  %v13700_v36 = vand.u32 4294901760, %v13686_v9  ;;  %2157 = vmatprep.mubr.f32.mxu0 %v13701_v45  ;;  %v10537_v22 = vpack.c.bf16 %v4554_v25, %v4542_v16  ;;  %v13703_v7 = vand.u32 4294901760, %v13688_v11  ;;  %v13707_v25 = vld [vmem:[#allocation198_spill] sm:$0xff] }
 0x264   :  { %13695 = vst [vmem:[#allocation223_spill] sm:$0xff] %v10519_v21  ;;  %13698 = vst [vmem:[#allocation224_spill] sm:$0xff] %v10524_v31  ;;  %4334 = vmatmul.mubr.f32.vlgmr.msra.gmra.mrb[0].mxu1 %v10139_v62  ;;  %6607 = vmatprep.subr.bf16.mxu0 %v10145_v24  ;;  %v13704_v47 = vand.u32 4294901760, %v13689_v34  ;;  %v10554_v62 = vsub.f32 %v13691_v23, %v12461_v63  ;;  %v13705_v24 = vand.u32 4294901760, %v13692_v56  ;;  %v13706_v55 = vand.u32 4294901760, %v13693_v14  ;;  %v13722_v21 = vld [vmem:[#allocation25_spill] sm:$0xff] }
 0x265   :  { %13699 = vst [vmem:[#allocation225_spill] sm:$0xff] %v10526_v29  ;;  %v10532_v10 = vsub.f32 %v13686_v9, %v13700_v36  ;;  %13702 = vst [vmem:[#allocation226_spill] sm:$0xff] %v10537_v22  ;;  %v10543_v41 = vsub.f32 %v13688_v11, %v13703_v7  ;;  %7373 = vmatpush1.bf16.msra.mxu1 %v10143_v46  ;;  %4725 = vmatprep.mubr.f32.mxu1 %v13701_v45  ;;  %v12465_v33 = vand.u32 4294901760, %v13710_v30  ;;  %v13711_v36 = vld [vmem:[#allocation207_spill] sm:$0xff]  ;;  %v13712_v45 = vld [vmem:[#allocation208_spill] sm:$0xff] }
 0x266   :  { %v10548_v53 = vsub.f32 %v13689_v34, %v13704_v47  ;;  %v10559_v59 = vsub.f32 %v13692_v56, %v13705_v24  ;;  %v10564_v16 = vsub.f32 %v13693_v14, %v13706_v55  ;;  %7375 = vmatprep.subr.bf16.mxu1 %v10148_v39  ;;  %v10572_v46 = vsub.f32 %v13696_v57, %v12463_v28  ;;  %v13708_v47 = vld [vmem:[#allocation199_spill] sm:$0xff]  ;;  %v13709_v55 = vld [vmem:[#allocation202_spill] sm:$0xff]  ;;  %v13713_v29 = vld [vmem:[#allocation20_spill] sm:$0xff] }
 0x267   :  { %v10577_v7 = vsub.f32 %v13697_v32, %v12464_v48  ;;  %6609 = vmatpush1.bf16.msra.mxu0 %v10150_v54  ;;  %v12466_v63 = vand.u32 4294901760, %v13714_v61  ;;  %v13715_v28 = vand.u32 4294901760, %v13707_v25  ;;  %v13716_v31 = vand.u32 4294901760, %v13708_v47  ;;  %v13731_v26 = vld [vmem:[#allocation70_spill] sm:$0xff]  ;;  %v13737_v56 = vld [vmem:[#allocation97_spill] sm:$0xff]  ;;  %v13744_v9 = vld [vmem:[#allocation128_spill] sm:$0xff] }
 0x268   :  { %6611 = vmatprep.subr.bf16.mxu0 %v10264_v60  ;;  %v13717_v39 = vand.u32 4294901760, %v13709_v55  ;;  %v13739_v57 = vld [vmem:[#allocation217_spill] sm:$0xff]  ;;  %v13754_v32 = vld [vmem:[#allocation184_spill] sm:$0xff] }
 0x269   :  { %7377 = vmatpush1.bf16.msra.mxu1 %v10246_v5  ;;  %v10598_v60 = vsub.f32 %v13707_v25, %v13715_v28  ;;  %v10606_v5 = vsub.f32 %v13708_v47, %v13716_v31  ;;  %v13718_v28 = vand.u32 4294901760, %v13711_v36  ;;  %v13719_v31 = vand.u32 4294901760, %v13712_v45  ;;  %v13728_v25 = vld [vmem:[#allocation55_spill] sm:$0xff]  ;;  %v13736_v47 = vld [vmem:[#allocation94_spill] sm:$0xff]  ;;  %v13743_v23 = vld [vmem:[#allocation121_spill] sm:$0xff] }
 0x26a   :  { %7379 = vmatprep.subr.bf16.mxu1 %v10270_v37  ;;  %v10611_v22 = vsub.f32 %v13709_v55, %v13717_v39  ;;  %v10617_v37 = vsub.f32 %v13710_v30, %v12465_v33  ;;  %v13720_v39 = vand.u32 4294901760, %v13713_v29  ;;  %v13721_v33 = vld [vmem:[#allocation29_spill] sm:$0xff]  ;;  %v13729_v55 = vld [vmem:[#allocation64_spill] sm:$0xff] }
 0x26b   :  { %6613 = vmatpush1.bf16.msra.mxu0 %v10275_v38  ;;  %v10622_v24 = vsub.f32 %v13711_v36, %v13718_v28  ;;  %v10627_v48 = vsub.f32 %v13712_v45, %v13719_v31  ;;  %v10638_v38 = vsub.f32 %v13714_v61, %v12466_v63  ;;  %v13724_v31 = vld [vmem:[#allocation40_spill] sm:$0xff]  ;;  %v13727_v28 = vld [vmem:[#allocation49_spill] sm:$0xff]  ;;  %v4584_v45 = vand.u32 4294901760, %v10598_v60 }
 0x26c   :  { %v10632_v54 = vsub.f32 %v13713_v29, %v13720_v39  ;;  %6615 = vmatprep.subr.bf16.mxu0 %v10279_v20  ;;  %v13725_v39 = vld [vmem:[#allocation43_spill] sm:$0xff]  ;;  %v13730_v30 = vld [vmem:[#allocation61_spill] sm:$0xff]  ;;  %v13734_v29 = vld [vmem:[#allocation88_spill] sm:$0xff]  ;;  %v2022_v42 = vand.u32 4294901760, %v10611_v22  ;;  %v2034_v50 = vand.u32 4294901760, %v10617_v37  ;;  %v13762_v60 = vand.u32 4294901760, %v13723_v27 }
 0x26d   :  { %7381 = vmatpush1.bf16.msra.mxu1 %v10277_v17  ;;  %v13732_v36 = vld [vmem:[#allocation73_spill] sm:$0xff]  ;;  %v13733_v17 = vld [vmem:[#allocation82_spill] sm:$0xff]  ;;  %v13735_v61 = vld [vmem:[#allocation92_spill] sm:$0xff]  ;;  %v4602_v19 = vand.u32 4294901760, %v10627_v48  ;;  %v13763_v22 = vand.u32 4294901760, %v10498_v3  ;;  %v13765_v48 = vand.u32 4294901760, %v10532_v10 }
 0x26e   :  { %7383 = vmatprep.subr.bf16.mxu1 %v10281_v4  ;;  %v13742_v4 = vld [vmem:[#allocation124_spill] sm:$0xff]  ;;  %v13748_v63 = vld [vmem:[#allocation145_spill] sm:$0xff] }
 0x26f   :  { %6617 = vmatpush1.bf16.msra.mxu0 %v10284_v51  ;;  %v13750_v51 = vld [vmem:[#allocation160_spill] sm:$0xff]  ;;  %v13753_v14 = vld [vmem:[#allocation169_spill] sm:$0xff] }
 0x270   :  { %6619 = vmatprep.subr.bf16.mxu0 %v10288_v52  ;;  %v13755_v20 = vld [vmem:[#allocation181_spill] sm:$0xff]  ;;  %v4596_v52 = vand.u32 4294901760, %v10606_v5  ;;  %v2045_v5 = vsub.f32 %v13723_v27, %v13762_v60 }
 0x271   :  { %7385 = vmatpush1.bf16.msra.mxu1 %v10286_v44  ;;  %v13758_v11 = vld [vmem:[#allocation201_spill] sm:$0xff]  ;;  %v13761_v44 = vand.u32 4294901760, %v13722_v21 }
 0x272   :  { %7387 = vmatprep.subr.bf16.mxu1 %v13739_v57  ;;  %v13760_v57 = vand.u32 4294901760, %v13721_v33 }
 0x273   :  { %6621 = vmatpush1.bf16.msra.mxu0 %v10398_v6  ;;  %v13757_v6 = vld [vmem:[#allocation197_spill] sm:$0xff] }
 0x274   :  { %6623 = vmatprep.subr.bf16.mxu0 %v10402_v18  ;;  %v4607_v34 = vsub.f32 %v13721_v33, %v13760_v57  ;;  %v4619_v18 = vsub.f32 %v13722_v21, %v13761_v44  ;;  %v2040_v57 = vand.u32 4294901760, %v10632_v54  ;;  %v2052_v44 = vand.u32 4294901760, %v10638_v38 }
 0x275   :  { %7389 = vmatpush1.bf16.msra.mxu1 %v10400_v35  ;;  %v4590_v35 = vand.u32 4294901760, %v10622_v24  ;;  %v13764_v24 = vand.u32 4294901760, %v10505_v8  ;;  %v13767_v38 = vand.u32 4294901760, %v10548_v53  ;;  %v13768_v33 = vand.u32 4294901760, %v10554_v62 }
 0x276   :  { %7391 = vmatprep.subr.bf16.mxu1 %v10404_v49  ;;  %v13769_v49 = vand.u32 4294901760, %v10559_v59  ;;  %v4608_v8 = vand.u32 4294901760, %v4607_v34  ;;  %v4620_v10 = vand.u32 4294901760, %v4619_v18  ;;  %v13772_v53 = vand.u32 4294901760, %v13725_v39 }
 0x277   :  { %6625 = vmatpush1.bf16.msra.mxu0 %v10407_v1  ;;  %v6638_v37 = vpack.c.bf16 %v13764_v24, %v13763_v22  ;;  %v13766_v1 = vand.u32 4294901760, %v10543_v41  ;;  %v10749_v60 = vpack.c.bf16 %v13768_v33, %v13767_v38  ;;  %v13771_v41 = vand.u32 4294901760, %v13724_v31 }
 0x278   :  { %6627 = vmatprep.subr.bf16.mxu0 %v10411_v13  ;;  %v13770_v13 = vand.u32 4294901760, %v10564_v16  ;;  %v10764_v62 = vsub.f32 %v13725_v39, %v13772_v53  ;;  %v13773_v33 = vand.u32 4294901760, %v10572_v46  ;;  %v13774_v59 = vand.u32 4294901760, %v10577_v7  ;;  %v13776_v7 = vld [vmem:[#allocation219_spill] sm:$0xff]  ;;  %v13779_v53 = vld [vmem:[#allocation221_spill] sm:$0xff] }
 0x279   :  { %v10743_v54 = vpack.c.bf16 %v13766_v1, %v13765_v48  ;;  %7393 = vmatpush1.bf16.msra.mxu1 %v10409_v15  ;;  %v2057_v22 = vsub.f32 %v13724_v31, %v13771_v41  ;;  %v10773_v15 = vpack.c.bf16 %v4596_v52, %v4584_v45  ;;  %v10775_v34 = vpack.c.bf16 %v2034_v50, %v2022_v42 }
 0x27a   :  { %v10755_v3 = vpack.c.bf16 %v13770_v13, %v13769_v49  ;;  %7395 = vmatprep.subr.bf16.mxu1 %v10413_v40  ;;  %v10771_v16 = vpack.c.bf16 %v13774_v59, %v13773_v33  ;;  %v10777_v18 = vpack.c.bf16 %v4602_v19, %v4590_v35  ;;  %v10780_v49 = vpack.c.bf16 %v2052_v44, %v2040_v57  ;;  %v13778_v44 = vld [vmem:[#allocation220_spill] sm:$0xff]  ;;  %v13781_v59 = vld [vmem:[#allocation223_spill] sm:$0xff] }
 0x27b   :  { %6629 = vmatpush1.bf16.msra.mxu0 %v10416_v58  ;;  %v2046_v24 = vand.u32 4294901760, %v2045_v5  ;;  %v13775_v48 = vand.u32 4294901760, %v13726_v0  ;;  %v12491_v46 = vand.u32 4294901760, %v13727_v28  ;;  %v12490_v45 = vand.u32 4294901760, %v13728_v25  ;;  %v13777_v58 = vld [vmem:[#allocation218_spill] sm:$0xff] }
 0x27c   :  { %6631 = vmatprep.subr.bf16.mxu0 %v13776_v7  ;;  %v12492_v50 = vand.u32 4294901760, %v13729_v55  ;;  %v12493_v42 = vand.u32 4294901760, %v13730_v30  ;;  %v12495_v19 = vand.u32 4294901760, %v13731_v26  ;;  %v10792_v52 = vpack.c.bf16 %v4620_v10, %v4608_v8  ;;  %v13785_v10 = vld [vmem:[#allocation224_spill] sm:$0xff] }
 0x27d   :  { %v4625_v40 = vsub.f32 %v13726_v0, %v13775_v48  ;;  %7397 = vmatpush1.bf16.msra.mxu1 %v13777_v58  ;;  %v2058_v5 = vand.u32 4294901760, %v2057_v22  ;;  %v4614_v35 = vand.u32 4294901760, %v10764_v62  ;;  %v12494_v57 = vand.u32 4294901760, %v13732_v36  ;;  %v13780_v22 = vld [vmem:[#allocation104_spill] sm:$0xff] }
 0x27e   :  { %7399 = vmatprep.subr.bf16.mxu1 %v13778_v44  ;;  %v12496_v1 = vand.u32 4294901760, %v13733_v17  ;;  %v12497_v38 = vand.u32 4294901760, %v13734_v29  ;;  %v12499_v13 = vand.u32 4294901760, %v13735_v61  ;;  %v12503_v41 = vand.u32 4294901760, %v13736_v47  ;;  %v13782_v44 = vld [vmem:[#allocation222_spill] sm:$0xff]  ;;  %v13784_v62 = vld [vmem:[#allocation116_spill] sm:$0xff] }
 0x27f   :  { %6633 = vmatpush1.bf16.msra.mxu0 %v13779_v53  ;;  %v4626_v33 = vand.u32 4294901760, %v4625_v40  ;;  %v2063_v8 = vsub.f32 %v13727_v28, %v12491_v46  ;;  %v2075_v48 = vsub.f32 %v13728_v25, %v12490_v45  ;;  %v4631_v7 = vsub.f32 %v13729_v55, %v12492_v50  ;;  %v13783_v45 = vld [vmem:[#allocation106_spill] sm:$0xff] }
 0x280   :  { %6635 = vmatprep.subr.bf16.mxu0 %v13781_v59  ;;  %v4643_v40 = vsub.f32 %v13730_v30, %v12493_v42  ;;  %v2069_v58 = vsub.f32 %v13731_v26, %v12495_v19  ;;  %v10821_v53 = vpack.c.bf16 %v2058_v5, %v2046_v24  ;;  %v2081_v59 = vsub.f32 %v13732_v36, %v12494_v57  ;;  %v13786_v57 = vld [vmem:[#allocation225_spill] sm:$0xff]  ;;  %v13789_v26 = vld [vmem:[#allocation226_spill] sm:$0xff] }
 0x281   :  { %7401 = vmatpush1.bf16.msra.mxu1 %v13782_v44  ;;  %v4637_v42 = vsub.f32 %v13733_v17, %v12496_v1  ;;  %v4649_v44 = vsub.f32 %v13734_v29, %v12497_v38  ;;  %v2087_v24 = vsub.f32 %v13735_v61, %v12499_v13  ;;  %v2099_v5 = vsub.f32 %v13736_v47, %v12503_v41 }
 0x282   :  { %7403 = vmatprep.subr.bf16.mxu1 %v13785_v10  ;;  %v2064_v19 = vand.u32 4294901760, %v2063_v8  ;;  %v13787_v10 = vand.u32 4294901760, %v13737_v56  ;;  %v13788_v1 = vand.u32 4294901760, %v13780_v22  ;;  %v12509_v38 = vand.u32 4294901760, %v13742_v4 }
 0x283   :  { %6637 = vmatpush1.bf16.msra.mxu0 %v13786_v57  ;;  %v2076_v17 = vand.u32 4294901760, %v2075_v48  ;;  %v4632_v13 = vand.u32 4294901760, %v4631_v7  ;;  %v4644_v29 = vand.u32 4294901760, %v4643_v40  ;;  %v2070_v61 = vand.u32 4294901760, %v2069_v58 }
 0x284   :  { %v4655_v50 = vsub.f32 %v13737_v56, %v13787_v10  ;;  %v4667_v46 = vsub.f32 %v13780_v22, %v13788_v1  ;;  %6639 = vmatprep.subr.bf16.mxu0 %v6638_v37  ;;  %v2082_v41 = vand.u32 4294901760, %v2081_v59  ;;  %v13790_v57 = vand.u32 4294901760, %v13783_v45 }
 0x285   :  { %7405 = vmatpush1.bf16.msra.mxu1 %v13789_v26  ;;  %v13791_v10 = vand.u32 4294901760, %v13784_v62  ;;  %v4638_v37 = vand.u32 4294901760, %v4637_v42  ;;  %v4650_v48 = vand.u32 4294901760, %v4649_v44  ;;  %v2088_v7 = vand.u32 4294901760, %v2087_v24  ;;  %v13792_v42 = vld [vmem:[#allocation140_spill] sm:$0xff] }
 0x286   :  { %v2093_v8 = vsub.f32 %v13783_v45, %v13790_v57  ;;  %7407 = vmatprep.subr.bf16.mxu1 %v10743_v54  ;;  %v2100_v40 = vand.u32 4294901760, %v2099_v5  ;;  %v7416_v26 = vpack.c.bf16 %v4626_v33, %v4614_v35  ;;  %v4656_v58 = vand.u32 4294901760, %v4655_v50 }
 0x287   :  { %v2105_v56 = vsub.f32 %v13784_v62, %v13791_v10  ;;  %6641 = vmatpush1.bf16.msra.mxu0 %v10749_v60  ;;  %v4668_v59 = vand.u32 4294901760, %v4667_v46  ;;  %v10862_v57 = vsub.f32 %v13742_v4, %v12509_v38  ;;  %v6650_v10 = vpack.c.bf16 %v2076_v17, %v2064_v19 }
 0x288   :  { %6643 = vmatprep.subr.bf16.mxu0 %v10771_v16  ;;  %v7418_v1 = vpack.c.bf16 %v4644_v29, %v4632_v13  ;;  %v12515_v54 = vand.u32 4294901760, %v13744_v9  ;;  %v12513_v44 = vand.u32 4294901760, %v13792_v42  ;;  %v6652_v24 = vpack.c.bf16 %v2082_v41, %v2070_v61  ;;  %v13794_v16 = vld [vmem:[#allocation209_spill] sm:$0xff]  ;;  %v13795_v29 = vld [vmem:[#allocation148_spill] sm:$0xff] }
 0x289   :  { %7409 = vmatpush1.bf16.msra.mxu1 %v10755_v3  ;;  %v2094_v60 = vand.u32 4294901760, %v2093_v8  ;;  %v2106_v35 = vand.u32 4294901760, %v2105_v56  ;;  %v13793_v46 = vand.u32 4294901760, %v13743_v23  ;;  %v7420_v33 = vpack.c.bf16 %v4650_v48, %v4638_v37  ;;  %v13796_v56 = vld [vmem:[#allocation154_spill] sm:$0xff] }
 0x28a   :  { %7411 = vmatprep.subr.bf16.mxu1 %v10773_v15  ;;  %v6654_v5 = vpack.c.bf16 %v2100_v40, %v2088_v7  ;;  %v12506_v17 = vand.u32 4294901760, %v13794_v16  ;;  %v12505_v19 = vand.u32 4294901760, %v13795_v29  ;;  %v7422_v13 = vpack.c.bf16 %v4668_v59, %v4656_v58 }
 0x28b   :  { %v4673_v50 = vsub.f32 %v13743_v23, %v13793_v46  ;;  %6645 = vmatpush1.bf16.msra.mxu0 %v10775_v34  ;;  %v4662_v3 = vand.u32 4294901760, %v10862_v57  ;;  %v12508_v61 = vand.u32 4294901760, %v13748_v63  ;;  %v12507_v41 = vand.u32 4294901760, %v13796_v56 }
 0x28c   :  { %6647 = vmatprep.subr.bf16.mxu0 %v10780_v49  ;;  %v2111_v15 = vsub.f32 %v13744_v9, %v12515_v54  ;;  %v2123_v8 = vsub.f32 %v13792_v42, %v12513_v44  ;;  %v12510_v37 = vand.u32 4294901760, %v13752_v12  ;;  %v12511_v34 = vand.u32 4294901760, %v13753_v14 }
 0x28d   :  { %7413 = vmatpush1.bf16.msra.mxu1 %v10777_v18  ;;  %v6656_v48 = vpack.c.bf16 %v2106_v35, %v2094_v60  ;;  %v4674_v7 = vand.u32 4294901760, %v4673_v50  ;;  %v12512_v40 = vand.u32 4294901760, %v13750_v51  ;;  %v12514_v49 = vand.u32 4294901760, %v13751_v2 }
 0x28e   :  { %7415 = vmatprep.subr.bf16.mxu1 %v10792_v52  ;;  %v4679_v58 = vsub.f32 %v13794_v16, %v12506_v17  ;;  %v4691_v59 = vsub.f32 %v13795_v29, %v12505_v19  ;;  %v12516_v57 = vand.u32 4294901760, %v13754_v32  ;;  %v12518_v18 = vand.u32 4294901760, %v13755_v20 }
 0x28f   :  { %6649 = vmatpush1.bf16.msra.mxu0 %v10821_v53  ;;  %v2117_v60 = vsub.f32 %v13748_v63, %v12508_v61  ;;  %v2129_v52 = vsub.f32 %v13796_v56, %v12507_v41  ;;  %v12517_v35 = vand.u32 4294901760, %v13756_v43  ;;  %v12520_v46 = vand.u32 4294901760, %v13757_v6 }
 0x290   :  { %6651 = vmatprep.subr.bf16.mxu0 %v6650_v10  ;;  %v2112_v50 = vand.u32 4294901760, %v2111_v15  ;;  %v2124_v19 = vand.u32 4294901760, %v2123_v8  ;;  %v2135_v17 = vsub.f32 %v13752_v12, %v12510_v37  ;;  %v2147_v53 = vsub.f32 %v13753_v14, %v12511_v34  ;;  %v13797_v15 = vld [vmem:[#allocation206_spill] sm:$0xff] }
 0x291   :  { %7417 = vmatpush1.bf16.msra.mxu1 %v7416_v26  ;;  %v4685_v41 = vsub.f32 %v13750_v51, %v12512_v40  ;;  %v4697_v61 = vsub.f32 %v13751_v2, %v12514_v49  ;;  %v4680_v38 = vand.u32 4294901760, %v4679_v58  ;;  %v4692_v37 = vand.u32 4294901760, %v4691_v59 }
 0x292   :  { %7419 = vmatprep.subr.bf16.mxu1 %v7418_v1  ;;  %v4703_v34 = vsub.f32 %v13754_v32, %v12516_v57  ;;  %v4715_v26 = vsub.f32 %v13755_v20, %v12518_v18  ;;  %v2118_v40 = vand.u32 4294901760, %v2117_v60  ;;  %v2130_v44 = vand.u32 4294901760, %v2129_v52 }
 0x293   :  { %6653 = vmatpush1.bf16.msra.mxu0 %v6652_v24  ;;  %v2141_v49 = vsub.f32 %v13756_v43, %v12517_v35  ;;  %v2153_v1 = vsub.f32 %v13757_v6, %v12520_v46  ;;  %v7424_v58 = vpack.c.bf16 %v4674_v7, %v4662_v3  ;;  %v6658_v59 = vpack.c.bf16 %v2124_v19, %v2112_v50 }
 0x294   :  { %6655 = vmatprep.subr.bf16.mxu0 %v6654_v5  ;;  %v2136_v54 = vand.u32 4294901760, %v2135_v17  ;;  %v2148_v57 = vand.u32 4294901760, %v2147_v53  ;;  %v4686_v8 = vand.u32 4294901760, %v4685_v41  ;;  %v4698_v10 = vand.u32 4294901760, %v4697_v61  ;;  %v13800_v53 = vld [vmem:[#allocation120_spill] sm:$0xff] }
 0x295   :  { %7421 = vmatpush1.bf16.msra.mxu1 %v7420_v33  ;;  %v13798_v24 = vand.u32 4294901760, %v13758_v11  ;;  %v13799_v52 = vand.u32 4294901760, %v13797_v15  ;;  %v7426_v18 = vpack.c.bf16 %v4692_v37, %v4680_v38  ;;  %v4704_v43 = vand.u32 4294901760, %v4703_v34  ;;  %v13803_v34 = vld [vmem:[#allocation168_spill] sm:$0xff] }
 0x296   :  { %7423 = vmatprep.subr.bf16.mxu1 %v7422_v13  ;;  %v4716_v46 = vand.u32 4294901760, %v4715_v26  ;;  %v6660_v5 = vpack.c.bf16 %v2130_v44, %v2118_v40  ;;  %v2142_v19 = vand.u32 4294901760, %v2141_v49  ;;  %v2154_v17 = vand.u32 4294901760, %v2153_v1  ;;  %v13801_v13 = vld [vmem:[#allocation122_spill] sm:$0xff]  ;;  %v13802_v44 = vld [vmem:[#allocation125_spill] sm:$0xff]  ;;  %v13811_v26 = vld [vmem:[#allocation159_spill] sm:$0xff] }
 0x297   :  { %v4709_v60 = vsub.f32 %v13758_v11, %v13798_v24  ;;  %v4721_v35 = vsub.f32 %v13797_v15, %v13799_v52  ;;  %6657 = vmatpush1.bf16.msra.mxu0 %v6656_v48  ;;  %v6662_v33 = vpack.c.bf16 %v2148_v57, %v2136_v54  ;;  %v7428_v3 = vpack.c.bf16 %v4698_v10, %v4686_v8  ;;  %v13804_v54 = vld [vmem:[#allocation127_spill] sm:$0xff]  ;;  %v13805_v40 = vld [vmem:[#allocation129_spill] sm:$0xff]  ;;  %v13806_v57 = vld [vmem:[#allocation138_spill] sm:$0xff] }
 0x298   :  { %6659 = vmatprep.subr.bf16.mxu0 %v6658_v59  ;;  %v7430_v7 = vpack.c.bf16 %v4716_v46, %v4704_v43  ;;  %v6664_v50 = vpack.c.bf16 %v2154_v17, %v2142_v19  ;;  %v6666_v38 = vpack.c.bf16 %v13801_v13, %v13800_v53  ;;  %v7434_v48 = vpack.c.bf16 %v13803_v34, %v13802_v44  ;;  %v13809_v46 = vld [vmem:[#allocation137_spill] sm:$0xff]  ;;  %v13810_v8 = vld [vmem:[#allocation178_spill] sm:$0xff]  ;;  %v13815_v52 = vld [vmem:[#allocation112_spill] sm:$0xff] }
 0x299   :  { %7425 = vmatpush1.bf16.msra.mxu1 %v7424_v58  ;;  %v4710_v61 = vand.u32 4294901760, %v4709_v60  ;;  %v4722_v41 = vand.u32 4294901760, %v4721_v35  ;;  %v6668_v49 = vpack.c.bf16 %v13805_v40, %v13804_v54  ;;  %v13808_v35 = vld [vmem:[#allocation132_spill] sm:$0xff]  ;;  %v13812_v1 = vld [vmem:[#allocation161_spill] sm:$0xff]  ;;  %v13813_v59 = vld [vmem:[#allocation162_spill] sm:$0xff] }
 0x29a   :  { %7427 = vmatprep.subr.bf16.mxu1 %v7426_v18  ;;  %v13807_v18 = vld [vmem:[#allocation143_spill] sm:$0xff]  ;;  %v7436_v10 = vpack.c.bf16 %v13809_v46, %v13808_v35  ;;  %v7438_v58 = vpack.c.bf16 %v13812_v1, %v13811_v26  ;;  %v13814_v24 = vld [vmem:[#allocation165_spill] sm:$0xff] }
 0x29b   :  { %6661 = vmatpush1.bf16.msra.mxu0 %v6660_v5  ;;  %v7432_v37 = vpack.c.bf16 %v4722_v41, %v4710_v61  ;;  %v6670_v43 = vpack.c.bf16 %v13807_v18, %v13806_v57  ;;  %v6672_v60 = vpack.c.bf16 %v13814_v24, %v13813_v59  ;;  %v13816_v5 = vld [vmem:[#allocation103_spill] sm:$0xff]  ;;  %v13817_v19 = vld [vmem:[#allocation105_spill] sm:$0xff]  ;;  %v13820_v41 = vld [vmem:[#allocation108_spill] sm:$0xff] }
 0x29c   :  { %6663 = vmatprep.subr.bf16.mxu0 %v6662_v33  ;;  %v6674_v17 = vpack.c.bf16 %v13817_v19, %v13816_v5  ;;  %v13818_v33 = vld [vmem:[#allocation171_spill] sm:$0xff]  ;;  %v13826_v19 = vld [vmem:[#allocation117_spill] sm:$0xff]  ;;  %v13831_v24 = vld [vmem:[#allocation214_spill] sm:$0xff] }
 0x29d   :  { %7429 = vmatpush1.bf16.msra.mxu1 %v7428_v3  ;;  %v13819_v3 = vld [vmem:[#allocation212_spill] sm:$0xff] }
 0x29e   :  { %7431 = vmatprep.subr.bf16.mxu1 %v7430_v7  ;;  %v7440_v61 = vpack.c.bf16 %v13819_v3, %v13818_v33  ;;  %v13821_v7 = vld [vmem:[#allocation113_spill] sm:$0xff]  ;;  %v13828_v3 = vld [vmem:[#allocation155_spill] sm:$0xff]  ;;  %v13829_v33 = vld [vmem:[#allocation158_spill] sm:$0xff] }
 0x29f   :  { %6665 = vmatpush1.bf16.msra.mxu0 %v6664_v50  ;;  %v7442_v50 = vpack.c.bf16 %v13821_v7, %v13820_v41  ;;  %v13833_v41 = vld [vmem:[#allocation24_spill] sm:$0xff] }
 0x2a0   :  { %6667 = vmatprep.subr.bf16.mxu0 %v6666_v38  ;;  %v13822_v38 = vld [vmem:[#allocation110_spill] sm:$0xff] }
 0x2a1   :  { %7433 = vmatpush1.bf16.msra.mxu1 %v7432_v37  ;;  %v13823_v37 = vld [vmem:[#allocation111_spill] sm:$0xff] }
 0x2a2   :  { %7435 = vmatprep.subr.bf16.mxu1 %v7434_v48  ;;  %2159 = vmatmul.mubr.f32.vlgmr.msra.gmra.mrb[0].mxu0 %v13810_v8  ;;  %v6676_v48 = vpack.c.bf16 %v13823_v37, %v13822_v38  ;;  %v13835_v38 = vld [vmem:[#allocation19_spill] sm:$0xff] }
 0x2a3   :  { %6669 = vmatpush1.bf16.msra.mxu0 %v6668_v49  ;;  %2359 = vmatprep.mubr.f32.mxu0 %v13815_v52  ;;  %v13824_v49 = vld [vmem:[#allocation147_spill] sm:$0xff] }
 0x2a4   :  { %4727 = vmatmul.mubr.f32.vlgmr.msra.gmra.mrb[0].mxu1 %v13810_v8  ;;  %6671 = vmatprep.subr.bf16.mxu0 %v6670_v43  ;;  %v13825_v43 = vld [vmem:[#allocation151_spill] sm:$0xff] }
 0x2a5   :  { %7437 = vmatpush1.bf16.msra.mxu1 %v7436_v10  ;;  %4927 = vmatprep.mubr.f32.mxu1 %v13815_v52  ;;  %v6678_v8 = vpack.c.bf16 %v13825_v43, %v13824_v49  ;;  %v13827_v10 = vld [vmem:[#allocation149_spill] sm:$0xff]  ;;  %v7446_v52 = vpack.c.bf16 %v13829_v33, %v13828_v3  ;;  %v13837_v49 = vld [vmem:[#allocation26_spill] sm:$0xff] }
 0x2a6   :  { %7439 = vmatprep.subr.bf16.mxu1 %v7438_v58  ;;  %v7444_v5 = vpack.c.bf16 %v13827_v10, %v13826_v19  ;;  %v13830_v58 = vld [vmem:[#allocation167_spill] sm:$0xff]  ;;  %v13839_v19 = vld [vmem:[#allocation32_spill] sm:$0xff]  ;;  %v13841_v3 = vld [vmem:[#allocation37_spill] sm:$0xff] }
 0x2a7   :  { %6673 = vmatpush1.bf16.msra.mxu0 %v6672_v60  ;;  %v6680_v7 = vpack.c.bf16 %v13831_v24, %v13830_v58  ;;  %v13832_v60 = vld [vmem:[#allocation23_spill] sm:$0xff]  ;;  %v13843_v58 = vld [vmem:[#allocation36_spill] sm:$0xff] }
 0x2a8   :  { %6675 = vmatprep.subr.bf16.mxu0 %v6674_v17  ;;  %v6682_v37 = vpack.c.bf16 %v13833_v41, %v13832_v60  ;;  %v13834_v17 = vld [vmem:[#allocation18_spill] sm:$0xff]  ;;  %v13845_v60 = vld [vmem:[#allocation45_spill] sm:$0xff] }
 0x2a9   :  { %7441 = vmatpush1.bf16.msra.mxu1 %v7440_v61  ;;  %v7448_v43 = vpack.c.bf16 %v13835_v38, %v13834_v17  ;;  %v13836_v61 = vld [vmem:[#allocation30_spill] sm:$0xff]  ;;  %v13847_v17 = vld [vmem:[#allocation53_spill] sm:$0xff] }
 0x2aa   :  { %7443 = vmatprep.subr.bf16.mxu1 %v7442_v50  ;;  %v7450_v10 = vpack.c.bf16 %v13837_v49, %v13836_v61  ;;  %v13838_v50 = vld [vmem:[#allocation215_spill] sm:$0xff]  ;;  %v13849_v61 = vld [vmem:[#allocation58_spill] sm:$0xff] }
 0x2ab   :  { %6677 = vmatpush1.bf16.msra.mxu0 %v6676_v48  ;;  %v6684_v33 = vpack.c.bf16 %v13839_v19, %v13838_v50  ;;  %v13840_v48 = vld [vmem:[#allocation42_spill] sm:$0xff]  ;;  %v13851_v50 = vld [vmem:[#allocation51_spill] sm:$0xff] }
 0x2ac   :  { %6679 = vmatprep.subr.bf16.mxu0 %v6678_v8  ;;  %v6686_v24 = vpack.c.bf16 %v13841_v3, %v13840_v48  ;;  %v13842_v8 = vld [vmem:[#allocation34_spill] sm:$0xff] }
 0x2ad   :  { %7445 = vmatpush1.bf16.msra.mxu1 %v7444_v5  ;;  %v7452_v41 = vpack.c.bf16 %v13843_v58, %v13842_v8  ;;  %v13844_v5 = vld [vmem:[#allocation44_spill] sm:$0xff]  ;;  %v13853_v48 = vld [vmem:[#allocation66_spill] sm:$0xff]  ;;  %v13855_v8 = vld [vmem:[#allocation67_spill] sm:$0xff] }
 0x2ae   :  { %7447 = vmatprep.subr.bf16.mxu1 %v7446_v52  ;;  %v7454_v38 = vpack.c.bf16 %v13845_v60, %v13844_v5  ;;  %v13846_v52 = vld [vmem:[#allocation48_spill] sm:$0xff]  ;;  %v13857_v5 = vld [vmem:[#allocation74_spill] sm:$0xff] }
 0x2af   :  { %6681 = vmatpush1.bf16.msra.mxu0 %v6680_v7  ;;  %v6688_v49 = vpack.c.bf16 %v13847_v17, %v13846_v52  ;;  %v13848_v7 = vld [vmem:[#allocation57_spill] sm:$0xff]  ;;  %v13859_v52 = vld [vmem:[#allocation72_spill] sm:$0xff] }
 0x2b0   :  { %6683 = vmatprep.subr.bf16.mxu0 %v6682_v37  ;;  %v6690_v19 = vpack.c.bf16 %v13849_v61, %v13848_v7  ;;  %v13850_v37 = vld [vmem:[#allocation50_spill] sm:$0xff]  ;;  %v13861_v7 = vld [vmem:[#allocation81_spill] sm:$0xff] }
 0x2b1   :  { %7449 = vmatpush1.bf16.msra.mxu1 %v7448_v43  ;;  %v7456_v3 = vpack.c.bf16 %v13851_v50, %v13850_v37  ;;  %v13852_v43 = vld [vmem:[#allocation65_spill] sm:$0xff] }
 0x2b2   :  { %7451 = vmatprep.subr.bf16.mxu1 %v7450_v10  ;;  %v7458_v58 = vpack.c.bf16 %v13853_v48, %v13852_v43  ;;  %v13854_v10 = vld [vmem:[#allocation63_spill] sm:$0xff]  ;;  %v13863_v37 = vld [vmem:[#allocation89_spill] sm:$0xff] }
 0x2b3   :  { %6685 = vmatpush1.bf16.msra.mxu0 %v6684_v33  ;;  %v6692_v60 = vpack.c.bf16 %v13855_v8, %v13854_v10  ;;  %v13856_v33 = vld [vmem:[#allocation78_spill] sm:$0xff]  ;;  %v13865_v43 = vld [vmem:[#allocation95_spill] sm:$0xff] }
 0x2b4   :  { %6687 = vmatprep.subr.bf16.mxu0 %v6686_v24  ;;  %v6694_v17 = vpack.c.bf16 %v13857_v5, %v13856_v33  ;;  %v13858_v24 = vld [vmem:[#allocation71_spill] sm:$0xff]  ;;  %v13869_v33 = vld [vmem:[#allocation102_spill] sm:$0xff] }
 0x2b5   :  { %7453 = vmatpush1.bf16.msra.mxu1 %v7452_v41  ;;  %v7460_v61 = vpack.c.bf16 %v13859_v52, %v13858_v24  ;;  %v13860_v41 = vld [vmem:[#allocation79_spill] sm:$0xff] }
 0x2b6   :  { %7455 = vmatprep.subr.bf16.mxu1 %v7454_v38  ;;  %v7462_v50 = vpack.c.bf16 %v13861_v7, %v13860_v41  ;;  %v13862_v38 = vld [vmem:[#allocation84_spill] sm:$0xff]  ;;  %v13867_v10 = vld [vmem:[#allocation87_spill] sm:$0xff] }
 0x2b7   :  { %6689 = vmatpush1.bf16.msra.mxu0 %v6688_v49  ;;  %v6696_v48 = vpack.c.bf16 %v13863_v37, %v13862_v38  ;;  %v13864_v49 = vld [vmem:[#allocation93_spill] sm:$0xff]  ;;  %v13874_v37 = vld [vmem:[#allocation174_spill] sm:$0xff] }
 0x2b8   :  { %6691 = vmatprep.subr.bf16.mxu0 %v6690_v19  ;;  %v6698_v8 = vpack.c.bf16 %v13865_v43, %v13864_v49  ;;  %v13866_v19 = vld [vmem:[#allocation86_spill] sm:$0xff] }
 0x2b9   :  { %7457 = vmatpush1.bf16.msra.mxu1 %v7456_v3  ;;  %v7464_v5 = vpack.c.bf16 %v13867_v10, %v13866_v19  ;;  %v13868_v3 = vld [vmem:[#allocation101_spill] sm:$0xff]  ;;  %v13877_v43 = vld [vmem:[#allocation150_spill] sm:$0xff]  ;;  %v13880_v10 = vld [vmem:[#allocation179_spill] sm:$0xff] }
 0x2ba   :  { %7459 = vmatprep.subr.bf16.mxu1 %v7458_v58  ;;  %v7466_v52 = vpack.c.bf16 %v13869_v33, %v13868_v3  ;;  %v13870_v58 = vld [vmem:[#allocation135_spill] sm:$0xff]  ;;  %v13886_v33 = vld [vmem:[#allocation192_spill] sm:$0xff] }
 0x2bb   :  { %6693 = vmatpush1.bf16.msra.mxu0 %v6692_v60  ;;  %v13871_v60 = vld [vmem:[#allocation134_spill] sm:$0xff] }
 0x2bc   :  { %6695 = vmatprep.subr.bf16.mxu0 %v6694_v17  ;;  %v13872_v7 = vpack.c.bf16 %v13870_v58, %v13871_v60  ;;  %v13873_v17 = vld [vmem:[#allocation175_spill] sm:$0xff] }
 0x2bd   :  { %7461 = vmatpush1.bf16.msra.mxu1 %v7460_v61  ;;  %v13875_v38 = vpack.c.bf16 %v13873_v17, %v13874_v37  ;;  %v13876_v61 = vld [vmem:[#allocation153_spill] sm:$0xff]  ;;  %v13889_v60 = vld [vmem:[#allocation187_spill] sm:$0xff]  ;;  %v13892_v37 = vld [vmem:[#allocation198_spill] sm:$0xff] }
 0x2be   :  { %7463 = vmatprep.subr.bf16.mxu1 %v7462_v50  ;;  %v13878_v49 = vpack.c.bf16 %v13876_v61, %v13877_v43  ;;  %v13879_v50 = vld [vmem:[#allocation180_spill] sm:$0xff]  ;;  %v13895_v43 = vld [vmem:[#allocation202_spill] sm:$0xff] }
 0x2bf   :  { %6697 = vmatpush1.bf16.msra.mxu0 %v6696_v48  ;;  %v13881_v19 = vpack.c.bf16 %v13879_v50, %v13880_v10  ;;  %v13882_v48 = vld [vmem:[#allocation185_spill] sm:$0xff]  ;;  %v13898_v10 = vld [vmem:[#allocation20_spill] sm:$0xff] }
 0x2c0   :  { %6699 = vmatprep.subr.bf16.mxu0 %v6698_v8  ;;  %v13883_v8 = vld [vmem:[#allocation183_spill] sm:$0xff] }
 0x2c1   :  { %7465 = vmatpush1.bf16.msra.mxu1 %v7464_v5  ;;  %v13884_v5 = vpack.c.bf16 %v13882_v48, %v13883_v8  ;;  %v13901_v8 = vld [vmem:[#allocation207_spill] sm:$0xff] }
 0x2c2   :  { %7467 = vmatprep.subr.bf16.mxu1 %v7466_v52  ;;  %v13885_v52 = vld [vmem:[#allocation194_spill] sm:$0xff] }
 0x2c3   :  { %6701 = vmatpush1.bf16.msra.mxu0 %v13872_v7  ;;  %v13887_v58 = vpack.c.bf16 %v13885_v52, %v13886_v33  ;;  %v13888_v7 = vld [vmem:[#allocation189_spill] sm:$0xff] }
 0x2c4   :  { %6703 = vmatprep.subr.bf16.mxu0 %v13875_v38  ;;  %v13890_v17 = vpack.c.bf16 %v13888_v7, %v13889_v60  ;;  %v13891_v38 = vld [vmem:[#allocation199_spill] sm:$0xff] }
 0x2c5   :  { %7469 = vmatpush1.bf16.msra.mxu1 %v13878_v49  ;;  %v13893_v61 = vpack.c.bf16 %v13891_v38, %v13892_v37  ;;  %v13894_v49 = vld [vmem:[#allocation204_spill] sm:$0xff] }
 0x2c6   :  { %7471 = vmatprep.subr.bf16.mxu1 %v13881_v19  ;;  %v13896_v50 = vpack.c.bf16 %v13894_v49, %v13895_v43  ;;  %v13897_v19 = vld [vmem:[#allocation22_spill] sm:$0xff] }
 0x2c7   :  { %6705 = vmatpush1.bf16.msra.mxu0 %v13884_v5  ;;  %v13899_v48 = vpack.c.bf16 %v13897_v19, %v13898_v10  ;;  %v13900_v5 = vld [vmem:[#allocation208_spill] sm:$0xff] }
 0x2c8   :  { %6707 = vmatprep.subr.bf16.mxu0 %v13887_v58  ;;  %v13902_v52 = vpack.c.bf16 %v13900_v5, %v13901_v8  ;;  %v13903_v58 = vld [vmem:[#allocation29_spill] sm:$0xff] }
 0x2c9   :  { %7473 = vmatpush1.bf16.msra.mxu1 %v13890_v17  ;;  %v13904_v7 = vpack.c.bf16 %v13722_v21, %v13903_v58  ;;  %v13905_v17 = vpack.c.bf16 %v13724_v31, %v13723_v27  ;;  %v13914_v27 = vld [vmem:[#allocation82_spill] sm:$0xff] }
 0x2ca   :  { %7475 = vmatprep.subr.bf16.mxu1 %v13893_v61  ;;  %v13906_v61 = vpack.c.bf16 %v13728_v25, %v13727_v28 }
 0x2cb   :  { %6709 = vmatpush1.bf16.msra.mxu0 %v13896_v50  ;;  %v13907_v50 = vpack.c.bf16 %v13726_v0, %v13725_v39 }
 0x2cc   :  { %6711 = vmatprep.subr.bf16.mxu0 %v13899_v48  ;;  %v13908_v48 = vpack.c.bf16 %v13730_v30, %v13729_v55 }
 0x2cd   :  { %7477 = vmatpush1.bf16.msra.mxu1 %v13902_v52  ;;  %v13909_v52 = vld [vmem:[#allocation70_spill] sm:$0xff] }
 0x2ce   :  { %7479 = vmatprep.subr.bf16.mxu1 %v13904_v7  ;;  %v13910_v21 = vpack.c.bf16 %v13732_v36, %v13909_v52  ;;  %v13911_v7 = vld [vmem:[#allocation92_spill] sm:$0xff] }
 0x2cf   :  { %6713 = vmatpush1.bf16.msra.mxu0 %v13905_v17  ;;  %v13912_v31 = vpack.c.bf16 %v13736_v47, %v13911_v7  ;;  %v13913_v17 = vld [vmem:[#allocation88_spill] sm:$0xff] }
 0x2d0   :  { %6715 = vmatprep.subr.bf16.mxu0 %v13906_v61  ;;  %v13915_v25 = vpack.c.bf16 %v13913_v17, %v13914_v27  ;;  %v13916_v61 = vld [vmem:[#allocation97_spill] sm:$0xff] }
 0x2d1   :  { %7481 = vmatpush1.bf16.msra.mxu1 %v13907_v50  ;;  %v13917_v0 = vpack.c.bf16 %v13780_v22, %v13916_v61  ;;  %v13918_v50 = vpack.c.bf16 %v13784_v62, %v13783_v45 }
 0x2d2   :  { %7483 = vmatprep.subr.bf16.mxu1 %v13908_v48  ;;  %v13919_v48 = vpack.c.bf16 %v13792_v42, %v13744_v9 }
 0x2d3   :  { %6717 = vmatpush1.bf16.msra.mxu0 %v13910_v21  ;;  %v13920_v21 = vpack.c.bf16 %v13743_v23, %v13742_v4 }
 0x2d4   :  { %6719 = vmatprep.subr.bf16.mxu0 %v13912_v31  ;;  %v13921_v31 = vpack.c.bf16 %v13795_v29, %v13794_v16 }
 0x2d5   :  { %7485 = vmatpush1.bf16.msra.mxu1 %v13915_v25  ;;  %v13922_v25 = vpack.c.bf16 %v13796_v56, %v13748_v63 }
 0x2d6   :  { %7487 = vmatprep.subr.bf16.mxu1 %v13917_v0  ;;  %v13923_v0 = vpack.c.bf16 %v13753_v14, %v13752_v12  ;;  %v13930_v14 = vld [vmem:[#allocation123_spill] sm:$0xff] }
 0x2d7   :  { %6721 = vmatpush1.bf16.msra.mxu0 %v13918_v50  ;;  %v13924_v50 = vpack.c.bf16 %v13751_v2, %v13750_v51  ;;  %v13932_v2 = vld [vmem:[#allocation126_spill] sm:$0xff] }
 0x2d8   :  { %6723 = vmatprep.subr.bf16.mxu0 %v13919_v48  ;;  %v13925_v48 = vpack.c.bf16 %v13755_v20, %v13754_v32 }
 0x2d9   :  { %7489 = vmatpush1.bf16.msra.mxu1 %v13920_v21  ;;  %v13926_v21 = vld [vmem:[#allocation190_spill] sm:$0xff] }
 0x2da   :  { %7491 = vmatprep.subr.bf16.mxu1 %v13921_v31  ;;  %v13927_v29 = vpack.c.bf16 %v13757_v6, %v13926_v21  ;;  %v13928_v31 = vld [vmem:[#allocation119_spill] sm:$0xff]  ;;  %v13997_v21 = vld [vmem:[#allocation188_spill] sm:$0xff] }
 0x2db   :  { %6725 = vmatpush1.bf16.msra.mxu0 %v13922_v25  ;;  %v13929_v25 = vpack.c.bf16 %v13797_v15, %v13758_v11  ;;  %v13935_v6 = vld [vmem:[#allocation131_spill] sm:$0xff]  ;;  %v13942_v11 = vld [vmem:[#allocation146_spill] sm:$0xff] }
 0x2dc   :  { %6727 = vmatprep.subr.bf16.mxu0 %v13923_v0  ;;  %v13931_v0 = vld [vmem:[#allocation203_spill] sm:$0xff] }
 0x2dd   :  { %7493 = vmatpush1.bf16.msra.mxu1 %v13924_v50  ;;  %v13933_v50 = vld [vmem:[#allocation130_spill] sm:$0xff]  ;;  %v13940_v15 = vld [vmem:[#allocation107_spill] sm:$0xff] }
 0x2de   :  { %7495 = vmatprep.subr.bf16.mxu1 %v13925_v48  ;;  %v13934_v48 = vld [vmem:[#allocation139_spill] sm:$0xff] }
 0x2df   :  { %6729 = vmatpush1.bf16.msra.mxu0 %v13927_v29  ;;  %v13936_v29 = vld [vmem:[#allocation144_spill] sm:$0xff] }
 0x2e0   :  { %6731 = vmatprep.subr.bf16.mxu0 %v13928_v31  ;;  %v13937_v31 = vld [vmem:[#allocation163_spill] sm:$0xff] }
 0x2e1   :  { %7497 = vmatpush1.bf16.msra.mxu1 %v13929_v25  ;;  %v13938_v25 = vld [vmem:[#allocation98_spill] sm:$0xff] }
 0x2e2   :  { %7499 = vmatprep.subr.bf16.mxu1 %v13930_v14  ;;  %2362 = vmatmul.mubr.f32.vlgmr.msra.gmra.mrb[0].mxu0 %v13931_v0  ;;  %v13939_v14 = vld [vmem:[#allocation170_spill] sm:$0xff] }
 0x2e3   :  { %6733 = vmatpush1.bf16.msra.mxu0 %v13932_v2  ;;  %2499 = vmatprep.mubr.f32.mxu0 %v13933_v50  ;;  %v13941_v2 = vld [vmem:[#allocation114_spill] sm:$0xff] }
 0x2e4   :  { %4930 = vmatmul.mubr.f32.vlgmr.msra.gmra.mrb[0].mxu1 %v13931_v0  ;;  %6735 = vmatprep.subr.bf16.mxu0 %v13934_v48  ;;  %v13943_v0 = vld [vmem:[#allocation115_spill] sm:$0xff]  ;;  %v13944_v48 = vld [vmem:[#allocation156_spill] sm:$0xff] }
 0x2e5   :  { %7501 = vmatpush1.bf16.msra.mxu1 %v13935_v6  ;;  %5067 = vmatprep.mubr.f32.mxu1 %v13933_v50  ;;  %v13945_v6 = vld [vmem:[#allocation213_spill] sm:$0xff] }
 0x2e6   :  { %7503 = vmatprep.subr.bf16.mxu1 %v13936_v29  ;;  %v13946_v50 = vld [vmem:[#allocation21_spill] sm:$0xff] }
 0x2e7   :  { %6737 = vmatpush1.bf16.msra.mxu0 %v13937_v31  ;;  %v13947_v29 = vld [vmem:[#allocation17_spill] sm:$0xff]  ;;  %v13948_v31 = vld [vmem:[#allocation28_spill] sm:$0xff] }
 0x2e8   :  { %6739 = vmatprep.subr.bf16.mxu0 %v13938_v25  ;;  %v13949_v25 = vld [vmem:[#allocation27_spill] sm:$0xff] }
 0x2e9   :  { %7505 = vmatpush1.bf16.msra.mxu1 %v13939_v14  ;;  %v13950_v14 = vld [vmem:[#allocation41_spill] sm:$0xff] }
 0x2ea   :  { %7507 = vmatprep.subr.bf16.mxu1 %v13940_v15  ;;  %v13951_v15 = vld [vmem:[#allocation33_spill] sm:$0xff] }
 0x2eb   :  { %6741 = vmatpush1.bf16.msra.mxu0 %v13941_v2  ;;  %v13952_v2 = vld [vmem:[#allocation39_spill] sm:$0xff] }
 0x2ec   :  { %6743 = vmatprep.subr.bf16.mxu0 %v13942_v11  ;;  %v13953_v11 = vld [vmem:[#allocation47_spill] sm:$0xff] }
 0x2ed   :  { %7509 = vmatpush1.bf16.msra.mxu1 %v13943_v0  ;;  %v13954_v0 = vld [vmem:[#allocation56_spill] sm:$0xff] }
 0x2ee   :  { %7511 = vmatprep.subr.bf16.mxu1 %v13944_v48  ;;  %v13955_v48 = vld [vmem:[#allocation54_spill] sm:$0xff] }
 0x2ef   :  { %6745 = vmatpush1.bf16.msra.mxu0 %v13945_v6  ;;  %v13956_v6 = vld [vmem:[#allocation60_spill] sm:$0xff] }
 0x2f0   :  { %6747 = vmatprep.subr.bf16.mxu0 %v13946_v50  ;;  %v13957_v50 = vld [vmem:[#allocation62_spill] sm:$0xff] }
 0x2f1   :  { %7513 = vmatpush1.bf16.msra.mxu1 %v13947_v29  ;;  %v13958_v29 = vld [vmem:[#allocation77_spill] sm:$0xff] }
 0x2f2   :  { %7515 = vmatprep.subr.bf16.mxu1 %v13948_v31  ;;  %v13959_v31 = vld [vmem:[#allocation69_spill] sm:$0xff] }
 0x2f3   :  { %6749 = vmatpush1.bf16.msra.mxu0 %v13949_v25  ;;  %v13960_v25 = vld [vmem:[#allocation75_spill] sm:$0xff] }
 0x2f4   :  { %6751 = vmatprep.subr.bf16.mxu0 %v13950_v14  ;;  %v13961_v14 = vld [vmem:[#allocation83_spill] sm:$0xff] }
 0x2f5   :  { %7517 = vmatpush1.bf16.msra.mxu1 %v13951_v15  ;;  %v13962_v15 = vld [vmem:[#allocation91_spill] sm:$0xff] }
 0x2f6   :  { %7519 = vmatprep.subr.bf16.mxu1 %v13952_v2  ;;  %v13963_v2 = vld [vmem:[#allocation90_spill] sm:$0xff] }
 0x2f7   :  { %6753 = vmatpush1.bf16.msra.mxu0 %v13953_v11  ;;  %v13964_v11 = vld [vmem:[#allocation96_spill] sm:$0xff] }
 0x2f8   :  { %6755 = vmatprep.subr.bf16.mxu0 %v13954_v0  ;;  %v13965_v0 = vld [vmem:[#allocation99_spill] sm:$0xff] }
 0x2f9   :  { %7521 = vmatpush1.bf16.msra.mxu1 %v13955_v48  ;;  %v13966_v48 = vld [vmem:[#allocation173_spill] sm:$0xff] }
 0x2fa   :  { %7523 = vmatprep.subr.bf16.mxu1 %v13956_v6  ;;  %v13967_v6 = vld [vmem:[#allocation141_spill] sm:$0xff] }
 0x2fb   :  { %6757 = vmatpush1.bf16.msra.mxu0 %v13957_v50  ;;  %v13968_v50 = vld [vmem:[#allocation177_spill] sm:$0xff] }
 0x2fc   :  { %6759 = vmatprep.subr.bf16.mxu0 %v13958_v29  ;;  %v13969_v29 = vld [vmem:[#allocation182_spill] sm:$0xff] }
 0x2fd   :  { %7525 = vmatpush1.bf16.msra.mxu1 %v13959_v31  ;;  %v13970_v31 = vld [vmem:[#allocation191_spill] sm:$0xff] }
 0x2fe   :  { %7527 = vmatprep.subr.bf16.mxu1 %v13960_v25  ;;  %v13971_v25 = vld [vmem:[#allocation186_spill] sm:$0xff] }
 0x2ff   :  { %6761 = vmatpush1.bf16.msra.mxu0 %v13961_v14  ;;  %v13972_v14 = vld [vmem:[#allocation195_spill] sm:$0xff] }
 0x300   :  { %6763 = vmatprep.subr.bf16.mxu0 %v13962_v15  ;;  %v13973_v15 = vld [vmem:[#allocation200_spill] sm:$0xff] }
 0x301   :  { %7529 = vmatpush1.bf16.msra.mxu1 %v13963_v2  ;;  %v13974_v2 = vld [vmem:[#allocation16_spill] sm:$0xff] }
 0x302   :  { %7531 = vmatprep.subr.bf16.mxu1 %v13964_v11  ;;  %v13975_v11 = vld [vmem:[#allocation205_spill] sm:$0xff] }
 0x303   :  { %6765 = vmatpush1.bf16.msra.mxu0 %v13965_v0  ;;  %v13976_v0 = vld [vmem:[#allocation210_spill] sm:$0xff] }
 0x304   :  { %6767 = vmatprep.subr.bf16.mxu0 %v13966_v48  ;;  %v13977_v48 = vld [vmem:[#allocation31_spill] sm:$0xff] }
 0x305   :  { %7533 = vmatpush1.bf16.msra.mxu1 %v13967_v6  ;;  %v13978_v6 = vld [vmem:[#allocation52_spill] sm:$0xff] }
 0x306   :  { %7535 = vmatprep.subr.bf16.mxu1 %v13968_v50  ;;  %v13979_v50 = vld [vmem:[#allocation38_spill] sm:$0xff] }
 0x307   :  { %6769 = vmatpush1.bf16.msra.mxu0 %v13969_v29  ;;  %v13980_v29 = vld [vmem:[#allocation59_spill] sm:$0xff] }
 0x308   :  { %6771 = vmatprep.subr.bf16.mxu0 %v13970_v31  ;;  %v13981_v31 = vld [vmem:[#allocation68_spill] sm:$0xff] }
 0x309   :  { %7537 = vmatpush1.bf16.msra.mxu1 %v13971_v25  ;;  %v13982_v25 = vld [vmem:[#allocation85_spill] sm:$0xff] }
 0x30a   :  { %7539 = vmatprep.subr.bf16.mxu1 %v13972_v14  ;;  %v13983_v14 = vld [vmem:[#allocation80_spill] sm:$0xff] }
 0x30b   :  { %6773 = vmatpush1.bf16.msra.mxu0 %v13973_v15  ;;  %v13984_v15 = vld [vmem:[#allocation100_spill] sm:$0xff] }
 0x30c   :  { %6775 = vmatprep.subr.bf16.mxu0 %v13974_v2  ;;  %v13985_v2 = vld [vmem:[#allocation109_spill] sm:$0xff] }
 0x30d   :  { %7541 = vmatpush1.bf16.msra.mxu1 %v13975_v11  ;;  %v13986_v11 = vld [vmem:[#allocation133_spill] sm:$0xff] }
 0x30e   :  { %7543 = vmatprep.subr.bf16.mxu1 %v13976_v0  ;;  %v13987_v0 = vld [vmem:[#allocation118_spill] sm:$0xff] }
 0x30f   :  { %6777 = vmatpush1.bf16.msra.mxu0 %v13977_v48  ;;  %v13988_v48 = vld [vmem:[#allocation142_spill] sm:$0xff] }
 0x310   :  { %6779 = vmatprep.subr.bf16.mxu0 %v13978_v6  ;;  %v13989_v6 = vld [vmem:[#allocation152_spill] sm:$0xff] }
 0x311   :  { %7545 = vmatpush1.bf16.msra.mxu1 %v13979_v50  ;;  %v13990_v50 = vld [vmem:[#allocation166_spill] sm:$0xff] }
 0x312   :  { %7547 = vmatprep.subr.bf16.mxu1 %v13980_v29 }
 0x313   :  { %6781 = vmatpush1.bf16.msra.mxu0 %v13981_v31  ;;  %v13991_v31 = vand.u32 4294901760, %v13800_v53  ;;  %v14000_v53 = vand.u32 4294901760, %v13806_v57  ;;  %v14008_v57 = vand.u32 4294901760, %v13813_v59  ;;  %v14020_v59 = vld [vmem:[#allocation108_spill] sm:$0xff] }
 0x314   :  { %6783 = vmatprep.subr.bf16.mxu0 %v13982_v25  ;;  %v13992_v25 = vand.u32 4294901760, %v13801_v13  ;;  %v14001_v13 = vand.u32 4294901760, %v13807_v18  ;;  %v14009_v18 = vld [vmem:[#allocation165_spill] sm:$0xff] }
 0x315   :  { %7549 = vmatpush1.bf16.msra.mxu1 %v13983_v14  ;;  %v13993_v14 = vld [vmem:[#allocation157_spill] sm:$0xff] }
 0x316   :  { %7551 = vmatprep.subr.bf16.mxu1 %v13984_v15  ;;  %v6794_v29 = vpack.c.bf16 %v13992_v25, %v13991_v31  ;;  %v13994_v15 = vld [vmem:[#allocation176_spill] sm:$0xff]  ;;  %v6798_v31 = vpack.c.bf16 %v14001_v13, %v14000_v53  ;;  %v14002_v25 = vld [vmem:[#allocation193_spill] sm:$0xff] }
 0x317   :  { %6785 = vmatpush1.bf16.msra.mxu0 %v13985_v2  ;;  %v13995_v2 = vand.u32 4294901760, %v13802_v44  ;;  %v14003_v44 = vand.u32 4294901760, %v13808_v35  ;;  %v14011_v53 = vld [vmem:[#allocation76_spill] sm:$0xff]  ;;  %v14012_v35 = vld [vmem:[#allocation103_spill] sm:$0xff] }
 0x318   :  { %6787 = vmatprep.subr.bf16.mxu0 %v13986_v11  ;;  %v13996_v11 = vand.u32 4294901760, %v13803_v34  ;;  %v14004_v34 = vand.u32 4294901760, %v13809_v46  ;;  %v14013_v46 = vand.u32 4294901760, %v14012_v35  ;;  %v14026_v35 = vld [vmem:[#allocation111_spill] sm:$0xff] }
 0x319   :  { %7553 = vmatpush1.bf16.msra.mxu1 %v13987_v0 }
 0x31a   :  { %7555 = vmatprep.subr.bf16.mxu1 %v13988_v48  ;;  %v7562_v0 = vpack.c.bf16 %v13996_v11, %v13995_v2  ;;  %v7564_v2 = vpack.c.bf16 %v14004_v34, %v14003_v44  ;;  %v14005_v11 = vld [vmem:[#allocation216_spill] sm:$0xff] }
 0x31b   :  { %6789 = vmatpush1.bf16.msra.mxu0 %v13989_v6  ;;  %v13998_v6 = vand.u32 4294901760, %v13804_v54  ;;  %v14006_v54 = vand.u32 4294901760, %v13811_v26  ;;  %v14016_v26 = vld [vmem:[#allocation171_spill] sm:$0xff]  ;;  %v14018_v34 = vld [vmem:[#allocation212_spill] sm:$0xff] }
 0x31c   :  { %6791 = vmatprep.subr.bf16.mxu0 %v13990_v50  ;;  %v13999_v50 = vand.u32 4294901760, %v13805_v40 }
 0x31d   :  { %7557 = vmatpush1.bf16.msra.mxu1 %v13993_v14 }
 0x31e   :  { %7559 = vmatprep.subr.bf16.mxu1 %v13994_v15  ;;  %v6796_v48 = vpack.c.bf16 %v13999_v50, %v13998_v6  ;;  %v14007_v6 = vand.u32 4294901760, %v13812_v1  ;;  %v14017_v1 = vand.u32 4294901760, %v14016_v26  ;;  %v14030_v26 = vld [vmem:[#allocation151_spill] sm:$0xff] }
 0x31f   :  { %6793 = vmatpush1.bf16.msra.mxu0 %v13997_v21 }
 0x320   :  { %6795 = vmatprep.subr.bf16.mxu0 %v6794_v29  ;;  %v7566_v40 = vpack.c.bf16 %v14007_v6, %v14006_v54  ;;  %v14010_v29 = vand.u32 4294901760, %v14009_v18  ;;  %v14021_v6 = vand.u32 4294901760, %v14020_v59 }
 0x321   :  { %7561 = vmatpush1.bf16.msra.mxu1 %v14002_v25  ;;  %v14034_v25 = vld [vmem:[#allocation149_spill] sm:$0xff] }
 0x322   :  { %7563 = vmatprep.subr.bf16.mxu1 %v7562_v0  ;;  %2503 = vmatmul.mubr.f32.vlgmr.msra.gmra.mrb[0].mxu0 %v14005_v11  ;;  %v6800_v50 = vpack.c.bf16 %v14010_v29, %v14008_v57  ;;  %v14014_v0 = vld [vmem:[#allocation105_spill] sm:$0xff]  ;;  %v14035_v59 = vand.u32 4294901760, %v14034_v25  ;;  %v14048_v25 = vld [vmem:[#allocation18_spill] sm:$0xff] }
 0x323   :  { %6797 = vmatpush1.bf16.msra.mxu0 %v6796_v48  ;;  %2766 = vmatprep.mubr.f32.mxu0 %v14011_v53  ;;  %v14015_v13 = vand.u32 4294901760, %v14014_v0  ;;  %v14019_v48 = vand.u32 4294901760, %v14018_v34  ;;  %v14022_v57 = vld [vmem:[#allocation113_spill] sm:$0xff]  ;;  %v14027_v0 = vand.u32 4294901760, %v14026_v35  ;;  %v14031_v34 = vand.u32 4294901760, %v14030_v26  ;;  %v14042_v35 = vld [vmem:[#allocation214_spill] sm:$0xff] }
 0x324   :  { %5071 = vmatmul.mubr.f32.vlgmr.msra.gmra.mrb[0].mxu1 %v14005_v11  ;;  %6799 = vmatprep.subr.bf16.mxu0 %v6798_v31  ;;  %v14023_v18 = vand.u32 4294901760, %v14022_v57  ;;  %v14024_v31 = vld [vmem:[#allocation110_spill] sm:$0xff]  ;;  %v14046_v26 = vld [vmem:[#allocation24_spill] sm:$0xff] }
 0x325   :  { %v6802_v44 = vpack.c.bf16 %v14015_v13, %v14013_v46  ;;  %7565 = vmatpush1.bf16.msra.mxu1 %v7564_v2  ;;  %v7568_v54 = vpack.c.bf16 %v14019_v48, %v14017_v1  ;;  %5334 = vmatprep.mubr.f32.mxu1 %v14011_v53  ;;  %v14025_v29 = vand.u32 4294901760, %v14024_v31  ;;  %v14028_v2 = vld [vmem:[#allocation147_spill] sm:$0xff]  ;;  %v14032_v48 = vld [vmem:[#allocation117_spill] sm:$0xff]  ;;  %v14038_v57 = vld [vmem:[#allocation158_spill] sm:$0xff] }
 0x326   :  { %7567 = vmatprep.subr.bf16.mxu1 %v7566_v40  ;;  %v7570_v11 = vpack.c.bf16 %v14023_v18, %v14021_v6  ;;  %v14029_v13 = vand.u32 4294901760, %v14028_v2  ;;  %v14033_v40 = vand.u32 4294901760, %v14032_v48  ;;  %v14036_v6 = vld [vmem:[#allocation155_spill] sm:$0xff]  ;;  %v14039_v18 = vand.u32 4294901760, %v14038_v57  ;;  %v14054_v57 = vld [vmem:[#allocation26_spill] sm:$0xff] }
 0x327   :  { %6801 = vmatpush1.bf16.msra.mxu0 %v6800_v50  ;;  %v6804_v46 = vpack.c.bf16 %v14027_v0, %v14025_v29  ;;  %v14037_v50 = vand.u32 4294901760, %v14036_v6  ;;  %v14040_v29 = vld [vmem:[#allocation167_spill] sm:$0xff]  ;;  %v14043_v0 = vand.u32 4294901760, %v14042_v35  ;;  %v14058_v35 = vld [vmem:[#allocation32_spill] sm:$0xff] }
 0x328   :  { %6803 = vmatprep.subr.bf16.mxu0 %v6802_v44  ;;  %v6806_v1 = vpack.c.bf16 %v14031_v34, %v14029_v13  ;;  %v7572_v21 = vpack.c.bf16 %v14035_v59, %v14033_v40  ;;  %v14041_v44 = vand.u32 4294901760, %v14040_v29  ;;  %v14044_v13 = vld [vmem:[#allocation23_spill] sm:$0xff]  ;;  %v14047_v34 = vand.u32 4294901760, %v14046_v26  ;;  %v14062_v26 = vld [vmem:[#allocation37_spill] sm:$0xff] }
 0x329   :  { %7569 = vmatpush1.bf16.msra.mxu1 %v7568_v54  ;;  %v7574_v31 = vpack.c.bf16 %v14039_v18, %v14037_v50  ;;  %v14045_v54 = vand.u32 4294901760, %v14044_v13  ;;  %v14050_v40 = vld [vmem:[#allocation19_spill] sm:$0xff]  ;;  %v14052_v50 = vld [vmem:[#allocation30_spill] sm:$0xff]  ;;  %v14055_v18 = vand.u32 4294901760, %v14054_v57  ;;  %v14070_v57 = vld [vmem:[#allocation45_spill] sm:$0xff] }
 0x32a   :  { %7571 = vmatprep.subr.bf16.mxu1 %v7570_v11  ;;  %v6808_v2 = vpack.c.bf16 %v14043_v0, %v14041_v44  ;;  %v14049_v11 = vand.u32 4294901760, %v14048_v25  ;;  %v14051_v59 = vand.u32 4294901760, %v14050_v40  ;;  %v14056_v44 = vld [vmem:[#allocation215_spill] sm:$0xff]  ;;  %v14059_v0 = vand.u32 4294901760, %v14058_v35  ;;  %v14066_v40 = vld [vmem:[#allocation36_spill] sm:$0xff]  ;;  %v14074_v35 = vld [vmem:[#allocation53_spill] sm:$0xff] }
 0x32b   :  { %6805 = vmatpush1.bf16.msra.mxu0 %v6804_v46  ;;  %v6810_v48 = vpack.c.bf16 %v14047_v34, %v14045_v54  ;;  %v14053_v46 = vand.u32 4294901760, %v14052_v50  ;;  %v14060_v54 = vld [vmem:[#allocation42_spill] sm:$0xff]  ;;  %v14063_v34 = vand.u32 4294901760, %v14062_v26 }
 0x32c   :  { %6807 = vmatprep.subr.bf16.mxu0 %v6806_v1  ;;  %v7576_v6 = vpack.c.bf16 %v14051_v59, %v14049_v11  ;;  %v14057_v1 = vand.u32 4294901760, %v14056_v44  ;;  %v14064_v11 = vld [vmem:[#allocation34_spill] sm:$0xff]  ;;  %v14067_v59 = vand.u32 4294901760, %v14066_v40  ;;  %v14082_v40 = vld [vmem:[#allocation51_spill] sm:$0xff] }
 0x32d   :  { %7573 = vmatpush1.bf16.msra.mxu1 %v7572_v21  ;;  %v7578_v29 = vpack.c.bf16 %v14055_v18, %v14053_v46  ;;  %v14061_v21 = vand.u32 4294901760, %v14060_v54  ;;  %v14068_v46 = vld [vmem:[#allocation44_spill] sm:$0xff]  ;;  %v14071_v18 = vand.u32 4294901760, %v14070_v57  ;;  %v14078_v26 = vld [vmem:[#allocation58_spill] sm:$0xff] }
 0x32e   :  { %7575 = vmatprep.subr.bf16.mxu1 %v7574_v31  ;;  %v6812_v13 = vpack.c.bf16 %v14059_v0, %v14057_v1  ;;  %v14065_v31 = vand.u32 4294901760, %v14064_v11  ;;  %v14072_v1 = vld [vmem:[#allocation48_spill] sm:$0xff]  ;;  %v14075_v0 = vand.u32 4294901760, %v14074_v35  ;;  %v14086_v57 = vld [vmem:[#allocation66_spill] sm:$0xff]  ;;  %v14090_v35 = vld [vmem:[#allocation67_spill] sm:$0xff] }
 0x32f   :  { %6809 = vmatpush1.bf16.msra.mxu0 %v6808_v2  ;;  %v6814_v25 = vpack.c.bf16 %v14063_v34, %v14061_v21  ;;  %v14069_v2 = vand.u32 4294901760, %v14068_v46  ;;  %v14076_v21 = vld [vmem:[#allocation57_spill] sm:$0xff]  ;;  %v14079_v34 = vand.u32 4294901760, %v14078_v26  ;;  %v14094_v26 = vld [vmem:[#allocation74_spill] sm:$0xff] }
 0x330   :  { %6811 = vmatprep.subr.bf16.mxu0 %v6810_v48  ;;  %v7580_v50 = vpack.c.bf16 %v14067_v59, %v14065_v31  ;;  %v14073_v48 = vand.u32 4294901760, %v14072_v1  ;;  %v14080_v31 = vld [vmem:[#allocation50_spill] sm:$0xff]  ;;  %v14083_v59 = vand.u32 4294901760, %v14082_v40 }
 0x331   :  { %7577 = vmatpush1.bf16.msra.mxu1 %v7576_v6  ;;  %v7582_v44 = vpack.c.bf16 %v14071_v18, %v14069_v2  ;;  %v14077_v6 = vand.u32 4294901760, %v14076_v21  ;;  %v14084_v2 = vld [vmem:[#allocation65_spill] sm:$0xff]  ;;  %v14087_v18 = vand.u32 4294901760, %v14086_v57 }
 0x332   :  { %7579 = vmatprep.subr.bf16.mxu1 %v7578_v29  ;;  %v6816_v54 = vpack.c.bf16 %v14075_v0, %v14073_v48  ;;  %v14081_v29 = vand.u32 4294901760, %v14080_v31  ;;  %v14088_v48 = vld [vmem:[#allocation63_spill] sm:$0xff]  ;;  %v14091_v0 = vand.u32 4294901760, %v14090_v35 }
 0x333   :  { %6813 = vmatpush1.bf16.msra.mxu0 %v6812_v13  ;;  %v6818_v11 = vpack.c.bf16 %v14079_v34, %v14077_v6  ;;  %v14085_v13 = vand.u32 4294901760, %v14084_v2  ;;  %v14092_v6 = vld [vmem:[#allocation78_spill] sm:$0xff]  ;;  %v14095_v34 = vand.u32 4294901760, %v14094_v26  ;;  %v14100_v2 = vld [vmem:[#allocation81_spill] sm:$0xff] }
 0x334   :  { %6815 = vmatprep.subr.bf16.mxu0 %v6814_v25  ;;  %v7584_v46 = vpack.c.bf16 %v14083_v59, %v14081_v29  ;;  %v14089_v25 = vand.u32 4294901760, %v14088_v48  ;;  %v14097_v29 = vld [vmem:[#allocation72_spill] sm:$0xff]  ;;  %v14104_v48 = vld [vmem:[#allocation89_spill] sm:$0xff]  ;;  %v14110_v26 = vld [vmem:[#allocation86_spill] sm:$0xff] }
 0x335   :  { %7581 = vmatpush1.bf16.msra.mxu1 %v7580_v50  ;;  %v7586_v1 = vpack.c.bf16 %v14087_v18, %v14085_v13  ;;  %v14093_v50 = vand.u32 4294901760, %v14092_v6  ;;  %v14098_v40 = vand.u32 4294901760, %v14097_v29  ;;  %v14101_v13 = vand.u32 4294901760, %v14100_v2  ;;  %v14102_v18 = vld [vmem:[#allocation84_spill] sm:$0xff]  ;;  %v14108_v6 = vld [vmem:[#allocation95_spill] sm:$0xff]  ;;  %v14115_v29 = vld [vmem:[#allocation102_spill] sm:$0xff] }
 0x336   :  { %7583 = vmatprep.subr.bf16.mxu1 %v7582_v44  ;;  %v6820_v21 = vpack.c.bf16 %v14091_v0, %v14089_v25  ;;  %v14096_v44 = vand.u32 4294901760, %v13858_v24  ;;  %v14105_v25 = vand.u32 4294901760, %v14104_v48  ;;  %v14106_v0 = vld [vmem:[#allocation93_spill] sm:$0xff]  ;;  %v14109_v24 = vand.u32 4294901760, %v14108_v6  ;;  %v14117_v2 = vld [vmem:[#allocation134_spill] sm:$0xff] }
 0x337   :  { %6817 = vmatpush1.bf16.msra.mxu0 %v6816_v54  ;;  %v6822_v31 = vpack.c.bf16 %v14095_v34, %v14093_v50  ;;  %v14099_v54 = vand.u32 4294901760, %v13860_v41  ;;  %v14112_v34 = vld [vmem:[#allocation87_spill] sm:$0xff]  ;;  %v14121_v48 = vld [vmem:[#allocation174_spill] sm:$0xff] }
 0x338   :  { %6819 = vmatprep.subr.bf16.mxu0 %v6818_v11  ;;  %v7588_v59 = vpack.c.bf16 %v14098_v40, %v14096_v44  ;;  %v14103_v11 = vand.u32 4294901760, %v14102_v18  ;;  %v14113_v41 = vand.u32 4294901760, %v14112_v34  ;;  %v14116_v40 = vand.u32 4294901760, %v14115_v29  ;;  %v14125_v6 = vld [vmem:[#allocation150_spill] sm:$0xff]  ;;  %v14131_v34 = vld [vmem:[#allocation180_spill] sm:$0xff]  ;;  %v14133_v29 = vld [vmem:[#allocation183_spill] sm:$0xff] }
 0x339   :  { %7585 = vmatpush1.bf16.msra.mxu1 %v7584_v46  ;;  %v7590_v57 = vpack.c.bf16 %v14101_v13, %v14099_v54  ;;  %v14107_v46 = vand.u32 4294901760, %v14106_v0  ;;  %v14119_v13 = vld [vmem:[#allocation135_spill] sm:$0xff] }
 0x33a   :  { %7587 = vmatprep.subr.bf16.mxu1 %v7586_v1  ;;  %v6824_v35 = vpack.c.bf16 %v14105_v25, %v14103_v11  ;;  %v14111_v1 = vand.u32 4294901760, %v14110_v26  ;;  %v14120_v18 = vand.u32 4294901760, %v14119_v13  ;;  %v14123_v25 = vld [vmem:[#allocation175_spill] sm:$0xff]  ;;  %v14138_v13 = vld [vmem:[#allocation194_spill] sm:$0xff] }
 0x33b   :  { %6821 = vmatpush1.bf16.msra.mxu0 %v6820_v21  ;;  %v6826_v50 = vpack.c.bf16 %v14109_v24, %v14107_v46  ;;  %v14114_v21 = vand.u32 4294901760, %v13868_v3  ;;  %v14124_v0 = vand.u32 4294901760, %v14123_v25  ;;  %v14127_v24 = vld [vmem:[#allocation153_spill] sm:$0xff] }
 0x33c   :  { %6823 = vmatprep.subr.bf16.mxu0 %v6822_v31  ;;  %v7592_v44 = vpack.c.bf16 %v14113_v41, %v14111_v1  ;;  %v14118_v31 = vand.u32 4294901760, %v14117_v2  ;;  %v14128_v3 = vand.u32 4294901760, %v14127_v24  ;;  %v14129_v1 = vld [vmem:[#allocation179_spill] sm:$0xff]  ;;  %v14132_v41 = vand.u32 4294901760, %v14131_v34  ;;  %v14152_v34 = vld [vmem:[#allocation25_spill] sm:$0xff] }
 0x33d   :  { %7589 = vmatpush1.bf16.msra.mxu1 %v7588_v59  ;;  %v7594_v54 = vpack.c.bf16 %v14116_v40, %v14114_v21  ;;  %v14122_v59 = vand.u32 4294901760, %v14121_v48  ;;  %v14135_v40 = vld [vmem:[#allocation185_spill] sm:$0xff] }
 0x33e   :  { %7591 = vmatprep.subr.bf16.mxu1 %v7590_v57  ;;  %v6828_v11 = vpack.c.bf16 %v14120_v18, %v14118_v31  ;;  %v14126_v57 = vand.u32 4294901760, %v14125_v6  ;;  %v14136_v2 = vand.u32 4294901760, %v14135_v40  ;;  %v14139_v18 = vand.u32 4294901760, %v14138_v13  ;;  %v14159_v40 = vld [vmem:[#allocation55_spill] sm:$0xff] }
 0x33f   :  { %6825 = vmatpush1.bf16.msra.mxu0 %v6824_v35  ;;  %v6830_v46 = vpack.c.bf16 %v14124_v0, %v14122_v59  ;;  %v14130_v35 = vand.u32 4294901760, %v14129_v1  ;;  %v14141_v59 = vld [vmem:[#allocation189_spill] sm:$0xff]  ;;  %v14144_v6 = vand.u32 4294901760, %v13891_v38  ;;  %v14149_v1 = vand.u32 4294901760, %v13901_v8 }
 0x340   :  { %6827 = vmatprep.subr.bf16.mxu0 %v6826_v50  ;;  %v7596_v26 = vpack.c.bf16 %v14128_v3, %v14126_v57  ;;  %v14134_v50 = vand.u32 4294901760, %v14133_v29  ;;  %v14142_v25 = vand.u32 4294901760, %v14141_v59  ;;  %v14147_v3 = vand.u32 4294901760, %v13898_v10  ;;  %v14156_v29 = vld [vmem:[#allocation40_spill] sm:$0xff] }
 0x341   :  { %7593 = vmatpush1.bf16.msra.mxu1 %v7592_v44  ;;  %v7598_v21 = vpack.c.bf16 %v14132_v41, %v14130_v35  ;;  %v14137_v44 = vand.u32 4294901760, %v13886_v33  ;;  %v14146_v33 = vand.u32 4294901760, %v13894_v49  ;;  %v14151_v38 = vand.u32 4294901760, %v13903_v58  ;;  %v14154_v49 = vld [vmem:[#allocation35_spill] sm:$0xff] }
 0x342   :  { %7595 = vmatprep.subr.bf16.mxu1 %v7594_v54  ;;  %v6832_v31 = vpack.c.bf16 %v14136_v2, %v14134_v50  ;;  %v14140_v54 = vand.u32 4294901760, %v13889_v60  ;;  %v14148_v60 = vand.u32 4294901760, %v13897_v19  ;;  %v14157_v10 = vand.u32 4294901760, %v14156_v29  ;;  %v14197_v29 = vld [vmem:[#allocation201_spill] sm:$0xff] }
 0x343   :  { %6829 = vmatpush1.bf16.msra.mxu0 %v6828_v11  ;;  %v6834_v48 = vpack.c.bf16 %v14139_v18, %v14137_v44  ;;  %v14143_v11 = vand.u32 4294901760, %v13892_v37  ;;  %v14150_v37 = vand.u32 4294901760, %v13900_v5  ;;  %v14158_v19 = vand.u32 4294901760, %v13727_v28 }
 0x344   :  { %6831 = vmatprep.subr.bf16.mxu0 %v6830_v46  ;;  %v7600_v0 = vpack.c.bf16 %v14142_v25, %v14140_v54  ;;  %v14145_v46 = vand.u32 4294901760, %v13895_v43  ;;  %v14153_v43 = vand.u32 4294901760, %v14152_v34  ;;  %v14160_v8 = vand.u32 4294901760, %v14159_v40  ;;  %v14201_v40 = vld [vmem:[#allocation119_spill] sm:$0xff] }
 0x345   :  { %7597 = vmatpush1.bf16.msra.mxu1 %v7596_v26  ;;  %v7602_v57 = vpack.c.bf16 %v14144_v6, %v14143_v11  ;;  %v6838_v26 = vpack.c.bf16 %v14148_v60, %v14147_v3  ;;  %v7604_v35 = vpack.c.bf16 %v14150_v37, %v14149_v1  ;;  %v14161_v5 = vand.u32 4294901760, %v13725_v39  ;;  %v14181_v3 = vld [vmem:[#allocation148_spill] sm:$0xff]  ;;  %v14186_v1 = vld [vmem:[#allocation169_spill] sm:$0xff] }
 0x346   :  { %7599 = vmatprep.subr.bf16.mxu1 %v7598_v21  ;;  %v6836_v24 = vpack.c.bf16 %v14146_v33, %v14145_v46  ;;  %v7606_v41 = vpack.c.bf16 %v14153_v43, %v14151_v38  ;;  %v14155_v21 = vand.u32 4294901760, %v14154_v49  ;;  %v6842_v2 = vpack.c.bf16 %v14160_v8, %v14158_v19  ;;  %v14195_v49 = vld [vmem:[#allocation197_spill] sm:$0xff]  ;;  %v14204_v8 = vld [vmem:[#allocation126_spill] sm:$0xff] }
 0x347   :  { %6833 = vmatpush1.bf16.msra.mxu0 %v6832_v31  ;;  %v14162_v31 = vld [vmem:[#allocation46_spill] sm:$0xff]  ;;  %v14164_v13 = vand.u32 4294901760, %v13729_v55  ;;  %v14165_v18 = vand.u32 4294901760, %v13730_v30  ;;  %v14166_v54 = vand.u32 4294901760, %v13909_v52  ;;  %v14167_v28 = vand.u32 4294901760, %v13732_v36 }
 0x348   :  { %6835 = vmatprep.subr.bf16.mxu0 %v6834_v48  ;;  %v6840_v50 = vpack.c.bf16 %v14157_v10, %v14155_v21  ;;  %v14163_v58 = vand.u32 4294901760, %v14162_v31  ;;  %v14168_v25 = vand.u32 4294901760, %v13911_v7  ;;  %v14169_v39 = vand.u32 4294901760, %v13736_v47  ;;  %v14207_v31 = vld [vmem:[#allocation144_spill] sm:$0xff] }
 0x349   :  { %7601 = vmatpush1.bf16.msra.mxu1 %v7600_v0  ;;  %v7610_v48 = vpack.c.bf16 %v14165_v18, %v14164_v13  ;;  %v6844_v59 = vpack.c.bf16 %v14167_v28, %v14166_v54  ;;  %v14170_v11 = vand.u32 4294901760, %v13914_v27  ;;  %v14171_v55 = vand.u32 4294901760, %v13913_v17  ;;  %v14210_v13 = vld [vmem:[#allocation170_spill] sm:$0xff]  ;;  %v14211_v18 = vld [vmem:[#allocation107_spill] sm:$0xff] }
 0x34a   :  { %7603 = vmatprep.subr.bf16.mxu1 %v7602_v57  ;;  %v7608_v44 = vpack.c.bf16 %v14163_v58, %v14161_v5  ;;  %v6846_v0 = vpack.c.bf16 %v14169_v39, %v14168_v25  ;;  %v14172_v30 = vand.u32 4294901760, %v13916_v61  ;;  %v14173_v52 = vand.u32 4294901760, %v13780_v22  ;;  %v14206_v5 = vld [vmem:[#allocation131_spill] sm:$0xff]  ;;  %v14213_v54 = vld [vmem:[#allocation146_spill] sm:$0xff]  ;;  %v14216_v25 = vld [vmem:[#allocation213_spill] sm:$0xff] }
 0x34b   :  { %6837 = vmatpush1.bf16.msra.mxu0 %v6836_v24  ;;  %v7612_v6 = vpack.c.bf16 %v14171_v55, %v14170_v11  ;;  %v14174_v36 = vand.u32 4294901760, %v13783_v45  ;;  %v14175_v7 = vand.u32 4294901760, %v13784_v62  ;;  %v14176_v47 = vand.u32 4294901760, %v13744_v9  ;;  %v14208_v58 = vld [vmem:[#allocation163_spill] sm:$0xff]  ;;  %v14218_v39 = vld [vmem:[#allocation17_spill] sm:$0xff] }
 0x34c   :  { %6839 = vmatprep.subr.bf16.mxu0 %v6838_v26  ;;  %v7614_v57 = vpack.c.bf16 %v14173_v52, %v14172_v30  ;;  %v14177_v27 = vand.u32 4294901760, %v13792_v42  ;;  %v14178_v17 = vand.u32 4294901760, %v13742_v4  ;;  %v14179_v61 = vand.u32 4294901760, %v13743_v23  ;;  %v14214_v28 = vld [vmem:[#allocation115_spill] sm:$0xff]  ;;  %v14221_v55 = vld [vmem:[#allocation41_spill] sm:$0xff] }
 0x34d   :  { %7605 = vmatpush1.bf16.msra.mxu1 %v7604_v35  ;;  %v6848_v46 = vpack.c.bf16 %v14175_v7, %v14174_v36  ;;  %v14180_v22 = vand.u32 4294901760, %v13794_v16  ;;  %v14182_v45 = vand.u32 4294901760, %v14181_v3  ;;  %v14183_v62 = vand.u32 4294901760, %v13748_v63  ;;  %v14189_v35 = vld [vmem:[#allocation164_spill] sm:$0xff]  ;;  %v14220_v11 = vld [vmem:[#allocation27_spill] sm:$0xff]  ;;  %v14226_v36 = vld [vmem:[#allocation54_spill] sm:$0xff] }
 0x34e   :  { %7607 = vmatprep.subr.bf16.mxu1 %v7606_v41  ;;  %v6850_v33 = vpack.c.bf16 %v14177_v27, %v14176_v47  ;;  %v7616_v24 = vpack.c.bf16 %v14179_v61, %v14178_v17  ;;  %v14184_v9 = vand.u32 4294901760, %v13796_v56  ;;  %v14185_v42 = vand.u32 4294901760, %v13752_v12  ;;  %v14193_v56 = vld [vmem:[#allocation190_spill] sm:$0xff]  ;;  %v14223_v30 = vld [vmem:[#allocation39_spill] sm:$0xff]  ;;  %v14227_v7 = vld [vmem:[#allocation60_spill] sm:$0xff] }
 0x34f   :  { %6841 = vmatpush1.bf16.msra.mxu0 %v6840_v50  ;;  %v7618_v60 = vpack.c.bf16 %v14182_v45, %v14180_v22  ;;  %v14187_v4 = vand.u32 4294901760, %v14186_v1  ;;  %v14188_v23 = vand.u32 4294901760, %v13750_v51  ;;  %v14190_v16 = vand.u32 4294901760, %v14189_v35  ;;  %v14199_v51 = vld [vmem:[#allocation206_spill] sm:$0xff]  ;;  %v14224_v52 = vld [vmem:[#allocation47_spill] sm:$0xff]  ;;  %v14229_v47 = vld [vmem:[#allocation77_spill] sm:$0xff] }
 0x350   :  { %6843 = vmatprep.subr.bf16.mxu0 %v6842_v2  ;;  %v6852_v26 = vpack.c.bf16 %v14184_v9, %v14183_v62  ;;  %v14191_v34 = vand.u32 4294901760, %v13754_v32  ;;  %v14192_v63 = vand.u32 4294901760, %v13755_v20  ;;  %v14194_v41 = vand.u32 4294901760, %v14193_v56  ;;  %v14202_v32 = vld [vmem:[#allocation123_spill] sm:$0xff]  ;;  %v14203_v20 = vld [vmem:[#allocation178_spill] sm:$0xff]  ;;  %v14230_v27 = vld [vmem:[#allocation69_spill] sm:$0xff] }
 0x351   :  { %7609 = vmatpush1.bf16.msra.mxu1 %v7608_v44  ;;  %v6854_v37 = vpack.c.bf16 %v14187_v4, %v14185_v42  ;;  %v7620_v38 = vpack.c.bf16 %v14190_v16, %v14188_v23  ;;  %v14196_v12 = vand.u32 4294901760, %v14195_v49  ;;  %v14198_v10 = vand.u32 4294901760, %v14197_v29  ;;  %v14205_v2 = vld [vmem:[#allocation139_spill] sm:$0xff]  ;;  %v14209_v44 = vld [vmem:[#allocation98_spill] sm:$0xff]  ;;  %v14235_v22 = vld [vmem:[#allocation96_spill] sm:$0xff] }
 0x352   :  { %7611 = vmatprep.subr.bf16.mxu1 %v7610_v48  ;;  %v7622_v43 = vpack.c.bf16 %v14192_v63, %v14191_v34  ;;  %v14200_v50 = vand.u32 4294901760, %v14199_v51  ;;  %v14212_v48 = vld [vmem:[#allocation114_spill] sm:$0xff]  ;;  %v14232_v17 = vld [vmem:[#allocation83_spill] sm:$0xff]  ;;  %v14237_v45 = vld [vmem:[#allocation173_spill] sm:$0xff] }
 0x353   :  { %6845 = vmatpush1.bf16.msra.mxu0 %v6844_v59  ;;  %v6856_v21 = vpack.c.bf16 %v14196_v12, %v14194_v41  ;;  %v14215_v59 = vld [vmem:[#allocation156_spill] sm:$0xff]  ;;  %v14233_v61 = vld [vmem:[#allocation91_spill] sm:$0xff]  ;;  %v14239_v62 = vld [vmem:[#allocation177_spill] sm:$0xff] }
 0x354   :  { %6847 = vmatprep.subr.bf16.mxu0 %v6846_v0  ;;  %v7624_v19 = vpack.c.bf16 %v14200_v50, %v14198_v10  ;;  %v14219_v0 = vld [vmem:[#allocation28_spill] sm:$0xff]  ;;  %v14236_v3 = vld [vmem:[#allocation99_spill] sm:$0xff]  ;;  %v14240_v9 = vld [vmem:[#allocation182_spill] sm:$0xff] }
 0x355   :  { %7613 = vmatpush1.bf16.msra.mxu1 %v7612_v6  ;;  %v14222_v6 = vld [vmem:[#allocation33_spill] sm:$0xff]  ;;  %v14242_v42 = vld [vmem:[#allocation186_spill] sm:$0xff]  ;;  %v14243_v1 = vld [vmem:[#allocation195_spill] sm:$0xff] }
 0x356   :  { %7615 = vmatprep.subr.bf16.mxu1 %v7614_v57  ;;  %v14225_v57 = vld [vmem:[#allocation56_spill] sm:$0xff]  ;;  %v14246_v23 = vld [vmem:[#allocation205_spill] sm:$0xff]  ;;  %v14247_v35 = vld [vmem:[#allocation210_spill] sm:$0xff] }
 0x357   :  { %6849 = vmatpush1.bf16.msra.mxu0 %v6848_v46  ;;  %v14228_v46 = vld [vmem:[#allocation62_spill] sm:$0xff]  ;;  %v14244_v4 = vld [vmem:[#allocation200_spill] sm:$0xff]  ;;  %v14248_v16 = vld [vmem:[#allocation31_spill] sm:$0xff] }
 0x358   :  { %6851 = vmatprep.subr.bf16.mxu0 %v6850_v33  ;;  %v14231_v33 = vld [vmem:[#allocation75_spill] sm:$0xff]  ;;  %v14250_v34 = vld [vmem:[#allocation38_spill] sm:$0xff]  ;;  %v14253_v56 = vld [vmem:[#allocation85_spill] sm:$0xff] }
 0x359   :  { %7617 = vmatpush1.bf16.msra.mxu1 %v7616_v24  ;;  %v14234_v24 = vld [vmem:[#allocation90_spill] sm:$0xff]  ;;  %v14251_v63 = vld [vmem:[#allocation59_spill] sm:$0xff]  ;;  %v14254_v41 = vld [vmem:[#allocation80_spill] sm:$0xff] }
 0x35a   :  { %7619 = vmatprep.subr.bf16.mxu1 %v7618_v60  ;;  %v14238_v60 = vld [vmem:[#allocation141_spill] sm:$0xff]  ;;  %v14255_v49 = vld [vmem:[#allocation100_spill] sm:$0xff]  ;;  %v14258_v29 = vld [vmem:[#allocation118_spill] sm:$0xff] }
 0x35b   :  { %6853 = vmatpush1.bf16.msra.mxu0 %v6852_v26  ;;  %v14241_v26 = vld [vmem:[#allocation191_spill] sm:$0xff]  ;;  %v14256_v12 = vld [vmem:[#allocation109_spill] sm:$0xff]  ;;  %v14259_v10 = vld [vmem:[#allocation142_spill] sm:$0xff] }
 0x35c   :  { %6855 = vmatprep.subr.bf16.mxu0 %v6854_v37  ;;  %v14245_v37 = vld [vmem:[#allocation16_spill] sm:$0xff]  ;;  %v14261_v50 = vld [vmem:[#allocation166_spill] sm:$0xff] }
 0x35d   :  { %7621 = vmatpush1.bf16.msra.mxu1 %v7620_v38  ;;  %v14249_v38 = vld [vmem:[#allocation52_spill] sm:$0xff] }
 0x35e   :  { %7623 = vmatprep.subr.bf16.mxu1 %v7622_v43  ;;  %v14252_v43 = vld [vmem:[#allocation68_spill] sm:$0xff] }
 0x35f   :  { %6857 = vmatpush1.bf16.msra.mxu0 %v6856_v21  ;;  %v14257_v21 = vld [vmem:[#allocation133_spill] sm:$0xff]  ;;  %v14260_v51 = vld [vmem:[#allocation152_spill] sm:$0xff] }
 0x360   :  { %6859 = vmatprep.subr.bf16.mxu0 %v14201_v40  ;;  %v14263_v40 = vld [vmem:[#allocation193_spill] sm:$0xff] }
 0x361   :  { %7625 = vmatpush1.bf16.msra.mxu1 %v7624_v19  ;;  %v14262_v19 = vld [vmem:[#allocation188_spill] sm:$0xff] }
 0x362   :  { %7627 = vmatprep.subr.bf16.mxu1 %v14202_v32  ;;  %2768 = vmatmul.mubr.f32.vlgmr.msra.gmra.mrb[0].mxu0 %v14203_v20  ;;  %v7855_v32 = vmov 1966171168  }
 0x363   :  { %6861 = vmatpush1.bf16.msra.mxu0 %v14204_v8  ;;  %2903 = vmatprep.mubr.f32.mxu0 %v14011_v53  ;;  %v5486_v8 = vunpack.c.l.s4 %v7855_v32 }
 0x364   :  { %5336 = vmatmul.mubr.f32.vlgmr.msra.gmra.mrb[0].mxu1 %v14203_v20  ;;  %6863 = vmatprep.subr.bf16.mxu0 %v14205_v2 }
 0x365   :  { %7629 = vmatpush1.bf16.msra.mxu1 %v14206_v5  ;;  %5471 = vmatprep.mubr.f32.mxu1 %v14011_v53  ;;  %v14217_v53 = vld [vmem:[#allocation21_spill] sm:$0xff]  ;;  %v5487_v2 = vunpack.c.0.s8 %v5486_v8 }
 0x366   :  { %7631 = vmatprep.subr.bf16.mxu1 %v14207_v31  ;;  %v14264_v5 = vld [vmem:[#allocation13_spill] sm:$0xff] }
 0x367   :  { %6865 = vmatpush1.bf16.msra.mxu0 %v14208_v58  ;;  %v11501_v31 = vsub.s32 %v5487_v2, %v14264_v5 }
 0x368   :  { %6867 = vmatprep.subr.bf16.mxu0 %v14209_v44 }
 0x369   :  { %7633 = vmatpush1.bf16.msra.mxu1 %v14210_v13 }
 0x36a   :  { %7635 = vmatprep.subr.bf16.mxu1 %v14211_v18 }
 0x36b   :  { %6869 = vmatpush1.bf16.msra.mxu0 %v14212_v48 }
 0x36c   :  { %6871 = vmatprep.subr.bf16.mxu0 %v14213_v54 }
 0x36d   :  { %7637 = vmatpush1.bf16.msra.mxu1 %v14214_v28 }
 0x36e   :  { %7639 = vmatprep.subr.bf16.mxu1 %v14215_v59 }
 0x36f   :  { %6873 = vmatpush1.bf16.msra.mxu0 %v14216_v25 }
 0x370   :  { %6875 = vmatprep.subr.bf16.mxu0 %v14217_v53  ;;  %v14266_v53 = vld [vmem:[#allocation136_spill] sm:$0xff] }
 0x371   :  { %7641 = vmatpush1.bf16.msra.mxu1 %v14218_v39 }
 0x372   :  { %7643 = vmatprep.subr.bf16.mxu1 %v14219_v0  ;;  %v14267_v0 = vld [vmem:[#allocation15_spill] sm:$0xff] }
 0x373   :  { %6877 = vmatpush1.bf16.msra.mxu0 %v14220_v11 }
 0x374   :  { %6879 = vmatprep.subr.bf16.mxu0 %v14221_v55  ;;  %v14268_v55 = vld [vmem:[#allocation211_spill] sm:$0xff] }
 0x375   :  { %7645 = vmatpush1.bf16.msra.mxu1 %v14222_v6 }
 0x376   :  { %7647 = vmatprep.subr.bf16.mxu1 %v14223_v30  ;;  %v14269_v30 = vld [vmem:[#allocation14_spill] sm:$0xff] }
 0x377   :  { %6881 = vmatpush1.bf16.msra.mxu0 %v14224_v52 }
 0x378   :  { %6883 = vmatprep.subr.bf16.mxu0 %v14225_v57 }
 0x379   :  { %7649 = vmatpush1.bf16.msra.mxu1 %v14226_v36 }
 0x37a   :  { %7651 = vmatprep.subr.bf16.mxu1 %v14227_v7 }
 0x37b   :  { %6885 = vmatpush1.bf16.msra.mxu0 %v14228_v46 }
 0x37c   :  { %6887 = vmatprep.subr.bf16.mxu0 %v14229_v47 }
 0x37d   :  { %7653 = vmatpush1.bf16.msra.mxu1 %v14230_v27 }
 0x37e   :  { %7655 = vmatprep.subr.bf16.mxu1 %v14231_v33 }
 0x37f   :  { %6889 = vmatpush1.bf16.msra.mxu0 %v14232_v17 }
 0x380   :  { %6891 = vmatprep.subr.bf16.mxu0 %v14233_v61 }
 0x381   :  { %7657 = vmatpush1.bf16.msra.mxu1 %v14234_v24 }
 0x382   :  { %7659 = vmatprep.subr.bf16.mxu1 %v14235_v22 }
 0x383   :  { %6893 = vmatpush1.bf16.msra.mxu0 %v14236_v3 }
 0x384   :  { %6895 = vmatprep.subr.bf16.mxu0 %v14237_v45 }
 0x385   :  { %7661 = vmatpush1.bf16.msra.mxu1 %v14238_v60 }
 0x386   :  { %7663 = vmatprep.subr.bf16.mxu1 %v14239_v62 }
 0x387   :  { %6897 = vmatpush1.bf16.msra.mxu0 %v14240_v9 }
 0x388   :  { %6899 = vmatprep.subr.bf16.mxu0 %v14241_v26 }
 0x389   :  { %7665 = vmatpush1.bf16.msra.mxu1 %v14242_v42 }
 0x38a   :  { %7667 = vmatprep.subr.bf16.mxu1 %v14243_v1 }
 0x38b   :  { %6901 = vmatpush1.bf16.msra.mxu0 %v14244_v4 }
 0x38c   :  { %6903 = vmatprep.subr.bf16.mxu0 %v14245_v37 }
 0x38d   :  { %7669 = vmatpush1.bf16.msra.mxu1 %v14246_v23 }
 0x38e   :  { %7671 = vmatprep.subr.bf16.mxu1 %v14247_v35 }
 0x38f   :  { %6905 = vmatpush1.bf16.msra.mxu0 %v14248_v16 }
 0x390   :  { %6907 = vmatprep.subr.bf16.mxu0 %v14249_v38 }
 0x391   :  { %7673 = vmatpush1.bf16.msra.mxu1 %v14250_v34 }
 0x392   :  { %7675 = vmatprep.subr.bf16.mxu1 %v14251_v63 }
 0x393   :  { %6909 = vmatpush1.bf16.msra.mxu0 %v14252_v43 }
 0x394   :  { %6911 = vmatprep.subr.bf16.mxu0 %v14253_v56 }
 0x395   :  { %7677 = vmatpush1.bf16.msra.mxu1 %v14254_v41 }
 0x396   :  { %7679 = vmatprep.subr.bf16.mxu1 %v14255_v49 }
 0x397   :  { %6913 = vmatpush1.bf16.msra.mxu0 %v14256_v12 }
 0x398   :  { %6915 = vmatprep.subr.bf16.mxu0 %v14257_v21 }
 0x399   :  { %7681 = vmatpush1.bf16.msra.mxu1 %v14258_v29 }
 0x39a   :  { %7683 = vmatprep.subr.bf16.mxu1 %v14259_v10 }
 0x39b   :  { %6917 = vmatpush1.bf16.msra.mxu0 %v14260_v51 }
 0x39c   :  { %6919 = vmatprep.subr.bf16.mxu0 %v14261_v50 }
 0x39d   :  { %7685 = vmatpush1.bf16.msra.mxu1 %v13993_v14 }
 0x39e   :  { %7687 = vmatprep.subr.bf16.mxu1 %v13994_v15 }
 0x39f   :  { %6921 = vmatpush1.bf16.msra.mxu0 %v14262_v19 }
 0x3a1   :  { %7689 = vmatpush1.bf16.msra.mxu1 %v14263_v40 }
 0x3a2   :  { %2905 = vmatmul.mubr.f32.vlgmr.msra.gmra.mrb[0].mxu0 %v14203_v20 }
 0x3a4   :  { %5473 = vmatmul.mubr.f32.vlgmr.msra.gmra.mrb[0].mxu1 %v14203_v20 }
 0x475   :  { %v11503_v58 = vpop.f32.mrb[0].mxu0 }
 0x476   :  { %v11505_v44 = vpop.f32.mrb[1].mxu0 }
 0x477   :  { %v11507_v14 = vpop.f32.mrb[0].mxu1  ;;  %v5483_v15 = vcombine.low %v11503_v58, %v11505_v44 }
 0x478   :  { %v11511_v13 = vpop.f32.mrb[1].mxu1 }
 0x479   :  { %v5491_v18 = vrot.slane %v5483_v15, %v11501_v31  ;;  %v5484_v20 = vcombine.low %v11507_v14, %v11511_v13 }
 0x47b   :  { %v5498_v48 = vrot.slane %v5484_v20, %v11501_v31 }
 0x47d   :  { %v5499_v54 = vcombine.low %v5491_v18, %v5498_v48 }
 0x47f   :  { %v5506_v28 = vrot.slane %v5499_v54, %v11501_v31 }
 0x481   :  { %v5508_v25 = vsel %vm317_vm0, -1e+30, %v5506_v28 }
 0x482   :  { %v5521_v39 = vrot.slane %v5508_v25, %v14266_v53  ;;  %v5513_v11 = vrot.slane %v5508_v25, %v14267_v0  ;;  %v5525_v6 = vrot.slane %v5508_v25, %v14268_v55  ;;  %v5517_v52 = vrot.slane %v5508_v25, %v14269_v30 }
 0x484   :  { %5530 = vrot.lane.b32.xlu1 %v5521_v39, %s7856_s2  ;;  %5526 = vrot.lane.b32.xlu0 %v5513_v11, %s7856_s2 }
 0x488   :  { %5532 = vrot.lane.b32.xlu1 %v5525_v6, %s7856_s2  ;;  %5528 = vrot.lane.b32.xlu0 %v5517_v52, %s7856_s2 }
 0x4f6   :  { %v5531_v57 = vpop.permute.xlu1 %5530  ;;  %v5527_v36 = vpop.permute.xlu0 %5526 }
 0x4f7   :  { %v5539_v47 = vsel %vm5534_vm1, -1e+30, %v5527_v36 }
 0x4fa   :  { %v5533_v7 = vpop.permute.xlu1 %5532  ;;  %v5529_v46 = vpop.permute.xlu0 %5528 }
 0x4fb   :  { %v5537_v27 = vsel %vm5534_vm1, %v5531_v57, %v5533_v7  ;;  %v5535_v33 = vsel %vm5534_vm1, %v5527_v36, %v5529_v46  ;;  %v5536_v17 = vsel %vm5534_vm1, %v5529_v46, %v5531_v57 }
 0x4fc   :  { %v5541_v61 = vcombine.low %v5539_v47, %v5535_v33  ;;  %v5542_v24 = vcombine.low %v5536_v17, %v5537_v27 }
 0x4fe   :  { %v5549_v22 = vrot.slane %v5541_v61, %v11501_v31  ;;  %v5556_v3 = vrot.slane %v5542_v24, %v11501_v31 }
 0x500   :  { %v5557_v45 = vcombine.low %v5549_v22, %v5556_v3 }
 0x502   :  { %v5564_v60 = vrot.slane %v5557_v45, %v11501_v31 }
 0x504   :  { %v5566_v62 = vmax.f32 %v5508_v25, %v5564_v60 }
 0x506   :  { %v5575_v9 = vrot.slane %v5566_v62, %v14269_v30  ;;  %v5571_v26 = vrot.slane %v5566_v62, %v14267_v0  ;;  %v5583_v42 = vrot.slane %v5566_v62, %v14268_v55  ;;  %v5579_v1 = vrot.slane %v5566_v62, %v14266_v53 }
 0x508   :  { %5586 = vrot.lane.b32.xlu1 %v5575_v9, %s7857_s21  ;;  %5584 = vrot.lane.b32.xlu0 %v5571_v26, %s7857_s21 }
 0x50c   :  { %5590 = vrot.lane.b32.xlu1 %v5583_v42, %s7857_s21  ;;  %5588 = vrot.lane.b32.xlu0 %v5579_v1, %s7857_s21 }
 0x57a   :  { %v5587_v4 = vpop.permute.xlu1 %5586  ;;  %v5585_v37 = vpop.permute.xlu0 %5584 }
 0x57b   :  { %v5593_v23 = vsel %vm5592_vm2, %v5585_v37, %v5587_v4  ;;  %v5597_v35 = vsel %vm5592_vm2, -1e+30, %v5585_v37 }
 0x57c   :  { %v5599_v16 = vcombine.low %v5597_v35, %v5593_v23 }
 0x57e   :  { %v5591_v38 = vpop.permute.xlu1 %5590  ;;  %v5589_v34 = vpop.permute.xlu0 %5588  ;;  %v5607_v41 = vrot.slane %v5599_v16, %v11501_v31 }
 0x57f   :  { %v5594_v63 = vsel %vm5592_vm2, %v5587_v4, %v5589_v34  ;;  %v5595_v43 = vsel %vm5592_vm2, %v5589_v34, %v5591_v38 }
 0x580   :  { %v5600_v56 = vcombine.low %v5594_v63, %v5595_v43 }
 0x582   :  { %v5614_v49 = vrot.slane %v5600_v56, %v11501_v31 }
 0x584   :  { %v5615_v12 = vcombine.low %v5607_v41, %v5614_v49 }
 0x586   :  { %v5622_v21 = vrot.slane %v5615_v12, %v11501_v31 }
 0x588   :  { %v5624_v29 = vmax.f32 %v5566_v62, %v5622_v21 }
 0x58a   :  { %v5633_v10 = vrot.slane %v5624_v29, %v14269_v30  ;;  %v5629_v51 = vrot.slane %v5624_v29, %v14267_v0  ;;  %v5641_v50 = vrot.slane %v5624_v29, %v14268_v55  ;;  %v5637_v19 = vrot.slane %v5624_v29, %v14266_v53 }
 0x58c   :  { %5644 = vrot.lane.b32.xlu1 %v5633_v10, %s7858_s22  ;;  %5642 = vrot.lane.b32.xlu0 %v5629_v51, %s7858_s22 }
 0x590   :  { %5648 = vrot.lane.b32.xlu1 %v5641_v50, %s7858_s22  ;;  %5646 = vrot.lane.b32.xlu0 %v5637_v19, %s7858_s22 }
 0x5fe   :  { %v5645_v40 = vpop.permute.xlu1 %5644  ;;  %v5643_v32 = vpop.permute.xlu0 %5642 }
 0x5ff   :  { %v5651_v8 = vsel %vm5650_vm3, %v5643_v32, %v5645_v40  ;;  %v5655_v2 = vsel %vm5650_vm3, -1e+30, %v5643_v32 }
 0x600   :  { %v5657_v5 = vcombine.low %v5655_v2, %v5651_v8  ;;  %v7861_v2 = vmov 0.0  }
 0x601   :  { %57 = vst.msk [vmem:[#allocation2] sm:$0x1] %vm56_vm6, %v7861_v2 }
 0x602   :  { %v5649_v15 = vpop.permute.xlu1 %5648  ;;  %v5647_v18 = vpop.permute.xlu0 %5646  ;;  %v5665_v28 = vrot.slane %v5657_v5, %v11501_v31  ;;  %v7862_v5 = vmov 0  }
 0x603   :  { %v5652_v20 = vsel %vm5650_vm3, %v5645_v40, %v5647_v18  ;;  %v5653_v48 = vsel %vm5650_vm3, %v5647_v18, %v5649_v15  ;;  %7750 = vset.pattern.permute.xlu0 %v7862_v5 }
 0x604   :  { %v5658_v54 = vcombine.low %v5652_v20, %v5653_v48 }
 0x606   :  { %v5672_v25 = vrot.slane %v5658_v54, %v11501_v31 }
 0x608   :  { %v5673_v39 = vcombine.low %v5665_v28, %v5672_v25 }
 0x60a   :  { %v5680_v11 = vrot.slane %v5673_v39, %v11501_v31 }
 0x60c   :  { %v5682_v6 = vmax.f32 %v5624_v29, %v5680_v11 }
 0x60e   :  { %v5691_v52 = vrot.slane %v5682_v6, %v14269_v30  ;;  %v5687_v57 = vrot.slane %v5682_v6, %v14267_v0  ;;  %v5699_v36 = vrot.slane %v5682_v6, %v14268_v55  ;;  %v5695_v7 = vrot.slane %v5682_v6, %v14266_v53 }
 0x610   :  { %5702 = vrot.lane.b32.xlu1 %v5691_v52, %s7859_s23  ;;  %5700 = vrot.lane.b32.xlu0 %v5687_v57, %s7859_s23 }
 0x614   :  { %5706 = vrot.lane.b32.xlu1 %v5699_v36, %s7859_s23  ;;  %5704 = vrot.lane.b32.xlu0 %v5695_v7, %s7859_s23 }
 0x682   :  { %v5703_v46 = vpop.permute.xlu1 %5702  ;;  %v5701_v47 = vpop.permute.xlu0 %5700 }
 0x683   :  { %v5709_v27 = vsel %vm5708_vm4, %v5701_v47, %v5703_v46  ;;  %v5713_v33 = vsel %vm5708_vm4, -1e+30, %v5701_v47 }
 0x684   :  { %v5715_v17 = vcombine.low %v5713_v33, %v5709_v27 }
 0x686   :  { %v5707_v61 = vpop.permute.xlu1 %5706  ;;  %v5705_v24 = vpop.permute.xlu0 %5704  ;;  %v5723_v60 = vrot.slane %v5715_v17, %v11501_v31 }
 0x687   :  { %v5710_v22 = vsel %vm5708_vm4, %v5703_v46, %v5705_v24  ;;  %v5711_v3 = vsel %vm5708_vm4, %v5705_v24, %v5707_v61  ;;  %v11579_v61 = vld [vmem:[#allocation2] sm:$0x1] }
 0x688   :  { %v5716_v45 = vcombine.low %v5710_v22, %v5711_v3 }
 0x68a   :  { %v5730_v62 = vrot.slane %v5716_v45, %v11501_v31 }
 0x68c   :  { %v5731_v9 = vcombine.low %v5723_v60, %v5730_v62 }
 0x68e   :  { %v5738_v26 = vrot.slane %v5731_v9, %v11501_v31 }
 0x690   :  { %v5740_v42 = vmax.f32 %v5682_v6, %v5738_v26 }
 0x692   :  { %v5749_v1 = vrot.slane %v5740_v42, %v14269_v30  ;;  %v5745_v4 = vrot.slane %v5740_v42, %v14267_v0  ;;  %v5757_v37 = vrot.slane %v5740_v42, %v14268_v55  ;;  %v5753_v23 = vrot.slane %v5740_v42, %v14266_v53 }
 0x694   :  { %5760 = vrot.lane.b32.xlu1 %v5749_v1, %s7860_s24  ;;  %5758 = vrot.lane.b32.xlu0 %v5745_v4, %s7860_s24 }
 0x698   :  { %5764 = vrot.lane.b32.xlu1 %v5757_v37, %s7860_s24  ;;  %5762 = vrot.lane.b32.xlu0 %v5753_v23, %s7860_s24 }
 0x706   :  { %v5761_v35 = vpop.permute.xlu1 %5760  ;;  %v5759_v16 = vpop.permute.xlu0 %5758 }
 0x707   :  { %v5767_v38 = vsel %vm5766_vm5, %v5759_v16, %v5761_v35  ;;  %v5771_v34 = vsel %vm5766_vm5, -1e+30, %v5759_v16 }
 0x708   :  { %v5773_v63 = vcombine.low %v5771_v34, %v5767_v38 }
 0x70a   :  { %v5765_v43 = vpop.permute.xlu1 %5764  ;;  %v5763_v56 = vpop.permute.xlu0 %5762  ;;  %v5781_v21 = vrot.slane %v5773_v63, %v11501_v31 }
 0x70b   :  { %v5768_v41 = vsel %vm5766_vm5, %v5761_v35, %v5763_v56  ;;  %v5769_v49 = vsel %vm5766_vm5, %v5763_v56, %v5765_v43  ;;  %v7864_v43 = vmov -1e+30  }
 0x70c   :  { %v5774_v12 = vcombine.low %v5768_v41, %v5769_v49 }
 0x70e   :  { %v5788_v29 = vrot.slane %v5774_v12, %v11501_v31 }
 0x710   :  { %v5789_v10 = vcombine.low %v5781_v21, %v5788_v29 }
 0x712   :  { %v5796_v51 = vrot.slane %v5789_v10, %v11501_v31  ;;  %v5964_v10 = vcombine.low %v7864_v43, %v7864_v43 }
 0x714   :  { %v5798_v50 = vmax.f32 %v5740_v42, %v5796_v51 }
 0x716   :  { %v5807_v19 = vrot.slane %v5798_v50, %v14269_v30  ;;  %v5803_v40 = vrot.slane %v5798_v50, %v14267_v0  ;;  %v5815_v32 = vrot.slane %v5798_v50, %v14268_v55  ;;  %v5811_v8 = vrot.slane %v5798_v50, %v14266_v53 }
 0x718   :  { %5818 = vrot.lane.b32.xlu1 %v5807_v19, %s7854_s15  ;;  %5816 = vrot.lane.b32.xlu0 %v5803_v40, %s7854_s15 }
 0x71c   :  { %5822 = vrot.lane.b32.xlu1 %v5815_v32, %s7854_s15  ;;  %5820 = vrot.lane.b32.xlu0 %v5811_v8, %s7854_s15  ;;  %v5972_v32 = vrot.slane %v5964_v10, %v11501_v31 }
 0x78a   :  { %v5819_v15 = vpop.permute.xlu1 %5818  ;;  %v5817_v18 = vpop.permute.xlu0 %5816 }
 0x78b   :  { %v5825_v20 = vsel %vm5824_vm7, %v5817_v18, %v5819_v15  ;;  %v5829_v48 = vsel %vm5824_vm7, -1e+30, %v5817_v18 }
 0x78c   :  { %v5831_v54 = vcombine.low %v5829_v48, %v5825_v20 }
 0x78e   :  { %v5823_v28 = vpop.permute.xlu1 %5822  ;;  %v5821_v25 = vpop.permute.xlu0 %5820  ;;  %v5839_v52 = vrot.slane %v5831_v54, %v11501_v31 }
 0x78f   :  { %v5826_v39 = vsel %vm5824_vm7, %v5819_v15, %v5821_v25  ;;  %v5827_v11 = vsel %vm5824_vm7, %v5821_v25, %v5823_v28 }
 0x790   :  { %v5832_v6 = vcombine.low %v5826_v39, %v5827_v11 }
 0x792   :  { %v5846_v57 = vrot.slane %v5832_v6, %v11501_v31 }
 0x794   :  { %v5847_v36 = vcombine.low %v5839_v52, %v5846_v57 }
 0x796   :  { %v5854_v7 = vrot.slane %v5847_v36, %v11501_v31 }
 0x798   :  { %v5856_v46 = vmax.f32 %v5798_v50, %v5854_v7 }
 0x79a   :  { %v5865_v47 = vrot.slane %v5856_v46, %v14269_v30  ;;  %v5861_v27 = vrot.slane %v5856_v46, %v14267_v0  ;;  %v5873_v33 = vrot.slane %v5856_v46, %v14268_v55  ;;  %v5869_v17 = vrot.slane %v5856_v46, %v14266_v53 }
 0x79c   :  { %5876 = vrot.lane.b32.xlu1 %v5865_v47, %s7863_s25  ;;  %5874 = vrot.lane.b32.xlu0 %v5861_v27, %s7863_s25 }
 0x7a0   :  { %5880 = vrot.lane.b32.xlu1 %v5873_v33, %s7863_s25  ;;  %5878 = vrot.lane.b32.xlu0 %v5869_v17, %s7863_s25 }
 0x7a4   :  { %5992 = vperm.xlu0 %7750, %v11579_v61  }
 0x80e   :  { %v5877_v24 = vpop.permute.xlu1 %5876  ;;  %v5875_v22 = vpop.permute.xlu0 %5874 }
 0x80f   :  { %v5883_v3 = vsel %vm5882_vm8, %v5875_v22, %v5877_v24  ;;  %v5887_v45 = vsel %vm5882_vm8, -1e+30, %v5875_v22 }
 0x810   :  { %v5889_v60 = vcombine.low %v5887_v45, %v5883_v3  ;;  %v6036_v45 = vceil.f32 %v11579_v61 }
 0x812   :  { %v5881_v62 = vpop.permute.xlu1 %5880  ;;  %v5879_v9 = vpop.permute.xlu0 %5878  ;;  %v5897_v4 = vrot.slane %v5889_v60, %v11501_v31 }
 0x813   :  { %v5884_v26 = vsel %vm5882_vm8, %v5877_v24, %v5879_v9  ;;  %v5885_v42 = vsel %vm5882_vm8, %v5879_v9, %v5881_v62 }
 0x814   :  { %v5890_v1 = vcombine.low %v5884_v26, %v5885_v42 }
 0x816   :  { %v5904_v37 = vrot.slane %v5890_v1, %v11501_v31 }
 0x818   :  { %v5905_v23 = vcombine.low %v5897_v4, %v5904_v37 }
 0x81a   :  { %v5912_v35 = vrot.slane %v5905_v23, %v11501_v31 }
 0x81c   :  { %v5914_v16 = vmax.f32 %v5856_v46, %v5912_v35 }
 0x81e   :  { %v5919_v38 = vrot.slane %v5914_v16, %v14267_v0  ;;  %v5923_v34 = vrot.slane %v5914_v16, %v14269_v30  ;;  %v5927_v63 = vrot.slane %v5914_v16, %v14266_v53 }
 0x820   :  { %v5929_v56 = vcombine.low %v7864_v43, %v5919_v38  ;;  %v5930_v41 = vcombine.low %v5923_v34, %v5927_v63 }
 0x822   :  { %v5937_v49 = vrot.slane %v5929_v56, %v11501_v31  ;;  %v5944_v12 = vrot.slane %v5930_v41, %v11501_v31 }
 0x823   :  { %v5993_v2 = vpop.permute.xlu0 %5992 }
 0x824   :  { %v5945_v21 = vcombine.low %v5937_v49, %v5944_v12  ;;  %v5998_v18 = vrot.slane %v5993_v2, %v14267_v0 }
 0x826   :  { %v5952_v29 = vrot.slane %v5945_v21, %v11501_v31  ;;  %v6001_v25 = vadd.f32 %v5998_v18, %v11507_v14  ;;  %v5999_v39 = vadd.f32 %v5998_v18, %v11503_v58  ;;  %v6000_v46 = vadd.f32 %v5998_v18, %v11505_v44 }
 0x828   :  { %v5954_v51 = vmax.f32 %v5914_v16, %v5952_v29 }
 0x82a   :  { %v5959_v50 = vrot.slane %v5954_v51, %v14267_v0  ;;  %v5963_v19 = vrot.slane %v5954_v51, %v14269_v30 }
 0x82c   :  { %v5965_v40 = vcombine.low %v5959_v50, %v5963_v19 }
 0x82e   :  { %v5979_v8 = vrot.slane %v5965_v40, %v11501_v31 }
 0x830   :  { %v5980_v5 = vcombine.low %v5972_v32, %v5979_v8  ;;  %v14270_v32 = vlaneseq }
 0x832   :  { %v5987_v15 = vrot.slane %v5980_v5, %v11501_v31  ;;  %vm6129_vm15 = vcmp.lt.s32.totalorder %v14270_v32, 512 }
 0x834   :  { %v5989_v20 = vmax.f32 %v5954_v51, %v5987_v15 }
 0x836   :  { %v6015_v48 = vrot.slane %v5989_v20, %v14266_v53  ;;  %v6007_v54 = vrot.slane %v5989_v20, %v14267_v0  ;;  %v6011_v28 = vrot.slane %v5989_v20, %v14269_v30  ;;  %v6019_v52 = vrot.slane %v5989_v20, %v14268_v55 }
 0x838   :  { %v6026_v11 = vsub.f32 %v11507_v14, %v6015_v48  ;;  %v6024_v6 = vsub.f32 %v11503_v58, %v6007_v54  ;;  %v6025_v57 = vsub.f32 %v11505_v44, %v6011_v28  ;;  %v6027_v33 = vsub.f32 %v11511_v13, %v6019_v52  ;;  %v7755_v44 = vld [vmem:[#allocation3] sm:$0xf] }
 0x839   :  { %v6002_v14 = vadd.f32 %v5998_v18, %v11511_v13  ;;  %7753 = vrsqrt.f32 %v7755_v44  ;;  %vm6067_vm9 = vcmp.eq.f32.partialorder %v7755_v44, inf  ;;  %v6070_v9 = vand.u32 2147483648, %v7755_v44 }
 0x83a   :  { %v6030_v36 = vmin.f32 %v6001_v25, %v6026_v11  ;;  %v6028_v7 = vmin.f32 %v5999_v39, %v6024_v6  ;;  %v6029_v17 = vmin.f32 %v6000_v46, %v6025_v57  ;;  %vm6069_vm10 = vcmp.eq.f32.partialorder %v7755_v44, 0.0 }
 0x83b   :  { %v6031_v58 = vmin.f32 %v6002_v14, %v6027_v33 }
 0x83c   :  { %v6034_v47 = vceil.f32 %v6030_v36  ;;  %v6032_v27 = vceil.f32 %v6028_v7  ;;  %v6033_v24 = vceil.f32 %v6029_v17 }
 0x83d   :  { %v6035_v22 = vceil.f32 %v6031_v58 }
 0x83e   :  { %6045 = vrot.lane.b32.xlu0 %v6034_v47, %s7856_s2  ;;  %6041 = vrot.lane.b32.xlu1 %v6032_v27, %s7856_s2 }
 0x842   :  { %6133 = vrot.lane.b32.xlu0 %v6031_v58, %s7856_s2  ;;  %6043 = vrot.lane.b32.xlu1 %v6033_v24, %s7856_s2 }
 0x843   :  { %v7754_v3 = vpop.eup %7753 }
 0x844   :  { %v6066_v60 = vmul.f32 %v7755_v44, %v7754_v3 }
 0x846   :  { %6047 = vrot.lane.b32.xlu1 %v6035_v22, %s7856_s2  ;;  %v6068_v13 = vsel %vm6067_vm9, %v7755_v44, %v6066_v60 }
 0x847   :  { %v6071_v1 = vsel %vm6069_vm10, %v6070_v9, %v6068_v13 }
 0x848   :  { %v6080_v35 = vrot.slane %v6071_v1, %v14269_v30  ;;  %v6076_v63 = vrot.slane %v6071_v1, %v14267_v0  ;;  %v6084_v56 = vrot.slane %v6071_v1, %v14266_v53  ;;  %v6088_v49 = vrot.slane %v6071_v1, %v14268_v55  ;;  %v59_v53 = vld [vmem:[#allocation6] sm:$0xf] }
 0x8b0   :  { %v6046_v62 = vpop.permute.xlu0 %6045  ;;  %v6042_v26 = vpop.permute.xlu1 %6041 }
 0x8b1   :  { %v6056_v42 = vsel %vm5534_vm1, %v6036_v45, %v6042_v26 }
 0x8b2   :  { %v6057_v4 = vsub.f32 %v6032_v27, %v6056_v42 }
 0x8b4   :  { %v6134_v37 = vpop.permute.xlu0 %6133  ;;  %v6044_v23 = vpop.permute.xlu1 %6043  ;;  %vm6061_vm11 = vcmp.ge.f32.partialorder %v6057_v4, 1.0 }
 0x8b5   :  { %6137 = vst.msk [vmem:[#allocation2] sm:$0x1] %vm56_vm6, %v6134_v37  ;;  %v6049_v16 = vsel %vm5534_vm1, %v6042_v26, %v6044_v23  ;;  %v6050_v61 = vsel %vm5534_vm1, %v6044_v23, %v6046_v62  ;;  %v6093_v21 = vsel %vm6061_vm11, %v6076_v63, 0.0 }
 0x8b6   :  { %v6058_v38 = vsub.f32 %v6033_v24, %v6049_v16  ;;  %v6059_v34 = vsub.f32 %v6034_v47, %v6050_v61 }
 0x8b8   :  { %vm6062_vm12 = vcmp.ge.f32.partialorder %v6058_v38, 1.0  ;;  %v6048_v43 = vpop.permute.xlu1 %6047  ;;  %vm6063_vm13 = vcmp.ge.f32.partialorder %v6059_v34, 1.0 }
 0x8b9   :  { %v6094_v41 = vsel %vm6062_vm12, %v6080_v35, 0.0  ;;  %v6051_v12 = vsel %vm5534_vm1, %v6046_v62, %v6048_v43  ;;  %v6095_v10 = vsel %vm6063_vm13, %v6084_v56, 0.0 }
 0x8ba   :  { %v6060_v30 = vsub.f32 %v6035_v22, %v6051_v12  ;;  %v6101_v29 = vcombine.low %v6093_v21, %v6094_v41 }
 0x8bc   :  { %vm6064_vm14 = vcmp.ge.f32.partialorder %v6060_v30, 1.0  ;;  %v6109_v0 = vrot.slane %v6101_v29, %v11501_v31 }
 0x8bd   :  { %v6096_v51 = vsel %vm6064_vm14, %v6088_v49, 0.0 }
 0x8be   :  { %v6102_v50 = vcombine.low %v6095_v10, %v6096_v51 }
 0x8c0   :  { %v6116_v19 = vrot.slane %v6102_v50, %v11501_v31 }
 0x8c2   :  { %v6117_v40 = vcombine.low %v6109_v0, %v6116_v19 }
 0x8c4   :  { %v6124_v55 = vrot.slane %v6117_v40, %v11501_v31 }
 0x8c6   :  { %v6126_v8 = vsel %vm317_vm0, %v6124_v55, %v59_v53 }
 0x8c7   :  { %6131 = vst.msk [vmem:[#allocation9] sm:$0xf] %vm6129_vm15, %v6126_v8 }
 0x8c8   :  { %7833 = shalt.err (!%p7830_p0)
}
 0x8c9   :  { %s7834_s4 = scalar_lea.hbm %s11645_s3, 64 }
 0x8ca   :  { %p7835_p1 = scmp.ne.s32.totalorder %s11645_s3, %s7834_s4  ;;  %p7838_p2 = scmp.lt.u32.totalorder %s7834_s4, %s11645_s3 }
 0x8cc   :  { %p7840_p3 = pnand %p7838_p2, %p7835_p1 }
 0x8ce   :  { %7843 = shalt.err (!%p7840_p3)
}
 0x8cf   :  { %6147 = dma.vmem_to_hbm [thread:$0]  %s6145_s27, 64, %s11645_s3, [#allocation5]  }
 0x8d0   :  { %7848 = dma.done.wait [#allocation5], 64  }
 0x8d1   :  { %7849 = vsyncadd [#allocation5], 4294967232 }
 0x8d2   :  { %6151 = vsyncpa [#allocation4], 1 }
 0x8d3   :  { %6152 = vsyncpa [#allocation7], 1 }
 0x8d4   :  { %6153 = vsyncpa [#allocation5], 1 }

</bundles_post_ra>
